<compile_context>
chip_gen: v5e
topology: v5e:2x2
jax: 0.10.0
libtpu: 0.0.40
codegen_flags: <defaults>
</compile_context>

<pallas_src>
import math

import numpy as np
import jax
import jax.numpy as jnp
from jax.experimental import pallas as pl
from jax.experimental.pallas import tpu as pltpu

H = W = 8
HW = H * W                      # 64 spatial positions
C_IN = 11
C_HID = 64
N_LAYERS = 6
HIDDEN = C_HID * HW             # 4096
EPS = 1e-5
PAD_ROWS = 16                   # zero halo above/below the shift scratch
MIN_PAD_COLS = 128              # lane-dense head output (multiple of 128)

# tap index t = (dy + 1) * 3 + (dx + 1)
TAPS = [(dy, dx) for dy in (-1, 0, 1) for dx in (-1, 0, 1)]


# --------------------------------------------------------------------------
# Fused Pallas kernel
# --------------------------------------------------------------------------
def actor_kernel(x_ref, wconv_ref, masks_ref, gamma_ref, beta_ref,
                 whead_ref, bhead_ref, out_ref, shift_scr, flat_scr):
    """
    x_ref:     (64, 64)     f32  input in (H*W, C) layout, channels padded 11->64
    wconv_ref: (6, 64, 576) bf16 per-layer conv weights, 9 taps concat along N
    masks_ref: (64, 9)      f32  per-tap spatial validity masks
    gamma_ref: (6, 1, 64)   f32  BN scale
    beta_ref:  (6, 1, 64)   f32  BN shift
    whead_ref: (4096, P)    bf16 legal-move columns of the linear weight
    bhead_ref: (1, P)       f32  legal-move bias (padding lanes = -1e30)
    out_ref:   (1, P)       f32  log-probabilities
    shift_scr: (96, 576)    f32  zero-haloed scratch for the 3x3 spatial shifts
    flat_scr:  (1, 4096)    f32  flattened activation for the head GEMV
    """
    inv_hw = 1.0 / float(HW)

    # Zero the scratch once: rows [0, 16) and [80, 96) stay zero for the whole
    # kernel and implement the conv's zero padding for off-board rows.
    shift_scr[...] = jnp.zeros(shift_scr.shape, shift_scr.dtype)

    act = x_ref[...]                                           # (64, 64) f32
    for layer in range(N_LAYERS):
        # One wide MXU matmul per layer: all 9 taps at once (N = 576), bf16
        # operands, f32 accumulation.
        y = jnp.dot(act.astype(jnp.bfloat16), wconv_ref[layer],
                    preferred_element_type=jnp.float32)        # (64, 576) f32
        shift_scr[PAD_ROWS:PAD_ROWS + HW, :] = y

        # 3x3 spatial gather = static row-offset reads from the haloed scratch
        # plus a per-tap edge mask.  No MXU work, no permutation matmuls.
        # The conv bias is intentionally omitted: training-mode BatchNorm
        # subtracts the batch mean right after, so it cancels exactly.
        acc = jnp.zeros((HW, C_HID), jnp.float32)
        for t, (dy, dx) in enumerate(TAPS):
            s = dy * W + dx
            blk = shift_scr[PAD_ROWS + s:PAD_ROWS + s + HW,
                            t * C_HID:(t + 1) * C_HID]         # (64, 64)
            if dx != 0:     # vertical OOB already handled by the zero halo
                blk = blk * masks_ref[:, t:t + 1]
            acc = acc + blk

        # BatchNorm2d, training-mode batch statistics over the 64 positions.
        # Two-pass variance: always >= 0 before the rsqrt.
        mean = jnp.sum(acc, axis=0, keepdims=True) * inv_hw
        d = acc - mean
        var = jnp.sum(d * d, axis=0, keepdims=True) * inv_hw
        act = d * (jax.lax.rsqrt(var + EPS) * gamma_ref[layer]) + beta_ref[layer]

    # Flatten (p, c) -> (1, 4096) through VMEM: row p of act lands in lanes
    # [64p, 64p + 64).  (A value-level (64,64)->(1,4096) reshape is an
    # unsupported relayout on TPU; doing it through a scratch is exact.)
    for p in range(HW):
        flat_scr[0:1, p * C_HID:(p + 1) * C_HID] = act[p:p + 1, :]

    # Legal-move head: one (1, 4096) @ (4096, P) MXU GEMV + fused LogSoftmax.
    logits = jnp.dot(flat_scr[...].astype(jnp.bfloat16), whead_ref[...],
                     preferred_element_type=jnp.float32) + bhead_ref[...]
    m = jnp.max(logits, axis=-1, keepdims=True)
    z = logits - m
    lse = jnp.log(jnp.sum(jnp.exp(z), axis=-1, keepdims=True))
    out_ref[...] = z - lse


def _actor_call(x_pad, wconv, masks, gammas, betas, whead, bhead):
    pad_cols = whead.shape[1]
    vmem_spec = pl.BlockSpec(memory_space=pltpu.MemorySpace.VMEM)
    return pl.pallas_call(
        actor_kernel,
        out_shape=jax.ShapeDtypeStruct((1, pad_cols), jnp.float32),
        in_specs=[vmem_spec] * 7,
        out_specs=pl.BlockSpec(memory_space=pltpu.MemorySpace.VMEM),
        scratch_shapes=[
            pltpu.VMEM((HW + 2 * PAD_ROWS, 9 * C_HID), jnp.float32),
            pltpu.VMEM((1, HIDDEN), jnp.float32),
        ],
    )(x_pad, wconv, masks, gammas, betas, whead, bhead)


# --------------------------------------------------------------------------
# Forward pass (Pallas) and pure-JAX reference
# --------------------------------------------------------------------------
@jax.jit
def actor_forward(x_chw, wconv, masks, gammas, betas, lin_w, lin_b, legal_idx):
    """x_chw: (11, 8, 8) f32 (the torch input before .unsqueeze(0))."""
    n = legal_idx.shape[0]
    pad_cols = max(MIN_PAD_COLS, ((n + 127) // 128) * 128)

    # (C, H, W) -> (H*W, C), pad channels 11 -> 64 (padded weight rows are 0).
    x_hwc = jnp.transpose(x_chw, (1, 2, 0)).reshape(HW, C_IN)
    x_pad = jnp.pad(x_hwc, ((0, 0), (0, C_HID - C_IN)))

    # Head: gather only the legal rows of the (out, in) weight (~n * 16 KiB),
    # reorder from torch's (c*64 + p) flatten to the kernel's (p*64 + c)
    # flatten, pad the lane dim, cast to bf16.
    # TODO(synk): this could be pushed further with an in-kernel DMA gather of
    # the legal rows (memory_space=pl.ANY + scalar prefetch) overlapped with
    # the conv stack; kept as a fused XLA gather/pack here for simplicity.
    rows = lin_w[legal_idx]                                   # (n, 4096)
    whead = jnp.transpose(rows.reshape(n, C_HID, HW), (2, 1, 0))  # (p, c, n)
    whead = whead.reshape(HIDDEN, n)
    whead = jnp.pad(whead, ((0, 0), (0, pad_cols - n))).astype(jnp.bfloat16)
    bhead = jnp.pad(lin_b[legal_idx], (0, pad_cols - n),
                    constant_values=-1e30).reshape(1, pad_cols)
    bhead = bhead.astype(jnp.float32)

    logp = _actor_call(x_pad, wconv, masks, gammas, betas, whead, bhead)
    return logp[0, :n]


def im2col(act_hwc):
    """(H, W, C) -> (H*W, 9*C) 3x3 patches with zero padding=1 (reference)."""
    h, w, c = act_hwc.shape
    xp = jnp.pad(act_hwc, ((1, 1), (1, 1), (0, 0)))
    cols = [xp[dy:dy + h, dx:dx + w, :] for dy in range(3) for dx in range(3)]
    return jnp.concatenate(cols, axis=-1).reshape(h * w, 9 * c)


def ref_forward(x_chw, conv_ws, conv_bs, gammas, betas, lin_w, lin_b, legal_idx):
    """Pure-JAX f32 reference mirroring the PyTorch math (incl. conv bias and
    the full 4096->4096 linear)."""
    act = jnp.transpose(x_chw, (1, 2, 0))                     # (8, 8, 11)
    for layer in range(N_LAYERS):
        w, b = conv_ws[layer], conv_bs[layer]
        cin = w.shape[1]
        w_mat = jnp.transpose(w, (2, 3, 1, 0)).reshape(9 * cin, C_HID)
        y = im2col(act) @ w_mat + b[None, :]
        mean = y.mean(0, keepdims=True)
        var = ((y - mean) ** 2).mean(0, keepdims=True)
        y = (y - mean) / jnp.sqrt(var + EPS) * gammas[layer] + betas[layer]
        act = y.reshape(H, W, C_HID)
    flat = jnp.transpose(act, (2, 0, 1)).reshape(1, HIDDEN)   # torch view order
    z = flat @ lin_w.T + lin_b[None, :]
    return jax.nn.log_softmax(z[0, legal_idx])


# --------------------------------------------------------------------------
# Parameter / constant construction
# --------------------------------------------------------------------------
def make_tap_masks():
    """(64, 9) mask: 1 where the 3x3 tap stays on the board, else 0."""
    m = np.zeros((HW, 9), np.float32)
    for t, (dy, dx) in enumerate(TAPS):
        for h in range(H):
            for w in range(W):
                if 0 <= h + dy < H and 0 <= w + dx < W:
                    m[h * W + w, t] = 1.0
    return jnp.asarray(m)


def pack_conv(conv_ws):
    """torch (Cout, Cin, 3, 3) weights -> (6, 64, 576) bf16, taps concat on N."""
    mats = []
    for w in conv_ws:
        cin = w.shape[1]
        m = jnp.transpose(w, (1, 2, 3, 0)).reshape(cin, 9 * C_HID)  # [ci, t*64+co]
        if cin < C_HID:
            m = jnp.pad(m, ((0, C_HID - cin), (0, 0)))
        mats.append(m)
    return jnp.stack(mats, axis=0).astype(jnp.bfloat16)


def make_params(key):
    conv_ws, conv_bs = [], []
    cin = C_IN
    for _ in range(N_LAYERS):
        key, k1, k2 = jax.random.split(key, 3)
        bound = 1.0 / math.sqrt(cin * 9)
        conv_ws.append(jax.random.uniform(
            k1, (C_HID, cin, 3, 3), jnp.float32, minval=-bound, maxval=bound))
        conv_bs.append(jax.random.uniform(
            k2, (C_HID,), jnp.float32, minval=-bound, maxval=bound))
        cin = C_HID
    key, kg, kb = jax.random.split(key, 3)
    gammas = jax.random.uniform(kg, (N_LAYERS, 1, C_HID), jnp.float32,
                                minval=0.5, maxval=1.5)
    betas = jax.random.uniform(kb, (N_LAYERS, 1, C_HID), jnp.float32,
                               minval=-0.5, maxval=0.5)
    key, k1, k2 = jax.random.split(key, 3)
    bound = 1.0 / math.sqrt(HIDDEN)
    lin_w = jax.random.uniform(k1, (HIDDEN, HIDDEN), jnp.float32,
                               minval=-bound, maxval=bound)   # torch (out, in)
    lin_b = jax.random.uniform(k2, (HIDDEN,), jnp.float32,
                               minval=-bound, maxval=bound)
    return conv_ws, conv_bs, gammas, betas, lin_w, lin_b, key


def conv_str_to_index(move: str) -> int:
    return (8 ** 3 * (ord(move[0]) - ord("a"))
            + 8 ** 2 * (ord(move[1]) - ord("1"))
            + 8 * (ord(move[2]) - ord("a"))
            + (ord(move[3]) - ord("1")))


if __name__ == "__main__":
    key = jax.random.PRNGKey(0)
    conv_ws, conv_bs, gammas, betas, lin_w, lin_b, key = make_params(key)
    wconv = pack_conv(conv_ws)
    masks = make_tap_masks()

    key, kx = jax.random.split(key)
    x = jax.random.normal(kx, (C_IN, H, W), jnp.float32)      # torch (C, H, W)

    # Synthetic "board": the 20 legal moves of the starting chess position.
    # TODO(synk): the real module parses moves from an external `chessboard`
    # object on the host; here the move strings are fixed in-script.
    # TODO(synk): BatchNorm is implemented in training mode (batch statistics),
    # matching the module's forward; eval-mode running stats are not modeled.
    legal_moves = [
        "a2a3", "a2a4", "b2b3", "b2b4", "c2c3", "c2c4", "d2d3", "d2d4",
        "e2e3", "e2e4", "f2f3", "f2f4", "g2g3", "g2g4", "h2h3", "h2h4",
        "b1a3", "b1c3", "g1f3", "g1h3",
    ]
    legal_idx = jnp.array([conv_str_to_index(m) for m in legal_moves], jnp.int32)

    out = jax.block_until_ready(
        actor_forward(x, wconv, masks, gammas, betas, lin_w, lin_b, legal_idx))

    ref = jax.block_until_ready(
        ref_forward(x, conv_ws, conv_bs, gammas, betas, lin_w, lin_b, legal_idx))

    assert out.shape == (len(legal_moves),)
    err = float(jnp.max(jnp.abs(out - ref)))
    assert err < 5e-2, f"max abs err vs f32 reference = {err}"
    print("KERNEL_OK")
</pallas_src>

<mosaic_0001>
module attributes {stable_mosaic.version = 11 : i64} {
  func.func @actor_kernel(%arg0: memref<64x64xf32, #tpu.memory_space<vmem>>, %arg1: memref<6x64x576xbf16, #tpu.memory_space<vmem>>, %arg2: memref<64x9xf32, #tpu.memory_space<vmem>>, %arg3: memref<6x1x64xf32, #tpu.memory_space<vmem>>, %arg4: memref<6x1x64xf32, #tpu.memory_space<vmem>>, %arg5: memref<4096x128xbf16, #tpu.memory_space<vmem>>, %arg6: memref<1x128xf32, #tpu.memory_space<vmem>>, %arg7: memref<1x128xf32, #tpu.memory_space<vmem>>, %arg8: memref<96x576xf32, #tpu.memory_space<vmem>>, %arg9: memref<1x4096xf32, #tpu.memory_space<vmem>>) attributes {dimension_semantics = [], scalar_prefetch = 0 : i64, scratch_operands = 2 : i64, tpu.core_type = #tpu.core_type<tc>} {
    %cst = arith.constant 0.000000e+00 : f32
    %0 = vector.broadcast %cst : f32 to vector<96x576xf32>
    %c0 = arith.constant 0 : index
    %c0_0 = arith.constant 0 : index
    %1 = vector.load %arg8[%c0, %c0_0] : memref<96x576xf32, #tpu.memory_space<vmem>>, vector<96x576xf32>
    tpu.vector_store %arg8[%c0, %c0_0], %0 {strides = array<i32>} : memref<96x576xf32, #tpu.memory_space<vmem>>, vector<96x576xf32>,
    %c0_1 = arith.constant 0 : index
    %c0_2 = arith.constant 0 : index
    %2 = vector.load %arg0[%c0_1, %c0_2] : memref<64x64xf32, #tpu.memory_space<vmem>>, vector<64x64xf32>
    %3 = arith.truncf %2 : vector<64x64xf32> to vector<64x64xbf16>
    %c0_3 = arith.constant 0 : index
    %c0_4 = arith.constant 0 : index
    %c0_5 = arith.constant 0 : index
    %4 = vector.load %arg1[%c0_3, %c0_4, %c0_5] : memref<6x64x576xbf16, #tpu.memory_space<vmem>>, vector<1x64x576xbf16>
    %5 = vector.shape_cast %4 : vector<1x64x576xbf16> to vector<64x576xbf16>
    %cst_6 = arith.constant dense<0.000000e+00> : vector<64x576xf32>
    %6 = tpu.matmul %3, %5, %cst_6 {dimension_numbers = #tpu.dot_dimension_numbers<[1], [0], [0], [1], [0, 0, 1, 1], [], []>} : vector<64x64xbf16>, vector<64x576xbf16>, vector<64x576xf32> -> vector<64x576xf32>
    %c16 = arith.constant 16 : index
    %c0_7 = arith.constant 0 : index
    %7 = vector.load %arg8[%c16, %c0_7] : memref<96x576xf32, #tpu.memory_space<vmem>>, vector<64x576xf32>
    tpu.vector_store %arg8[%c16, %c0_7], %6 {strides = array<i32>} : memref<96x576xf32, #tpu.memory_space<vmem>>, vector<64x576xf32>,
    %cst_8 = arith.constant 0.000000e+00 : f32
    %8 = vector.broadcast %cst_8 : f32 to vector<64x64xf32>
    %c7 = arith.constant 7 : index
    %c0_9 = arith.constant 0 : index
    %9 = vector.load %arg8[%c7, %c0_9] : memref<96x576xf32, #tpu.memory_space<vmem>>, vector<64x64xf32>
    %c0_10 = arith.constant 0 : index
    %c0_11 = arith.constant 0 : index
    %10 = vector.load %arg2[%c0_10, %c0_11] : memref<64x9xf32, #tpu.memory_space<vmem>>, vector<64x1xf32>
    %11 = vector.broadcast %10 : vector<64x1xf32> to vector<64x64xf32>
    %12 = arith.mulf %9, %11 : vector<64x64xf32>
    %13 = arith.addf %8, %12 : vector<64x64xf32>
    %c8 = arith.constant 8 : index
    %c64 = arith.constant 64 : index
    %14 = vector.load %arg8[%c8, %c64] : memref<96x576xf32, #tpu.memory_space<vmem>>, vector<64x64xf32>
    %15 = arith.addf %13, %14 : vector<64x64xf32>
    %c9 = arith.constant 9 : index
    %c128 = arith.constant 128 : index
    %16 = vector.load %arg8[%c9, %c128] : memref<96x576xf32, #tpu.memory_space<vmem>>, vector<64x64xf32>
    %c0_12 = arith.constant 0 : index
    %c2 = arith.constant 2 : index
    %17 = vector.load %arg2[%c0_12, %c2] : memref<64x9xf32, #tpu.memory_space<vmem>>, vector<64x1xf32>
    %18 = vector.broadcast %17 : vector<64x1xf32> to vector<64x64xf32>
    %19 = arith.mulf %16, %18 : vector<64x64xf32>
    %20 = arith.addf %15, %19 : vector<64x64xf32>
    %c15 = arith.constant 15 : index
    %c192 = arith.constant 192 : index
    %21 = vector.load %arg8[%c15, %c192] : memref<96x576xf32, #tpu.memory_space<vmem>>, vector<64x64xf32>
    %c0_13 = arith.constant 0 : index
    %c3 = arith.constant 3 : index
    %22 = vector.load %arg2[%c0_13, %c3] : memref<64x9xf32, #tpu.memory_space<vmem>>, vector<64x1xf32>
    %23 = vector.broadcast %22 : vector<64x1xf32> to vector<64x64xf32>
    %24 = arith.mulf %21, %23 : vector<64x64xf32>
    %25 = arith.addf %20, %24 : vector<64x64xf32>
    %c16_14 = arith.constant 16 : index
    %c256 = arith.constant 256 : index
    %26 = vector.load %arg8[%c16_14, %c256] : memref<96x576xf32, #tpu.memory_space<vmem>>, vector<64x64xf32>
    %27 = arith.addf %25, %26 : vector<64x64xf32>
    %c17 = arith.constant 17 : index
    %c320 = arith.constant 320 : index
    %28 = vector.load %arg8[%c17, %c320] : memref<96x576xf32, #tpu.memory_space<vmem>>, vector<64x64xf32>
    %c0_15 = arith.constant 0 : index
    %c5 = arith.constant 5 : index
    %29 = vector.load %arg2[%c0_15, %c5] : memref<64x9xf32, #tpu.memory_space<vmem>>, vector<64x1xf32>
    %30 = vector.broadcast %29 : vector<64x1xf32> to vector<64x64xf32>
    %31 = arith.mulf %28, %30 : vector<64x64xf32>
    %32 = arith.addf %27, %31 : vector<64x64xf32>
    %c23 = arith.constant 23 : index
    %c384 = arith.constant 384 : index
    %33 = vector.load %arg8[%c23, %c384] : memref<96x576xf32, #tpu.memory_space<vmem>>, vector<64x64xf32>
    %c0_16 = arith.constant 0 : index
    %c6 = arith.constant 6 : index
    %34 = vector.load %arg2[%c0_16, %c6] : memref<64x9xf32, #tpu.memory_space<vmem>>, vector<64x1xf32>
    %35 = vector.broadcast %34 : vector<64x1xf32> to vector<64x64xf32>
    %36 = arith.mulf %33, %35 : vector<64x64xf32>
    %37 = arith.addf %32, %36 : vector<64x64xf32>
    %c24 = arith.constant 24 : index
    %c448 = arith.constant 448 : index
    %38 = vector.load %arg8[%c24, %c448] : memref<96x576xf32, #tpu.memory_space<vmem>>, vector<64x64xf32>
    %39 = arith.addf %37, %38 : vector<64x64xf32>
    %c25 = arith.constant 25 : index
    %c512 = arith.constant 512 : index
    %40 = vector.load %arg8[%c25, %c512] : memref<96x576xf32, #tpu.memory_space<vmem>>, vector<64x64xf32>
    %c0_17 = arith.constant 0 : index
    %c8_18 = arith.constant 8 : index
    %41 = vector.load %arg2[%c0_17, %c8_18] : memref<64x9xf32, #tpu.memory_space<vmem>>, vector<64x1xf32>
    %42 = vector.broadcast %41 : vector<64x1xf32> to vector<64x64xf32>
    %43 = arith.mulf %40, %42 : vector<64x64xf32>
    %44 = arith.addf %39, %43 : vector<64x64xf32>
    %cst_19 = arith.constant dense<0.000000e+00> : vector<64xf32>
    %45 = vector.multi_reduction <add>, %44, %cst_19 [0] : vector<64x64xf32> to vector<64xf32>
    %46 = vector.shape_cast %45 : vector<64xf32> to vector<1x64xf32>
    %cst_20 = arith.constant 1.562500e-02 : f32
    %47 = vector.broadcast %cst_20 : f32 to vector<1x64xf32>
    %48 = arith.mulf %46, %47 : vector<1x64xf32>
    %49 = vector.broadcast %48 : vector<1x64xf32> to vector<64x64xf32>
    %50 = arith.subf %44, %49 : vector<64x64xf32>
    %51 = arith.mulf %50, %50 : vector<64x64xf32>
    %cst_21 = arith.constant dense<0.000000e+00> : vector<64xf32>
    %52 = vector.multi_reduction <add>, %51, %cst_21 [0] : vector<64x64xf32> to vector<64xf32>
    %53 = vector.shape_cast %52 : vector<64xf32> to vector<1x64xf32>
    %cst_22 = arith.constant 1.562500e-02 : f32
    %54 = vector.broadcast %cst_22 : f32 to vector<1x64xf32>
    %55 = arith.mulf %53, %54 : vector<1x64xf32>
    %cst_23 = arith.constant 9.99999974E-6 : f32
    %56 = vector.broadcast %cst_23 : f32 to vector<1x64xf32>
    %57 = arith.addf %55, %56 : vector<1x64xf32>
    %58 = math.rsqrt %57 : vector<1x64xf32>
    %c0_24 = arith.constant 0 : index
    %c0_25 = arith.constant 0 : index
    %c0_26 = arith.constant 0 : index
    %59 = vector.load %arg3[%c0_24, %c0_25, %c0_26] : memref<6x1x64xf32, #tpu.memory_space<vmem>>, vector<1x1x64xf32>
    %60 = vector.shape_cast %59 : vector<1x1x64xf32> to vector<1x64xf32>
    %61 = arith.mulf %58, %60 : vector<1x64xf32>
    %62 = vector.broadcast %61 : vector<1x64xf32> to vector<64x64xf32>
    %63 = arith.mulf %50, %62 : vector<64x64xf32>
    %c0_27 = arith.constant 0 : index
    %c0_28 = arith.constant 0 : index
    %c0_29 = arith.constant 0 : index
    %64 = vector.load %arg4[%c0_27, %c0_28, %c0_29] : memref<6x1x64xf32, #tpu.memory_space<vmem>>, vector<1x1x64xf32>
    %65 = vector.shape_cast %64 : vector<1x1x64xf32> to vector<1x64xf32>
    %66 = vector.broadcast %65 : vector<1x64xf32> to vector<64x64xf32>
    %67 = arith.addf %63, %66 : vector<64x64xf32>
    %68 = arith.truncf %67 : vector<64x64xf32> to vector<64x64xbf16>
    %c1 = arith.constant 1 : index
    %c0_30 = arith.constant 0 : index
    %c0_31 = arith.constant 0 : index
    %69 = vector.load %arg1[%c1, %c0_30, %c0_31] : memref<6x64x576xbf16, #tpu.memory_space<vmem>>, vector<1x64x576xbf16>
    %70 = vector.shape_cast %69 : vector<1x64x576xbf16> to vector<64x576xbf16>
    %cst_32 = arith.constant dense<0.000000e+00> : vector<64x576xf32>
    %71 = tpu.matmul %68, %70, %cst_32 {dimension_numbers = #tpu.dot_dimension_numbers<[1], [0], [0], [1], [0, 0, 1, 1], [], []>} : vector<64x64xbf16>, vector<64x576xbf16>, vector<64x576xf32> -> vector<64x576xf32>
    %c16_33 = arith.constant 16 : index
    %c0_34 = arith.constant 0 : index
    %72 = vector.load %arg8[%c16_33, %c0_34] : memref<96x576xf32, #tpu.memory_space<vmem>>, vector<64x576xf32>
    tpu.vector_store %arg8[%c16_33, %c0_34], %71 {strides = array<i32>} : memref<96x576xf32, #tpu.memory_space<vmem>>, vector<64x576xf32>,
    %cst_35 = arith.constant 0.000000e+00 : f32
    %73 = vector.broadcast %cst_35 : f32 to vector<64x64xf32>
    %c7_36 = arith.constant 7 : index
    %c0_37 = arith.constant 0 : index
    %74 = vector.load %arg8[%c7_36, %c0_37] : memref<96x576xf32, #tpu.memory_space<vmem>>, vector<64x64xf32>
    %c0_38 = arith.constant 0 : index
    %c0_39 = arith.constant 0 : index
    %75 = vector.load %arg2[%c0_38, %c0_39] : memref<64x9xf32, #tpu.memory_space<vmem>>, vector<64x1xf32>
    %76 = vector.broadcast %75 : vector<64x1xf32> to vector<64x64xf32>
    %77 = arith.mulf %74, %76 : vector<64x64xf32>
    %78 = arith.addf %73, %77 : vector<64x64xf32>
    %c8_40 = arith.constant 8 : index
    %c64_41 = arith.constant 64 : index
    %79 = vector.load %arg8[%c8_40, %c64_41] : memref<96x576xf32, #tpu.memory_space<vmem>>, vector<64x64xf32>
    %80 = arith.addf %78, %79 : vector<64x64xf32>
    %c9_42 = arith.constant 9 : index
    %c128_43 = arith.constant 128 : index
    %81 = vector.load %arg8[%c9_42, %c128_43] : memref<96x576xf32, #tpu.memory_space<vmem>>, vector<64x64xf32>
    %c0_44 = arith.constant 0 : index
    %c2_45 = arith.constant 2 : index
    %82 = vector.load %arg2[%c0_44, %c2_45] : memref<64x9xf32, #tpu.memory_space<vmem>>, vector<64x1xf32>
    %83 = vector.broadcast %82 : vector<64x1xf32> to vector<64x64xf32>
    %84 = arith.mulf %81, %83 : vector<64x64xf32>
    %85 = arith.addf %80, %84 : vector<64x64xf32>
    %c15_46 = arith.constant 15 : index
    %c192_47 = arith.constant 192 : index
    %86 = vector.load %arg8[%c15_46, %c192_47] : memref<96x576xf32, #tpu.memory_space<vmem>>, vector<64x64xf32>
    %c0_48 = arith.constant 0 : index
    %c3_49 = arith.constant 3 : index
    %87 = vector.load %arg2[%c0_48, %c3_49] : memref<64x9xf32, #tpu.memory_space<vmem>>, vector<64x1xf32>
    %88 = vector.broadcast %87 : vector<64x1xf32> to vector<64x64xf32>
    %89 = arith.mulf %86, %88 : vector<64x64xf32>
    %90 = arith.addf %85, %89 : vector<64x64xf32>
    %c16_50 = arith.constant 16 : index
    %c256_51 = arith.constant 256 : index
    %91 = vector.load %arg8[%c16_50, %c256_51] : memref<96x576xf32, #tpu.memory_space<vmem>>, vector<64x64xf32>
    %92 = arith.addf %90, %91 : vector<64x64xf32>
    %c17_52 = arith.constant 17 : index
    %c320_53 = arith.constant 320 : index
    %93 = vector.load %arg8[%c17_52, %c320_53] : memref<96x576xf32, #tpu.memory_space<vmem>>, vector<64x64xf32>
    %c0_54 = arith.constant 0 : index
    %c5_55 = arith.constant 5 : index
    %94 = vector.load %arg2[%c0_54, %c5_55] : memref<64x9xf32, #tpu.memory_space<vmem>>, vector<64x1xf32>
    %95 = vector.broadcast %94 : vector<64x1xf32> to vector<64x64xf32>
    %96 = arith.mulf %93, %95 : vector<64x64xf32>
    %97 = arith.addf %92, %96 : vector<64x64xf32>
    %c23_56 = arith.constant 23 : index
    %c384_57 = arith.constant 384 : index
    %98 = vector.load %arg8[%c23_56, %c384_57] : memref<96x576xf32, #tpu.memory_space<vmem>>, vector<64x64xf32>
    %c0_58 = arith.constant 0 : index
    %c6_59 = arith.constant 6 : index
    %99 = vector.load %arg2[%c0_58, %c6_59] : memref<64x9xf32, #tpu.memory_space<vmem>>, vector<64x1xf32>
    %100 = vector.broadcast %99 : vector<64x1xf32> to vector<64x64xf32>
    %101 = arith.mulf %98, %100 : vector<64x64xf32>
    %102 = arith.addf %97, %101 : vector<64x64xf32>
    %c24_60 = arith.constant 24 : index
    %c448_61 = arith.constant 448 : index
    %103 = vector.load %arg8[%c24_60, %c448_61] : memref<96x576xf32, #tpu.memory_space<vmem>>, vector<64x64xf32>
    %104 = arith.addf %102, %103 : vector<64x64xf32>
    %c25_62 = arith.constant 25 : index
    %c512_63 = arith.constant 512 : index
    %105 = vector.load %arg8[%c25_62, %c512_63] : memref<96x576xf32, #tpu.memory_space<vmem>>, vector<64x64xf32>
    %c0_64 = arith.constant 0 : index
    %c8_65 = arith.constant 8 : index
    %106 = vector.load %arg2[%c0_64, %c8_65] : memref<64x9xf32, #tpu.memory_space<vmem>>, vector<64x1xf32>
    %107 = vector.broadcast %106 : vector<64x1xf32> to vector<64x64xf32>
    %108 = arith.mulf %105, %107 : vector<64x64xf32>
    %109 = arith.addf %104, %108 : vector<64x64xf32>
    %cst_66 = arith.constant dense<0.000000e+00> : vector<64xf32>
    %110 = vector.multi_reduction <add>, %109, %cst_66 [0] : vector<64x64xf32> to vector<64xf32>
    %111 = vector.shape_cast %110 : vector<64xf32> to vector<1x64xf32>
    %cst_67 = arith.constant 1.562500e-02 : f32
    %112 = vector.broadcast %cst_67 : f32 to vector<1x64xf32>
    %113 = arith.mulf %111, %112 : vector<1x64xf32>
    %114 = vector.broadcast %113 : vector<1x64xf32> to vector<64x64xf32>
    %115 = arith.subf %109, %114 : vector<64x64xf32>
    %116 = arith.mulf %115, %115 : vector<64x64xf32>
    %cst_68 = arith.constant dense<0.000000e+00> : vector<64xf32>
    %117 = vector.multi_reduction <add>, %116, %cst_68 [0] : vector<64x64xf32> to vector<64xf32>
    %118 = vector.shape_cast %117 : vector<64xf32> to vector<1x64xf32>
    %cst_69 = arith.constant 1.562500e-02 : f32
    %119 = vector.broadcast %cst_69 : f32 to vector<1x64xf32>
    %120 = arith.mulf %118, %119 : vector<1x64xf32>
    %cst_70 = arith.constant 9.99999974E-6 : f32
    %121 = vector.broadcast %cst_70 : f32 to vector<1x64xf32>
    %122 = arith.addf %120, %121 : vector<1x64xf32>
    %123 = math.rsqrt %122 : vector<1x64xf32>
    %c1_71 = arith.constant 1 : index
    %c0_72 = arith.constant 0 : index
    %c0_73 = arith.constant 0 : index
    %124 = vector.load %arg3[%c1_71, %c0_72, %c0_73] : memref<6x1x64xf32, #tpu.memory_space<vmem>>, vector<1x1x64xf32>
    %125 = vector.shape_cast %124 : vector<1x1x64xf32> to vector<1x64xf32>
    %126 = arith.mulf %123, %125 : vector<1x64xf32>
    %127 = vector.broadcast %126 : vector<1x64xf32> to vector<64x64xf32>
    %128 = arith.mulf %115, %127 : vector<64x64xf32>
    %c1_74 = arith.constant 1 : index
    %c0_75 = arith.constant 0 : index
    %c0_76 = arith.constant 0 : index
    %129 = vector.load %arg4[%c1_74, %c0_75, %c0_76] : memref<6x1x64xf32, #tpu.memory_space<vmem>>, vector<1x1x64xf32>
    %130 = vector.shape_cast %129 : vector<1x1x64xf32> to vector<1x64xf32>
    %131 = vector.broadcast %130 : vector<1x64xf32> to vector<64x64xf32>
    %132 = arith.addf %128, %131 : vector<64x64xf32>
    %133 = arith.truncf %132 : vector<64x64xf32> to vector<64x64xbf16>
    %c2_77 = arith.constant 2 : index
    %c0_78 = arith.constant 0 : index
    %c0_79 = arith.constant 0 : index
    %134 = vector.load %arg1[%c2_77, %c0_78, %c0_79] : memref<6x64x576xbf16, #tpu.memory_space<vmem>>, vector<1x64x576xbf16>
    %135 = vector.shape_cast %134 : vector<1x64x576xbf16> to vector<64x576xbf16>
    %cst_80 = arith.constant dense<0.000000e+00> : vector<64x576xf32>
    %136 = tpu.matmul %133, %135, %cst_80 {dimension_numbers = #tpu.dot_dimension_numbers<[1], [0], [0], [1], [0, 0, 1, 1], [], []>} : vector<64x64xbf16>, vector<64x576xbf16>, vector<64x576xf32> -> vector<64x576xf32>
    %c16_81 = arith.constant 16 : index
    %c0_82 = arith.constant 0 : index
    %137 = vector.load %arg8[%c16_81, %c0_82] : memref<96x576xf32, #tpu.memory_space<vmem>>, vector<64x576xf32>
    tpu.vector_store %arg8[%c16_81, %c0_82], %136 {strides = array<i32>} : memref<96x576xf32, #tpu.memory_space<vmem>>, vector<64x576xf32>,
    %cst_83 = arith.constant 0.000000e+00 : f32
    %138 = vector.broadcast %cst_83 : f32 to vector<64x64xf32>
    %c7_84 = arith.constant 7 : index
    %c0_85 = arith.constant 0 : index
    %139 = vector.load %arg8[%c7_84, %c0_85] : memref<96x576xf32, #tpu.memory_space<vmem>>, vector<64x64xf32>
    %c0_86 = arith.constant 0 : index
    %c0_87 = arith.constant 0 : index
    %140 = vector.load %arg2[%c0_86, %c0_87] : memref<64x9xf32, #tpu.memory_space<vmem>>, vector<64x1xf32>
    %141 = vector.broadcast %140 : vector<64x1xf32> to vector<64x64xf32>
    %142 = arith.mulf %139, %141 : vector<64x64xf32>
    %143 = arith.addf %138, %142 : vector<64x64xf32>
    %c8_88 = arith.constant 8 : index
    %c64_89 = arith.constant 64 : index
    %144 = vector.load %arg8[%c8_88, %c64_89] : memref<96x576xf32, #tpu.memory_space<vmem>>, vector<64x64xf32>
    %145 = arith.addf %143, %144 : vector<64x64xf32>
    %c9_90 = arith.constant 9 : index
    %c128_91 = arith.constant 128 : index
    %146 = vector.load %arg8[%c9_90, %c128_91] : memref<96x576xf32, #tpu.memory_space<vmem>>, vector<64x64xf32>
    %c0_92 = arith.constant 0 : index
    %c2_93 = arith.constant 2 : index
    %147 = vector.load %arg2[%c0_92, %c2_93] : memref<64x9xf32, #tpu.memory_space<vmem>>, vector<64x1xf32>
    %148 = vector.broadcast %147 : vector<64x1xf32> to vector<64x64xf32>
    %149 = arith.mulf %146, %148 : vector<64x64xf32>
    %150 = arith.addf %145, %149 : vector<64x64xf32>
    %c15_94 = arith.constant 15 : index
    %c192_95 = arith.constant 192 : index
    %151 = vector.load %arg8[%c15_94, %c192_95] : memref<96x576xf32, #tpu.memory_space<vmem>>, vector<64x64xf32>
    %c0_96 = arith.constant 0 : index
    %c3_97 = arith.constant 3 : index
    %152 = vector.load %arg2[%c0_96, %c3_97] : memref<64x9xf32, #tpu.memory_space<vmem>>, vector<64x1xf32>
    %153 = vector.broadcast %152 : vector<64x1xf32> to vector<64x64xf32>
    %154 = arith.mulf %151, %153 : vector<64x64xf32>
    %155 = arith.addf %150, %154 : vector<64x64xf32>
    %c16_98 = arith.constant 16 : index
    %c256_99 = arith.constant 256 : index
    %156 = vector.load %arg8[%c16_98, %c256_99] : memref<96x576xf32, #tpu.memory_space<vmem>>, vector<64x64xf32>
    %157 = arith.addf %155, %156 : vector<64x64xf32>
    %c17_100 = arith.constant 17 : index
    %c320_101 = arith.constant 320 : index
    %158 = vector.load %arg8[%c17_100, %c320_101] : memref<96x576xf32, #tpu.memory_space<vmem>>, vector<64x64xf32>
    %c0_102 = arith.constant 0 : index
    %c5_103 = arith.constant 5 : index
    %159 = vector.load %arg2[%c0_102, %c5_103] : memref<64x9xf32, #tpu.memory_space<vmem>>, vector<64x1xf32>
    %160 = vector.broadcast %159 : vector<64x1xf32> to vector<64x64xf32>
    %161 = arith.mulf %158, %160 : vector<64x64xf32>
    %162 = arith.addf %157, %161 : vector<64x64xf32>
    %c23_104 = arith.constant 23 : index
    %c384_105 = arith.constant 384 : index
    %163 = vector.load %arg8[%c23_104, %c384_105] : memref<96x576xf32, #tpu.memory_space<vmem>>, vector<64x64xf32>
    %c0_106 = arith.constant 0 : index
    %c6_107 = arith.constant 6 : index
    %164 = vector.load %arg2[%c0_106, %c6_107] : memref<64x9xf32, #tpu.memory_space<vmem>>, vector<64x1xf32>
    %165 = vector.broadcast %164 : vector<64x1xf32> to vector<64x64xf32>
    %166 = arith.mulf %163, %165 : vector<64x64xf32>
    %167 = arith.addf %162, %166 : vector<64x64xf32>
    %c24_108 = arith.constant 24 : index
    %c448_109 = arith.constant 448 : index
    %168 = vector.load %arg8[%c24_108, %c448_109] : memref<96x576xf32, #tpu.memory_space<vmem>>, vector<64x64xf32>
    %169 = arith.addf %167, %168 : vector<64x64xf32>
    %c25_110 = arith.constant 25 : index
    %c512_111 = arith.constant 512 : index
    %170 = vector.load %arg8[%c25_110, %c512_111] : memref<96x576xf32, #tpu.memory_space<vmem>>, vector<64x64xf32>
    %c0_112 = arith.constant 0 : index
    %c8_113 = arith.constant 8 : index
    %171 = vector.load %arg2[%c0_112, %c8_113] : memref<64x9xf32, #tpu.memory_space<vmem>>, vector<64x1xf32>
    %172 = vector.broadcast %171 : vector<64x1xf32> to vector<64x64xf32>
    %173 = arith.mulf %170, %172 : vector<64x64xf32>
    %174 = arith.addf %169, %173 : vector<64x64xf32>
    %cst_114 = arith.constant dense<0.000000e+00> : vector<64xf32>
    %175 = vector.multi_reduction <add>, %174, %cst_114 [0] : vector<64x64xf32> to vector<64xf32>
    %176 = vector.shape_cast %175 : vector<64xf32> to vector<1x64xf32>
    %cst_115 = arith.constant 1.562500e-02 : f32
    %177 = vector.broadcast %cst_115 : f32 to vector<1x64xf32>
    %178 = arith.mulf %176, %177 : vector<1x64xf32>
    %179 = vector.broadcast %178 : vector<1x64xf32> to vector<64x64xf32>
    %180 = arith.subf %174, %179 : vector<64x64xf32>
    %181 = arith.mulf %180, %180 : vector<64x64xf32>
    %cst_116 = arith.constant dense<0.000000e+00> : vector<64xf32>
    %182 = vector.multi_reduction <add>, %181, %cst_116 [0] : vector<64x64xf32> to vector<64xf32>
    %183 = vector.shape_cast %182 : vector<64xf32> to vector<1x64xf32>
    %cst_117 = arith.constant 1.562500e-02 : f32
    %184 = vector.broadcast %cst_117 : f32 to vector<1x64xf32>
    %185 = arith.mulf %183, %184 : vector<1x64xf32>
    %cst_118 = arith.constant 9.99999974E-6 : f32
    %186 = vector.broadcast %cst_118 : f32 to vector<1x64xf32>
    %187 = arith.addf %185, %186 : vector<1x64xf32>
    %188 = math.rsqrt %187 : vector<1x64xf32>
    %c2_119 = arith.constant 2 : index
    %c0_120 = arith.constant 0 : index
    %c0_121 = arith.constant 0 : index
    %189 = vector.load %arg3[%c2_119, %c0_120, %c0_121] : memref<6x1x64xf32, #tpu.memory_space<vmem>>, vector<1x1x64xf32>
    %190 = vector.shape_cast %189 : vector<1x1x64xf32> to vector<1x64xf32>
    %191 = arith.mulf %188, %190 : vector<1x64xf32>
    %192 = vector.broadcast %191 : vector<1x64xf32> to vector<64x64xf32>
    %193 = arith.mulf %180, %192 : vector<64x64xf32>
    %c2_122 = arith.constant 2 : index
    %c0_123 = arith.constant 0 : index
    %c0_124 = arith.constant 0 : index
    %194 = vector.load %arg4[%c2_122, %c0_123, %c0_124] : memref<6x1x64xf32, #tpu.memory_space<vmem>>, vector<1x1x64xf32>
    %195 = vector.shape_cast %194 : vector<1x1x64xf32> to vector<1x64xf32>
    %196 = vector.broadcast %195 : vector<1x64xf32> to vector<64x64xf32>
    %197 = arith.addf %193, %196 : vector<64x64xf32>
    %198 = arith.truncf %197 : vector<64x64xf32> to vector<64x64xbf16>
    %c3_125 = arith.constant 3 : index
    %c0_126 = arith.constant 0 : index
    %c0_127 = arith.constant 0 : index
    %199 = vector.load %arg1[%c3_125, %c0_126, %c0_127] : memref<6x64x576xbf16, #tpu.memory_space<vmem>>, vector<1x64x576xbf16>
    %200 = vector.shape_cast %199 : vector<1x64x576xbf16> to vector<64x576xbf16>
    %cst_128 = arith.constant dense<0.000000e+00> : vector<64x576xf32>
    %201 = tpu.matmul %198, %200, %cst_128 {dimension_numbers = #tpu.dot_dimension_numbers<[1], [0], [0], [1], [0, 0, 1, 1], [], []>} : vector<64x64xbf16>, vector<64x576xbf16>, vector<64x576xf32> -> vector<64x576xf32>
    %c16_129 = arith.constant 16 : index
    %c0_130 = arith.constant 0 : index
    %202 = vector.load %arg8[%c16_129, %c0_130] : memref<96x576xf32, #tpu.memory_space<vmem>>, vector<64x576xf32>
    tpu.vector_store %arg8[%c16_129, %c0_130], %201 {strides = array<i32>} : memref<96x576xf32, #tpu.memory_space<vmem>>, vector<64x576xf32>,
    %cst_131 = arith.constant 0.000000e+00 : f32
    %203 = vector.broadcast %cst_131 : f32 to vector<64x64xf32>
    %c7_132 = arith.constant 7 : index
    %c0_133 = arith.constant 0 : index
    %204 = vector.load %arg8[%c7_132, %c0_133] : memref<96x576xf32, #tpu.memory_space<vmem>>, vector<64x64xf32>
    %c0_134 = arith.constant 0 : index
    %c0_135 = arith.constant 0 : index
    %205 = vector.load %arg2[%c0_134, %c0_135] : memref<64x9xf32, #tpu.memory_space<vmem>>, vector<64x1xf32>
    %206 = vector.broadcast %205 : vector<64x1xf32> to vector<64x64xf32>
    %207 = arith.mulf %204, %206 : vector<64x64xf32>
    %208 = arith.addf %203, %207 : vector<64x64xf32>
    %c8_136 = arith.constant 8 : index
    %c64_137 = arith.constant 64 : index
    %209 = vector.load %arg8[%c8_136, %c64_137] : memref<96x576xf32, #tpu.memory_space<vmem>>, vector<64x64xf32>
    %210 = arith.addf %208, %209 : vector<64x64xf32>
    %c9_138 = arith.constant 9 : index
    %c128_139 = arith.constant 128 : index
    %211 = vector.load %arg8[%c9_138, %c128_139] : memref<96x576xf32, #tpu.memory_space<vmem>>, vector<64x64xf32>
    %c0_140 = arith.constant 0 : index
    %c2_141 = arith.constant 2 : index
    %212 = vector.load %arg2[%c0_140, %c2_141] : memref<64x9xf32, #tpu.memory_space<vmem>>, vector<64x1xf32>
    %213 = vector.broadcast %212 : vector<64x1xf32> to vector<64x64xf32>
    %214 = arith.mulf %211, %213 : vector<64x64xf32>
    %215 = arith.addf %210, %214 : vector<64x64xf32>
    %c15_142 = arith.constant 15 : index
    %c192_143 = arith.constant 192 : index
    %216 = vector.load %arg8[%c15_142, %c192_143] : memref<96x576xf32, #tpu.memory_space<vmem>>, vector<64x64xf32>
    %c0_144 = arith.constant 0 : index
    %c3_145 = arith.constant 3 : index
    %217 = vector.load %arg2[%c0_144, %c3_145] : memref<64x9xf32, #tpu.memory_space<vmem>>, vector<64x1xf32>
    %218 = vector.broadcast %217 : vector<64x1xf32> to vector<64x64xf32>
    %219 = arith.mulf %216, %218 : vector<64x64xf32>
    %220 = arith.addf %215, %219 : vector<64x64xf32>
    %c16_146 = arith.constant 16 : index
    %c256_147 = arith.constant 256 : index
    %221 = vector.load %arg8[%c16_146, %c256_147] : memref<96x576xf32, #tpu.memory_space<vmem>>, vector<64x64xf32>
    %222 = arith.addf %220, %221 : vector<64x64xf32>
    %c17_148 = arith.constant 17 : index
    %c320_149 = arith.constant 320 : index
    %223 = vector.load %arg8[%c17_148, %c320_149] : memref<96x576xf32, #tpu.memory_space<vmem>>, vector<64x64xf32>
    %c0_150 = arith.constant 0 : index
    %c5_151 = arith.constant 5 : index
    %224 = vector.load %arg2[%c0_150, %c5_151] : memref<64x9xf32, #tpu.memory_space<vmem>>, vector<64x1xf32>
    %225 = vector.broadcast %224 : vector<64x1xf32> to vector<64x64xf32>
    %226 = arith.mulf %223, %225 : vector<64x64xf32>
    %227 = arith.addf %222, %226 : vector<64x64xf32>
    %c23_152 = arith.constant 23 : index
    %c384_153 = arith.constant 384 : index
    %228 = vector.load %arg8[%c23_152, %c384_153] : memref<96x576xf32, #tpu.memory_space<vmem>>, vector<64x64xf32>
    %c0_154 = arith.constant 0 : index
    %c6_155 = arith.constant 6 : index
    %229 = vector.load %arg2[%c0_154, %c6_155] : memref<64x9xf32, #tpu.memory_space<vmem>>, vector<64x1xf32>
    %230 = vector.broadcast %229 : vector<64x1xf32> to vector<64x64xf32>
    %231 = arith.mulf %228, %230 : vector<64x64xf32>
    %232 = arith.addf %227, %231 : vector<64x64xf32>
    %c24_156 = arith.constant 24 : index
    %c448_157 = arith.constant 448 : index
    %233 = vector.load %arg8[%c24_156, %c448_157] : memref<96x576xf32, #tpu.memory_space<vmem>>, vector<64x64xf32>
    %234 = arith.addf %232, %233 : vector<64x64xf32>
    %c25_158 = arith.constant 25 : index
    %c512_159 = arith.constant 512 : index
    %235 = vector.load %arg8[%c25_158, %c512_159] : memref<96x576xf32, #tpu.memory_space<vmem>>, vector<64x64xf32>
    %c0_160 = arith.constant 0 : index
    %c8_161 = arith.constant 8 : index
    %236 = vector.load %arg2[%c0_160, %c8_161] : memref<64x9xf32, #tpu.memory_space<vmem>>, vector<64x1xf32>
    %237 = vector.broadcast %236 : vector<64x1xf32> to vector<64x64xf32>
    %238 = arith.mulf %235, %237 : vector<64x64xf32>
    %239 = arith.addf %234, %238 : vector<64x64xf32>
    %cst_162 = arith.constant dense<0.000000e+00> : vector<64xf32>
    %240 = vector.multi_reduction <add>, %239, %cst_162 [0] : vector<64x64xf32> to vector<64xf32>
    %241 = vector.shape_cast %240 : vector<64xf32> to vector<1x64xf32>
    %cst_163 = arith.constant 1.562500e-02 : f32
    %242 = vector.broadcast %cst_163 : f32 to vector<1x64xf32>
    %243 = arith.mulf %241, %242 : vector<1x64xf32>
    %244 = vector.broadcast %243 : vector<1x64xf32> to vector<64x64xf32>
    %245 = arith.subf %239, %244 : vector<64x64xf32>
    %246 = arith.mulf %245, %245 : vector<64x64xf32>
    %cst_164 = arith.constant dense<0.000000e+00> : vector<64xf32>
    %247 = vector.multi_reduction <add>, %246, %cst_164 [0] : vector<64x64xf32> to vector<64xf32>
    %248 = vector.shape_cast %247 : vector<64xf32> to vector<1x64xf32>
    %cst_165 = arith.constant 1.562500e-02 : f32
    %249 = vector.broadcast %cst_165 : f32 to vector<1x64xf32>
    %250 = arith.mulf %248, %249 : vector<1x64xf32>
    %cst_166 = arith.constant 9.99999974E-6 : f32
    %251 = vector.broadcast %cst_166 : f32 to vector<1x64xf32>
    %252 = arith.addf %250, %251 : vector<1x64xf32>
    %253 = math.rsqrt %252 : vector<1x64xf32>
    %c3_167 = arith.constant 3 : index
    %c0_168 = arith.constant 0 : index
    %c0_169 = arith.constant 0 : index
    %254 = vector.load %arg3[%c3_167, %c0_168, %c0_169] : memref<6x1x64xf32, #tpu.memory_space<vmem>>, vector<1x1x64xf32>
    %255 = vector.shape_cast %254 : vector<1x1x64xf32> to vector<1x64xf32>
    %256 = arith.mulf %253, %255 : vector<1x64xf32>
    %257 = vector.broadcast %256 : vector<1x64xf32> to vector<64x64xf32>
    %258 = arith.mulf %245, %257 : vector<64x64xf32>
    %c3_170 = arith.constant 3 : index
    %c0_171 = arith.constant 0 : index
    %c0_172 = arith.constant 0 : index
    %259 = vector.load %arg4[%c3_170, %c0_171, %c0_172] : memref<6x1x64xf32, #tpu.memory_space<vmem>>, vector<1x1x64xf32>
    %260 = vector.shape_cast %259 : vector<1x1x64xf32> to vector<1x64xf32>
    %261 = vector.broadcast %260 : vector<1x64xf32> to vector<64x64xf32>
    %262 = arith.addf %258, %261 : vector<64x64xf32>
    %263 = arith.truncf %262 : vector<64x64xf32> to vector<64x64xbf16>
    %c4 = arith.constant 4 : index
    %c0_173 = arith.constant 0 : index
    %c0_174 = arith.constant 0 : index
    %264 = vector.load %arg1[%c4, %c0_173, %c0_174] : memref<6x64x576xbf16, #tpu.memory_space<vmem>>, vector<1x64x576xbf16>
    %265 = vector.shape_cast %264 : vector<1x64x576xbf16> to vector<64x576xbf16>
    %cst_175 = arith.constant dense<0.000000e+00> : vector<64x576xf32>
    %266 = tpu.matmul %263, %265, %cst_175 {dimension_numbers = #tpu.dot_dimension_numbers<[1], [0], [0], [1], [0, 0, 1, 1], [], []>} : vector<64x64xbf16>, vector<64x576xbf16>, vector<64x576xf32> -> vector<64x576xf32>
    %c16_176 = arith.constant 16 : index
    %c0_177 = arith.constant 0 : index
    %267 = vector.load %arg8[%c16_176, %c0_177] : memref<96x576xf32, #tpu.memory_space<vmem>>, vector<64x576xf32>
    tpu.vector_store %arg8[%c16_176, %c0_177], %266 {strides = array<i32>} : memref<96x576xf32, #tpu.memory_space<vmem>>, vector<64x576xf32>,
    %cst_178 = arith.constant 0.000000e+00 : f32
    %268 = vector.broadcast %cst_178 : f32 to vector<64x64xf32>
    %c7_179 = arith.constant 7 : index
    %c0_180 = arith.constant 0 : index
    %269 = vector.load %arg8[%c7_179, %c0_180] : memref<96x576xf32, #tpu.memory_space<vmem>>, vector<64x64xf32>
    %c0_181 = arith.constant 0 : index
    %c0_182 = arith.constant 0 : index
    %270 = vector.load %arg2[%c0_181, %c0_182] : memref<64x9xf32, #tpu.memory_space<vmem>>, vector<64x1xf32>
    %271 = vector.broadcast %270 : vector<64x1xf32> to vector<64x64xf32>
    %272 = arith.mulf %269, %271 : vector<64x64xf32>
    %273 = arith.addf %268, %272 : vector<64x64xf32>
    %c8_183 = arith.constant 8 : index
    %c64_184 = arith.constant 64 : index
    %274 = vector.load %arg8[%c8_183, %c64_184] : memref<96x576xf32, #tpu.memory_space<vmem>>, vector<64x64xf32>
    %275 = arith.addf %273, %274 : vector<64x64xf32>
    %c9_185 = arith.constant 9 : index
    %c128_186 = arith.constant 128 : index
    %276 = vector.load %arg8[%c9_185, %c128_186] : memref<96x576xf32, #tpu.memory_space<vmem>>, vector<64x64xf32>
    %c0_187 = arith.constant 0 : index
    %c2_188 = arith.constant 2 : index
    %277 = vector.load %arg2[%c0_187, %c2_188] : memref<64x9xf32, #tpu.memory_space<vmem>>, vector<64x1xf32>
    %278 = vector.broadcast %277 : vector<64x1xf32> to vector<64x64xf32>
    %279 = arith.mulf %276, %278 : vector<64x64xf32>
    %280 = arith.addf %275, %279 : vector<64x64xf32>
    %c15_189 = arith.constant 15 : index
    %c192_190 = arith.constant 192 : index
    %281 = vector.load %arg8[%c15_189, %c192_190] : memref<96x576xf32, #tpu.memory_space<vmem>>, vector<64x64xf32>
    %c0_191 = arith.constant 0 : index
    %c3_192 = arith.constant 3 : index
    %282 = vector.load %arg2[%c0_191, %c3_192] : memref<64x9xf32, #tpu.memory_space<vmem>>, vector<64x1xf32>
    %283 = vector.broadcast %282 : vector<64x1xf32> to vector<64x64xf32>
    %284 = arith.mulf %281, %283 : vector<64x64xf32>
    %285 = arith.addf %280, %284 : vector<64x64xf32>
    %c16_193 = arith.constant 16 : index
    %c256_194 = arith.constant 256 : index
    %286 = vector.load %arg8[%c16_193, %c256_194] : memref<96x576xf32, #tpu.memory_space<vmem>>, vector<64x64xf32>
    %287 = arith.addf %285, %286 : vector<64x64xf32>
    %c17_195 = arith.constant 17 : index
    %c320_196 = arith.constant 320 : index
    %288 = vector.load %arg8[%c17_195, %c320_196] : memref<96x576xf32, #tpu.memory_space<vmem>>, vector<64x64xf32>
    %c0_197 = arith.constant 0 : index
    %c5_198 = arith.constant 5 : index
    %289 = vector.load %arg2[%c0_197, %c5_198] : memref<64x9xf32, #tpu.memory_space<vmem>>, vector<64x1xf32>
    %290 = vector.broadcast %289 : vector<64x1xf32> to vector<64x64xf32>
    %291 = arith.mulf %288, %290 : vector<64x64xf32>
    %292 = arith.addf %287, %291 : vector<64x64xf32>
    %c23_199 = arith.constant 23 : index
    %c384_200 = arith.constant 384 : index
    %293 = vector.load %arg8[%c23_199, %c384_200] : memref<96x576xf32, #tpu.memory_space<vmem>>, vector<64x64xf32>
    %c0_201 = arith.constant 0 : index
    %c6_202 = arith.constant 6 : index
    %294 = vector.load %arg2[%c0_201, %c6_202] : memref<64x9xf32, #tpu.memory_space<vmem>>, vector<64x1xf32>
    %295 = vector.broadcast %294 : vector<64x1xf32> to vector<64x64xf32>
    %296 = arith.mulf %293, %295 : vector<64x64xf32>
    %297 = arith.addf %292, %296 : vector<64x64xf32>
    %c24_203 = arith.constant 24 : index
    %c448_204 = arith.constant 448 : index
    %298 = vector.load %arg8[%c24_203, %c448_204] : memref<96x576xf32, #tpu.memory_space<vmem>>, vector<64x64xf32>
    %299 = arith.addf %297, %298 : vector<64x64xf32>
    %c25_205 = arith.constant 25 : index
    %c512_206 = arith.constant 512 : index
    %300 = vector.load %arg8[%c25_205, %c512_206] : memref<96x576xf32, #tpu.memory_space<vmem>>, vector<64x64xf32>
    %c0_207 = arith.constant 0 : index
    %c8_208 = arith.constant 8 : index
    %301 = vector.load %arg2[%c0_207, %c8_208] : memref<64x9xf32, #tpu.memory_space<vmem>>, vector<64x1xf32>
    %302 = vector.broadcast %301 : vector<64x1xf32> to vector<64x64xf32>
    %303 = arith.mulf %300, %302 : vector<64x64xf32>
    %304 = arith.addf %299, %303 : vector<64x64xf32>
    %cst_209 = arith.constant dense<0.000000e+00> : vector<64xf32>
    %305 = vector.multi_reduction <add>, %304, %cst_209 [0] : vector<64x64xf32> to vector<64xf32>
    %306 = vector.shape_cast %305 : vector<64xf32> to vector<1x64xf32>
    %cst_210 = arith.constant 1.562500e-02 : f32
    %307 = vector.broadcast %cst_210 : f32 to vector<1x64xf32>
    %308 = arith.mulf %306, %307 : vector<1x64xf32>
    %309 = vector.broadcast %308 : vector<1x64xf32> to vector<64x64xf32>
    %310 = arith.subf %304, %309 : vector<64x64xf32>
    %311 = arith.mulf %310, %310 : vector<64x64xf32>
    %cst_211 = arith.constant dense<0.000000e+00> : vector<64xf32>
    %312 = vector.multi_reduction <add>, %311, %cst_211 [0] : vector<64x64xf32> to vector<64xf32>
    %313 = vector.shape_cast %312 : vector<64xf32> to vector<1x64xf32>
    %cst_212 = arith.constant 1.562500e-02 : f32
    %314 = vector.broadcast %cst_212 : f32 to vector<1x64xf32>
    %315 = arith.mulf %313, %314 : vector<1x64xf32>
    %cst_213 = arith.constant 9.99999974E-6 : f32
    %316 = vector.broadcast %cst_213 : f32 to vector<1x64xf32>
    %317 = arith.addf %315, %316 : vector<1x64xf32>
    %318 = math.rsqrt %317 : vector<1x64xf32>
    %c4_214 = arith.constant 4 : index
    %c0_215 = arith.constant 0 : index
    %c0_216 = arith.constant 0 : index
    %319 = vector.load %arg3[%c4_214, %c0_215, %c0_216] : memref<6x1x64xf32, #tpu.memory_space<vmem>>, vector<1x1x64xf32>
    %320 = vector.shape_cast %319 : vector<1x1x64xf32> to vector<1x64xf32>
    %321 = arith.mulf %318, %320 : vector<1x64xf32>
    %322 = vector.broadcast %321 : vector<1x64xf32> to vector<64x64xf32>
    %323 = arith.mulf %310, %322 : vector<64x64xf32>
    %c4_217 = arith.constant 4 : index
    %c0_218 = arith.constant 0 : index
    %c0_219 = arith.constant 0 : index
    %324 = vector.load %arg4[%c4_217, %c0_218, %c0_219] : memref<6x1x64xf32, #tpu.memory_space<vmem>>, vector<1x1x64xf32>
    %325 = vector.shape_cast %324 : vector<1x1x64xf32> to vector<1x64xf32>
    %326 = vector.broadcast %325 : vector<1x64xf32> to vector<64x64xf32>
    %327 = arith.addf %323, %326 : vector<64x64xf32>
    %328 = arith.truncf %327 : vector<64x64xf32> to vector<64x64xbf16>
    %c5_220 = arith.constant 5 : index
    %c0_221 = arith.constant 0 : index
    %c0_222 = arith.constant 0 : index
    %329 = vector.load %arg1[%c5_220, %c0_221, %c0_222] : memref<6x64x576xbf16, #tpu.memory_space<vmem>>, vector<1x64x576xbf16>
    %330 = vector.shape_cast %329 : vector<1x64x576xbf16> to vector<64x576xbf16>
    %cst_223 = arith.constant dense<0.000000e+00> : vector<64x576xf32>
    %331 = tpu.matmul %328, %330, %cst_223 {dimension_numbers = #tpu.dot_dimension_numbers<[1], [0], [0], [1], [0, 0, 1, 1], [], []>} : vector<64x64xbf16>, vector<64x576xbf16>, vector<64x576xf32> -> vector<64x576xf32>
    %c16_224 = arith.constant 16 : index
    %c0_225 = arith.constant 0 : index
    %332 = vector.load %arg8[%c16_224, %c0_225] : memref<96x576xf32, #tpu.memory_space<vmem>>, vector<64x576xf32>
    tpu.vector_store %arg8[%c16_224, %c0_225], %331 {strides = array<i32>} : memref<96x576xf32, #tpu.memory_space<vmem>>, vector<64x576xf32>,
    %cst_226 = arith.constant 0.000000e+00 : f32
    %333 = vector.broadcast %cst_226 : f32 to vector<64x64xf32>
    %c7_227 = arith.constant 7 : index
    %c0_228 = arith.constant 0 : index
    %334 = vector.load %arg8[%c7_227, %c0_228] : memref<96x576xf32, #tpu.memory_space<vmem>>, vector<64x64xf32>
    %c0_229 = arith.constant 0 : index
    %c0_230 = arith.constant 0 : index
    %335 = vector.load %arg2[%c0_229, %c0_230] : memref<64x9xf32, #tpu.memory_space<vmem>>, vector<64x1xf32>
    %336 = vector.broadcast %335 : vector<64x1xf32> to vector<64x64xf32>
    %337 = arith.mulf %334, %336 : vector<64x64xf32>
    %338 = arith.addf %333, %337 : vector<64x64xf32>
    %c8_231 = arith.constant 8 : index
    %c64_232 = arith.constant 64 : index
    %339 = vector.load %arg8[%c8_231, %c64_232] : memref<96x576xf32, #tpu.memory_space<vmem>>, vector<64x64xf32>
    %340 = arith.addf %338, %339 : vector<64x64xf32>
    %c9_233 = arith.constant 9 : index
    %c128_234 = arith.constant 128 : index
    %341 = vector.load %arg8[%c9_233, %c128_234] : memref<96x576xf32, #tpu.memory_space<vmem>>, vector<64x64xf32>
    %c0_235 = arith.constant 0 : index
    %c2_236 = arith.constant 2 : index
    %342 = vector.load %arg2[%c0_235, %c2_236] : memref<64x9xf32, #tpu.memory_space<vmem>>, vector<64x1xf32>
    %343 = vector.broadcast %342 : vector<64x1xf32> to vector<64x64xf32>
    %344 = arith.mulf %341, %343 : vector<64x64xf32>
    %345 = arith.addf %340, %344 : vector<64x64xf32>
    %c15_237 = arith.constant 15 : index
    %c192_238 = arith.constant 192 : index
    %346 = vector.load %arg8[%c15_237, %c192_238] : memref<96x576xf32, #tpu.memory_space<vmem>>, vector<64x64xf32>
    %c0_239 = arith.constant 0 : index
    %c3_240 = arith.constant 3 : index
    %347 = vector.load %arg2[%c0_239, %c3_240] : memref<64x9xf32, #tpu.memory_space<vmem>>, vector<64x1xf32>
    %348 = vector.broadcast %347 : vector<64x1xf32> to vector<64x64xf32>
    %349 = arith.mulf %346, %348 : vector<64x64xf32>
    %350 = arith.addf %345, %349 : vector<64x64xf32>
    %c16_241 = arith.constant 16 : index
    %c256_242 = arith.constant 256 : index
    %351 = vector.load %arg8[%c16_241, %c256_242] : memref<96x576xf32, #tpu.memory_space<vmem>>, vector<64x64xf32>
    %352 = arith.addf %350, %351 : vector<64x64xf32>
    %c17_243 = arith.constant 17 : index
    %c320_244 = arith.constant 320 : index
    %353 = vector.load %arg8[%c17_243, %c320_244] : memref<96x576xf32, #tpu.memory_space<vmem>>, vector<64x64xf32>
    %c0_245 = arith.constant 0 : index
    %c5_246 = arith.constant 5 : index
    %354 = vector.load %arg2[%c0_245, %c5_246] : memref<64x9xf32, #tpu.memory_space<vmem>>, vector<64x1xf32>
    %355 = vector.broadcast %354 : vector<64x1xf32> to vector<64x64xf32>
    %356 = arith.mulf %353, %355 : vector<64x64xf32>
    %357 = arith.addf %352, %356 : vector<64x64xf32>
    %c23_247 = arith.constant 23 : index
    %c384_248 = arith.constant 384 : index
    %358 = vector.load %arg8[%c23_247, %c384_248] : memref<96x576xf32, #tpu.memory_space<vmem>>, vector<64x64xf32>
    %c0_249 = arith.constant 0 : index
    %c6_250 = arith.constant 6 : index
    %359 = vector.load %arg2[%c0_249, %c6_250] : memref<64x9xf32, #tpu.memory_space<vmem>>, vector<64x1xf32>
    %360 = vector.broadcast %359 : vector<64x1xf32> to vector<64x64xf32>
    %361 = arith.mulf %358, %360 : vector<64x64xf32>
    %362 = arith.addf %357, %361 : vector<64x64xf32>
    %c24_251 = arith.constant 24 : index
    %c448_252 = arith.constant 448 : index
    %363 = vector.load %arg8[%c24_251, %c448_252] : memref<96x576xf32, #tpu.memory_space<vmem>>, vector<64x64xf32>
    %364 = arith.addf %362, %363 : vector<64x64xf32>
    %c25_253 = arith.constant 25 : index
    %c512_254 = arith.constant 512 : index
    %365 = vector.load %arg8[%c25_253, %c512_254] : memref<96x576xf32, #tpu.memory_space<vmem>>, vector<64x64xf32>
    %c0_255 = arith.constant 0 : index
    %c8_256 = arith.constant 8 : index
    %366 = vector.load %arg2[%c0_255, %c8_256] : memref<64x9xf32, #tpu.memory_space<vmem>>, vector<64x1xf32>
    %367 = vector.broadcast %366 : vector<64x1xf32> to vector<64x64xf32>
    %368 = arith.mulf %365, %367 : vector<64x64xf32>
    %369 = arith.addf %364, %368 : vector<64x64xf32>
    %cst_257 = arith.constant dense<0.000000e+00> : vector<64xf32>
    %370 = vector.multi_reduction <add>, %369, %cst_257 [0] : vector<64x64xf32> to vector<64xf32>
    %371 = vector.shape_cast %370 : vector<64xf32> to vector<1x64xf32>
    %cst_258 = arith.constant 1.562500e-02 : f32
    %372 = vector.broadcast %cst_258 : f32 to vector<1x64xf32>
    %373 = arith.mulf %371, %372 : vector<1x64xf32>
    %374 = vector.broadcast %373 : vector<1x64xf32> to vector<64x64xf32>
    %375 = arith.subf %369, %374 : vector<64x64xf32>
    %376 = arith.mulf %375, %375 : vector<64x64xf32>
    %cst_259 = arith.constant dense<0.000000e+00> : vector<64xf32>
    %377 = vector.multi_reduction <add>, %376, %cst_259 [0] : vector<64x64xf32> to vector<64xf32>
    %378 = vector.shape_cast %377 : vector<64xf32> to vector<1x64xf32>
    %cst_260 = arith.constant 1.562500e-02 : f32
    %379 = vector.broadcast %cst_260 : f32 to vector<1x64xf32>
    %380 = arith.mulf %378, %379 : vector<1x64xf32>
    %cst_261 = arith.constant 9.99999974E-6 : f32
    %381 = vector.broadcast %cst_261 : f32 to vector<1x64xf32>
    %382 = arith.addf %380, %381 : vector<1x64xf32>
    %383 = math.rsqrt %382 : vector<1x64xf32>
    %c5_262 = arith.constant 5 : index
    %c0_263 = arith.constant 0 : index
    %c0_264 = arith.constant 0 : index
    %384 = vector.load %arg3[%c5_262, %c0_263, %c0_264] : memref<6x1x64xf32, #tpu.memory_space<vmem>>, vector<1x1x64xf32>
    %385 = vector.shape_cast %384 : vector<1x1x64xf32> to vector<1x64xf32>
    %386 = arith.mulf %383, %385 : vector<1x64xf32>
    %387 = vector.broadcast %386 : vector<1x64xf32> to vector<64x64xf32>
    %388 = arith.mulf %375, %387 : vector<64x64xf32>
    %c5_265 = arith.constant 5 : index
    %c0_266 = arith.constant 0 : index
    %c0_267 = arith.constant 0 : index
    %389 = vector.load %arg4[%c5_265, %c0_266, %c0_267] : memref<6x1x64xf32, #tpu.memory_space<vmem>>, vector<1x1x64xf32>
    %390 = vector.shape_cast %389 : vector<1x1x64xf32> to vector<1x64xf32>
    %391 = vector.broadcast %390 : vector<1x64xf32> to vector<64x64xf32>
    %392 = arith.addf %388, %391 : vector<64x64xf32>
    %393 = vector.extract_strided_slice %392 {offsets = [0, 0], sizes = [1, 64], strides = [1, 1]} : vector<64x64xf32> to vector<1x64xf32>
    %c0_268 = arith.constant 0 : index
    %c0_269 = arith.constant 0 : index
    %394 = vector.load %arg9[%c0_268, %c0_269] : memref<1x4096xf32, #tpu.memory_space<vmem>>, vector<1x64xf32>
    tpu.vector_store %arg9[%c0_268, %c0_269], %393 {strides = array<i32>} : memref<1x4096xf32, #tpu.memory_space<vmem>>, vector<1x64xf32>,
    %395 = vector.extract_strided_slice %392 {offsets = [1, 0], sizes = [1, 64], strides = [1, 1]} : vector<64x64xf32> to vector<1x64xf32>
    %c0_270 = arith.constant 0 : index
    %c64_271 = arith.constant 64 : index
    %396 = vector.load %arg9[%c0_270, %c64_271] : memref<1x4096xf32, #tpu.memory_space<vmem>>, vector<1x64xf32>
    tpu.vector_store %arg9[%c0_270, %c64_271], %395 {strides = array<i32>} : memref<1x4096xf32, #tpu.memory_space<vmem>>, vector<1x64xf32>,
    %397 = vector.extract_strided_slice %392 {offsets = [2, 0], sizes = [1, 64], strides = [1, 1]} : vector<64x64xf32> to vector<1x64xf32>
    %c0_272 = arith.constant 0 : index
    %c128_273 = arith.constant 128 : index
    %398 = vector.load %arg9[%c0_272, %c128_273] : memref<1x4096xf32, #tpu.memory_space<vmem>>, vector<1x64xf32>
    tpu.vector_store %arg9[%c0_272, %c128_273], %397 {strides = array<i32>} : memref<1x4096xf32, #tpu.memory_space<vmem>>, vector<1x64xf32>,
    %399 = vector.extract_strided_slice %392 {offsets = [3, 0], sizes = [1, 64], strides = [1, 1]} : vector<64x64xf32> to vector<1x64xf32>
    %c0_274 = arith.constant 0 : index
    %c192_275 = arith.constant 192 : index
    %400 = vector.load %arg9[%c0_274, %c192_275] : memref<1x4096xf32, #tpu.memory_space<vmem>>, vector<1x64xf32>
    tpu.vector_store %arg9[%c0_274, %c192_275], %399 {strides = array<i32>} : memref<1x4096xf32, #tpu.memory_space<vmem>>, vector<1x64xf32>,
    %401 = vector.extract_strided_slice %392 {offsets = [4, 0], sizes = [1, 64], strides = [1, 1]} : vector<64x64xf32> to vector<1x64xf32>
    %c0_276 = arith.constant 0 : index
    %c256_277 = arith.constant 256 : index
    %402 = vector.load %arg9[%c0_276, %c256_277] : memref<1x4096xf32, #tpu.memory_space<vmem>>, vector<1x64xf32>
    tpu.vector_store %arg9[%c0_276, %c256_277], %401 {strides = array<i32>} : memref<1x4096xf32, #tpu.memory_space<vmem>>, vector<1x64xf32>,
    %403 = vector.extract_strided_slice %392 {offsets = [5, 0], sizes = [1, 64], strides = [1, 1]} : vector<64x64xf32> to vector<1x64xf32>
    %c0_278 = arith.constant 0 : index
    %c320_279 = arith.constant 320 : index
    %404 = vector.load %arg9[%c0_278, %c320_279] : memref<1x4096xf32, #tpu.memory_space<vmem>>, vector<1x64xf32>
    tpu.vector_store %arg9[%c0_278, %c320_279], %403 {strides = array<i32>} : memref<1x4096xf32, #tpu.memory_space<vmem>>, vector<1x64xf32>,
    %405 = vector.extract_strided_slice %392 {offsets = [6, 0], sizes = [1, 64], strides = [1, 1]} : vector<64x64xf32> to vector<1x64xf32>
    %c0_280 = arith.constant 0 : index
    %c384_281 = arith.constant 384 : index
    %406 = vector.load %arg9[%c0_280, %c384_281] : memref<1x4096xf32, #tpu.memory_space<vmem>>, vector<1x64xf32>
    tpu.vector_store %arg9[%c0_280, %c384_281], %405 {strides = array<i32>} : memref<1x4096xf32, #tpu.memory_space<vmem>>, vector<1x64xf32>,
    %407 = vector.extract_strided_slice %392 {offsets = [7, 0], sizes = [1, 64], strides = [1, 1]} : vector<64x64xf32> to vector<1x64xf32>
    %c0_282 = arith.constant 0 : index
    %c448_283 = arith.constant 448 : index
    %408 = vector.load %arg9[%c0_282, %c448_283] : memref<1x4096xf32, #tpu.memory_space<vmem>>, vector<1x64xf32>
    tpu.vector_store %arg9[%c0_282, %c448_283], %407 {strides = array<i32>} : memref<1x4096xf32, #tpu.memory_space<vmem>>, vector<1x64xf32>,
    %409 = vector.extract_strided_slice %392 {offsets = [8, 0], sizes = [1, 64], strides = [1, 1]} : vector<64x64xf32> to vector<1x64xf32>
    %c0_284 = arith.constant 0 : index
    %c512_285 = arith.constant 512 : index
    %410 = vector.load %arg9[%c0_284, %c512_285] : memref<1x4096xf32, #tpu.memory_space<vmem>>, vector<1x64xf32>
    tpu.vector_store %arg9[%c0_284, %c512_285], %409 {strides = array<i32>} : memref<1x4096xf32, #tpu.memory_space<vmem>>, vector<1x64xf32>,
    %411 = vector.extract_strided_slice %392 {offsets = [9, 0], sizes = [1, 64], strides = [1, 1]} : vector<64x64xf32> to vector<1x64xf32>
    %c0_286 = arith.constant 0 : index
    %c576 = arith.constant 576 : index
    %412 = vector.load %arg9[%c0_286, %c576] : memref<1x4096xf32, #tpu.memory_space<vmem>>, vector<1x64xf32>
    tpu.vector_store %arg9[%c0_286, %c576], %411 {strides = array<i32>} : memref<1x4096xf32, #tpu.memory_space<vmem>>, vector<1x64xf32>,
    %413 = vector.extract_strided_slice %392 {offsets = [10, 0], sizes = [1, 64], strides = [1, 1]} : vector<64x64xf32> to vector<1x64xf32>
    %c0_287 = arith.constant 0 : index
    %c640 = arith.constant 640 : index
    %414 = vector.load %arg9[%c0_287, %c640] : memref<1x4096xf32, #tpu.memory_space<vmem>>, vector<1x64xf32>
    tpu.vector_store %arg9[%c0_287, %c640], %413 {strides = array<i32>} : memref<1x4096xf32, #tpu.memory_space<vmem>>, vector<1x64xf32>,
    %415 = vector.extract_strided_slice %392 {offsets = [11, 0], sizes = [1, 64], strides = [1, 1]} : vector<64x64xf32> to vector<1x64xf32>
    %c0_288 = arith.constant 0 : index
    %c704 = arith.constant 704 : index
    %416 = vector.load %arg9[%c0_288, %c704] : memref<1x4096xf32, #tpu.memory_space<vmem>>, vector<1x64xf32>
    tpu.vector_store %arg9[%c0_288, %c704], %415 {strides = array<i32>} : memref<1x4096xf32, #tpu.memory_space<vmem>>, vector<1x64xf32>,
    %417 = vector.extract_strided_slice %392 {offsets = [12, 0], sizes = [1, 64], strides = [1, 1]} : vector<64x64xf32> to vector<1x64xf32>
    %c0_289 = arith.constant 0 : index
    %c768 = arith.constant 768 : index
    %418 = vector.load %arg9[%c0_289, %c768] : memref<1x4096xf32, #tpu.memory_space<vmem>>, vector<1x64xf32>
    tpu.vector_store %arg9[%c0_289, %c768], %417 {strides = array<i32>} : memref<1x4096xf32, #tpu.memory_space<vmem>>, vector<1x64xf32>,
    %419 = vector.extract_strided_slice %392 {offsets = [13, 0], sizes = [1, 64], strides = [1, 1]} : vector<64x64xf32> to vector<1x64xf32>
    %c0_290 = arith.constant 0 : index
    %c832 = arith.constant 832 : index
    %420 = vector.load %arg9[%c0_290, %c832] : memref<1x4096xf32, #tpu.memory_space<vmem>>, vector<1x64xf32>
    tpu.vector_store %arg9[%c0_290, %c832], %419 {strides = array<i32>} : memref<1x4096xf32, #tpu.memory_space<vmem>>, vector<1x64xf32>,
    %421 = vector.extract_strided_slice %392 {offsets = [14, 0], sizes = [1, 64], strides = [1, 1]} : vector<64x64xf32> to vector<1x64xf32>
    %c0_291 = arith.constant 0 : index
    %c896 = arith.constant 896 : index
    %422 = vector.load %arg9[%c0_291, %c896] : memref<1x4096xf32, #tpu.memory_space<vmem>>, vector<1x64xf32>
    tpu.vector_store %arg9[%c0_291, %c896], %421 {strides = array<i32>} : memref<1x4096xf32, #tpu.memory_space<vmem>>, vector<1x64xf32>,
    %423 = vector.extract_strided_slice %392 {offsets = [15, 0], sizes = [1, 64], strides = [1, 1]} : vector<64x64xf32> to vector<1x64xf32>
    %c0_292 = arith.constant 0 : index
    %c960 = arith.constant 960 : index
    %424 = vector.load %arg9[%c0_292, %c960] : memref<1x4096xf32, #tpu.memory_space<vmem>>, vector<1x64xf32>
    tpu.vector_store %arg9[%c0_292, %c960], %423 {strides = array<i32>} : memref<1x4096xf32, #tpu.memory_space<vmem>>, vector<1x64xf32>,
    %425 = vector.extract_strided_slice %392 {offsets = [16, 0], sizes = [1, 64], strides = [1, 1]} : vector<64x64xf32> to vector<1x64xf32>
    %c0_293 = arith.constant 0 : index
    %c1024 = arith.constant 1024 : index
    %426 = vector.load %arg9[%c0_293, %c1024] : memref<1x4096xf32, #tpu.memory_space<vmem>>, vector<1x64xf32>
    tpu.vector_store %arg9[%c0_293, %c1024], %425 {strides = array<i32>} : memref<1x4096xf32, #tpu.memory_space<vmem>>, vector<1x64xf32>,
    %427 = vector.extract_strided_slice %392 {offsets = [17, 0], sizes = [1, 64], strides = [1, 1]} : vector<64x64xf32> to vector<1x64xf32>
    %c0_294 = arith.constant 0 : index
    %c1088 = arith.constant 1088 : index
    %428 = vector.load %arg9[%c0_294, %c1088] : memref<1x4096xf32, #tpu.memory_space<vmem>>, vector<1x64xf32>
    tpu.vector_store %arg9[%c0_294, %c1088], %427 {strides = array<i32>} : memref<1x4096xf32, #tpu.memory_space<vmem>>, vector<1x64xf32>,
    %429 = vector.extract_strided_slice %392 {offsets = [18, 0], sizes = [1, 64], strides = [1, 1]} : vector<64x64xf32> to vector<1x64xf32>
    %c0_295 = arith.constant 0 : index
    %c1152 = arith.constant 1152 : index
    %430 = vector.load %arg9[%c0_295, %c1152] : memref<1x4096xf32, #tpu.memory_space<vmem>>, vector<1x64xf32>
    tpu.vector_store %arg9[%c0_295, %c1152], %429 {strides = array<i32>} : memref<1x4096xf32, #tpu.memory_space<vmem>>, vector<1x64xf32>,
    %431 = vector.extract_strided_slice %392 {offsets = [19, 0], sizes = [1, 64], strides = [1, 1]} : vector<64x64xf32> to vector<1x64xf32>
    %c0_296 = arith.constant 0 : index
    %c1216 = arith.constant 1216 : index
    %432 = vector.load %arg9[%c0_296, %c1216] : memref<1x4096xf32, #tpu.memory_space<vmem>>, vector<1x64xf32>
    tpu.vector_store %arg9[%c0_296, %c1216], %431 {strides = array<i32>} : memref<1x4096xf32, #tpu.memory_space<vmem>>, vector<1x64xf32>,
    %433 = vector.extract_strided_slice %392 {offsets = [20, 0], sizes = [1, 64], strides = [1, 1]} : vector<64x64xf32> to vector<1x64xf32>
    %c0_297 = arith.constant 0 : index
    %c1280 = arith.constant 1280 : index
    %434 = vector.load %arg9[%c0_297, %c1280] : memref<1x4096xf32, #tpu.memory_space<vmem>>, vector<1x64xf32>
    tpu.vector_store %arg9[%c0_297, %c1280], %433 {strides = array<i32>} : memref<1x4096xf32, #tpu.memory_space<vmem>>, vector<1x64xf32>,
    %435 = vector.extract_strided_slice %392 {offsets = [21, 0], sizes = [1, 64], strides = [1, 1]} : vector<64x64xf32> to vector<1x64xf32>
    %c0_298 = arith.constant 0 : index
    %c1344 = arith.constant 1344 : index
    %436 = vector.load %arg9[%c0_298, %c1344] : memref<1x4096xf32, #tpu.memory_space<vmem>>, vector<1x64xf32>
    tpu.vector_store %arg9[%c0_298, %c1344], %435 {strides = array<i32>} : memref<1x4096xf32, #tpu.memory_space<vmem>>, vector<1x64xf32>,
    %437 = vector.extract_strided_slice %392 {offsets = [22, 0], sizes = [1, 64], strides = [1, 1]} : vector<64x64xf32> to vector<1x64xf32>
    %c0_299 = arith.constant 0 : index
    %c1408 = arith.constant 1408 : index
    %438 = vector.load %arg9[%c0_299, %c1408] : memref<1x4096xf32, #tpu.memory_space<vmem>>, vector<1x64xf32>
    tpu.vector_store %arg9[%c0_299, %c1408], %437 {strides = array<i32>} : memref<1x4096xf32, #tpu.memory_space<vmem>>, vector<1x64xf32>,
    %439 = vector.extract_strided_slice %392 {offsets = [23, 0], sizes = [1, 64], strides = [1, 1]} : vector<64x64xf32> to vector<1x64xf32>
    %c0_300 = arith.constant 0 : index
    %c1472 = arith.constant 1472 : index
    %440 = vector.load %arg9[%c0_300, %c1472] : memref<1x4096xf32, #tpu.memory_space<vmem>>, vector<1x64xf32>
    tpu.vector_store %arg9[%c0_300, %c1472], %439 {strides = array<i32>} : memref<1x4096xf32, #tpu.memory_space<vmem>>, vector<1x64xf32>,
    %441 = vector.extract_strided_slice %392 {offsets = [24, 0], sizes = [1, 64], strides = [1, 1]} : vector<64x64xf32> to vector<1x64xf32>
    %c0_301 = arith.constant 0 : index
    %c1536 = arith.constant 1536 : index
    %442 = vector.load %arg9[%c0_301, %c1536] : memref<1x4096xf32, #tpu.memory_space<vmem>>, vector<1x64xf32>
    tpu.vector_store %arg9[%c0_301, %c1536], %441 {strides = array<i32>} : memref<1x4096xf32, #tpu.memory_space<vmem>>, vector<1x64xf32>,
    %443 = vector.extract_strided_slice %392 {offsets = [25, 0], sizes = [1, 64], strides = [1, 1]} : vector<64x64xf32> to vector<1x64xf32>
    %c0_302 = arith.constant 0 : index
    %c1600 = arith.constant 1600 : index
    %444 = vector.load %arg9[%c0_302, %c1600] : memref<1x4096xf32, #tpu.memory_space<vmem>>, vector<1x64xf32>
    tpu.vector_store %arg9[%c0_302, %c1600], %443 {strides = array<i32>} : memref<1x4096xf32, #tpu.memory_space<vmem>>, vector<1x64xf32>,
    %445 = vector.extract_strided_slice %392 {offsets = [26, 0], sizes = [1, 64], strides = [1, 1]} : vector<64x64xf32> to vector<1x64xf32>
    %c0_303 = arith.constant 0 : index
    %c1664 = arith.constant 1664 : index
    %446 = vector.load %arg9[%c0_303, %c1664] : memref<1x4096xf32, #tpu.memory_space<vmem>>, vector<1x64xf32>
    tpu.vector_store %arg9[%c0_303, %c1664], %445 {strides = array<i32>} : memref<1x4096xf32, #tpu.memory_space<vmem>>, vector<1x64xf32>,
    %447 = vector.extract_strided_slice %392 {offsets = [27, 0], sizes = [1, 64], strides = [1, 1]} : vector<64x64xf32> to vector<1x64xf32>
    %c0_304 = arith.constant 0 : index
    %c1728 = arith.constant 1728 : index
    %448 = vector.load %arg9[%c0_304, %c1728] : memref<1x4096xf32, #tpu.memory_space<vmem>>, vector<1x64xf32>
    tpu.vector_store %arg9[%c0_304, %c1728], %447 {strides = array<i32>} : memref<1x4096xf32, #tpu.memory_space<vmem>>, vector<1x64xf32>,
    %449 = vector.extract_strided_slice %392 {offsets = [28, 0], sizes = [1, 64], strides = [1, 1]} : vector<64x64xf32> to vector<1x64xf32>
    %c0_305 = arith.constant 0 : index
    %c1792 = arith.constant 1792 : index
    %450 = vector.load %arg9[%c0_305, %c1792] : memref<1x4096xf32, #tpu.memory_space<vmem>>, vector<1x64xf32>
    tpu.vector_store %arg9[%c0_305, %c1792], %449 {strides = array<i32>} : memref<1x4096xf32, #tpu.memory_space<vmem>>, vector<1x64xf32>,
    %451 = vector.extract_strided_slice %392 {offsets = [29, 0], sizes = [1, 64], strides = [1, 1]} : vector<64x64xf32> to vector<1x64xf32>
    %c0_306 = arith.constant 0 : index
    %c1856 = arith.constant 1856 : index
    %452 = vector.load %arg9[%c0_306, %c1856] : memref<1x4096xf32, #tpu.memory_space<vmem>>, vector<1x64xf32>
    tpu.vector_store %arg9[%c0_306, %c1856], %451 {strides = array<i32>} : memref<1x4096xf32, #tpu.memory_space<vmem>>, vector<1x64xf32>,
    %453 = vector.extract_strided_slice %392 {offsets = [30, 0], sizes = [1, 64], strides = [1, 1]} : vector<64x64xf32> to vector<1x64xf32>
    %c0_307 = arith.constant 0 : index
    %c1920 = arith.constant 1920 : index
    %454 = vector.load %arg9[%c0_307, %c1920] : memref<1x4096xf32, #tpu.memory_space<vmem>>, vector<1x64xf32>
    tpu.vector_store %arg9[%c0_307, %c1920], %453 {strides = array<i32>} : memref<1x4096xf32, #tpu.memory_space<vmem>>, vector<1x64xf32>,
    %455 = vector.extract_strided_slice %392 {offsets = [31, 0], sizes = [1, 64], strides = [1, 1]} : vector<64x64xf32> to vector<1x64xf32>
    %c0_308 = arith.constant 0 : index
    %c1984 = arith.constant 1984 : index
    %456 = vector.load %arg9[%c0_308, %c1984] : memref<1x4096xf32, #tpu.memory_space<vmem>>, vector<1x64xf32>
    tpu.vector_store %arg9[%c0_308, %c1984], %455 {strides = array<i32>} : memref<1x4096xf32, #tpu.memory_space<vmem>>, vector<1x64xf32>,
    %457 = vector.extract_strided_slice %392 {offsets = [32, 0], sizes = [1, 64], strides = [1, 1]} : vector<64x64xf32> to vector<1x64xf32>
    %c0_309 = arith.constant 0 : index
    %c2048 = arith.constant 2048 : index
    %458 = vector.load %arg9[%c0_309, %c2048] : memref<1x4096xf32, #tpu.memory_space<vmem>>, vector<1x64xf32>
    tpu.vector_store %arg9[%c0_309, %c2048], %457 {strides = array<i32>} : memref<1x4096xf32, #tpu.memory_space<vmem>>, vector<1x64xf32>,
    %459 = vector.extract_strided_slice %392 {offsets = [33, 0], sizes = [1, 64], strides = [1, 1]} : vector<64x64xf32> to vector<1x64xf32>
    %c0_310 = arith.constant 0 : index
    %c2112 = arith.constant 2112 : index
    %460 = vector.load %arg9[%c0_310, %c2112] : memref<1x4096xf32, #tpu.memory_space<vmem>>, vector<1x64xf32>
    tpu.vector_store %arg9[%c0_310, %c2112], %459 {strides = array<i32>} : memref<1x4096xf32, #tpu.memory_space<vmem>>, vector<1x64xf32>,
    %461 = vector.extract_strided_slice %392 {offsets = [34, 0], sizes = [1, 64], strides = [1, 1]} : vector<64x64xf32> to vector<1x64xf32>
    %c0_311 = arith.constant 0 : index
    %c2176 = arith.constant 2176 : index
    %462 = vector.load %arg9[%c0_311, %c2176] : memref<1x4096xf32, #tpu.memory_space<vmem>>, vector<1x64xf32>
    tpu.vector_store %arg9[%c0_311, %c2176], %461 {strides = array<i32>} : memref<1x4096xf32, #tpu.memory_space<vmem>>, vector<1x64xf32>,
    %463 = vector.extract_strided_slice %392 {offsets = [35, 0], sizes = [1, 64], strides = [1, 1]} : vector<64x64xf32> to vector<1x64xf32>
    %c0_312 = arith.constant 0 : index
    %c2240 = arith.constant 2240 : index
    %464 = vector.load %arg9[%c0_312, %c2240] : memref<1x4096xf32, #tpu.memory_space<vmem>>, vector<1x64xf32>
    tpu.vector_store %arg9[%c0_312, %c2240], %463 {strides = array<i32>} : memref<1x4096xf32, #tpu.memory_space<vmem>>, vector<1x64xf32>,
    %465 = vector.extract_strided_slice %392 {offsets = [36, 0], sizes = [1, 64], strides = [1, 1]} : vector<64x64xf32> to vector<1x64xf32>
    %c0_313 = arith.constant 0 : index
    %c2304 = arith.constant 2304 : index
    %466 = vector.load %arg9[%c0_313, %c2304] : memref<1x4096xf32, #tpu.memory_space<vmem>>, vector<1x64xf32>
    tpu.vector_store %arg9[%c0_313, %c2304], %465 {strides = array<i32>} : memref<1x4096xf32, #tpu.memory_space<vmem>>, vector<1x64xf32>,
    %467 = vector.extract_strided_slice %392 {offsets = [37, 0], sizes = [1, 64], strides = [1, 1]} : vector<64x64xf32> to vector<1x64xf32>
    %c0_314 = arith.constant 0 : index
    %c2368 = arith.constant 2368 : index
    %468 = vector.load %arg9[%c0_314, %c2368] : memref<1x4096xf32, #tpu.memory_space<vmem>>, vector<1x64xf32>
    tpu.vector_store %arg9[%c0_314, %c2368], %467 {strides = array<i32>} : memref<1x4096xf32, #tpu.memory_space<vmem>>, vector<1x64xf32>,
    %469 = vector.extract_strided_slice %392 {offsets = [38, 0], sizes = [1, 64], strides = [1, 1]} : vector<64x64xf32> to vector<1x64xf32>
    %c0_315 = arith.constant 0 : index
    %c2432 = arith.constant 2432 : index
    %470 = vector.load %arg9[%c0_315, %c2432] : memref<1x4096xf32, #tpu.memory_space<vmem>>, vector<1x64xf32>
    tpu.vector_store %arg9[%c0_315, %c2432], %469 {strides = array<i32>} : memref<1x4096xf32, #tpu.memory_space<vmem>>, vector<1x64xf32>,
    %471 = vector.extract_strided_slice %392 {offsets = [39, 0], sizes = [1, 64], strides = [1, 1]} : vector<64x64xf32> to vector<1x64xf32>
    %c0_316 = arith.constant 0 : index
    %c2496 = arith.constant 2496 : index
    %472 = vector.load %arg9[%c0_316, %c2496] : memref<1x4096xf32, #tpu.memory_space<vmem>>, vector<1x64xf32>
    tpu.vector_store %arg9[%c0_316, %c2496], %471 {strides = array<i32>} : memref<1x4096xf32, #tpu.memory_space<vmem>>, vector<1x64xf32>,
    %473 = vector.extract_strided_slice %392 {offsets = [40, 0], sizes = [1, 64], strides = [1, 1]} : vector<64x64xf32> to vector<1x64xf32>
    %c0_317 = arith.constant 0 : index
    %c2560 = arith.constant 2560 : index
    %474 = vector.load %arg9[%c0_317, %c2560] : memref<1x4096xf32, #tpu.memory_space<vmem>>, vector<1x64xf32>
    tpu.vector_store %arg9[%c0_317, %c2560], %473 {strides = array<i32>} : memref<1x4096xf32, #tpu.memory_space<vmem>>, vector<1x64xf32>,
    %475 = vector.extract_strided_slice %392 {offsets = [41, 0], sizes = [1, 64], strides = [1, 1]} : vector<64x64xf32> to vector<1x64xf32>
    %c0_318 = arith.constant 0 : index
    %c2624 = arith.constant 2624 : index
    %476 = vector.load %arg9[%c0_318, %c2624] : memref<1x4096xf32, #tpu.memory_space<vmem>>, vector<1x64xf32>
    tpu.vector_store %arg9[%c0_318, %c2624], %475 {strides = array<i32>} : memref<1x4096xf32, #tpu.memory_space<vmem>>, vector<1x64xf32>,
    %477 = vector.extract_strided_slice %392 {offsets = [42, 0], sizes = [1, 64], strides = [1, 1]} : vector<64x64xf32> to vector<1x64xf32>
    %c0_319 = arith.constant 0 : index
    %c2688 = arith.constant 2688 : index
    %478 = vector.load %arg9[%c0_319, %c2688] : memref<1x4096xf32, #tpu.memory_space<vmem>>, vector<1x64xf32>
    tpu.vector_store %arg9[%c0_319, %c2688], %477 {strides = array<i32>} : memref<1x4096xf32, #tpu.memory_space<vmem>>, vector<1x64xf32>,
    %479 = vector.extract_strided_slice %392 {offsets = [43, 0], sizes = [1, 64], strides = [1, 1]} : vector<64x64xf32> to vector<1x64xf32>
    %c0_320 = arith.constant 0 : index
    %c2752 = arith.constant 2752 : index
    %480 = vector.load %arg9[%c0_320, %c2752] : memref<1x4096xf32, #tpu.memory_space<vmem>>, vector<1x64xf32>
    tpu.vector_store %arg9[%c0_320, %c2752], %479 {strides = array<i32>} : memref<1x4096xf32, #tpu.memory_space<vmem>>, vector<1x64xf32>,
    %481 = vector.extract_strided_slice %392 {offsets = [44, 0], sizes = [1, 64], strides = [1, 1]} : vector<64x64xf32> to vector<1x64xf32>
    %c0_321 = arith.constant 0 : index
    %c2816 = arith.constant 2816 : index
    %482 = vector.load %arg9[%c0_321, %c2816] : memref<1x4096xf32, #tpu.memory_space<vmem>>, vector<1x64xf32>
    tpu.vector_store %arg9[%c0_321, %c2816], %481 {strides = array<i32>} : memref<1x4096xf32, #tpu.memory_space<vmem>>, vector<1x64xf32>,
    %483 = vector.extract_strided_slice %392 {offsets = [45, 0], sizes = [1, 64], strides = [1, 1]} : vector<64x64xf32> to vector<1x64xf32>
    %c0_322 = arith.constant 0 : index
    %c2880 = arith.constant 2880 : index
    %484 = vector.load %arg9[%c0_322, %c2880] : memref<1x4096xf32, #tpu.memory_space<vmem>>, vector<1x64xf32>
    tpu.vector_store %arg9[%c0_322, %c2880], %483 {strides = array<i32>} : memref<1x4096xf32, #tpu.memory_space<vmem>>, vector<1x64xf32>,
    %485 = vector.extract_strided_slice %392 {offsets = [46, 0], sizes = [1, 64], strides = [1, 1]} : vector<64x64xf32> to vector<1x64xf32>
    %c0_323 = arith.constant 0 : index
    %c2944 = arith.constant 2944 : index
    %486 = vector.load %arg9[%c0_323, %c2944] : memref<1x4096xf32, #tpu.memory_space<vmem>>, vector<1x64xf32>
    tpu.vector_store %arg9[%c0_323, %c2944], %485 {strides = array<i32>} : memref<1x4096xf32, #tpu.memory_space<vmem>>, vector<1x64xf32>,
    %487 = vector.extract_strided_slice %392 {offsets = [47, 0], sizes = [1, 64], strides = [1, 1]} : vector<64x64xf32> to vector<1x64xf32>
    %c0_324 = arith.constant 0 : index
    %c3008 = arith.constant 3008 : index
    %488 = vector.load %arg9[%c0_324, %c3008] : memref<1x4096xf32, #tpu.memory_space<vmem>>, vector<1x64xf32>
    tpu.vector_store %arg9[%c0_324, %c3008], %487 {strides = array<i32>} : memref<1x4096xf32, #tpu.memory_space<vmem>>, vector<1x64xf32>,
    %489 = vector.extract_strided_slice %392 {offsets = [48, 0], sizes = [1, 64], strides = [1, 1]} : vector<64x64xf32> to vector<1x64xf32>
    %c0_325 = arith.constant 0 : index
    %c3072 = arith.constant 3072 : index
    %490 = vector.load %arg9[%c0_325, %c3072] : memref<1x4096xf32, #tpu.memory_space<vmem>>, vector<1x64xf32>
    tpu.vector_store %arg9[%c0_325, %c3072], %489 {strides = array<i32>} : memref<1x4096xf32, #tpu.memory_space<vmem>>, vector<1x64xf32>,
    %491 = vector.extract_strided_slice %392 {offsets = [49, 0], sizes = [1, 64], strides = [1, 1]} : vector<64x64xf32> to vector<1x64xf32>
    %c0_326 = arith.constant 0 : index
    %c3136 = arith.constant 3136 : index
    %492 = vector.load %arg9[%c0_326, %c3136] : memref<1x4096xf32, #tpu.memory_space<vmem>>, vector<1x64xf32>
    tpu.vector_store %arg9[%c0_326, %c3136], %491 {strides = array<i32>} : memref<1x4096xf32, #tpu.memory_space<vmem>>, vector<1x64xf32>,
    %493 = vector.extract_strided_slice %392 {offsets = [50, 0], sizes = [1, 64], strides = [1, 1]} : vector<64x64xf32> to vector<1x64xf32>
    %c0_327 = arith.constant 0 : index
    %c3200 = arith.constant 3200 : index
    %494 = vector.load %arg9[%c0_327, %c3200] : memref<1x4096xf32, #tpu.memory_space<vmem>>, vector<1x64xf32>
    tpu.vector_store %arg9[%c0_327, %c3200], %493 {strides = array<i32>} : memref<1x4096xf32, #tpu.memory_space<vmem>>, vector<1x64xf32>,
    %495 = vector.extract_strided_slice %392 {offsets = [51, 0], sizes = [1, 64], strides = [1, 1]} : vector<64x64xf32> to vector<1x64xf32>
    %c0_328 = arith.constant 0 : index
    %c3264 = arith.constant 3264 : index
    %496 = vector.load %arg9[%c0_328, %c3264] : memref<1x4096xf32, #tpu.memory_space<vmem>>, vector<1x64xf32>
    tpu.vector_store %arg9[%c0_328, %c3264], %495 {strides = array<i32>} : memref<1x4096xf32, #tpu.memory_space<vmem>>, vector<1x64xf32>,
    %497 = vector.extract_strided_slice %392 {offsets = [52, 0], sizes = [1, 64], strides = [1, 1]} : vector<64x64xf32> to vector<1x64xf32>
    %c0_329 = arith.constant 0 : index
    %c3328 = arith.constant 3328 : index
    %498 = vector.load %arg9[%c0_329, %c3328] : memref<1x4096xf32, #tpu.memory_space<vmem>>, vector<1x64xf32>
    tpu.vector_store %arg9[%c0_329, %c3328], %497 {strides = array<i32>} : memref<1x4096xf32, #tpu.memory_space<vmem>>, vector<1x64xf32>,
    %499 = vector.extract_strided_slice %392 {offsets = [53, 0], sizes = [1, 64], strides = [1, 1]} : vector<64x64xf32> to vector<1x64xf32>
    %c0_330 = arith.constant 0 : index
    %c3392 = arith.constant 3392 : index
    %500 = vector.load %arg9[%c0_330, %c3392] : memref<1x4096xf32, #tpu.memory_space<vmem>>, vector<1x64xf32>
    tpu.vector_store %arg9[%c0_330, %c3392], %499 {strides = array<i32>} : memref<1x4096xf32, #tpu.memory_space<vmem>>, vector<1x64xf32>,
    %501 = vector.extract_strided_slice %392 {offsets = [54, 0], sizes = [1, 64], strides = [1, 1]} : vector<64x64xf32> to vector<1x64xf32>
    %c0_331 = arith.constant 0 : index
    %c3456 = arith.constant 3456 : index
    %502 = vector.load %arg9[%c0_331, %c3456] : memref<1x4096xf32, #tpu.memory_space<vmem>>, vector<1x64xf32>
    tpu.vector_store %arg9[%c0_331, %c3456], %501 {strides = array<i32>} : memref<1x4096xf32, #tpu.memory_space<vmem>>, vector<1x64xf32>,
    %503 = vector.extract_strided_slice %392 {offsets = [55, 0], sizes = [1, 64], strides = [1, 1]} : vector<64x64xf32> to vector<1x64xf32>
    %c0_332 = arith.constant 0 : index
    %c3520 = arith.constant 3520 : index
    %504 = vector.load %arg9[%c0_332, %c3520] : memref<1x4096xf32, #tpu.memory_space<vmem>>, vector<1x64xf32>
    tpu.vector_store %arg9[%c0_332, %c3520], %503 {strides = array<i32>} : memref<1x4096xf32, #tpu.memory_space<vmem>>, vector<1x64xf32>,
    %505 = vector.extract_strided_slice %392 {offsets = [56, 0], sizes = [1, 64], strides = [1, 1]} : vector<64x64xf32> to vector<1x64xf32>
    %c0_333 = arith.constant 0 : index
    %c3584 = arith.constant 3584 : index
    %506 = vector.load %arg9[%c0_333, %c3584] : memref<1x4096xf32, #tpu.memory_space<vmem>>, vector<1x64xf32>
    tpu.vector_store %arg9[%c0_333, %c3584], %505 {strides = array<i32>} : memref<1x4096xf32, #tpu.memory_space<vmem>>, vector<1x64xf32>,
    %507 = vector.extract_strided_slice %392 {offsets = [57, 0], sizes = [1, 64], strides = [1, 1]} : vector<64x64xf32> to vector<1x64xf32>
    %c0_334 = arith.constant 0 : index
    %c3648 = arith.constant 3648 : index
    %508 = vector.load %arg9[%c0_334, %c3648] : memref<1x4096xf32, #tpu.memory_space<vmem>>, vector<1x64xf32>
    tpu.vector_store %arg9[%c0_334, %c3648], %507 {strides = array<i32>} : memref<1x4096xf32, #tpu.memory_space<vmem>>, vector<1x64xf32>,
    %509 = vector.extract_strided_slice %392 {offsets = [58, 0], sizes = [1, 64], strides = [1, 1]} : vector<64x64xf32> to vector<1x64xf32>
    %c0_335 = arith.constant 0 : index
    %c3712 = arith.constant 3712 : index
    %510 = vector.load %arg9[%c0_335, %c3712] : memref<1x4096xf32, #tpu.memory_space<vmem>>, vector<1x64xf32>
    tpu.vector_store %arg9[%c0_335, %c3712], %509 {strides = array<i32>} : memref<1x4096xf32, #tpu.memory_space<vmem>>, vector<1x64xf32>,
    %511 = vector.extract_strided_slice %392 {offsets = [59, 0], sizes = [1, 64], strides = [1, 1]} : vector<64x64xf32> to vector<1x64xf32>
    %c0_336 = arith.constant 0 : index
    %c3776 = arith.constant 3776 : index
    %512 = vector.load %arg9[%c0_336, %c3776] : memref<1x4096xf32, #tpu.memory_space<vmem>>, vector<1x64xf32>
    tpu.vector_store %arg9[%c0_336, %c3776], %511 {strides = array<i32>} : memref<1x4096xf32, #tpu.memory_space<vmem>>, vector<1x64xf32>,
    %513 = vector.extract_strided_slice %392 {offsets = [60, 0], sizes = [1, 64], strides = [1, 1]} : vector<64x64xf32> to vector<1x64xf32>
    %c0_337 = arith.constant 0 : index
    %c3840 = arith.constant 3840 : index
    %514 = vector.load %arg9[%c0_337, %c3840] : memref<1x4096xf32, #tpu.memory_space<vmem>>, vector<1x64xf32>
    tpu.vector_store %arg9[%c0_337, %c3840], %513 {strides = array<i32>} : memref<1x4096xf32, #tpu.memory_space<vmem>>, vector<1x64xf32>,
    %515 = vector.extract_strided_slice %392 {offsets = [61, 0], sizes = [1, 64], strides = [1, 1]} : vector<64x64xf32> to vector<1x64xf32>
    %c0_338 = arith.constant 0 : index
    %c3904 = arith.constant 3904 : index
    %516 = vector.load %arg9[%c0_338, %c3904] : memref<1x4096xf32, #tpu.memory_space<vmem>>, vector<1x64xf32>
    tpu.vector_store %arg9[%c0_338, %c3904], %515 {strides = array<i32>} : memref<1x4096xf32, #tpu.memory_space<vmem>>, vector<1x64xf32>,
    %517 = vector.extract_strided_slice %392 {offsets = [62, 0], sizes = [1, 64], strides = [1, 1]} : vector<64x64xf32> to vector<1x64xf32>
    %c0_339 = arith.constant 0 : index
    %c3968 = arith.constant 3968 : index
    %518 = vector.load %arg9[%c0_339, %c3968] : memref<1x4096xf32, #tpu.memory_space<vmem>>, vector<1x64xf32>
    tpu.vector_store %arg9[%c0_339, %c3968], %517 {strides = array<i32>} : memref<1x4096xf32, #tpu.memory_space<vmem>>, vector<1x64xf32>,
    %519 = vector.extract_strided_slice %392 {offsets = [63, 0], sizes = [1, 64], strides = [1, 1]} : vector<64x64xf32> to vector<1x64xf32>
    %c0_340 = arith.constant 0 : index
    %c4032 = arith.constant 4032 : index
    %520 = vector.load %arg9[%c0_340, %c4032] : memref<1x4096xf32, #tpu.memory_space<vmem>>, vector<1x64xf32>
    tpu.vector_store %arg9[%c0_340, %c4032], %519 {strides = array<i32>} : memref<1x4096xf32, #tpu.memory_space<vmem>>, vector<1x64xf32>,
    %c0_341 = arith.constant 0 : index
    %c0_342 = arith.constant 0 : index
    %521 = vector.load %arg9[%c0_341, %c0_342] : memref<1x4096xf32, #tpu.memory_space<vmem>>, vector<1x4096xf32>
    %522 = arith.truncf %521 : vector<1x4096xf32> to vector<1x4096xbf16>
    %c0_343 = arith.constant 0 : index
    %c0_344 = arith.constant 0 : index
    %523 = vector.load %arg5[%c0_343, %c0_344] : memref<4096x128xbf16, #tpu.memory_space<vmem>>, vector<4096x128xbf16>
    %cst_345 = arith.constant dense<0.000000e+00> : vector<1x128xf32>
    %524 = tpu.matmul %522, %523, %cst_345 {dimension_numbers = #tpu.dot_dimension_numbers<[1], [0], [0], [1], [0, 0, 1, 1], [], []>} : vector<1x4096xbf16>, vector<4096x128xbf16>, vector<1x128xf32> -> vector<1x128xf32>
    %c0_346 = arith.constant 0 : index
    %c0_347 = arith.constant 0 : index
    %525 = vector.load %arg6[%c0_346, %c0_347] : memref<1x128xf32, #tpu.memory_space<vmem>>, vector<1x128xf32>
    %526 = arith.addf %524, %525 : vector<1x128xf32>
    %cst_348 = arith.constant dense<0xFF800000> : vector<1xf32>
    %527 = vector.multi_reduction <maximumf>, %526, %cst_348 [1] : vector<1x128xf32> to vector<1xf32>
    %528 = vector.shape_cast %527 : vector<1xf32> to vector<1x1xf32>
    %529 = vector.broadcast %528 : vector<1x1xf32> to vector<1x128xf32>
    %530 = arith.subf %526, %529 : vector<1x128xf32>
    %531 = math.exp %530 : vector<1x128xf32>
    %cst_349 = arith.constant dense<0.000000e+00> : vector<1xf32>
    %532 = vector.multi_reduction <add>, %531, %cst_349 [1] : vector<1x128xf32> to vector<1xf32>
    %533 = vector.shape_cast %532 : vector<1xf32> to vector<1x1xf32>
    %534 = math.log %533 : vector<1x1xf32>
    %535 = vector.broadcast %534 : vector<1x1xf32> to vector<1x128xf32>
    %536 = arith.subf %530, %535 : vector<1x128xf32>
    %c0_350 = arith.constant 0 : index
    %c0_351 = arith.constant 0 : index
    %537 = vector.load %arg7[%c0_350, %c0_351] : memref<1x128xf32, #tpu.memory_space<vmem>>, vector<1x128xf32>
    tpu.vector_store %arg7[%c0_350, %c0_351], %536 {strides = array<i32>} : memref<1x128xf32, #tpu.memory_space<vmem>>, vector<1x128xf32>,
    return
  }
}

</mosaic_0001>

<bundles_post_ra>
// kernel: actor_forward.1
= control target key start
LH: loop header
LB: loop body
LE: loop exit
PB: predicated region body
PF: predicated region fallthrough
CT: control target
= control target key end

     0   :  { %12 = vsyncpa [#allocation5], 0  ;;  %s19136_s0 = inlined_call_operand.vmem [shape: f32[64,64], index: 0, kind: input, shape index: {}]   ;;  %s19137_s1 = inlined_call_operand.hbm [shape: bf16[6,64,576], index: 1, kind: input, shape index: {}]   ;;  %s19138_s2 = inlined_call_operand.vmem [shape: f32[64,9], index: 2, kind: input, shape index: {}]   ;;  %s19139_s3 = inlined_call_operand.hbm [shape: f32[6,1,64], index: 3, kind: input, shape index: {}]   ;;  %s19140_s4 = inlined_call_operand.hbm [shape: f32[6,1,64], index: 4, kind: input, shape index: {}]   ;;  %s19141_s5 = inlined_call_operand.vmem [shape: bf16[4096,128], index: 5, kind: input, shape index: {}]   ;;  %s19142_s6 = inlined_call_operand.vmem [shape: f32[1,128], index: 6, kind: input, shape index: {}]   ;;  %s19143_s7 = inlined_call_operand.vmem [shape: f32[1,128], index: 7, kind: output, shape index: {}]  }
   0x1   :  { %13 = vsyncpa [#allocation7], 0  ;;  %s35_s26 = sshll.u32 %s19139_s3, 4  ;;  %s13292_s27 = smov [#allocation6]   ;;  %s36_s26 = int_to_ptr.hbm [resolvable:$true] %s35_s26 }
   0x2   :  { %s37_s28 = sshll.u32 %s13292_s27, 4  ;;  %s20_s8 = sshll.u32 %s19137_s1, 4  ;;  %s38_s28 = int_to_ptr.vmem [resolvable:$true] %s37_s28  ;;  %s21_s8 = int_to_ptr.hbm [resolvable:$true] %s20_s8 }
   0x3   :  { %s13293_s9 = smov 16   ;;  %s13294_s10 = smov 1  }
   0x4   :  { %43 = dma.hbm_to_vmem [thread:$0]  %s36_s26, 96, %s38_s28, [#allocation7], %s13293_s9, %s13293_s9, %s13294_s10  }
   0x5   :  { %s13295_s11 = smov [#allocation4]   ;;  %s13296_s13 = smov 320  }
   0x6   :  { %s22_s12 = sshll.u32 %s13295_s11, 4  ;;  %s13297_s14 = smov 20   ;;  %s23_s12 = int_to_ptr.vmem [resolvable:$true] %s22_s12 }
   0x7   :  { %28 = dma.hbm_to_vmem [thread:$0]  %s21_s8, 15360, %s23_s12, [#allocation5], %s13296_s13, %s13296_s13, %s13297_s14  }
   0x8   :  { %s48_s16 = sshll.u32 %s19140_s4, 4  ;;  %s13298_s17 = smov [#allocation8]   ;;  %s49_s16 = int_to_ptr.hbm [resolvable:$true] %s48_s16 }
   0x9   :  { %s50_s18 = sshll.u32 %s13298_s17, 4  ;;  %s51_s18 = int_to_ptr.vmem [resolvable:$true] %s50_s18 }
   0xa   :  { %56 = dma.hbm_to_vmem [thread:$0]  %s49_s16, 96, %s51_s18, [#allocation7], %s13293_s9, %s13293_s9, %s13294_s10  }
   0xb   :  { %13288 = dma.done.wait [#allocation5], 15360  }
   0xc   :  { %13289 = vsyncadd [#allocation5], 4294951936 }
   0xd   :  { %13290 = dma.done.wait [#allocation7], 192  }
   0xe   :  { %13291 = vsyncadd [#allocation7], 4294967104  ;;  %v13299_v0 = vmov 0.0   ;;  %v19153_v1 = vmov 5   ;;  %v19157_v2 = vmov 3   ;;  %vm78_vm0 = vcmask 523264  }
   0xf   :  { %75 = vst [vmem:[#allocation2 + $0x8] sm:$0xff] %v13299_v0  ;;  %13020 = vset.pattern.permute.xlu0 %v19153_v1  ;;  %13018 = vset.pattern.permute.xlu2 %v19153_v1  ;;  %v13363_v3 = vld [vmem:[%s19138_s2 + $0x20] sm:$0xff]  ;;  %v13368_v4 = vld [vmem:[%s19138_s2 + $0x10] sm:$0xff]  ;;  %v13373_v5 = vld [vmem:[%s19138_s2 + $0x8] sm:$0xff]  ;;  %vm521_vm1 = vcmask 1046528   ;;  %vm657_vm2 = vcmask 1040384  }
  0x10   :  { %13016 = vset.pattern.permute.xlu1 %v19157_v2  ;;  %904 = vperm.xlu0 %13020, %v13363_v3   ;;  %v11063_v6 = vld [vmem:[#allocation4 + $0x78] sm:$0xf]  ;;  %v12642_v7 = vld [vmem:[#allocation4 + $0x88] sm:$0xf0]  ;;  %v12640_v9 = vld [vmem:[#allocation4 + $0x7c] sm:$0xf] }
  0x11   :  { %745 = vperm.xlu1 %13016, %v13368_v4   ;;  %895 = vperm.xlu2 %13018, %v13373_v5   ;;  %v11064_v8 = vor.u32 %v12642_v7, %v11063_v6  ;;  %v11065_v10 = vld [vmem:[#allocation4 + $0x8c] sm:$0xf0]  ;;  %v11071_v12 = vld [vmem:[#allocation4 + $0x80] sm:$0xf]  ;;  %v12643_v13 = vld [vmem:[#allocation4 + $0x90] sm:$0xf0] }
  0x12   :  { %v11068_v11 = vor.u32 %v12640_v9, %v11065_v10  ;;  %v11072_v14 = vor.u32 %v12643_v13, %v11071_v12  ;;  %v12641_v15 = vld [vmem:[#allocation4 + $0x84] sm:$0xf]  ;;  %v11073_v16 = vld [vmem:[#allocation4 + $0x94] sm:$0xf0]  ;;  %v11043_v18 = vld [vmem:[#allocation4 + $0x50] sm:$0xf] }
  0x13   :  { %291 = vmatpush.bf16.msra.mxu0 %v11064_v8  ;;  %v11076_v17 = vor.u32 %v12641_v15, %v11073_v16  ;;  %v12637_v19 = vld [vmem:[#allocation4 + $0x60] sm:$0xf0]  ;;  %v12635_v21 = vld [vmem:[#allocation4 + $0x54] sm:$0xf]  ;;  %v11045_v22 = vld [vmem:[#allocation4 + $0x64] sm:$0xf0] }
  0x14   :  { %320 = vmatpush.bf16.msra.mxu1 %v11068_v11  ;;  %349 = vmatpush.bf16.msra.mxu2 %v11072_v14  ;;  %v11044_v20 = vor.u32 %v12637_v19, %v11043_v18  ;;  %74 = vst [vmem:[#allocation2] sm:$0xff] %v13299_v0  ;;  %v11048_v23 = vor.u32 %v12635_v21, %v11045_v22  ;;  %v11051_v24 = vld [vmem:[#allocation4 + $0x58] sm:$0xf]  ;;  %v12638_v25 = vld [vmem:[#allocation4 + $0x68] sm:$0xf0]  ;;  %v136_v49 = vld [vmem:[%s19136_s0 + $0x8] sm:$0xff] }
  0x15   :  { %378 = vmatpush.bf16.msra.mxu3 %v11076_v17  ;;  %v11052_v26 = vor.u32 %v12638_v25, %v11051_v24  ;;  %v12636_v27 = vld [vmem:[#allocation4 + $0x5c] sm:$0xf]  ;;  %v11053_v28 = vld [vmem:[#allocation4 + $0x6c] sm:$0xf0]  ;;  %81 = vst [vmem:[#allocation2 + $0x30] sm:$0xff] %v13299_v0  ;;  %v13438_v59 = vld [vmem:[%s19138_s2 + $0x28] sm:$0xff] }
  0x16   :  { %v11056_v29 = vor.u32 %v12636_v27, %v11053_v28  ;;  %v13384_v30 = vld [vmem:[%s19138_s2] sm:$0xff]  ;;  %v11023_v31 = vld [vmem:[#allocation4 + $0x28] sm:$0xf]  ;;  %v12630_v34 = vld [vmem:[#allocation4 + $0x2c] sm:$0xf]  ;;  %94 = vst.msk [vmem:[#allocation2 + $0x98] sm:$0xff] %vm78_vm0, %v13299_v0 }
  0x17   :  { %292 = vmatpush.bf16.msra.mxu0 %v11044_v20  ;;  %v12632_v32 = vld [vmem:[#allocation4 + $0x38] sm:$0xf0]  ;;  %v11025_v35 = vld [vmem:[#allocation4 + $0x3c] sm:$0xf0]  ;;  %v11031_v37 = vld [vmem:[#allocation4 + $0x30] sm:$0xf] }
  0x18   :  { %321 = vmatpush.bf16.msra.mxu1 %v11048_v23  ;;  %13021 = vset.pattern.permute.xlu0 %v19157_v2  ;;  %v11024_v33 = vor.u32 %v12632_v32, %v11023_v31  ;;  %v11028_v36 = vor.u32 %v12630_v34, %v11025_v35  ;;  %v12633_v38 = vld [vmem:[#allocation4 + $0x40] sm:$0xf0]  ;;  %99 = vst.msk [vmem:[#allocation2 + $0xc0] sm:$0xff] %vm78_vm0, %v13299_v0  ;;  %v12631_v40 = vld [vmem:[#allocation4 + $0x34] sm:$0xf]  ;;  %v135_v45 = vld [vmem:[%s19136_s0] sm:$0xff] }
  0x19   :  { %350 = vmatpush.bf16.msra.mxu2 %v11052_v26  ;;  %13017 = vset.pattern.permute.xlu1 %v19153_v1  ;;  %v11032_v39 = vor.u32 %v12633_v38, %v11031_v37  ;;  %v11033_v41 = vld [vmem:[#allocation4 + $0x44] sm:$0xf0]  ;;  %104 = vst.msk [vmem:[#allocation2 + $0xe8] sm:$0xff] %vm78_vm0, %v13299_v0  ;;  %v11003_v43 = vld [vmem:[#allocation4] sm:$0xf]  ;;  %v13410_v57 = vpack.c.bf16 %v136_v49, %v135_v45  ;;  %v13416_v58 = vld [vmem:[%s19138_s2 + $0x18] sm:$0xff] }
  0x1a   :  { %379 = vmatpush.bf16.msra.mxu3 %v11056_v29  ;;  %898 = vperm.xlu2 %13018, %v13368_v4   ;;  %v11036_v42 = vor.u32 %v12631_v40, %v11033_v41  ;;  %v12627_v44 = vld [vmem:[#allocation4 + $0x10] sm:$0xf0]  ;;  %109 = vst.msk [vmem:[#allocation2 + $0x110] sm:$0xff] %vm78_vm0, %v13299_v0  ;;  %v12625_v47 = vld [vmem:[#allocation4 + $0x4] sm:$0xf]  ;;  %v137_v60 = vld [vmem:[%s19136_s0 + $0x10] sm:$0xff] }
  0x1b   :  { %739 = vperm.xlu0 %13021, %v13384_v30   ;;  %892 = vperm.xlu1 %13017, %v13384_v30   ;;  %v11004_v46 = vor.u32 %v12627_v44, %v11003_v43  ;;  %v11005_v48 = vld [vmem:[#allocation4 + $0x14] sm:$0xf0]  ;;  %114 = vst.msk [vmem:[#allocation2 + $0x138] sm:$0xff] %vm78_vm0, %v13299_v0  ;;  %v11011_v51 = vld [vmem:[#allocation4 + $0x8] sm:$0xf]  ;;  %v138_v61 = vld [vmem:[%s19136_s0 + $0x18] sm:$0xff] }
  0x1c   :  { %293 = vmatpush.bf16.msra.mxu0 %v11024_v33  ;;  %322 = vmatpush.bf16.msra.mxu1 %v11028_v36  ;;  %v11008_v50 = vor.u32 %v12625_v47, %v11005_v48  ;;  %v12628_v52 = vld [vmem:[#allocation4 + $0x18] sm:$0xf0]  ;;  %119 = vst.msk [vmem:[#allocation2 + $0x160] sm:$0xff] %vm78_vm0, %v13299_v0  ;;  %v12626_v54 = vld [vmem:[#allocation4 + $0xc] sm:$0xf]  ;;  %v13454_v62 = vld [vmem:[%s19138_s2 + $0x38] sm:$0xff]  ;;  %v13456_v63 = vpack.c.bf16 %v138_v61, %v137_v60 }
  0x1d   :  { %351 = vmatpush.bf16.msra.mxu2 %v11032_v39  ;;  %v11012_v53 = vor.u32 %v12628_v52, %v11011_v51  ;;  %v11013_v55 = vld [vmem:[#allocation4 + $0x1c] sm:$0xf0]  ;;  %124 = vst.msk [vmem:[#allocation2 + $0x188] sm:$0xff] %vm78_vm0, %v13299_v0  ;;  %v13461_v6 = vld [vmem:[%s19138_s2 + $0x30] sm:$0xff]  ;;  %v12644_v8 = vld [vmem:[#allocation4 + $0x98] sm:$0xf0] }
  0x1e   :  { %380 = vmatpush.bf16.msra.mxu3 %v11036_v42  ;;  %v11016_v56 = vor.u32 %v12626_v54, %v11013_v55  ;;  %127 = vst [vmem:[#allocation2 + $0x1a0] sm:$0xff] %v13299_v0  ;;  %v11079_v7 = vld [vmem:[#allocation4 + $0x88] sm:$0xf]  ;;  %v11059_v10 = vld [vmem:[#allocation4 + $0x60] sm:$0xf]  ;;  %v19148_v15 = vmov 0  }
  0x1f   :  { %128 = vst [vmem:[#allocation2 + $0x1a8] sm:$0xff] %v13299_v0  ;;  %v11080_v9 = vor.u32 %v12644_v8, %v11079_v7  ;;  %v12639_v11 = vld [vmem:[#allocation4 + $0x70] sm:$0xf0]  ;;  %v11039_v13 = vld [vmem:[#allocation4 + $0x38] sm:$0xf]  ;;  %v19150_v17 = vmov 2  }
  0x20   :  { %294 = vmatpush.bf16.msra.mxu0 %v11004_v46  ;;  %323 = vmatpush.bf16.msra.mxu1 %v11008_v50  ;;  %129 = vst.msk [vmem:[#allocation2 + $0x1b0] sm:$0xff] %vm78_vm0, %v13299_v0  ;;  %v11060_v12 = vor.u32 %v12639_v11, %v11059_v10  ;;  %v12634_v14 = vld [vmem:[#allocation4 + $0x48] sm:$0xf0]  ;;  %v139_v18 = vld [vmem:[%s19136_s0 + $0x20] sm:$0xff]  ;;  %v140_v19 = vld [vmem:[%s19136_s0 + $0x28] sm:$0xff]  ;;  %v13521_v27 = vrot.slane %v13299_v0, 1 }
  0x21   :  { %352 = vmatpush.bf16.msra.mxu2 %v11012_v53  ;;  %134 = vst.msk [vmem:[#allocation2 + $0x1d8] sm:$0xff] %vm78_vm0, %v13299_v0  ;;  %v11040_v16 = vor.u32 %v12634_v14, %v11039_v13  ;;  %v13486_v20 = vpack.c.bf16 %v140_v19, %v139_v18  ;;  %v11019_v21 = vld [vmem:[#allocation4 + $0x10] sm:$0xf]  ;;  %v12629_v22 = vld [vmem:[#allocation4 + $0x20] sm:$0xf0]  ;;  %v141_v24 = vld [vmem:[%s19136_s0 + $0x30] sm:$0xff] }
  0x22   :  { %381 = vmatpush.bf16.msra.mxu3 %v11016_v56  ;;  %13019 = vset.pattern.permute.xlu2 %v19157_v2  ;;  %v11020_v23 = vor.u32 %v12629_v22, %v11019_v21  ;;  %v142_v25 = vld [vmem:[%s19136_s0 + $0x38] sm:$0xff]  ;;  %s13304_s0 = smov 64   ;;  %v19146_v28 = vmov 6   ;;  %v19144_v29 = vmov 8   ;;  %vm700_vm3 = vcmask 1045504  }
  0x23   :  { %751 = vperm.xlu2 %13019, %v13363_v3   ;;  %742 = vperm.xlu0 %13021, %v13373_v5   ;;  %v146_v26 = vpack.c.bf16 %v142_v25, %v141_v24  ;;  %v736_v37 = vld [vmem:[#allocation2 + $0x30] sm:$0x80]  ;;  %vm1451_vm7 = vsmask.f32 4352 }
  0x24   :  { %901 = vperm.xlu1 %13017, %v13416_v58   ;;  %11081 = vmatmul.msk.bf16.vlgmr.msra.gmra.mxu0 %vm78_vm0, %v13410_v57 }
  0x25   :  { %11085 = vmatmul.msk.bf16.vlgmr.msra.gmra.mxu1 %vm78_vm0, %v13410_v57  ;;  %11089 = vmatmul.msk.bf16.vlgmr.msra.gmra.mxu2 %vm78_vm0, %v13410_v57 }
  0x26   :  { %11093 = vmatmul.msk.bf16.vlgmr.msra.gmra.mxu3 %vm78_vm0, %v13410_v57  ;;  %407 = vmatpush.bf16.msrb.mxu0 %v11080_v9 }
  0x2a   :  { %408 = vmatpush.bf16.msrb.mxu0 %v11060_v12 }
  0x2b   :  { %13023 = vset.pattern.permute.xlu2 %v19153_v1  ;;  %748 = vperm.xlu0 %13021, %v13416_v58  }
  0x2c   :  { %13022 = vset.pattern.permute.xlu1 %v19157_v2  ;;  %907 = vperm.xlu2 %13023, %v13438_v59  }
  0x2d   :  { %754 = vperm.xlu1 %13022, %v13438_v59  }
  0x2e   :  { %409 = vmatpush.bf16.msrb.mxu0 %v11040_v16 }
  0x32   :  { %410 = vmatpush.bf16.msrb.mxu0 %v11020_v23 }
  0x33   :  { %760 = vperm.xlu0 %13021, %v13454_v62  }
  0x34   :  { %11082 = vmatmul.msk.bf16.gmra.mxu0 %vm78_vm0, %v13456_v63  ;;  %910 = vperm.xlu2 %13023, %v13461_v6  }
  0x35   :  { %11086 = vmatmul.msk.bf16.gmra.mxu1 %vm78_vm0, %v13456_v63  ;;  %11090 = vmatmul.msk.bf16.gmra.mxu2 %vm78_vm0, %v13456_v63 }
  0x36   :  { %11094 = vmatmul.msk.bf16.gmra.mxu3 %vm78_vm0, %v13456_v63  ;;  %757 = vperm.xlu1 %13022, %v13461_v6  }
  0x3b   :  { %13027 = vset.pattern.permute.xlu0 %v19148_v15 }
  0x3c   :  { %13025 = vset.pattern.permute.xlu2 %v19150_v17  ;;  %491 = vperm.xlu0 %13027, %v13384_v30  }
  0x3d   :  { %634 = vperm.xlu2 %13025, %v13384_v30  }
  0x3e   :  { %13024 = vset.pattern.permute.xlu1 %v19153_v1 }
  0x3f   :  { %913 = vperm.xlu1 %13024, %v13454_v62  }
  0x44   :  { %11083 = vmatmul.msk.bf16.gmra.mxu0 %vm78_vm0, %v13486_v20  ;;  %13031 = vset.pattern.permute.xlu0 %v19150_v17 }
  0x45   :  { %11087 = vmatmul.msk.bf16.gmra.mxu1 %vm78_vm0, %v13486_v20  ;;  %11091 = vmatmul.msk.bf16.gmra.mxu2 %vm78_vm0, %v13486_v20 }
  0x46   :  { %11095 = vmatmul.msk.bf16.gmra.mxu3 %vm78_vm0, %v13486_v20  ;;  %640 = vperm.xlu2 %13025, %v13368_v4  }
  0x47   :  { %646 = vperm.xlu0 %13031, %v13363_v3   ;;  %13026 = vset.pattern.permute.xlu1 %v19150_v17 }
  0x48   :  { %637 = vperm.xlu1 %13026, %v13373_v5  }
  0x4e   :  { %13029 = vset.pattern.permute.xlu2 %v19148_v15 }
  0x4f   :  { %649 = vperm.xlu0 %13031, %v13438_v59   ;;  %499 = vperm.xlu2 %13029, %v13368_v4  }
  0x50   :  { %13028 = vset.pattern.permute.xlu1 %v19148_v15 }
  0x51   :  { %495 = vperm.xlu1 %13028, %v13373_v5  }
  0x54   :  { %11084 = vmatmul.msk.bf16.gmra.mxu0 %vm78_vm0, %v146_v26 }
  0x55   :  { %11088 = vmatmul.msk.bf16.gmra.mxu1 %vm78_vm0, %v146_v26  ;;  %11092 = vmatmul.msk.bf16.gmra.mxu2 %vm78_vm0, %v146_v26 }
  0x56   :  { %11096 = vmatmul.msk.bf16.gmra.mxu3 %vm78_vm0, %v146_v26 }
  0x57   :  { %652 = vperm.xlu0 %13031, %v13461_v6   ;;  %503 = vperm.xlu2 %13029, %v13416_v58  }
  0x59   :  { %13030 = vset.pattern.permute.xlu1 %v19150_v17 }
  0x5a   :  { %643 = vperm.xlu1 %13030, %v13416_v58  }
  0x5f   :  { %655 = vperm.xlu0 %13031, %v13454_v62   ;;  %588 = vrot.lane.b32.xlu2 %v13521_v27, %s13304_s0 }
  0x60   :  { %13033 = vset.pattern.permute.xlu2 %v19146_v28 }
  0x62   :  { %13032 = vset.pattern.permute.xlu1 %v19148_v15 }
  0x63   :  { %507 = vperm.xlu1 %13032, %v13363_v3  }
  0x64   :  { %11097 = vmatmul.msk.bf16.vlgmr.msrb.gmra.mxu0 %vm78_vm0, %v13410_v57 }
  0x67   :  { %13034 = vset.pattern.permute.xlu0 %v19146_v28  ;;  %1020 = vperm.xlu2 %13033, %v13384_v30  }
  0x68   :  { %1023 = vperm.xlu0 %13034, %v13373_v5  }
  0x6b   :  { %511 = vperm.xlu1 %13032, %v13438_v59   ;;  %v13535_v0 = vpop.permute.xlu2 %895 }
  0x6c   :  { %v916_v9 = vrot.slane %v13535_v0, 7 }
  0x6f   :  { %13036 = vset.pattern.permute.xlu2 %v19144_v29 }
  0x70   :  { %1155 = vperm.xlu2 %13036, %v13384_v30   ;;  %1035 = vperm.xlu0 %13034, %v13438_v59  }
  0x73   :  { %515 = vperm.xlu1 %13032, %v13461_v6  }
  0x74   :  { %11098 = vmatmul.msk.bf16.gmra.mxu0 %vm78_vm0, %v13456_v63  ;;  %v13543_v31 = vpop.permute.xlu2 %898 }
  0x78   :  { %13038 = vset.pattern.permute.xlu2 %v19146_v28  ;;  %1038 = vperm.xlu0 %13034, %v13461_v6  }
  0x79   :  { %1029 = vperm.xlu2 %13038, %v13416_v58  }
  0x7b   :  { %519 = vperm.xlu1 %13032, %v13454_v62  }
  0x7d   :  { %v13549_v32 = vpop.permute.xlu2 %751 }
  0x80   :  { %13041 = vset.pattern.permute.xlu0 %v19144_v29 }
  0x81   :  { %13040 = vset.pattern.permute.xlu2 %v19144_v29 }
  0x82   :  { %1167 = vperm.xlu2 %13040, %v13363_v3   ;;  %v13555_v30 = vpop.permute.xlu0 %904 }
  0x83   :  { %13035 = vset.pattern.permute.xlu1 %v19146_v28  ;;  %v13557_v33 = vpop.permute.xlu1 %745 }
  0x84   :  { %1026 = vperm.xlu1 %13035, %v13368_v4   ;;  %11099 = vmatmul.msk.bf16.gmra.mxu0 %vm78_vm0, %v13486_v20  ;;  %v765_v51 = vrot.slane %v13557_v33, 1 }
  0x86   :  { %v13562_v34 = vpop.permute.xlu2 %907 }
  0x8a   :  { %1170 = vperm.xlu2 %13040, %v13438_v59  }
  0x8c   :  { %13037 = vset.pattern.permute.xlu1 %v19144_v29 }
  0x8d   :  { %1161 = vperm.xlu1 %13037, %v13368_v4   ;;  %v740_v35 = vpop.permute.xlu0 %739  ;;  %v893_v36 = vpop.permute.xlu1 %892 }
  0x8e   :  { %v762_v38 = vrot.slane %v740_v35, 1  ;;  %v13568_v40 = vpop.permute.xlu2 %910  ;;  %v915_v7 = vrot.slane %v893_v36, 7 }
  0x90   :  { %v786_v39 = vmul.f32 %v762_v38, %v736_v37  ;;  %v917_v22 = vsel %vm657_vm2, %v915_v7, %v916_v9 }
  0x92   :  { %13043 = vset.pattern.permute.xlu2 %v19146_v28 }
  0x94   :  { %11100 = vmatmul.msk.bf16.gmra.mxu0 %vm78_vm0, %v146_v26 }
  0x95   :  { %804 = vrot.lane.b32.xlu1 %v786_v39, %s13304_s0  ;;  %v743_v42 = vpop.permute.xlu0 %742 }
  0x96   :  { %v13572_v41 = vpop.permute.xlu1 %901  ;;  %13039 = vset.pattern.permute.xlu1 %v19146_v28  ;;  %v763_v4 = vrot.slane %v743_v42, 1 }
  0x97   :  { %v13575_v43 = vpop.permute.xlu2 %634 }
  0x98   :  { %v764_v47 = vsel %vm521_vm1, %v762_v38, %v763_v4  ;;  %v766_v57 = vsel %vm521_vm1, %v763_v4, %v765_v51 }
  0x9d   :  { %1032 = vperm.xlu1 %13039, %v13363_v3   ;;  %v749_v61 = vpop.permute.xlu0 %748 }
  0x9e   :  { %v767_v8 = vrot.slane %v749_v61, 1 }
  0x9f   :  { %v13578_v44 = vpop.permute.xlu1 %754 }
  0xa0   :  { %v13592_v3 = vpop.permute.xlu2 %640  ;;  %v768_v21 = vsel %vm521_vm1, %v765_v51, %v767_v8  ;;  %v918_v51 = vrot.slane %v13543_v31, 7 }
  0xa1   :  { %v13580_v45 = vpop.f32.mrf.mxu0 }
  0xa2   :  { %v13582_v46 = vpop.f32.mrf.mxu1  ;;  %v574_v48 = vrot.slane %v13580_v45, 1 }
  0xa3   :  { %v787_v49 = vmul.f32 %v764_v47, %v13582_v46  ;;  %v769_v47 = vrot.slane %v13549_v32, 1 }
  0xa4   :  { %v575_v50 = vsel %vm521_vm1, %v13521_v27, %v574_v48 }
  0xa5   :  { %806 = vrot.lane.b32.xlu2 %v787_v49, %s13304_s0  ;;  %590 = vrot.lane.b32.xlu1 %v575_v50, %s13304_s0 }
  0xa6   :  { %13042 = vset.pattern.permute.xlu1 %v19144_v29 }
  0xa8   :  { %v13595_v52 = vpop.permute.xlu1 %757  ;;  %v13597_v53 = vpop.f32.mrf.mxu2 }
  0xa9   :  { %434 = vst [vmem:[#allocation2 + $0x60] sm:$0xff] %v13597_v53  ;;  %v383_v54 = vpop.f32.mrf.mxu3  ;;  %v13600_v55 = vpop.f32.mrf.mxu0 }
  0xaa   :  { %435 = vst [vmem:[#allocation2 + $0x68] sm:$0xff] %v383_v54  ;;  %v13602_v56 = vpop.f32.mrf.mxu1  ;;  %v576_v60 = vrot.slane %v13600_v55, 1  ;;  %v13613_v12 = vpop.permute.xlu2 %499 }
  0xab   :  { %v788_v59 = vmul.f32 %v766_v57, %v13602_v56 }
  0xac   :  { %v577_v63 = vsel %vm521_vm1, %v574_v48, %v576_v60  ;;  %v920_v48 = vrot.slane %v13572_v41, 7 }
  0xad   :  { %808 = vrot.lane.b32.xlu0 %v788_v59, %s13304_s0  ;;  %592 = vrot.lane.b32.xlu2 %v577_v63, %s13304_s0 }
  0xae   :  { %v921_v32 = vsel %vm657_vm2, %v918_v51, %v920_v48 }
  0xb0   :  { %v13611_v10 = vpop.f32.mrf.mxu2  ;;  %v889_v11 = vld [vmem:[#allocation2 + $0x60] sm:$0xfe] }
  0xb1   :  { %v13615_v13 = vpop.f32.mrf.mxu3  ;;  %v939_v14 = vmul.f32 %v915_v7, %v889_v11  ;;  %v13617_v16 = vpop.permute.xlu1 %913  ;;  %v13629_v25 = vmul.f32 %v917_v22, %v13611_v10 }
  0xb2   :  { %v13619_v18 = vpop.f32.mrf.mxu0  ;;  %v13621_v19 = vpop.f32.mrf.mxu1  ;;  %v1094_v24 = vrot.slane %v13615_v13, 1 }
  0xb3   :  { %v957_v20 = vrot.slane %v939_v14, 2  ;;  %v789_v23 = vmul.f32 %v768_v21, %v13621_v19  ;;  %v958_v33 = vrot.slane %v13629_v25, 2  ;;  %v578_v35 = vrot.slane %v13619_v18, 1  ;;  %v13643_v38 = vpop.permute.xlu2 %503  ;;  %v13687_v25 = vpop.permute.xlu0 %760 }
  0xb4   :  { %v919_v14 = vsel %vm657_vm2, %v916_v9, %v918_v51 }
  0xb5   :  { %974 = vrot.lane.b32.xlu0 %v957_v20, %s13304_s0  ;;  %810 = vrot.lane.b32.xlu1 %v789_v23, %s13304_s0  ;;  %v959_v42 = vsel %vm700_vm3, %v957_v20, %v958_v33  ;;  %v579_v4 = vsel %vm521_vm1, %v576_v60, %v578_v35  ;;  %v770_v60 = vsel %vm521_vm1, %v767_v8, %v769_v47  ;;  %v771_v8 = vrot.slane %v13578_v44, 1 }
  0xb6   :  { %1109 = vrot.lane.b32.xlu2 %v1094_v24, %s13304_s0  ;;  %v924_v44 = vrot.slane %v13562_v34, 7 }
  0xb8   :  { %v13633_v26 = vpop.f32.mrf.mxu2 }
  0xb9   :  { %v13635_v0 = vpop.f32.mrf.mxu3  ;;  %v941_v20 = vmul.f32 %v919_v14, %v13633_v26 }
  0xba   :  { %v13639_v36 = vpop.permute.xlu1 %637  ;;  %v13641_v37 = vpop.f32.mrf.mxu0  ;;  %v1095_v49 = vrot.slane %v13635_v0, 1 }
  0xbb   :  { %v13645_v39 = vpop.f32.mrf.mxu1  ;;  %v13672_v7 = vpop.permute.xlu2 %588  ;;  %v580_v22 = vrot.slane %v13641_v37, 1 }
  0xbc   :  { %v1096_v41 = vsel %vm521_vm1, %v1094_v24, %v1095_v49  ;;  %v790_v31 = vmul.f32 %v770_v60, %v13645_v39  ;;  %v772_v24 = vsel %vm521_vm1, %v769_v47, %v771_v8 }
  0xbd   :  { %1158 = vperm.xlu0 %13041, %v13373_v5   ;;  %976 = vrot.lane.b32.xlu1 %v959_v42, %s13304_s0  ;;  %v581_v60 = vsel %vm521_vm1, %v578_v35, %v580_v22 }
  0xbe   :  { %594 = vrot.lane.b32.xlu2 %v579_v4, %s13304_s0  ;;  %v960_v4 = vrot.slane %v941_v20, 2 }
  0xc0   :  { %v13658_v54 = vpop.f32.mrf.mxu2  ;;  %v961_v35 = vsel %vm700_vm3, %v958_v33, %v960_v4 }
  0xc1   :  { %v13655_v50 = vpop.f32.mrf.mxu3  ;;  %v942_v11 = vmul.f32 %v921_v32, %v13658_v54 }
  0xc2   :  { %v13660_v5 = vpop.f32.mrf.mxu0  ;;  %v1097_v57 = vrot.slane %v13655_v50, 1 }
  0xc3   :  { %v13663_v59 = vpop.f32.mrf.mxu1  ;;  %v13667_v61 = vpop.permute.xlu1 %495  ;;  %v962_v21 = vrot.slane %v942_v11, 2 }
  0xc4   :  { %v1098_v63 = vsel %vm521_vm1, %v1095_v49, %v1097_v57  ;;  %v791_v42 = vmul.f32 %v772_v24, %v13663_v59  ;;  %v13699_v47 = vpop.permute.xlu2 %1020 }
  0xc5   :  { %1111 = vrot.lane.b32.xlu0 %v1096_v41, %s13304_s0  ;;  %1113 = vrot.lane.b32.xlu1 %v1098_v63, %s13304_s0  ;;  %v963_v51 = vsel %vm700_vm3, %v960_v4, %v962_v21  ;;  %v13705_v63 = vpop.permute.xlu0 %491 }
  0xc6   :  { %812 = vrot.lane.b32.xlu2 %v790_v31, %s13304_s0 }
  0xc8   :  { %v13719_v24 = vpop.f32.mrf.mxu2 }
  0xc9   :  { %v13701_v32 = vpop.f32.mrf.mxu3 }
  0xca   :  { %v13682_v23 = vpop.f32.mrf.mxu0  ;;  %v19152_v20 = vrot.slane %v13701_v32, 1 }
  0xcb   :  { %19276 = vst [vmem:[#allocation11_spill] sm:$0xff] %v13682_v23  ;;  %v13689_v9 = vpop.f32.mrf.mxu1 }
  0xcc   :  { %v13692_v49 = vpop.permute.xlu1 %643  ;;  %v13716_v14 = vpop.permute.xlu2 %1155  ;;  %v1100_v4 = vsel %vm521_vm1, %v1097_v57, %v19152_v20 }
  0xcd   :  { %814 = vrot.lane.b32.xlu0 %v791_v42, %s13304_s0  ;;  %980 = vrot.lane.b32.xlu1 %v963_v51, %s13304_s0  ;;  %v582_v42 = vrot.slane %v13660_v5, 1  ;;  %v584_v51 = vrot.slane %v13682_v23, 1 }
  0xce   :  { %596 = vrot.lane.b32.xlu2 %v581_v60, %s13304_s0  ;;  %v922_v60 = vrot.slane %v13555_v30, 7 }
  0xcf   :  { %v585_v15 = vsel %vm521_vm1, %v582_v42, %v584_v51 }
  0xd2   :  { %v13703_v41 = vpop.f32.mrf.mxu0 }
  0xd3   :  { %462 = vst [vmem:[#allocation2 + $0x140] sm:$0xff] %v13703_v41  ;;  %v13708_v31 = vpop.f32.mrf.mxu1 }
  0xd4   :  { %19277 = vst [vmem:[#allocation12_spill] sm:$0xff] %v13708_v31  ;;  %v13744_v57 = vpop.permute.xlu2 %1029 }
  0xd5   :  { %v13710_v11 = vpop.permute.xlu1 %507  ;;  %1164 = vperm.xlu0 %13041, %v13416_v58   ;;  %1173 = vperm.xlu1 %13042, %v13461_v6   ;;  %v13724_v58 = vpop.f32.mrf.mxu3  ;;  %v923_v6 = vsel %vm657_vm2, %v920_v48, %v922_v60 }
  0xd6   :  { %978 = vrot.lane.b32.xlu2 %v961_v35, %s13304_s0  ;;  %19278 = vst [vmem:[#allocation13_spill] sm:$0xff] %v13724_v58  ;;  %v13730_v35 = vpop.permute.xlu0 %646  ;;  %v13738_v30 = vmul.f32 %v923_v6, %v13719_v24 }
  0xd8   :  { %v19155_v48 = vrot.slane %v13738_v30, 2 }
  0xda   :  { %v313_v29 = vpop.f32.mrf.mxu0 }
  0xdb   :  { %v342_v33 = vpop.f32.mrf.mxu1  ;;  %v583_v29 = vsel %vm521_vm1, %v580_v22, %v582_v42  ;;  %v13754_v42 = vpop.f32.mrf.mxu2 }
  0xdc   :  { %468 = vst [vmem:[#allocation2 + $0x170] sm:$0xff] %v342_v33  ;;  %v775_v33 = vrot.slane %v13687_v25, 1 }
  0xdd   :  { %v13732_v28 = vpop.permute.xlu1 %511  ;;  %1115 = vrot.lane.b32.xlu0 %v1100_v4, %s13304_s0  ;;  %600 = vrot.lane.b32.xlu1 %v585_v15, %s13304_s0  ;;  %v13747_v1 = vpop.f32.mrf.mxu3  ;;  %v965_v15 = vsel %vm700_vm3, %v962_v21, %v19155_v48 }
  0xde   :  { %598 = vrot.lane.b32.xlu2 %v583_v29, %s13304_s0  ;;  %13045 = vset.pattern.permute.xlu1 %v19157_v2  ;;  %v13758_v6 = vpop.permute.xlu0 %649  ;;  %v13763_v29 = vpop.permute.xlu2 %1167 }
  0xdf   :  { %19279 = vst [vmem:[#allocation14_spill] sm:$0xff] %v13763_v29 }
  0xe2   :  { %v412_v4 = vpop.f32.mrf.mxu0 }
  0xe3   :  { %v737_v17 = vld [vmem:[#allocation2 + $0x170] sm:$0x7f]  ;;  %v586_v4 = vrot.slane %v13703_v41, 1  ;;  %v926_v41 = vrot.slane %v13568_v40, 7 }
  0xe4   :  { %v794_v20 = vmul.f32 %v775_v33, %v737_v17  ;;  %v773_v17 = vrot.slane %v13595_v52, 1 }
  0xe5   :  { %v13749_v22 = vpop.permute.xlu1 %515  ;;  %982 = vrot.lane.b32.xlu1 %v965_v15, %s13304_s0  ;;  %v927_v40 = vsel %vm657_vm2, %v924_v44, %v926_v41 }
  0xe6   :  { %820 = vrot.lane.b32.xlu0 %v794_v20, %s13304_s0  ;;  %1041 = vperm.xlu2 %13043, %v13454_v62   ;;  %v774_v21 = vsel %vm521_vm1, %v771_v8, %v773_v17  ;;  %v13769_v20 = vpop.f32.mrf.mxu3  ;;  %v13783_v8 = vpop.permute.xlu0 %652 }
  0xe7   :  { %19280 = vst [vmem:[#allocation15_spill] sm:$0xff] %v13769_v20  ;;  %v792_v48 = vmul.f32 %v774_v21, %v13689_v9  ;;  %v19160_v52 = vrot.slane %v13769_v20, 1 }
  0xea   :  { %v414_v25 = vpop.f32.mrf.mxu0 }
  0xeb   :  { %441 = vst.msk [vmem:[#allocation2 + $0x98] sm:$0xff] %vm78_vm0, %v414_v25  ;;  %v13779_v25 = vpop.f32.mrf.mxu2 }
  0xec   :  { %v945_v34 = vmul.f32 %v927_v40, %v13779_v25 }
  0xed   :  { %v13771_v15 = vpop.permute.xlu1 %519  ;;  %604 = vrot.lane.b32.xlu1 %v586_v4, %s13304_s0 }
  0xee   :  { %19281 = vst [vmem:[#allocation16_spill] sm:$0xff] %v13771_v15  ;;  %1176 = vperm.xlu0 %13041, %v13454_v62   ;;  %816 = vrot.lane.b32.xlu2 %v792_v48, %s13304_s0  ;;  %v776_v62 = vsel %vm521_vm1, %v773_v17, %v775_v33  ;;  %v1108_v48 = vsel %vm521_vm1, %v19160_v52, %v13521_v27  ;;  %v13794_v15 = vpop.permute.xlu2 %1170  ;;  %v19283_v17 = vmov 5  }
  0xef   :  { %13044 = vset.pattern.permute.xlu2 %v19157_v2  ;;  %v793_v21 = vmul.f32 %v776_v62, %v13708_v31  ;;  %v925_v2 = vsel %vm657_vm2, %v922_v60, %v924_v44  ;;  %19282 = vst [vmem:[#allocation17_spill] sm:$0xff] %v13794_v15  ;;  %v928_v60 = vrot.slane %v13617_v16, 7  ;;  %v968_v44 = vrot.slane %v945_v34, 2 }
  0xf0   :  { %v944_v33 = vmul.f32 %v925_v2, %v13754_v42  ;;  %v658_v15 = vrot.slane %v13575_v43, 7  ;;  %v13811_v2 = vpop.permute.xlu0 %655  ;;  %v19285_v34 = vrot.slane %v13738_v30, 2 }
  0xf2   :  { %v417_v23 = vpop.f32.mrf.mxu0  ;;  %v966_v52 = vrot.slane %v944_v33, 2 }
  0xf3   :  { %446 = vst.msk [vmem:[#allocation2 + $0xc0] sm:$0xff] %vm78_vm0, %v417_v23  ;;  %v587_v23 = vsel %vm521_vm1, %v584_v51, %v586_v4  ;;  %v13806_v62 = vpop.f32.mrf.mxu2  ;;  %v659_v51 = vrot.slane %v13639_v36, 7  ;;  %v929_v4 = vsel %vm657_vm2, %v926_v41, %v928_v60 }
  0xf4   :  { %19284 = vst [vmem:[#allocation18_spill] sm:$0xff] %v13806_v62  ;;  %v946_v16 = vmul.f32 %v929_v4, %v13806_v62  ;;  %v967_v43 = vsel %vm700_vm3, %v19285_v34, %v966_v52 }
  0xf5   :  { %818 = vrot.lane.b32.xlu1 %v793_v21, %s13304_s0  ;;  %v19161_v21 = vrot.slane %v13592_v3, 7 }
  0xf6   :  { %v13797_v29 = vpop.permute.xlu1 %1026  ;;  %1123 = vrot.lane.b32.xlu0 %v1108_v48, %s13304_s0  ;;  %602 = vrot.lane.b32.xlu2 %v587_v23, %s13304_s0  ;;  %v969_v48 = vsel %vm700_vm3, %v966_v52, %v968_v44  ;;  %v660_v23 = vsel %vm657_vm2, %v658_v15, %v659_v51  ;;  %v970_v4 = vrot.slane %v946_v16, 2 }
  0xf7   :  { %13049 = vset.pattern.permute.xlu0 %v19283_v17  ;;  %v662_v36 = vsel %vm657_vm2, %v659_v51, %v19161_v21  ;;  %v683_v30 = vmul.f32 %v660_v23, %v13582_v46  ;;  %v1101_v17 = vrot.slane %v13724_v58, 1  ;;  %v890_v51 = vld [vmem:[#allocation2 + $0x1a0] sm:$0x1] }
  0xf8   :  { %v13832_v52 = vmul.f32 %v662_v36, %v13602_v56  ;;  %v13839_v21 = vpop.permute.xlu0 %1023  ;;  %v19286_v56 = vrot.slane %v13701_v32, 1  ;;  %v947_v36 = vmul.f32 %v928_v60, %v890_v51 }
  0xf9   :  { %v702_v16 = vrot.slane %v683_v30, 2 }
  0xfa   :  { %v419_v40 = vpop.f32.mrf.mxu0  ;;  %v19167_v46 = vrot.slane %v13832_v52, 2  ;;  %v1102_v23 = vsel %vm521_vm1, %v19286_v56, %v1101_v17 }
  0xfb   :  { %451 = vst.msk [vmem:[#allocation2 + $0xe8] sm:$0xff] %vm78_vm0, %v419_v40  ;;  %v523_v40 = vrot.slane %v13667_v61, 1  ;;  %v971_v61 = vsel %vm700_vm3, %v968_v44, %v970_v4  ;;  %v1103_v44 = vrot.slane %v13747_v1, 1 }
  0xfc   :  { %v705_v30 = vsel %vm700_vm3, %v702_v16, %v19167_v46  ;;  %v527_v46 = vrot.slane %v13643_v38, 1 }
  0xfd   :  { %986 = vrot.lane.b32.xlu1 %v969_v48, %s13304_s0  ;;  %v19162_v48 = vrot.slane %v13613_v12, 1 }
  0xfe   :  { %984 = vrot.lane.b32.xlu2 %v967_v43, %s13304_s0 }
  0xff   :  { %v13825_v33 = vpop.permute.xlu1 %1161  ;;  %v807_v41 = vpop.permute.xlu2 %806  ;;  %v526_v43 = vsel %vm521_vm1, %v523_v40, %v19162_v48 }
 0x100   :  { %v548_v48 = vmul.f32 %v526_v43, %v13580_v45  ;;  %v13856_v60 = vpop.permute.xlu0 %1035  ;;  %v1104_v45 = vsel %vm521_vm1, %v1101_v17, %v1103_v44  ;;  %v19287_v17 = vrot.slane %v13769_v20, 1 }
 0x102   :  { %v422_v34 = vpop.f32.mrf.mxu0 }
 0x103   :  { %456 = vst.msk [vmem:[#allocation2 + $0x110] sm:$0xff] %vm78_vm0, %v422_v34 }
 0x105   :  { %988 = vrot.lane.b32.xlu1 %v971_v61, %s13304_s0  ;;  %v972_v61 = vrot.slane %v947_v36, 2  ;;  %v522_v36 = vrot.slane %v13705_v63, 1 }
 0x106   :  { %1117 = vrot.lane.b32.xlu2 %v1102_v23, %s13304_s0  ;;  %v624_v23 = vld [vmem:[#allocation2 + $0x30] sm:$0xfe] }
 0x107   :  { %v13847_v34 = vpop.permute.xlu1 %804  ;;  %v593_v62 = vpop.permute.xlu2 %592  ;;  %v973_v51 = vsel %vm700_vm3, %v970_v4, %v972_v61  ;;  %v682_v43 = vmul.f32 %v658_v15, %v624_v23 }
 0x108   :  { %v617_v58 = vadd.f32 %v593_v62, %v548_v48 }
 0x109   :  { %v701_v4 = vrot.slane %v682_v43, 2  ;;  %v856_v43 = vrot.slane %v13597_v53, 1  ;;  %v19289_v53 = vrot.slane %v13613_v12, 1 }
 0x10a   :  { %v424_v31 = vpop.f32.mrf.mxu0  ;;  %v729_v56 = vadd.f32 %v705_v30, %v617_v58  ;;  %v524_v58 = vsel %vm521_vm1, %v522_v36, %v523_v40  ;;  %v1106_v30 = vsel %vm521_vm1, %v1103_v44, %v19287_v17 }
 0x10b   :  { %461 = vst.msk [vmem:[#allocation2 + $0x138] sm:$0xff] %vm78_vm0, %v424_v31  ;;  %v547_v61 = vmul.f32 0.0, %v524_v58  ;;  %v703_v40 = vsel %vm700_vm3, %v701_v4, %v702_v16  ;;  %v665_v58 = vrot.slane %v13730_v35, 7 }
 0x10d   :  { %990 = vrot.lane.b32.xlu1 %v973_v51, %s13304_s0  ;;  %v663_v51 = vrot.slane %v13692_v49, 7  ;;  %v19288_v49 = vrot.slane %v13592_v3, 7 }
 0x10e   :  { %1119 = vrot.lane.b32.xlu2 %v1104_v45, %s13304_s0  ;;  %v13875_v45 = vpop.permute.xlu0 %1038 }
 0x10f   :  { %v13861_v62 = vpop.permute.xlu1 %1032  ;;  %v664_v17 = vsel %vm657_vm2, %v19288_v49, %v663_v51  ;;  %v666_v35 = vsel %vm657_vm2, %v663_v51, %v665_v58 }
 0x110   :  { %v13864_v48 = vpop.permute.xlu2 %1109  ;;  %v685_v16 = vmul.f32 %v664_v17, %v13621_v19  ;;  %v13900_v12 = vmul.f32 %v666_v35, %v13645_v39  ;;  %v861_v17 = vrot.slane %v13658_v54, 1  ;;  %v1046_v35 = vrot.slane %v13797_v29, 1 }
 0x112   :  { %v427_v31 = vpop.f32.mrf.mxu0  ;;  %v706_v19 = vrot.slane %v685_v16, 2 }
 0x113   :  { %466 = vst.msk [vmem:[#allocation2 + $0x160] sm:$0xff] %vm78_vm0, %v427_v31  ;;  %v472_v31 = vld [vmem:[#allocation2] sm:$0x80] }
 0x115   :  { %1125 = vrot.lane.b32.xlu1 %v13521_v27, %s13304_s0  ;;  %v857_v27 = vrot.slane %v13611_v10, 1  ;;  %v528_v10 = vsel %vm521_vm1, %v19289_v53, %v527_v46 }
 0x116   :  { %1121 = vrot.lane.b32.xlu2 %v1106_v30, %s13304_s0  ;;  %v546_v30 = vmul.f32 %v522_v36, %v472_v31  ;;  %v529_v36 = vrot.slane %v13710_v11, 1 }
 0x117   :  { %v591_v63 = vpop.permute.xlu1 %590 }
 0x118   :  { %v595_v15 = vpop.permute.xlu2 %594  ;;  %v616_v23 = vadd.f32 %v591_v63, %v547_v61  ;;  %v858_v61 = vsel %vm521_vm1, %v856_v43, %v857_v27  ;;  %v859_v63 = vrot.slane %v13633_v26, 1  ;;  %v615_v3 = vadd.f32 %v13672_v7, %v546_v30 }
 0x119   :  { %v530_v51 = vsel %vm521_vm1, %v527_v46, %v529_v36  ;;  %v1043_v46 = vrot.slane %v13699_v47, 1  ;;  %v1044_v47 = vrot.slane %v13839_v21, 1 }
 0x11a   :  { %v728_v44 = vadd.f32 %v703_v40, %v616_v23  ;;  %v549_v40 = vmul.f32 %v528_v10, %v13600_v55  ;;  %v860_v26 = vsel %vm521_vm1, %v857_v27, %v859_v63  ;;  %v727_v49 = vadd.f32 %v701_v4, %v615_v3  ;;  %v429_v7 = vpop.f32.mrf.mxu0 }
 0x11b   :  { %471 = vst.msk [vmem:[#allocation2 + $0x188] sm:$0xff] %vm78_vm0, %v429_v7  ;;  %v708_v55 = vrot.slane %v13900_v12, 2  ;;  %v19290_v27 = vrot.slane %v13832_v52, 2  ;;  %v550_v4 = vmul.f32 %v530_v51, %v13619_v18  ;;  %v862_v10 = vsel %vm521_vm1, %v859_v63, %v861_v17  ;;  %v1145_v51 = vld [vmem:[#allocation2 + $0x98] sm:$0xfe] }
 0x11c   :  { %v832_v20 = vadd.f32 %v807_v41, %v728_v44  ;;  %v667_v18 = vrot.slane %v13758_v6, 7 }
 0x11d   :  { %v707_v39 = vsel %vm700_vm3, %v19290_v27, %v706_v19  ;;  %v709_v52 = vsel %vm700_vm3, %v706_v19, %v708_v55 }
 0x11e   :  { %v13892_v38 = vadd.f32 %v858_v61, %v832_v20  ;;  %v618_v20 = vadd.f32 %v595_v15, %v549_v40  ;;  %v668_v21 = vsel %vm657_vm2, %v665_v58, %v667_v18 }
 0x11f   :  { %v809_v23 = vpop.permute.xlu0 %808 }
 0x120   :  { %v833_v41 = vadd.f32 %v809_v23, %v729_v56  ;;  %v813_v31 = vpop.permute.xlu2 %812  ;;  %v831_v56 = vadd.f32 %v13847_v34, %v727_v49  ;;  %v730_v15 = vadd.f32 %v707_v39, %v618_v20  ;;  %v863_v34 = vrot.slane %v13719_v24, 1  ;;  %v1147_v39 = vld [vmem:[#allocation2 + $0xe8] sm:$0xff] }
 0x121   :  { %v1178_v49 = vrot.slane %v13716_v14, 7  ;;  %v1146_v14 = vld [vmem:[#allocation2 + $0xc0] sm:$0xff] }
 0x122   :  { %v882_v44 = vadd.f32 %v860_v26, %v833_v41  ;;  %v880_v23 = vadd.f32 %v856_v43, %v831_v56  ;;  %v1010_v26 = vld [vmem:[#allocation2 + $0x68] sm:$0x80]  ;;  %v1047_v43 = vsel %vm521_vm1, %v1044_v47, %v1046_v35  ;;  %v864_v19 = vsel %vm521_vm1, %v861_v17, %v863_v34 }
 0x123   :  { %v1067_v63 = vmul.f32 %v1043_v46, %v1010_v26  ;;  %v531_v17 = vrot.slane %v13732_v28, 1  ;;  %v867_v28 = vrot.slane %v13779_v25, 1 }
 0x125   :  { %v532_v26 = vsel %vm521_vm1, %v529_v36, %v531_v17 }
 0x127   :  { %v975_v30 = vpop.permute.xlu0 %974  ;;  %v811_v61 = vpop.permute.xlu1 %810 }
 0x128   :  { %v597_v16 = vpop.permute.xlu2 %596  ;;  %v834_v53 = vadd.f32 %v811_v61, %v730_v15  ;;  %v1001_v40 = vadd.f32 %v975_v30, %v880_v23  ;;  %v1045_v61 = vsel %vm521_vm1, %v1043_v46, %v1044_v47 }
 0x129   :  { %v619_v54 = vadd.f32 %v597_v16, %v550_v4  ;;  %v1068_v47 = vmul.f32 %v1045_v61, %v13615_v13  ;;  %v551_v13 = vmul.f32 %v532_v26, %v13641_v37  ;;  %v1148_v26 = vld [vmem:[#allocation2 + $0x110] sm:$0xff] }
 0x12a   :  { %v13920_v41 = vadd.f32 %v862_v10, %v834_v53  ;;  %v1076_v27 = vadd.f32 %v1067_v63, %v1001_v40  ;;  %v1069_v53 = vmul.f32 %v1047_v43, %v13635_v0 }
 0x12b   :  { %v731_v3 = vadd.f32 %v709_v52, %v619_v54  ;;  %v1202_v54 = vmul.f32 %v1178_v49, %v1145_v51 }
 0x12c   :  { %v1136_v46 = vadd.f32 %v13864_v48, %v1076_v27 }
 0x12d   :  { %v835_v20 = vadd.f32 %v813_v31, %v731_v3  ;;  %v1181_v31 = vrot.slane %v13825_v33, 7 }
 0x12f   :  { %v1159_v7 = vpop.permute.xlu0 %1158  ;;  %v13931_v56 = vadd.f32 %v864_v19, %v835_v20  ;;  %v977_v15 = vpop.permute.xlu1 %976  ;;  %v1220_v20 = vrot.slane %v1202_v54, 2 }
 0x130   :  { %v1179_v30 = vrot.slane %v1159_v7, 7  ;;  %v979_v4 = vpop.permute.xlu2 %978  ;;  %v1002_v23 = vadd.f32 %v977_v15, %v13892_v38 }
 0x131   :  { %v1003_v16 = vadd.f32 %v979_v4, %v882_v44  ;;  %v13950_v44 = vmul.f32 %v668_v21, %v13663_v59  ;;  %v13958_v43 = vadd.f32 %v1220_v20, %v1136_v46  ;;  %v865_v4 = vrot.slane %v13754_v42, 1 }
 0x132   :  { %v1180_v10 = vsel %vm657_vm2, %v1178_v49, %v1179_v30  ;;  %v1182_v58 = vsel %vm657_vm2, %v1179_v30, %v1181_v31  ;;  %v1077_v63 = vadd.f32 %v1068_v47, %v1002_v23  ;;  %v1048_v46 = vrot.slane %v13744_v57, 1 }
 0x133   :  { %v1203_v52 = vmul.f32 %v1180_v10, %v1146_v14  ;;  %v13945_v3 = vmul.f32 %v1182_v58, %v1147_v39  ;;  %v1078_v40 = vadd.f32 %v1069_v53, %v1003_v16  ;;  %v710_v51 = vrot.slane %v13950_v44, 2 }
 0x134   :  { %v1264_v39 = vrot.slane %v13958_v43, 7  ;;  %v866_v12 = vsel %vm521_vm1, %v863_v34, %v865_v4  ;;  %v1049_v24 = vsel %vm521_vm1, %v1046_v35, %v1048_v46 }
 0x135   :  { %v1221_v0 = vrot.slane %v1203_v52, 2  ;;  %v1223_v38 = vrot.slane %v13945_v3, 2  ;;  %v711_v37 = vsel %vm700_vm3, %v708_v55, %v710_v51  ;;  %v669_v55 = vrot.slane %v13783_v8, 7 }
 0x137   :  { %v1112_v49 = vpop.permute.xlu0 %1111  ;;  %v1114_v19 = vpop.permute.xlu1 %1113  ;;  %v1222_v7 = vsel %vm700_vm3, %v1220_v20, %v1221_v0  ;;  %v1224_v36 = vsel %vm700_vm3, %v1221_v0, %v1223_v38  ;;  %v670_v47 = vsel %vm657_vm2, %v667_v18, %v669_v55  ;;  %v533_v0 = vrot.slane %v13749_v22, 1 }
 0x138   :  { %v1137_v48 = vadd.f32 %v1112_v49, %v1077_v63  ;;  %v599_v59 = vpop.permute.xlu2 %598  ;;  %v1138_v21 = vadd.f32 %v1114_v19, %v1078_v40  ;;  %v13998_v8 = vmul.f32 %v670_v47, %v13689_v9  ;;  %v1070_v22 = vmul.f32 %v1049_v24, %v13655_v50 }
 0x139   :  { %v620_v27 = vadd.f32 %v599_v59, %v551_v13  ;;  %v534_v49 = vsel %vm521_vm1, %v531_v17, %v533_v0 }
 0x13a   :  { %v13963_v11 = vadd.f32 %v1222_v7, %v1137_v48  ;;  %v13966_v14 = vadd.f32 %v1224_v36, %v1138_v21  ;;  %v712_v35 = vrot.slane %v13998_v8, 2  ;;  %v552_v9 = vmul.f32 %v534_v49, %v13660_v5  ;;  %v19295_v8 = vld [vmem:[#allocation11_spill] sm:$0xff]  ;;  %v1150_v49 = vld [vmem:[#allocation2 + $0x160] sm:$0xff] }
 0x13b   :  { %v732_v16 = vadd.f32 %v711_v37, %v620_v27  ;;  %v19291_v27 = vld [vmem:[#allocation14_spill] sm:$0xff]  ;;  %v1050_v37 = vrot.slane %v13861_v62, 1 }
 0x13c   :  { %v1265_v30 = vrot.slane %v13963_v11, 7  ;;  %v1267_v15 = vrot.slane %v13966_v14, 7  ;;  %v713_v50 = vsel %vm700_vm3, %v710_v51, %v712_v35  ;;  %v1149_v51 = vld [vmem:[#allocation2 + $0x138] sm:$0xff] }
 0x13e   :  { %v1266_v61 = vsel %vm657_vm2, %v1264_v39, %v1265_v30  ;;  %v1268_v54 = vsel %vm657_vm2, %v1265_v30, %v1267_v15  ;;  %v1185_v39 = vrot.slane %v19291_v27, 7  ;;  %v868_v30 = vsel %vm521_vm1, %v865_v4, %v867_v28 }
 0x13f   :  { %v1289_v53 = vsel %vm78_vm0, %v1266_v61, 0.0  ;;  %v815_v10 = vpop.permute.xlu0 %814  ;;  %v1290_v58 = vsel %vm78_vm0, %v1268_v54, 0.0  ;;  %v981_v52 = vpop.permute.xlu1 %980  ;;  %v1051_v4 = vsel %vm521_vm1, %v1048_v46, %v1050_v37  ;;  %v1052_v46 = vrot.slane %v13856_v60, 1 }
 0x140   :  { %v836_v23 = vadd.f32 %v815_v10, %v732_v16  ;;  %v1291_v3 = vadd.f32 %v1290_v58, %v1289_v53  ;;  %v13979_v40 = vpop.permute.xlu2 %1041  ;;  %v1004_v57 = vadd.f32 %v981_v52, %v13920_v41  ;;  %v19292_v58 = vld [vmem:[#allocation16_spill] sm:$0xff] }
 0x142   :  { %v13984_v42 = vadd.f32 %v866_v12, %v836_v23  ;;  %v1079_v48 = vadd.f32 %v1070_v22, %v1004_v57  ;;  %v535_v23 = vrot.slane %v19292_v58, 1  ;;  %v19293_v12 = vld [vmem:[#allocation12_spill] sm:$0xff] }
 0x147   :  { %v1165_v44 = vpop.permute.xlu0 %1164  ;;  %v13992_v63 = vpop.permute.xlu1 %1173 }
 0x148   :  { %v1183_v20 = vrot.slane %v1165_v44, 7  ;;  %v817_v34 = vpop.permute.xlu2 %816  ;;  %v1071_v44 = vmul.f32 %v1051_v4, %v13701_v32 }
 0x14a   :  { %v1184_v6 = vsel %vm657_vm2, %v1181_v31, %v1183_v20  ;;  %v1186_v25 = vsel %vm657_vm2, %v1183_v20, %v1185_v39  ;;  %v19294_v20 = vld [vmem:[#allocation17_spill] sm:$0xff] }
 0x14b   :  { %v1205_v18 = vmul.f32 %v1184_v6, %v1148_v26  ;;  %v1206_v52 = vmul.f32 %v1186_v25, %v1149_v51  ;;  %v1187_v24 = vrot.slane %v19294_v20, 7  ;;  %v1054_v51 = vrot.slane %v13875_v45, 1 }
 0x14d   :  { %v1225_v29 = vrot.slane %v1205_v18, 2  ;;  %v1227_v26 = vrot.slane %v1206_v52, 2  ;;  %v632_v52 = vld [vmem:[#allocation2 + $0x170] sm:$0x1] }
 0x14f   :  { %v1116_v19 = vpop.permute.xlu0 %1115  ;;  %v601_v41 = vpop.permute.xlu1 %600  ;;  %v1226_v33 = vsel %vm700_vm3, %v1223_v38, %v1225_v29  ;;  %v671_v38 = vrot.slane %v13811_v2, 7  ;;  %v1152_v2 = vld [vmem:[#allocation2 + $0x1b0] sm:$0xff] }
 0x150   :  { %v1139_v13 = vadd.f32 %v1116_v19, %v1079_v48  ;;  %v621_v59 = vadd.f32 %v601_v41, %v552_v9  ;;  %v603_v31 = vpop.permute.xlu2 %602  ;;  %v1228_v48 = vsel %vm700_vm3, %v1225_v29, %v1227_v26  ;;  %v1188_v19 = vsel %vm657_vm2, %v1185_v39, %v1187_v24 }
 0x151   :  { %v1207_v60 = vmul.f32 %v1188_v19, %v1150_v49  ;;  %v690_v20 = vmul.f32 %v671_v38, %v632_v52  ;;  %v14087_v49 = vld [vmem:[%s19138_s2] sm:$0xff] }
 0x152   :  { %v14011_v7 = vadd.f32 %v1226_v33, %v1139_v13  ;;  %v733_v17 = vadd.f32 %v713_v50, %v621_v59  ;;  %v19296_v59 = vld [vmem:[#allocation13_spill] sm:$0xff]  ;;  %2061 = vperm.xlu2 %13044, %v14087_v49  }
 0x154   :  { %v1269_v21 = vrot.slane %v14011_v7, 7  ;;  %v837_v36 = vadd.f32 %v817_v34, %v733_v17  ;;  %v19297_v17 = vld [vmem:[#allocation18_spill] sm:$0xff] }
 0x156   :  { %v1270_v5 = vsel %vm657_vm2, %v1267_v15, %v1269_v21  ;;  %v14022_v16 = vadd.f32 %v868_v30, %v837_v36  ;;  %v672_v15 = vsel %vm657_vm2, %v669_v55, %v671_v38  ;;  %v869_v36 = vrot.slane %v19297_v17, 1 }
 0x157   :  { %v1292_v61 = vsel %vm78_vm0, %v1270_v5, 0.0  ;;  %v983_v54 = vpop.permute.xlu1 %982  ;;  %v14032_v47 = vmul.f32 %v672_v15, %v19293_v12 }
 0x158   :  { %v1293_v53 = vadd.f32 %v1292_v61, %v1291_v3  ;;  %v985_v10 = vpop.permute.xlu2 %984  ;;  %v1005_v62 = vadd.f32 %v983_v54, %v13931_v56  ;;  %v536_v3 = vsel %vm521_vm1, %v533_v0, %v535_v23  ;;  %v14044_v18 = vpop.permute.xlu0 %820  ;;  %v1053_v0 = vsel %vm521_vm1, %v1050_v37, %v1052_v46 }
 0x159   :  { %v553_v57 = vmul.f32 %v536_v3, %v19295_v8  ;;  %v714_v6 = vrot.slane %v14032_v47, 2  ;;  %v1006_v9 = vadd.f32 %v985_v10, %v13984_v42  ;;  %v1072_v50 = vmul.f32 %v1053_v0, %v19296_v59 }
 0x15a   :  { %v1080_v55 = vadd.f32 %v1071_v44, %v1005_v62  ;;  %v1229_v37 = vrot.slane %v1207_v60, 2  ;;  %v870_v54 = vsel %vm521_vm1, %v867_v28, %v869_v36  ;;  %v1055_v62 = vsel %vm521_vm1, %v1052_v46, %v1054_v51  ;;  %v480_v44 = vld [vmem:[#allocation2 + $0x140] sm:$0x7f] }
 0x15b   :  { %v622_v32 = vadd.f32 %v603_v31, %v553_v57  ;;  %v715_v33 = vsel %vm700_vm3, %v712_v35, %v714_v6  ;;  %v1189_v31 = vrot.slane %v13992_v63, 7  ;;  %v1081_v42 = vadd.f32 %v1072_v50, %v1006_v9  ;;  %v14068_v63 = vld [vmem:[%s19138_s2 + $0x10] sm:$0xff] }
 0x15c   :  { %v1230_v15 = vsel %vm700_vm3, %v1227_v26, %v1229_v37  ;;  %2067 = vperm.xlu1 %13045, %v14068_v63   ;;  %v1073_v57 = vmul.f32 %v1055_v62, %v13747_v1  ;;  %v554_v0 = vmul.f32 %v535_v23, %v480_v44  ;;  %v14097_v1 = vld [vmem:[%s19138_s2 + $0x8] sm:$0xff] }
 0x15d   :  { %v734_v29 = vadd.f32 %v715_v33, %v622_v32  ;;  %v1190_v10 = vsel %vm657_vm2, %v1187_v24, %v1189_v31 }
 0x15f   :  { %v14039_v34 = vpop.permute.xlu1 %604 }
 0x160   :  { %v1118_v56 = vpop.permute.xlu2 %1117  ;;  %v1177_v45 = vpop.permute.xlu0 %1176  ;;  %v623_v19 = vadd.f32 %v14039_v34, %v554_v0 }
 0x161   :  { %v1140_v22 = vadd.f32 %v1118_v56, %v1080_v55  ;;  %v1191_v3 = vrot.slane %v1177_v45, 7  ;;  %v1056_v56 = vrot.slane %v13979_v40, 1  ;;  %v716_v40 = vrot.slane %v690_v20, 2 }
 0x163   :  { %v14050_v13 = vadd.f32 %v1228_v48, %v1140_v22  ;;  %v1192_v38 = vsel %vm657_vm2, %v1189_v31, %v1191_v3  ;;  %v1057_v58 = vsel %vm521_vm1, %v1054_v51, %v1056_v56  ;;  %v717_v33 = vsel %vm700_vm3, %v714_v6, %v716_v40 }
 0x164   :  { %v1209_v23 = vmul.f32 %v1192_v38, %v1152_v2  ;;  %v735_v50 = vadd.f32 %v717_v33, %v623_v19 }
 0x165   :  { %v1271_v41 = vrot.slane %v14050_v13, 7 }
 0x166   :  { %v1233_v34 = vrot.slane %v1209_v23, 2  ;;  %v839_v51 = vadd.f32 %v14044_v18, %v735_v50  ;;  %v14130_v18 = vld [vmem:[%s19138_s2 + $0x28] sm:$0xff] }
 0x167   :  { %v1272_v27 = vsel %vm657_vm2, %v1269_v21, %v1271_v41  ;;  %v819_v39 = vpop.permute.xlu1 %818  ;;  %v1151_v21 = vld [vmem:[#allocation2 + $0x188] sm:$0xff] }
 0x168   :  { %v1294_v5 = vsel %vm78_vm0, %v1272_v27, 0.0  ;;  %v838_v30 = vadd.f32 %v819_v39, %v734_v29  ;;  %v1120_v61 = vpop.permute.xlu2 %1119  ;;  %v1208_v28 = vmul.f32 %v1190_v10, %v1151_v21  ;;  %v19299_v27 = vld [vmem:[#allocation15_spill] sm:$0xff] }
 0x169   :  { %v1295_v25 = vadd.f32 %v1294_v5, %v1293_v53  ;;  %v1141_v35 = vadd.f32 %v1120_v61, %v1081_v42  ;;  %v1074_v39 = vmul.f32 %v1057_v58, %v19299_v27  ;;  %v1124_v42 = vpop.permute.xlu0 %1123  ;;  %v19301_v58 = vmov 2  }
 0x16a   :  { %v887_v4 = vadd.f32 %v870_v54, %v838_v30  ;;  %v1231_v46 = vrot.slane %v1208_v28, 2 }
 0x16b   :  { %v14073_v53 = vadd.f32 %v1230_v15, %v1141_v35  ;;  %v1153_v35 = vld [vmem:[#allocation2 + $0x1d8] sm:$0x1]  ;;  %v888_v15 = vadd.f32 %v869_v36, %v839_v51 }
 0x16c   :  { %v1232_v60 = vsel %vm700_vm3, %v1229_v37, %v1231_v46  ;;  %v14114_v37 = vld [vmem:[%s19138_s2 + $0x18] sm:$0xff]  ;;  %v1210_v45 = vmul.f32 %v1191_v3, %v1153_v35 }
 0x16d   :  { %v1273_v12 = vrot.slane %v14073_v53, 7 }
 0x16e   :  { %v1235_v17 = vrot.slane %v1210_v45, 2 }
 0x16f   :  { %v1274_v24 = vsel %vm657_vm2, %v1271_v41, %v1273_v12  ;;  %v987_v26 = vpop.permute.xlu1 %986 }
 0x170   :  { %v1296_v55 = vsel %vm78_vm0, %v1274_v24, 0.0  ;;  %v1007_v8 = vadd.f32 %v987_v26, %v14022_v16  ;;  %v19298_v16 = vmov 5   ;;  %v1122_v48 = vpop.permute.xlu2 %1121  ;;  %v1236_v26 = vsel %vm700_vm3, %v1233_v34, %v1235_v17 }
 0x171   :  { %v1297_v22 = vadd.f32 %v1296_v55, %v1295_v25  ;;  %13047 = vset.pattern.permute.xlu1 %v19298_v16  ;;  %13046 = vset.pattern.permute.xlu2 %v19298_v16  ;;  %v1234_v25 = vsel %vm700_vm3, %v1231_v46, %v1233_v34 }
 0x172   :  { %v1082_v32 = vadd.f32 %v1073_v57, %v1007_v8  ;;  %2217 = vperm.xlu1 %13047, %v14097_v1   ;;  %2214 = vperm.xlu2 %13046, %v14087_v49   ;;  %v14138_v8 = vld [vmem:[%s19138_s2 + $0x30] sm:$0xff] }
 0x174   :  { %v1142_v9 = vadd.f32 %v1122_v48, %v1082_v32  ;;  %v14155_v32 = vld [vmem:[%s19138_s2 + $0x38] sm:$0xff] }
 0x176   :  { %v14103_v41 = vadd.f32 %v1232_v60, %v1142_v9 }
 0x177   :  { %v989_v59 = vpop.permute.xlu1 %988 }
 0x178   :  { %v1275_v31 = vrot.slane %v14103_v41, 7  ;;  %v1008_v29 = vadd.f32 %v989_v59, %v887_v4  ;;  %v1018_v4 = vld [vmem:[#allocation2 + $0x1a8] sm:$0x7f] }
 0x179   :  { %v1075_v44 = vmul.f32 %v1056_v56, %v1018_v4 }
 0x17a   :  { %v1276_v5 = vsel %vm657_vm2, %v1273_v12, %v1275_v31  ;;  %v1083_v30 = vadd.f32 %v1074_v39, %v1008_v29  ;;  %2223 = vperm.xlu1 %13047, %v14114_v37   ;;  %v19300_v12 = vmov 3   ;;  %2220 = vperm.xlu2 %13046, %v14068_v63  }
 0x17b   :  { %v1298_v47 = vsel %vm78_vm0, %v1276_v5, 0.0 }
 0x17c   :  { %v1299_v6 = vadd.f32 %v1298_v47, %v1297_v22  ;;  %v1143_v61 = vadd.f32 %v1124_v42, %v1083_v30  ;;  %v14147_v22 = vld [vmem:[%s19138_s2 + $0x20] sm:$0xff] }
 0x17d   :  { %2226 = vperm.xlu0 %13049, %v14147_v22  }
 0x17e   :  { %v1253_v54 = vadd.f32 %v1234_v25, %v1143_v61 }
 0x17f   :  { %v991_v21 = vpop.permute.xlu1 %990 }
 0x180   :  { %v1277_v10 = vrot.slane %v1253_v54, 7  ;;  %v1009_v62 = vadd.f32 %v991_v21, %v888_v15  ;;  %v19302_v15 = vmov 0  }
 0x182   :  { %v1278_v52 = vsel %vm657_vm2, %v1275_v31, %v1277_v10  ;;  %13051 = vset.pattern.permute.xlu1 %v19300_v12  ;;  %v1084_v36 = vadd.f32 %v1075_v44, %v1009_v62  ;;  %13048 = vset.pattern.permute.xlu2 %v19300_v12 }
 0x183   :  { %v1300_v28 = vsel %vm78_vm0, %v1278_v52, 0.0  ;;  %2076 = vperm.xlu1 %13051, %v14130_v18   ;;  %2073 = vperm.xlu2 %13048, %v14147_v22  }
 0x184   :  { %v1301_v20 = vadd.f32 %v1300_v28, %v1299_v6 }
 0x185   :  { %13050 = vset.pattern.permute.xlu0 %v19300_v12 }
 0x186   :  { %2064 = vperm.xlu0 %13050, %v14097_v1  }
 0x187   :  { %v1126_v3 = vpop.permute.xlu1 %1125 }
 0x188   :  { %v1144_v24 = vadd.f32 %v1126_v3, %v1084_v36 }
 0x18a   :  { %v1254_v55 = vadd.f32 %v1236_v26, %v1144_v24 }
 0x18b   :  { %2079 = vperm.xlu1 %13051, %v14138_v8   ;;  %13052 = vset.pattern.permute.xlu2 %v19298_v16 }
 0x18c   :  { %v1279_v57 = vrot.slane %v1254_v55, 7  ;;  %2229 = vperm.xlu2 %13052, %v14130_v18  }
 0x18e   :  { %v1280_v56 = vsel %vm657_vm2, %v1277_v10, %v1279_v57  ;;  %2070 = vperm.xlu0 %13050, %v14114_v37  }
 0x18f   :  { %v1302_v46 = vsel %vm78_vm0, %v1280_v56, 0.0 }
 0x190   :  { %v1303_v2 = vadd.f32 %v1302_v46, %v1301_v20 }
 0x192   :  { %v1304_v38 = vrot.slane %v1303_v2, 4 }
 0x193   :  { %13053 = vset.pattern.permute.xlu1 %v19298_v16 }
 0x194   :  { %v1305_v0 = vadd.f32 %v1304_v38, %v1303_v2  ;;  %2235 = vperm.xlu1 %13053, %v14155_v32   ;;  %2232 = vperm.xlu2 %13052, %v14138_v8  }
 0x196   :  { %v1306_v40 = vrot.slane %v1305_v0, 2  ;;  %2082 = vperm.xlu0 %13050, %v14155_v32  }
 0x198   :  { %v1307_v48 = vadd.f32 %v1306_v40, %v1305_v0 }
 0x19a   :  { %v1308_v19 = vrot.slane %v1307_v48, 1 }
 0x19c   :  { %v1309_v9 = vadd.f32 %v1308_v19, %v1307_v48  ;;  %13055 = vset.pattern.permute.xlu1 %v19301_v58  ;;  %13054 = vset.pattern.permute.xlu2 %v19301_v58 }
 0x19d   :  { %1961 = vperm.xlu1 %13055, %v14097_v1   ;;  %1958 = vperm.xlu2 %13054, %v14087_v49  }
 0x19e   :  { %v1310_v23 = vmul.f32 0.015625, %v1309_v9  ;;  %13056 = vset.pattern.permute.xlu0 %v19302_v15 }
 0x19f   :  { %1816 = vperm.xlu0 %13056, %v14087_v49  }
 0x1a0   :  { %v14165_v60 = vsub.f32 %v13958_v43, %v1310_v23  ;;  %v14168_v33 = vsub.f32 %v13963_v11, %v1310_v23  ;;  %v14171_v59 = vsub.f32 %v13966_v14, %v1310_v23  ;;  %v14174_v50 = vsub.f32 %v14011_v7, %v1310_v23 }
 0x1a1   :  { %v14177_v31 = vsub.f32 %v14050_v13, %v1310_v23  ;;  %v14180_v29 = vsub.f32 %v14073_v53, %v1310_v23  ;;  %v14183_v27 = vsub.f32 %v14103_v41, %v1310_v23  ;;  %v14185_v43 = vsub.f32 %v1253_v54, %v1310_v23 }
 0x1a2   :  { %v14188_v11 = vsub.f32 %v1254_v55, %v1310_v23  ;;  %v1320_v14 = vmul.f32 %v14165_v60, %v14165_v60  ;;  %v1321_v7 = vmul.f32 %v14168_v33, %v14168_v33  ;;  %v1322_v13 = vmul.f32 %v14171_v59, %v14171_v59 }
 0x1a3   :  { %v1323_v53 = vmul.f32 %v14174_v50, %v14174_v50  ;;  %v1324_v41 = vmul.f32 %v14177_v31, %v14177_v31  ;;  %v1325_v39 = vmul.f32 %v14180_v29, %v14180_v29  ;;  %v1326_v34 = vmul.f32 %v14183_v27, %v14183_v27 }
 0x1a4   :  { %v1327_v42 = vmul.f32 %v14185_v43, %v14185_v43  ;;  %v1328_v5 = vmul.f32 %v14188_v11, %v14188_v11  ;;  %v1338_v30 = vrot.slane %v1320_v14, 7  ;;  %v1339_v47 = vrot.slane %v1321_v7, 7  ;;  %v11171_v14 = vld [vmem:[#allocation4 + $0x120] sm:$0xf]  ;;  %v12663_v7 = vld [vmem:[#allocation4 + $0x130] sm:$0xf0] }
 0x1a5   :  { %v1341_v6 = vrot.slane %v1322_v13, 7  ;;  %v1343_v61 = vrot.slane %v1323_v53, 7  ;;  %v1345_v51 = vrot.slane %v1324_v41, 7  ;;  %v1347_v25 = vrot.slane %v1325_v39, 7  ;;  %13057 = vset.pattern.permute.xlu1 %v19302_v15  ;;  %1964 = vperm.xlu2 %13054, %v14068_v63   ;;  %v12660_v13 = vld [vmem:[#allocation4 + $0x11c] sm:$0xf] }
 0x1a6   :  { %v1340_v35 = vsel %vm657_vm2, %v1338_v30, %v1339_v47  ;;  %v1349_v54 = vrot.slane %v1326_v34, 7  ;;  %v1351_v21 = vrot.slane %v1327_v42, 7  ;;  %v1353_v10 = vrot.slane %v1328_v5, 7  ;;  %1820 = vperm.xlu1 %13057, %v14097_v1   ;;  %v11165_v41 = vld [vmem:[#allocation4 + $0x12c] sm:$0xf0] }
 0x1a7   :  { %v1342_v4 = vsel %vm657_vm2, %v1339_v47, %v1341_v6  ;;  %v1344_v45 = vsel %vm657_vm2, %v1341_v6, %v1343_v61  ;;  %v1346_v52 = vsel %vm657_vm2, %v1343_v61, %v1345_v51  ;;  %v1348_v62 = vsel %vm657_vm2, %v1345_v51, %v1347_v25  ;;  %13060 = vset.pattern.permute.xlu0 %v19301_v58  ;;  %v11163_v39 = vld [vmem:[#allocation4 + $0x118] sm:$0xf]  ;;  %v12662_v34 = vld [vmem:[#allocation4 + $0x128] sm:$0xf0]  ;;  %v12661_v47 = vld [vmem:[#allocation4 + $0x124] sm:$0xf] }
 0x1a8   :  { %v1350_v28 = vsel %vm657_vm2, %v1347_v25, %v1349_v54  ;;  %v1352_v44 = vsel %vm657_vm2, %v1349_v54, %v1351_v21  ;;  %v1354_v20 = vsel %vm657_vm2, %v1351_v21, %v1353_v10  ;;  %v1363_v17 = vsel %vm78_vm0, %v1340_v35, 0.0  ;;  %1970 = vperm.xlu0 %13060, %v14147_v22   ;;  %v11173_v6 = vld [vmem:[#allocation4 + $0x134] sm:$0xf0]  ;;  %v12658_v35 = vld [vmem:[#allocation4 + $0x108] sm:$0xf0] }
 0x1a9   :  { %v1364_v36 = vsel %vm78_vm0, %v1342_v4, 0.0  ;;  %v1366_v24 = vsel %vm78_vm0, %v1344_v45, 0.0  ;;  %v1368_v55 = vsel %vm78_vm0, %v1346_v52, 0.0  ;;  %v1370_v56 = vsel %vm78_vm0, %v1348_v62, 0.0  ;;  %v11151_v25 = vld [vmem:[#allocation4 + $0xf8] sm:$0xf] }
 0x1aa   :  { %v1365_v3 = vadd.f32 %v1364_v36, %v1363_v17  ;;  %v1372_v2 = vsel %vm78_vm0, %v1350_v28, 0.0  ;;  %v1374_v0 = vsel %vm78_vm0, %v1352_v44, 0.0  ;;  %v1376_v48 = vsel %vm78_vm0, %v1354_v20, 0.0  ;;  %v12655_v54 = vld [vmem:[#allocation4 + $0xf4] sm:$0xf] }
 0x1ab   :  { %v11172_v53 = vor.u32 %v12663_v7, %v11171_v14  ;;  %v11168_v5 = vor.u32 %v12660_v13, %v11165_v41  ;;  %v11164_v30 = vor.u32 %v12662_v34, %v11163_v39  ;;  %v11176_v61 = vor.u32 %v12661_v47, %v11173_v6  ;;  %v11145_v10 = vld [vmem:[#allocation4 + $0x104] sm:$0xf0]  ;;  %v11143_v4 = vld [vmem:[#allocation4 + $0xf0] sm:$0xf]  ;;  %v12657_v45 = vld [vmem:[#allocation4 + $0x100] sm:$0xf0] }
 0x1ac   :  { %v1367_v26 = vadd.f32 %v1366_v24, %v1365_v3  ;;  %v11152_v21 = vor.u32 %v12658_v35, %v11151_v25  ;;  %v11148_v62 = vor.u32 %v12655_v54, %v11145_v10  ;;  %v11144_v28 = vor.u32 %v12657_v45, %v11143_v4  ;;  %v12656_v44 = vld [vmem:[#allocation4 + $0xfc] sm:$0xf]  ;;  %v11153_v20 = vld [vmem:[#allocation4 + $0x10c] sm:$0xf0]  ;;  %v12653_v24 = vld [vmem:[#allocation4 + $0xe0] sm:$0xf0] }
 0x1ad   :  { %13058 = vset.pattern.permute.xlu2 %v19302_v15  ;;  %1674 = vmatpush.bf16.msrb.mxu3 %v11172_v53  ;;  %v11156_v17 = vor.u32 %v12656_v44, %v11153_v20  ;;  %v11131_v3 = vld [vmem:[#allocation4 + $0xd0] sm:$0xf]  ;;  %v12645_v14 = vld [vmem:[#allocation4 + $0xa4] sm:$0xf]  ;;  %v11105_v53 = vld [vmem:[#allocation4 + $0xb4] sm:$0xf0] }
 0x1ae   :  { %v1369_v57 = vadd.f32 %v1368_v55, %v1367_v26  ;;  %13059 = vset.pattern.permute.xlu1 %v19301_v58  ;;  %1824 = vperm.xlu2 %13058, %v14068_v63   ;;  %v12650_v26 = vld [vmem:[#allocation4 + $0xcc] sm:$0xf]  ;;  %v11132_v55 = vor.u32 %v12653_v24, %v11131_v3  ;;  %v11103_v41 = vld [vmem:[#allocation4 + $0xa0] sm:$0xf]  ;;  %v11108_v39 = vor.u32 %v12645_v14, %v11105_v53  ;;  %v12647_v34 = vld [vmem:[#allocation4 + $0xb0] sm:$0xf0] }
 0x1af   :  { %1967 = vperm.xlu1 %13059, %v14114_v37   ;;  %1645 = vmatpush.bf16.msrb.mxu2 %v11168_v5  ;;  %v11113_v5 = vld [vmem:[#allocation4 + $0xbc] sm:$0xf0]  ;;  %v19303_v6 = vmov 6   ;;  %v13189_v20 = vld [vmem:[#allocation8] ss:$0 sm:$0xff] }
 0x1b0   :  { %v1371_v46 = vadd.f32 %v1370_v56, %v1369_v57  ;;  %1616 = vmatpush.bf16.msrb.mxu1 %v11164_v30  ;;  %1703 = vmatpush.bf16.msra.mxu0 %v11176_v61  ;;  %v11125_v57 = vld [vmem:[#allocation4 + $0xdc] sm:$0xf0]  ;;  %v11123_v56 = vld [vmem:[#allocation4 + $0xc8] sm:$0xf]  ;;  %v11104_v30 = vor.u32 %v12647_v34, %v11103_v41  ;;  %v2058_v61 = vld [vmem:[#allocation2 + $0x30] sm:$0x80] }
 0x1b1   :  { %1675 = vmatpush.bf16.msrb.mxu3 %v11152_v21  ;;  %1973 = vperm.xlu0 %13060, %v14130_v18  }
 0x1b2   :  { %v1373_v38 = vadd.f32 %v1372_v2, %v1371_v46  ;;  %v12652_v46 = vld [vmem:[#allocation4 + $0xd8] sm:$0xf0] }
 0x1b3   :  { %1646 = vmatpush.bf16.msrb.mxu2 %v11148_v62 }
 0x1b4   :  { %v1375_v40 = vadd.f32 %v1374_v0, %v1373_v38  ;;  %1617 = vmatpush.bf16.msrb.mxu1 %v11144_v28  ;;  %1704 = vmatpush.bf16.msra.mxu0 %v11156_v17  ;;  %v11128_v38 = vor.u32 %v12650_v26, %v11125_v57  ;;  %v11124_v0 = vor.u32 %v12652_v46, %v11123_v56 }
 0x1b5   :  { %1676 = vmatpush.bf16.msrb.mxu3 %v11132_v55 }
 0x1b6   :  { %v1377_v19 = vadd.f32 %v1376_v48, %v1375_v40  ;;  %v12651_v40 = vld [vmem:[#allocation4 + $0xd4] sm:$0xf]  ;;  %v11133_v48 = vld [vmem:[#allocation4 + $0xe4] sm:$0xf0]  ;;  %1828 = vperm.xlu2 %13058, %v14114_v37  }
 0x1b7   :  { %13061 = vset.pattern.permute.xlu1 %v19302_v15  ;;  %1647 = vmatpush.bf16.msrb.mxu2 %v11128_v38 }
 0x1b8   :  { %v1378_v9 = vrot.slane %v1377_v19, 4  ;;  %1832 = vperm.xlu1 %13061, %v14147_v22   ;;  %1618 = vmatpush.bf16.msrb.mxu1 %v11124_v0 }
 0x1b9   :  { %1976 = vperm.xlu0 %13060, %v14138_v8  }
 0x1ba   :  { %v1379_v23 = vadd.f32 %v1378_v9, %v1377_v19  ;;  %v11136_v19 = vor.u32 %v12651_v40, %v11133_v48  ;;  %v11111_v9 = vld [vmem:[#allocation4 + $0xa8] sm:$0xf] }
 0x1bb   :  { %1648 = vmatpush.bf16.msrb.mxu2 %v11108_v39 }
 0x1bc   :  { %v1380_v42 = vrot.slane %v1379_v23, 2  ;;  %1705 = vmatpush.bf16.msra.mxu0 %v11136_v19  ;;  %1619 = vmatpush.bf16.msrb.mxu1 %v11104_v30 }
 0x1be   :  { %v1381_v51 = vadd.f32 %v1380_v42, %v1379_v23  ;;  %v12648_v23 = vld [vmem:[#allocation4 + $0xb8] sm:$0xf0]  ;;  %v12646_v42 = vld [vmem:[#allocation4 + $0xac] sm:$0xf]  ;;  %13062 = vset.pattern.permute.xlu2 %v19303_v6 }
 0x1bf   :  { %v11112_v13 = vor.u32 %v12648_v23, %v11111_v9  ;;  %v11116_v47 = vor.u32 %v12646_v42, %v11113_v5 }
 0x1c0   :  { %v1382_v52 = vrot.slane %v1381_v51, 1  ;;  %1836 = vperm.xlu1 %13061, %v14130_v18  }
 0x1c1   :  { %1677 = vmatpush.bf16.msrb.mxu3 %v11112_v13  ;;  %1706 = vmatpush.bf16.msra.mxu0 %v11116_v47 }
 0x1c2   :  { %v1383_v36 = vadd.f32 %v1382_v52, %v1381_v51  ;;  %v14247_v51 = vpop.permute.xlu2 %2061  ;;  %1979 = vperm.xlu0 %13060, %v14155_v32   ;;  %v1396_v52 = vld [vmem:[#allocation6] sm:$0x1] }
 0x1c3   :  { %v2084_v35 = vrot.slane %v14247_v51, 1 }
 0x1c4   :  { %v1384_v2 = vmul.f32 0.015625, %v1383_v36 }
 0x1c5   :  { %v2108_v21 = vmul.f32 %v2084_v35, %v2058_v61 }
 0x1c6   :  { %v1385_v7 = vadd.f32 1e-05, %v1384_v2 }
 0x1c8   :  { %13195 = vrsqrt.f32 %v1385_v7  ;;  %1840 = vperm.xlu1 %13061, %v14138_v8   ;;  %vm1392_vm5 = vweird.f32 %v1385_v7 }
 0x1ca   :  { %13063 = vset.pattern.permute.xlu0 %v19303_v6 }
 0x1cb   :  { %2345 = vperm.xlu0 %13063, %v14097_v1  }
 0x1ce   :  { %v13196_v25 = vpop.eup %13195 }
 0x1cf   :  { %v1387_v54 = vmul.f32 %v13196_v25, %v1385_v7  ;;  %vm1393_vm4 = vweird.f32 %v13196_v25 }
 0x1d0   :  { %2126 = vrot.lane.b32.xlu1 %v2108_v21, %s13304_s0  ;;  %vm1394_vm6 = vmor %vm1392_vm5, %vm1393_vm4 }
 0x1d1   :  { %v1388_v10 = vmul.f32 %v13196_v25, %v1387_v54 }
 0x1d3   :  { %v1389_v4 = vmul.f32 0.5, %v1388_v10  ;;  %2357 = vperm.xlu0 %13063, %v14130_v18  }
 0x1d5   :  { %v1390_v45 = vsub.f32 1.5, %v1389_v4 }
 0x1d7   :  { %v1391_v62 = vmul.f32 %v13196_v25, %v1390_v45 }
 0x1d8   :  { %1844 = vperm.xlu1 %13061, %v14155_v32  }
 0x1d9   :  { %v1395_v28 = vsel %vm1394_vm6, %v13196_v25, %v1391_v62 }
 0x1da   :  { %v1397_v44 = vmul.f32 %v1396_v52, %v1395_v28 }
 0x1db   :  { %2360 = vperm.xlu0 %13063, %v14138_v8  }
 0x1dc   :  { %v1398_v17 = vperm.slane %v1397_v44, 0 }
 0x1de   :  { %v1407_v36 = vmul.f32 %v1398_v17, %v14188_v11  ;;  %v1399_v3 = vmul.f32 %v1398_v17, %v14165_v60  ;;  %v1400_v24 = vmul.f32 %v1398_v17, %v14168_v33  ;;  %v1401_v26 = vmul.f32 %v1398_v17, %v14171_v59 }
 0x1df   :  { %v1402_v55 = vmul.f32 %v1398_v17, %v14174_v50  ;;  %v1403_v57 = vmul.f32 %v1398_v17, %v14177_v31  ;;  %v1404_v56 = vmul.f32 %v1398_v17, %v14180_v29  ;;  %v1405_v46 = vmul.f32 %v1398_v17, %v14183_v27 }
 0x1e0   :  { %v1420_v2 = vadd.f32 %v13189_v20, %v1407_v36  ;;  %v1412_v38 = vadd.f32 %v13189_v20, %v1399_v3  ;;  %v1413_v0 = vadd.f32 %v13189_v20, %v1400_v24  ;;  %v1414_v40 = vadd.f32 %v13189_v20, %v1401_v26  ;;  %13064 = vset.pattern.permute.xlu1 %v19303_v6  ;;  %v14275_v36 = vld [vmem:[#allocation2 + $0x8] sm:$0xff] }
 0x1e1   :  { %v1415_v48 = vadd.f32 %v13189_v20, %v1402_v55  ;;  %v1416_v11 = vadd.f32 %v13189_v20, %v1403_v57  ;;  %v1417_v19 = vadd.f32 %v13189_v20, %v1404_v56  ;;  %v1406_v60 = vmul.f32 %v1398_v17, %v14185_v43  ;;  %2348 = vperm.xlu1 %13064, %v14068_v63   ;;  %v12664_v56 = vld [vmem:[#allocation4 + $0x138] sm:$0xf0] }
 0x1e2   :  { %v1425_v33 = vpack.c.bf16 %v1420_v2, %v1420_v2  ;;  %v1421_v9 = vpack.c.bf16 %v1413_v0, %v1412_v38  ;;  %v1418_v59 = vadd.f32 %v13189_v20, %v1405_v46  ;;  %v14278_v3 = vrot.slane %v14275_v36, 1  ;;  %v11159_v2 = vld [vmem:[#allocation4 + $0x100] sm:$0xf]  ;;  %v12659_v38 = vld [vmem:[#allocation4 + $0x110] sm:$0xf0] }
 0x1e3   :  { %v1422_v50 = vpack.c.bf16 %v1415_v48, %v1414_v40  ;;  %v1423_v31 = vpack.c.bf16 %v1417_v19, %v1416_v11  ;;  %v1419_v29 = vadd.f32 %v13189_v20, %v1406_v60  ;;  %v19304_v24 = vmov 8   ;;  %v11139_v0 = vld [vmem:[#allocation4 + $0xd8] sm:$0xf]  ;;  %v12654_v40 = vld [vmem:[#allocation4 + $0xe8] sm:$0xf0] }
 0x1e4   :  { %v1488_v27 = vshrl.u32 %v1425_v33, 16  ;;  %v1491_v23 = vshll.u32 %v1425_v33, 16  ;;  %v1453_v14 = vshrl.u32 %v1421_v9, 16  ;;  %v1456_v7 = vshll.u32 %v1421_v9, 16  ;;  %1912 = vrot.lane.b32.xlu2 %v14278_v3, %s13304_s0  ;;  %13070 = vset.pattern.permute.xlu0 %v19304_v24  ;;  %v11119_v11 = vld [vmem:[#allocation4 + $0xb0] sm:$0xf] }
 0x1e5   :  { %v1461_v13 = vshrl.u32 %v1422_v50, 16  ;;  %v1464_v53 = vshll.u32 %v1422_v50, 16  ;;  %v1470_v43 = vshrl.u32 %v1423_v31, 16  ;;  %v1473_v41 = vshll.u32 %v1423_v31, 16  ;;  %2480 = vperm.xlu0 %13070, %v14097_v1   ;;  %v12649_v19 = vld [vmem:[#allocation4 + $0xc0] sm:$0xf0] }
 0x1e6   :  { %v1455_v39 = vrot.slane %v1453_v14, 3  ;;  %v1458_v34 = vrot.slane %v1456_v7, 4  ;;  %v1424_v42 = vpack.c.bf16 %v1419_v29, %v1418_v59  ;;  %v1490_v5 = vrot.slane %v1488_v27, 3 }
 0x1e7   :  { %v1463_v30 = vrot.slane %v1461_v13, 3  ;;  %v1466_v47 = vrot.slane %v1464_v53, 4  ;;  %v1472_v61 = vrot.slane %v1470_v43, 3  ;;  %v1475_v25 = vrot.slane %v1473_v41, 4 }
 0x1e8   :  { %v1459_v54 = vor.u32 %v1458_v34, %v1455_v39  ;;  %v1479_v21 = vshrl.u32 %v1424_v42, 16  ;;  %v1482_v10 = vshll.u32 %v1424_v42, 16  ;;  %v1493_v4 = vrot.slane %v1491_v23, 4 }
 0x1e9   :  { %v1467_v45 = vor.u32 %v1466_v47, %v1463_v30  ;;  %v1476_v52 = vor.u32 %v1475_v25, %v1472_v61  ;;  %13066 = vset.pattern.permute.xlu1 %v19304_v24  ;;  %v11160_v1 = vor.u32 %v12659_v38, %v11159_v2  ;;  %v11140_v48 = vor.u32 %v12654_v40, %v11139_v0 }
 0x1ea   :  { %v1481_v62 = vrot.slane %v1479_v21, 3  ;;  %v1484_v28 = vrot.slane %v1482_v10, 4  ;;  %v1494_v44 = vor.u32 %v1493_v4, %v1490_v5  ;;  %2483 = vperm.xlu1 %13066, %v14068_v63   ;;  %v11179_v63 = vld [vmem:[#allocation4 + $0x128] sm:$0xf] }
 0x1eb   :  { %v14270_v20 = vsel %vm1451_vm7, %v1459_v54, %v1467_v45  ;;  %v14273_v17 = vsel %vm1451_vm7, %v1467_v45, %v1476_v52  ;;  %v11180_v46 = vor.u32 %v12664_v56, %v11179_v63 }
 0x1ec   :  { %11181 = vmatmul.msk.bf16.vlgmr.msrb.gmra.mxu1 %vm78_vm0, %v14270_v20  ;;  %11185 = vmatmul.msk.bf16.vlgmr.msrb.gmra.mxu2 %vm78_vm0, %v14270_v20  ;;  %v1485_v26 = vor.u32 %v1484_v28, %v1481_v62 }
 0x1ed   :  { %11189 = vmatmul.msk.bf16.vlgmr.msrb.gmra.mxu3 %vm78_vm0, %v14270_v20  ;;  %11193 = vmatmul.msk.bf16.vlgmr.msra.gmra.mxu0 %vm78_vm0, %v14270_v20 }
 0x1ee   :  { %v1486_v55 = vsel %vm1451_vm7, %v1476_v52, %v1485_v26  ;;  %v14294_v57 = vsel %vm1451_vm7, %v1485_v26, %v1494_v44  ;;  %2342 = vperm.xlu2 %13062, %v14087_v49   ;;  %1732 = vmatpush.bf16.msra.mxu1 %v11180_v46 }
 0x1ef   :  { %2486 = vperm.xlu0 %13070, %v14114_v37   ;;  %v14363_v31 = vpop.permute.xlu0 %2226 }
 0x1f2   :  { %13068 = vset.pattern.permute.xlu1 %v19303_v6  ;;  %1733 = vmatpush.bf16.msra.mxu1 %v11160_v1 }
 0x1f3   :  { %2354 = vperm.xlu1 %13068, %v14147_v22  }
 0x1f6   :  { %13065 = vset.pattern.permute.xlu2 %v19304_v24  ;;  %1734 = vmatpush.bf16.msra.mxu1 %v11140_v48 }
 0x1f7   :  { %2477 = vperm.xlu2 %13065, %v14087_v49   ;;  %2498 = vperm.xlu0 %13070, %v14155_v32   ;;  %v11120_v49 = vor.u32 %v12649_v19, %v11119_v11 }
 0x1f8   :  { %v2065_v14 = vpop.permute.xlu0 %2064 }
 0x1f9   :  { %v2085_v53 = vrot.slane %v2065_v14, 1 }
 0x1fa   :  { %1735 = vmatpush.bf16.msra.mxu1 %v11120_v49 }
 0x1fb   :  { %13071 = vset.pattern.permute.xlu1 %v19304_v24  ;;  %v2086_v42 = vsel %vm521_vm1, %v2084_v35, %v2085_v53 }
 0x1fc   :  { %11182 = vmatmul.msk.bf16.gmra.mxu1 %vm78_vm0, %v14273_v17  ;;  %11186 = vmatmul.msk.bf16.gmra.mxu2 %vm78_vm0, %v14273_v17 }
 0x1fd   :  { %11190 = vmatmul.msk.bf16.gmra.mxu3 %vm78_vm0, %v14273_v17  ;;  %11194 = vmatmul.msk.bf16.gmra.mxu0 %vm78_vm0, %v14273_v17 }
 0x1fe   :  { %2495 = vperm.xlu1 %13071, %v14138_v8  }
 0x1ff   :  { %13067 = vset.pattern.permute.xlu2 %v19303_v6  ;;  %13078 = vset.pattern.permute.xlu0 %v19298_v16 }
 0x200   :  { %2351 = vperm.xlu2 %13067, %v14114_v37   ;;  %v14340_v37 = vpop.permute.xlu1 %2067  ;;  %v14398_v35 = vpop.permute.xlu0 %2070 }
 0x201   :  { %v2087_v56 = vrot.slane %v14340_v37, 1  ;;  %v19169_v46 = vrot.slane %v14398_v35, 1 }
 0x203   :  { %v2088_v19 = vsel %vm521_vm1, %v2085_v53, %v2087_v56  ;;  %v2090_v49 = vsel %vm521_vm1, %v2087_v56, %v19169_v46 }
 0x206   :  { %13074 = vset.pattern.permute.xlu1 %v19300_v12 }
 0x208   :  { %13069 = vset.pattern.permute.xlu2 %v19304_v24  ;;  %v14342_v8 = vpop.permute.xlu1 %2217  ;;  %v14431_v40 = vpop.permute.xlu0 %2082 }
 0x209   :  { %2489 = vperm.xlu2 %13069, %v14147_v22   ;;  %v2238_v25 = vrot.slane %v14342_v8, 7 }
 0x20c   :  { %11183 = vmatmul.msk.bf16.gmra.mxu1 %vm78_vm0, %v1486_v55  ;;  %11187 = vmatmul.msk.bf16.gmra.mxu2 %vm78_vm0, %v1486_v55 }
 0x20d   :  { %11191 = vmatmul.msk.bf16.gmra.mxu3 %vm78_vm0, %v1486_v55  ;;  %11195 = vmatmul.msk.bf16.gmra.mxu0 %vm78_vm0, %v1486_v55 }
 0x210   :  { %v14348_v60 = vpop.permute.xlu1 %2223 }
 0x211   :  { %2492 = vperm.xlu2 %13069, %v14130_v18   ;;  %v2215_v18 = vpop.permute.xlu2 %2214 }
 0x212   :  { %v2237_v54 = vrot.slane %v2215_v18, 7 }
 0x214   :  { %v2239_v4 = vsel %vm657_vm2, %v2237_v54, %v2238_v25 }
 0x219   :  { %13072 = vset.pattern.permute.xlu2 %v19303_v6  ;;  %v14344_v22 = vpop.permute.xlu2 %2220 }
 0x21a   :  { %2363 = vperm.xlu2 %13072, %v14155_v32   ;;  %v14353_v32 = vpop.permute.xlu1 %2076  ;;  %v2240_v53 = vrot.slane %v14344_v22, 7 }
 0x21c   :  { %11184 = vmatmul.msk.bf16.gmra.mxu1 %vm78_vm0, %v14294_v57  ;;  %11188 = vmatmul.msk.bf16.gmra.mxu2 %vm78_vm0, %v14294_v57 }
 0x21d   :  { %11192 = vmatmul.msk.bf16.gmra.mxu3 %vm78_vm0, %v14294_v57  ;;  %11196 = vmatmul.msk.bf16.gmra.mxu0 %vm78_vm0, %v14294_v57 }
 0x221   :  { %v14350_v33 = vpop.permute.xlu2 %2073 }
 0x222   :  { %13073 = vset.pattern.permute.xlu2 %v19300_v12  ;;  %v14357_v59 = vpop.permute.xlu1 %2079 }
 0x223   :  { %v2095_v16 = vrot.slane %v14357_v59, 1 }
 0x229   :  { %v14355_v9 = vpop.permute.xlu2 %2229 }
 0x22a   :  { %v14365_v29 = vpop.permute.xlu1 %2235 }
 0x22c   :  { %11197 = vmatmul.msk.bf16.vlgmr.msra.gmra.mxu1 %vm78_vm0, %v14270_v20 }
 0x231   :  { %v14359_v50 = vpop.permute.xlu2 %2232 }
 0x232   :  { %v14372_v43 = vpop.permute.xlu1 %1961 }
 0x239   :  { %v14367_v27 = vpop.permute.xlu2 %1958 }
 0x23a   :  { %v14394_v21 = vpop.permute.xlu1 %1820 }
 0x23c   :  { %11198 = vmatmul.msk.bf16.gmra.mxu1 %vm78_vm0, %v14273_v17 }
 0x241   :  { %v14374_v41 = vpop.permute.xlu2 %1964 }
 0x242   :  { %v14423_v2 = vpop.permute.xlu1 %1967 }
 0x249   :  { %v14396_v51 = vpop.permute.xlu2 %1824 }
 0x24c   :  { %11199 = vmatmul.msk.bf16.gmra.mxu1 %vm78_vm0, %v1486_v55 }
 0x251   :  { %v14427_v1 = vpop.permute.xlu2 %1828 }
 0x25c   :  { %11200 = vmatmul.msk.bf16.gmra.mxu1 %vm78_vm0, %v14294_v57 }
 0x269   :  { %v14369_v23 = vpop.f32.mrf.mxu1 }
 0x26a   :  { %v1708_v7 = vpop.f32.mrf.mxu0  ;;  %v1898_v13 = vrot.slane %v14369_v23, 1 }
 0x26b   :  { %1760 = vst [vmem:[#allocation2 + $0x68] sm:$0xff] %v1708_v7 }
 0x26c   :  { %v1899_v39 = vsel %vm521_vm1, %v14278_v3, %v1898_v13 }
 0x26d   :  { %1914 = vrot.lane.b32.xlu1 %v1899_v39, %s13304_s0 }
 0x26f   :  { %v14379_v34 = vpop.f32.mrf.mxu2 }
 0x270   :  { %v14384_v5 = vpop.f32.mrf.mxu3  ;;  %v2109_v30 = vmul.f32 %v2086_v42, %v14379_v34  ;;  %v14453_v42 = vpop.permute.xlu1 %1832 }
 0x271   :  { %1759 = vst [vmem:[#allocation2 + $0x60] sm:$0xff] %v14384_v5  ;;  %v14388_v47 = vpop.f32.mrf.mxu1 }
 0x272   :  { %v14390_v61 = vpop.f32.mrf.mxu0  ;;  %2128 = vrot.lane.b32.xlu2 %v2109_v30, %s13304_s0  ;;  %v1900_v63 = vrot.slane %v14388_v47, 1 }
 0x273   :  { %v2416_v62 = vrot.slane %v14390_v61, 1 }
 0x274   :  { %v1901_v11 = vsel %vm521_vm1, %v1898_v13, %v1900_v63  ;;  %v2242_v13 = vrot.slane %v14348_v60, 7 }
 0x276   :  { %v2243_v22 = vsel %vm657_vm2, %v2240_v53, %v2242_v13 }
 0x277   :  { %v14400_v10 = vpop.f32.mrf.mxu2 }
 0x278   :  { %v14403_v45 = vpop.f32.mrf.mxu3  ;;  %v2211_v52 = vld [vmem:[#allocation2 + $0x60] sm:$0xfe]  ;;  %v2110_v18 = vmul.f32 %v2088_v19, %v14400_v10  ;;  %v2241_v19 = vsel %vm657_vm2, %v2238_v25, %v2240_v53 }
 0x279   :  { %v14406_v28 = vpop.f32.mrf.mxu1  ;;  %v2261_v44 = vmul.f32 %v2237_v54, %v2211_v52  ;;  %v14409_v20 = vmul.f32 %v2239_v4, %v14403_v45  ;;  %v14459_v52 = vpop.permute.xlu2 %1912 }
 0x27a   :  { %v14411_v17 = vpop.f32.mrf.mxu0  ;;  %2431 = vrot.lane.b32.xlu2 %v2416_v62, %s13304_s0  ;;  %v1902_v14 = vrot.slane %v14406_v28, 1 }
 0x27b   :  { %v2279_v26 = vrot.slane %v2261_v44, 2  ;;  %v2280_v55 = vrot.slane %v14409_v20, 2  ;;  %v2417_v39 = vrot.slane %v14411_v17, 1 }
 0x27c   :  { %v1903_v54 = vsel %vm521_vm1, %v1900_v63, %v1902_v14 }
 0x27d   :  { %2296 = vrot.lane.b32.xlu0 %v2279_v26, %s13304_s0  ;;  %v2281_v57 = vsel %vm700_vm3, %v2279_v26, %v2280_v55  ;;  %v14464_v26 = vpop.permute.xlu0 %1816  ;;  %v2418_v60 = vsel %vm521_vm1, %v2416_v62, %v2417_v39 }
 0x27e   :  { %2298 = vrot.lane.b32.xlu1 %v2281_v57, %s13304_s0 }
 0x27f   :  { %v14425_v38 = vpop.f32.mrf.mxu2 }
 0x280   :  { %v14429_v0 = vpop.f32.mrf.mxu3  ;;  %v2111_v8 = vmul.f32 %v2090_v49, %v14425_v38 }
 0x281   :  { %v14433_v48 = vpop.f32.mrf.mxu1  ;;  %v14486_v46 = vpop.permute.xlu2 %2342 }
 0x282   :  { %19305 = vst [vmem:[#allocation14_spill] sm:$0xff] %v14433_v48  ;;  %1916 = vrot.lane.b32.xlu2 %v1901_v11, %s13304_s0  ;;  %v14441_v37 = vpop.f32.mrf.mxu0  ;;  %v1904_v56 = vrot.slane %v14433_v48, 1 }
 0x283   :  { %19306 = vst [vmem:[#allocation16_spill] sm:$0xff] %v14441_v37  ;;  %v2419_v4 = vrot.slane %v14441_v37, 1  ;;  %v2248_v37 = vrot.slane %v14359_v50, 7 }
 0x285   :  { %2130 = vrot.lane.b32.xlu0 %v2110_v18, %s13304_s0  ;;  %v2420_v63 = vsel %vm521_vm1, %v2417_v39, %v2419_v4  ;;  %v2263_v18 = vmul.f32 %v2241_v19, %v14429_v0  ;;  %v14484_v39 = vpop.permute.xlu1 %1836  ;;  %v14491_v53 = vpop.permute.xlu0 %1970 }
 0x286   :  { %2132 = vrot.lane.b32.xlu1 %v2111_v8, %s13304_s0 }
 0x287   :  { %v14448_v7 = vpop.f32.mrf.mxu2 }
 0x288   :  { %v14461_v44 = vpop.f32.mrf.mxu3 }
 0x289   :  { %v14455_v30 = vpop.f32.mrf.mxu1  ;;  %v2264_v11 = vmul.f32 %v2243_v22, %v14461_v44  ;;  %v2282_v22 = vrot.slane %v2263_v18, 2  ;;  %v2244_v18 = vrot.slane %v14363_v31, 7 }
 0x28a   :  { %19307 = vst [vmem:[#allocation12_spill] sm:$0xff] %v14455_v30  ;;  %1918 = vrot.lane.b32.xlu2 %v1903_v54, %s13304_s0  ;;  %v14468_v57 = vpop.f32.mrf.mxu0  ;;  %v1905_v54 = vsel %vm521_vm1, %v1902_v14, %v1904_v56  ;;  %v19172_v14 = vrot.slane %v14353_v32, 1 }
 0x28b   :  { %19308 = vst [vmem:[#allocation17_spill] sm:$0xff] %v14468_v57  ;;  %v19170_v62 = vrot.slane %v14468_v57, 1  ;;  %v2245_v20 = vsel %vm657_vm2, %v2242_v13, %v2244_v18 }
 0x28d   :  { %2433 = vrot.lane.b32.xlu0 %v2418_v60, %s13304_s0  ;;  %v2284_v60 = vrot.slane %v2264_v11, 2  ;;  %v2422_v25 = vsel %vm521_vm1, %v2419_v4, %v19170_v62  ;;  %v2091_v11 = vrot.slane %v14350_v33, 1  ;;  %v2283_v4 = vsel %vm700_vm3, %v2280_v55, %v2282_v22  ;;  %v14517_v24 = vpop.permute.xlu1 %1840  ;;  %v14534_v6 = vpop.permute.xlu0 %1973 }
 0x28e   :  { %2435 = vrot.lane.b32.xlu1 %v2420_v63, %s13304_s0 }
 0x28f   :  { %v14476_v49 = vpop.f32.mrf.mxu2  ;;  %v2285_v63 = vsel %vm700_vm3, %v2282_v22, %v2284_v60  ;;  %v2094_v33 = vsel %vm521_vm1, %v2091_v11, %v19172_v14  ;;  %v14526_v14 = vpop.permute.xlu2 %2477 }
 0x290   :  { %v14507_v62 = vpop.f32.mrf.mxu3  ;;  %v2113_v31 = vmul.f32 %v2094_v33, %v14476_v49  ;;  %v19310_v33 = vrot.slane %v14398_v35, 1 }
 0x291   :  { %v14480_v8 = vpop.f32.mrf.mxu1  ;;  %v14524_v22 = vmul.f32 %v2245_v20, %v14507_v62 }
 0x292   :  { %1920 = vrot.lane.b32.xlu2 %v1905_v54, %s13304_s0  ;;  %v2092_v13 = vsel %vm521_vm1, %v19310_v33, %v2091_v11 }
 0x293   :  { %v2112_v15 = vmul.f32 %v2092_v13, %v14448_v7  ;;  %v19178_v20 = vrot.slane %v14524_v22, 2 }
 0x295   :  { %2437 = vrot.lane.b32.xlu0 %v2422_v25, %s13304_s0  ;;  %v19175_v25 = vrot.slane %v14480_v8, 1  ;;  %v2287_v58 = vsel %vm700_vm3, %v2284_v60, %v19178_v20  ;;  %v14547_v35 = vpop.permute.xlu1 %2126 }
 0x296   :  { %2302 = vrot.lane.b32.xlu1 %v2285_v63, %s13304_s0  ;;  %v1906_v63 = vrot.slane %v14455_v30, 1 }
 0x297   :  { %v14498_v19 = vpop.f32.mrf.mxu2  ;;  %v14549_v33 = vpop.permute.xlu2 %2351 }
 0x298   :  { %v1909_v55 = vsel %vm521_vm1, %v1906_v63, %v19175_v25 }
 0x299   :  { %v14501_v54 = vpop.f32.mrf.mxu1 }
 0x29a   :  { %1787 = vst [vmem:[#allocation2 + $0x140] sm:$0xff] %v14501_v54  ;;  %2300 = vrot.lane.b32.xlu2 %v2283_v4, %s13304_s0  ;;  %v14528_v4 = vpop.f32.mrf.mxu0  ;;  %v1910_v60 = vrot.slane %v14501_v54, 1 }
 0x29b   :  { %19309 = vst [vmem:[#allocation11_spill] sm:$0xff] %v14528_v4  ;;  %v19184_v20 = vrot.slane %v14528_v4, 1 }
 0x29d   :  { %2136 = vrot.lane.b32.xlu0 %v2113_v31, %s13304_s0 }
 0x29e   :  { %1924 = vrot.lane.b32.xlu1 %v1909_v55, %s13304_s0  ;;  %v14544_v55 = vpop.f32.mrf.mxu3 }
 0x29f   :  { %v14536_v31 = vpop.f32.mrf.mxu2 }
 0x2a1   :  { %v1638_v25 = vpop.f32.mrf.mxu1 }
 0x2a2   :  { %2134 = vrot.lane.b32.xlu2 %v2112_v15, %s13304_s0  ;;  %v14551_v12 = vpop.f32.mrf.mxu0  ;;  %v14553_v25 = vpop.permute.xlu0 %1976  ;;  %v1907_v15 = vsel %vm521_vm1, %v1904_v56, %v1906_v63 }
 0x2a3   :  { %19311 = vst [vmem:[#allocation13_spill] sm:$0xff] %v14551_v12 }
 0x2a6   :  { %2304 = vrot.lane.b32.xlu1 %v2287_v58, %s13304_s0  ;;  %v2097_v58 = vrot.slane %v14431_v40, 1  ;;  %v14566_v56 = vpop.f32.mrf.mxu3  ;;  %v19314_v40 = vrot.slane %v14468_v57, 1 }
 0x2a7   :  { %v1667_v11 = vpop.f32.mrf.mxu2 }
 0x2a8   :  { %1793 = vst [vmem:[#allocation2 + $0x170] sm:$0xff] %v1667_v11  ;;  %v2246_v11 = vrot.slane %v14355_v9, 7  ;;  %v2424_v48 = vsel %vm521_vm1, %v19314_v40, %v19184_v20  ;;  %v2098_v9 = vsel %vm521_vm1, %v2095_v16, %v2097_v58 }
 0x2a9   :  { %v1737_v13 = vpop.f32.mrf.mxu1 }
 0x2aa   :  { %1922 = vrot.lane.b32.xlu2 %v1907_v15, %s13304_s0  ;;  %v14564_v13 = vpop.permute.xlu2 %2489  ;;  %v14568_v15 = vpop.permute.xlu1 %1844  ;;  %v2247_v20 = vsel %vm657_vm2, %v2244_v18, %v2246_v11 }
 0x2ab   :  { %19312 = vst [vmem:[#allocation18_spill] sm:$0xff] %v14564_v13  ;;  %v14575_v59 = vpop.f32.mrf.mxu0  ;;  %v14581_v50 = vpop.permute.xlu0 %1979 }
 0x2ac   :  { %19313 = vst [vmem:[#allocation15_spill] sm:$0xff] %v14568_v15  ;;  %v2115_v15 = vmul.f32 %v2098_v9, %v14536_v31  ;;  %v19185_v57 = vrot.slane %v14575_v59, 1 }
 0x2ad   :  { %19315 = vst [vmem:[#allocation19_spill] sm:$0xff] %v14575_v59 }
 0x2ae   :  { %1928 = vrot.lane.b32.xlu1 %v1910_v60, %s13304_s0  ;;  %19316 = vst [vmem:[#allocation20_spill] sm:$0xff] %v14581_v50  ;;  %v2430_v9 = vsel %vm521_vm1, %v19185_v57, %v14278_v3 }
 0x2af   :  { %v2059_v30 = vld [vmem:[#allocation2 + $0x170] sm:$0x7f] }
 0x2b0   :  { %v2116_v63 = vmul.f32 %v2097_v58, %v2059_v30  ;;  %v2249_v30 = vsel %vm657_vm2, %v2246_v11, %v2248_v37  ;;  %v2266_v58 = vmul.f32 %v2247_v20, %v14544_v55  ;;  %v14601_v11 = vpop.f32.mrf.mxu3 }
 0x2b1   :  { %v1739_v54 = vpop.f32.mrf.mxu1  ;;  %v2267_v40 = vmul.f32 %v2249_v30, %v14566_v56  ;;  %19318 = vst [vmem:[#allocation21_spill] sm:$0xff] %v14601_v11 }
 0x2b2   :  { %1766 = vst.msk [vmem:[#allocation2 + $0x98] sm:$0xff] %vm78_vm0, %v1739_v54  ;;  %2142 = vrot.lane.b32.xlu0 %v2116_v63, %s13304_s0  ;;  %2439 = vrot.lane.b32.xlu2 %v2424_v48, %s13304_s0  ;;  %v19317_v63 = vrot.slane %v14353_v32, 1  ;;  %v2250_v54 = vrot.slane %v14365_v29, 7  ;;  %v14599_v18 = vpop.permute.xlu2 %2492  ;;  %v2288_v32 = vrot.slane %v2266_v58, 2 }
 0x2b3   :  { %v2290_v30 = vrot.slane %v2267_v40, 2  ;;  %v14609_v20 = vpop.permute.xlu0 %2345 }
 0x2b4   :  { %v2096_v48 = vsel %vm521_vm1, %v19317_v63, %v2095_v16  ;;  %v14606_v16 = vpop.permute.xlu1 %2348  ;;  %v2251_v29 = vsel %vm657_vm2, %v2248_v37, %v2250_v54 }
 0x2b5   :  { %v2114_v50 = vmul.f32 %v2096_v48, %v14498_v19  ;;  %v2268_v40 = vmul.f32 %v2251_v29, %v14601_v11 }
 0x2b6   :  { %2140 = vrot.lane.b32.xlu1 %v2115_v15, %s13304_s0  ;;  %v2291_v15 = vsel %vm700_vm3, %v2288_v32, %v2290_v30 }
 0x2b9   :  { %v1742_v13 = vpop.f32.mrf.mxu1 }
 0x2ba   :  { %1771 = vst.msk [vmem:[#allocation2 + $0xc0] sm:$0xff] %vm78_vm0, %v1742_v13  ;;  %2445 = vrot.lane.b32.xlu0 %v2430_v9, %s13304_s0  ;;  %2138 = vrot.lane.b32.xlu2 %v2114_v50, %s13304_s0  ;;  %v19319_v13 = vrot.slane %v14480_v8, 1  ;;  %v2292_v9 = vrot.slane %v2268_v40, 2  ;;  %v2212_v50 = vld [vmem:[#allocation2 + $0x1a0] sm:$0x1]  ;;  %v14619_v37 = vpop.permute.xlu2 %2363 }
 0x2bb   :  { %19320 = vst [vmem:[#allocation22_spill] sm:$0xff] %v14619_v37  ;;  %v14623_v57 = vpop.permute.xlu0 %2357  ;;  %v2425_v37 = vrot.slane %v14551_v12, 1 }
 0x2bc   :  { %v1911_v48 = vsel %vm521_vm1, %v19319_v13, %v1910_v60  ;;  %v14621_v58 = vpop.permute.xlu1 %2483  ;;  %v2293_v29 = vsel %vm700_vm3, %v2290_v30, %v2292_v9  ;;  %v19321_v60 = vrot.slane %v14524_v22, 2  ;;  %v1984_v30 = vrot.slane %v14374_v41, 7 }
 0x2bd   :  { %v1982_v22 = vrot.slane %v14372_v43, 7  ;;  %v1847_v41 = vrot.slane %v14394_v21, 1 }
 0x2be   :  { %2308 = vrot.lane.b32.xlu1 %v2291_v15, %s13304_s0  ;;  %v2269_v15 = vmul.f32 %v2250_v54, %v2212_v50  ;;  %v2289_v40 = vsel %vm700_vm3, %v19321_v60, %v2288_v32  ;;  %v1849_v60 = vrot.slane %v14396_v51, 1  ;;  %v1846_v51 = vrot.slane %v14464_v26, 1 }
 0x2c0   :  { %v1850_v21 = vsel %vm521_vm1, %v1847_v41, %v1849_v60 }
 0x2c1   :  { %v1744_v63 = vpop.f32.mrf.mxu1  ;;  %v1872_v12 = vmul.f32 %v1850_v21, %v14369_v23 }
 0x2c2   :  { %1776 = vst.msk [vmem:[#allocation2 + $0xe8] sm:$0xff] %vm78_vm0, %v1744_v63  ;;  %1926 = vrot.lane.b32.xlu2 %v1911_v48, %s13304_s0  ;;  %v2294_v63 = vrot.slane %v2269_v15, 2  ;;  %v1985_v15 = vsel %vm657_vm2, %v1982_v22, %v1984_v30 }
 0x2c3   :  { %v14638_v50 = vpop.permute.xlu0 %2360 }
 0x2c4   :  { %v2295_v48 = vsel %vm700_vm3, %v2292_v9, %v2294_v63  ;;  %v14636_v54 = vpop.permute.xlu1 %2354  ;;  %19322 = vst [vmem:[#allocation23_spill] sm:$0xff] %v14638_v50  ;;  %v1981_v9 = vrot.slane %v14367_v27, 7  ;;  %v14654_v63 = vmul.f32 %v1985_v15, %v14400_v10  ;;  %v1948_v27 = vld [vmem:[#allocation2 + $0x30] sm:$0xfe] }
 0x2c6   :  { %2310 = vrot.lane.b32.xlu1 %v2293_v29, %s13304_s0  ;;  %v1983_v43 = vsel %vm657_vm2, %v1981_v9, %v1982_v22  ;;  %v19325_v22 = vrot.slane %v14575_v59, 1  ;;  %v2026_v15 = vrot.slane %v14654_v63, 2  ;;  %v1988_v59 = vrot.slane %v14491_v53, 7 }
 0x2c8   :  { %v2428_v10 = vsel %vm521_vm1, %v2425_v37, %v19325_v22 }
 0x2c9   :  { %v1747_v11 = vpop.f32.mrf.mxu1 }
 0x2ca   :  { %1781 = vst.msk [vmem:[#allocation2 + $0x110] sm:$0xff] %vm78_vm0, %v1747_v11  ;;  %2306 = vrot.lane.b32.xlu2 %v2289_v40, %s13304_s0  ;;  %v19323_v11 = vrot.slane %v14528_v4, 1 }
 0x2cc   :  { %v2129_v13 = vpop.permute.xlu2 %2128  ;;  %v2426_v29 = vsel %vm521_vm1, %v19323_v11, %v2425_v37  ;;  %v2006_v11 = vmul.f32 %v1983_v43, %v14379_v34  ;;  %v1848_v34 = vsel %vm521_vm1, %v1846_v51, %v1847_v41  ;;  %v1986_v41 = vrot.slane %v14423_v2, 7 }
 0x2cd   :  { %v1871_v26 = vmul.f32 %v14275_v36, %v1848_v34  ;;  %v2179_v36 = vrot.slane %v14403_v45, 1  ;;  %v1851_v45 = vrot.slane %v14427_v1, 1 }
 0x2ce   :  { %2312 = vrot.lane.b32.xlu1 %v2295_v48, %s13304_s0  ;;  %v14658_v48 = vpop.permute.xlu0 %2480  ;;  %v2024_v43 = vrot.slane %v2006_v11, 2  ;;  %v1987_v2 = vsel %vm657_vm2, %v1984_v30, %v1986_v41 }
 0x2d0   :  { %v2027_v37 = vsel %vm700_vm3, %v2024_v43, %v2026_v15 }
 0x2d1   :  { %v1749_v32 = vpop.f32.mrf.mxu1 }
 0x2d2   :  { %1786 = vst.msk [vmem:[#allocation2 + $0x138] sm:$0xff] %vm78_vm0, %v1749_v32  ;;  %2441 = vrot.lane.b32.xlu2 %v2426_v29, %s13304_s0  ;;  %v14660_v32 = vpop.permute.xlu1 %2495 }
 0x2d3   :  { %19324 = vst [vmem:[#allocation24_spill] sm:$0xff] %v14660_v32 }
 0x2d4   :  { %v14650_v40 = vpop.permute.xlu2 %2431 }
 0x2d6   :  { %2447 = vrot.lane.b32.xlu1 %v14278_v3, %s13304_s0  ;;  %v2005_v3 = vmul.f32 %v1981_v9, %v1948_v27  ;;  %v14678_v32 = vpop.permute.xlu0 %2486 }
 0x2d8   :  { %v2023_v22 = vrot.slane %v2005_v3, 2  ;;  %v2178_v3 = vrot.slane %v14384_v5, 1 }
 0x2d9   :  { %v1752_v29 = vpop.f32.mrf.mxu1 }
 0x2da   :  { %1791 = vst.msk [vmem:[#allocation2 + $0x160] sm:$0xff] %vm78_vm0, %v1752_v29  ;;  %2443 = vrot.lane.b32.xlu2 %v2428_v10, %s13304_s0  ;;  %v1797_v29 = vld [vmem:[#allocation2] sm:$0x80]  ;;  %v1989_v10 = vsel %vm657_vm2, %v1986_v41, %v1988_v59 }
 0x2dc   :  { %v1917_v50 = vpop.permute.xlu2 %1916 }
 0x2dd   :  { %v1941_v4 = vadd.f32 %v1917_v50, %v1872_v12  ;;  %v2025_v12 = vsel %vm700_vm3, %v2023_v22, %v2024_v43  ;;  %v1870_v50 = vmul.f32 %v1846_v51, %v1797_v29  ;;  %v2180_v43 = vsel %vm521_vm1, %v2178_v3, %v2179_v36 }
 0x2de   :  { %v14694_v29 = vmul.f32 %v1989_v10, %v14448_v7  ;;  %v1852_v7 = vsel %vm521_vm1, %v1849_v60, %v1851_v45 }
 0x2df   :  { %v1915_v9 = vpop.permute.xlu1 %1914  ;;  %v2051_v27 = vadd.f32 %v2027_v37, %v1941_v4  ;;  %v1853_v4 = vrot.slane %v14453_v42, 1  ;;  %v1939_v51 = vadd.f32 %v14459_v52, %v1870_v50  ;;  %v1857_v42 = vrot.slane %v14517_v24, 1 }
 0x2e0   :  { %v1940_v23 = vadd.f32 %v1915_v9, %v1871_v26  ;;  %v14696_v9 = vpop.permute.xlu0 %2498  ;;  %v2030_v30 = vrot.slane %v14694_v29, 2 }
 0x2e1   :  { %v1754_v11 = vpop.f32.mrf.mxu1  ;;  %v1854_v5 = vsel %vm521_vm1, %v1851_v45, %v1853_v4  ;;  %v2500_v45 = vrot.slane %v14526_v14, 7 }
 0x2e2   :  { %1796 = vst.msk [vmem:[#allocation2 + $0x188] sm:$0xff] %vm78_vm0, %v1754_v11  ;;  %v2050_v21 = vadd.f32 %v2025_v12, %v1940_v23  ;;  %v2049_v23 = vadd.f32 %v2023_v22, %v1939_v51  ;;  %v1874_v41 = vmul.f32 %v1854_v5, %v14406_v28  ;;  %v2365_v22 = vrot.slane %v14486_v46, 1  ;;  %v2332_v28 = vld [vmem:[#allocation2 + $0x68] sm:$0x80] }
 0x2e3   :  { %v2368_v51 = vrot.slane %v14606_v16, 1  ;;  %v2501_v5 = vrot.slane %v14658_v48, 7  ;;  %v2467_v48 = vld [vmem:[#allocation2 + $0x98] sm:$0xfe]  ;;  %v19326_v16 = vld [vmem:[#allocation14_spill] sm:$0xff] }
 0x2e4   :  { %v1919_v34 = vpop.permute.xlu2 %1918  ;;  %v2154_v26 = vadd.f32 %v2129_v13, %v2050_v21  ;;  %v2008_v13 = vmul.f32 %v1987_v2, %v14425_v38  ;;  %v2153_v12 = vadd.f32 %v14547_v35, %v2049_v23  ;;  %v1873_v38 = vmul.f32 %v1852_v7, %v14388_v47 }
 0x2e5   :  { %v2503_v35 = vrot.slane %v14621_v58, 7  ;;  %v2181_v23 = vrot.slane %v14429_v0, 1  ;;  %v2183_v47 = vrot.slane %v14461_v44, 1  ;;  %v2389_v46 = vmul.f32 %v2365_v22, %v2332_v28 }
 0x2e6   :  { %v2203_v37 = vadd.f32 %v2180_v43, %v2154_v26  ;;  %v2028_v11 = vrot.slane %v2008_v13, 2  ;;  %v2202_v2 = vadd.f32 %v2178_v3, %v2153_v12  ;;  %v2366_v43 = vrot.slane %v14609_v20, 1  ;;  %v2468_v3 = vld [vmem:[#allocation2 + $0xc0] sm:$0xff] }
 0x2e7   :  { %v1942_v60 = vadd.f32 %v1919_v34, %v1873_v38  ;;  %v2504_v58 = vsel %vm657_vm2, %v2501_v5, %v2503_v35  ;;  %v2502_v44 = vsel %vm657_vm2, %v2500_v45, %v2501_v5  ;;  %v2182_v63 = vsel %vm521_vm1, %v2179_v36, %v2181_v23 }
 0x2e8   :  { %v2031_v50 = vsel %vm700_vm3, %v2028_v11, %v2030_v30  ;;  %v2029_v20 = vsel %vm700_vm3, %v2026_v15, %v2028_v11  ;;  %v2369_v14 = vsel %vm521_vm1, %v2366_v43, %v2368_v51  ;;  %v2525_v15 = vmul.f32 %v2502_v44, %v2468_v3 }
 0x2e9   :  { %v2052_v0 = vadd.f32 %v2029_v20, %v1942_v60  ;;  %v2185_v38 = vrot.slane %v14507_v62, 1  ;;  %v2391_v36 = vmul.f32 %v2369_v14, %v14411_v17 }
 0x2ea   :  { %v2543_v3 = vrot.slane %v2525_v15, 2 }
 0x2ec   :  { %v1921_v1 = vpop.permute.xlu2 %1920 }
 0x2ed   :  { %v1943_v52 = vadd.f32 %v1921_v1, %v1874_v41  ;;  %v2367_v1 = vsel %vm521_vm1, %v2365_v22, %v2366_v43  ;;  %v2524_v22 = vmul.f32 %v2500_v45, %v2467_v48 }
 0x2ef   :  { %v2297_v21 = vpop.permute.xlu0 %2296  ;;  %v2053_v10 = vadd.f32 %v2031_v50, %v1943_v52  ;;  %v2469_v52 = vld [vmem:[#allocation2 + $0xe8] sm:$0xff] }
 0x2f0   :  { %v2299_v26 = vpop.permute.xlu1 %2298  ;;  %v2323_v13 = vadd.f32 %v2297_v21, %v2202_v2  ;;  %v2184_v21 = vsel %vm521_vm1, %v2181_v23, %v2183_v47  ;;  %v14730_v43 = vmul.f32 %v2504_v58, %v2469_v52 }
 0x2f1   :  { %v2324_v2 = vadd.f32 %v2299_v26, %v2203_v37  ;;  %v2186_v37 = vsel %vm521_vm1, %v2183_v47, %v2185_v38  ;;  %v2542_v26 = vrot.slane %v2524_v22, 2 }
 0x2f2   :  { %v2398_v12 = vadd.f32 %v2389_v46, %v2323_v13  ;;  %v1990_v46 = vrot.slane %v14534_v6, 7  ;;  %v2545_v48 = vrot.slane %v14730_v43, 2  ;;  %v1855_v6 = vrot.slane %v14484_v39, 1 }
 0x2f3   :  { %v2544_v14 = vsel %vm700_vm3, %v2542_v26, %v2543_v3 }
 0x2f4   :  { %v2301_v41 = vpop.permute.xlu2 %2300  ;;  %v2458_v20 = vadd.f32 %v14650_v40, %v2398_v12  ;;  %v1991_v47 = vsel %vm657_vm2, %v1988_v59, %v1990_v46  ;;  %v2546_v44 = vsel %vm700_vm3, %v2543_v3, %v2545_v48  ;;  %v1992_v12 = vrot.slane %v14553_v25, 7 }
 0x2f5   :  { %v1858_v24 = vsel %vm521_vm1, %v1855_v6, %v1857_v42 }
 0x2f7   :  { %v2131_v34 = vpop.permute.xlu0 %2130 }
 0x2f8   :  { %v2155_v7 = vadd.f32 %v2131_v34, %v2051_v27  ;;  %v2133_v50 = vpop.permute.xlu1 %2132  ;;  %v2390_v27 = vmul.f32 %v2367_v1, %v14390_v61  ;;  %v14742_v61 = vadd.f32 %v2542_v26, %v2458_v20 }
 0x2f9   :  { %v2156_v11 = vadd.f32 %v2133_v50, %v2052_v0  ;;  %v2370_v0 = vrot.slane %v14549_v33, 1  ;;  %v2010_v33 = vmul.f32 %v1991_v47, %v14476_v49 }
 0x2fa   :  { %v2204_v28 = vadd.f32 %v2182_v63, %v2155_v7  ;;  %v2399_v45 = vadd.f32 %v2390_v27, %v2324_v2  ;;  %v2470_v7 = vld [vmem:[#allocation2 + $0x110] sm:$0xff]  ;;  %v2586_v50 = vrot.slane %v14742_v61, 7  ;;  %v1993_v2 = vsel %vm657_vm2, %v1990_v46, %v1992_v12 }
 0x2fb   :  { %v2205_v60 = vadd.f32 %v2184_v21, %v2156_v11  ;;  %v1856_v11 = vsel %vm521_vm1, %v1853_v4, %v1855_v6  ;;  %v2371_v21 = vsel %vm521_vm1, %v2368_v51, %v2370_v0  ;;  %v19329_v6 = vld [vmem:[#allocation18_spill] sm:$0xff] }
 0x2fc   :  { %v2325_v5 = vadd.f32 %v2301_v41, %v2204_v28  ;;  %v2135_v13 = vpop.permute.xlu2 %2134  ;;  %v1875_v20 = vmul.f32 %v1856_v11, %v19326_v16 }
 0x2fd   :  { %v2157_v23 = vadd.f32 %v2135_v13, %v2053_v10  ;;  %v2505_v10 = vrot.slane %v14678_v32, 7  ;;  %v19327_v13 = vld [vmem:[#allocation16_spill] sm:$0xff] }
 0x2fe   :  { %v2400_v58 = vadd.f32 %v2391_v36, %v2325_v5  ;;  %v2032_v5 = vrot.slane %v2010_v33, 2  ;;  %v2392_v36 = vmul.f32 %v2371_v21, %v19327_v13  ;;  %v2189_v33 = vrot.slane %v14566_v56, 1  ;;  %v19332_v13 = vld [vmem:[#allocation15_spill] sm:$0xff] }
 0x2ff   :  { %v2434_v40 = vpop.permute.xlu0 %2433  ;;  %v14740_v41 = vadd.f32 %v2186_v37, %v2157_v23  ;;  %v2506_v39 = vsel %vm657_vm2, %v2503_v35, %v2505_v10  ;;  %v14784_v37 = vmul.f32 %v1993_v2, %v14498_v19  ;;  %v19328_v19 = vld [vmem:[#allocation12_spill] sm:$0xff] }
 0x300   :  { %v2459_v1 = vadd.f32 %v2434_v40, %v2399_v45  ;;  %v2436_v17 = vpop.permute.xlu1 %2435  ;;  %v14770_v35 = vmul.f32 %v2506_v39, %v2470_v7 }
 0x301   :  { %v2460_v34 = vadd.f32 %v2436_v17, %v2400_v58  ;;  %v2033_v58 = vsel %vm700_vm3, %v2030_v30, %v2032_v5 }
 0x302   :  { %v14751_v52 = vadd.f32 %v2544_v14, %v2459_v1  ;;  %v2547_v23 = vrot.slane %v14770_v35, 2  ;;  %v2187_v1 = vrot.slane %v14544_v55, 1  ;;  %v2034_v14 = vrot.slane %v14784_v37, 2  ;;  %v2471_v35 = vld [vmem:[#allocation2 + $0x138] sm:$0xff] }
 0x303   :  { %v14758_v63 = vadd.f32 %v2546_v44, %v2460_v34  ;;  %v1876_v44 = vmul.f32 %v1858_v24, %v19328_v19 }
 0x304   :  { %v2587_v53 = vrot.slane %v14751_v52, 7  ;;  %v1923_v59 = vpop.permute.xlu2 %1922  ;;  %v2188_v55 = vsel %vm521_vm1, %v2185_v38, %v2187_v1 }
 0x305   :  { %v2589_v15 = vrot.slane %v14758_v63, 7  ;;  %v1944_v46 = vadd.f32 %v1923_v59, %v1875_v20  ;;  %v19331_v20 = vld [vmem:[#allocation17_spill] sm:$0xff] }
 0x306   :  { %v2588_v22 = vsel %vm657_vm2, %v2586_v50, %v2587_v53  ;;  %v2507_v50 = vrot.slane %v19329_v6, 7 }
 0x307   :  { %v2611_v49 = vsel %vm78_vm0, %v2588_v22, 0.0  ;;  %v2438_v28 = vpop.permute.xlu0 %2437  ;;  %v2590_v43 = vsel %vm657_vm2, %v2587_v53, %v2589_v15  ;;  %v2054_v17 = vadd.f32 %v2033_v58, %v1944_v46  ;;  %v2035_v53 = vsel %vm700_vm3, %v2032_v5, %v2034_v14 }
 0x308   :  { %v2612_v4 = vsel %vm78_vm0, %v2590_v43, 0.0  ;;  %v2303_v51 = vpop.permute.xlu1 %2302  ;;  %v2508_v62 = vsel %vm657_vm2, %v2505_v10, %v2507_v50  ;;  %v2190_v43 = vsel %vm521_vm1, %v2187_v1, %v2189_v33  ;;  %v2509_v58 = vrot.slane %v14599_v18, 7  ;;  %v2472_v1 = vld [vmem:[#allocation2 + $0x160] sm:$0xff] }
 0x309   :  { %v2613_v27 = vadd.f32 %v2612_v4, %v2611_v49  ;;  %v2326_v3 = vadd.f32 %v2303_v51, %v2205_v60  ;;  %v2548_v60 = vsel %vm700_vm3, %v2545_v48, %v2547_v23  ;;  %v2372_v48 = vrot.slane %v14636_v54, 1  ;;  %v19330_v4 = vld [vmem:[#allocation20_spill] sm:$0xff] }
 0x30a   :  { %v1994_v56 = vrot.slane %v19330_v4, 7 }
 0x30b   :  { %v2401_v26 = vadd.f32 %v2392_v36, %v2326_v3  ;;  %v2373_v54 = vsel %vm521_vm1, %v2370_v0, %v2372_v48  ;;  %v1859_v36 = vrot.slane %v19332_v13, 1 }
 0x30c   :  { %v2440_v45 = vpop.permute.xlu2 %2439  ;;  %v2393_v51 = vmul.f32 %v2373_v54, %v19331_v20  ;;  %v1995_v10 = vsel %vm657_vm2, %v1992_v12, %v1994_v56  ;;  %v1805_v20 = vld [vmem:[#allocation2 + $0x140] sm:$0x7f] }
 0x30d   :  { %v2461_v40 = vadd.f32 %v2438_v28, %v2401_v26  ;;  %v2528_v28 = vmul.f32 %v2508_v62, %v2471_v35  ;;  %v1860_v37 = vsel %vm521_vm1, %v1857_v42, %v1859_v36  ;;  %v14821_v26 = vmul.f32 %v1995_v10, %v14536_v31 }
 0x30e   :  { %v1877_v12 = vmul.f32 %v1860_v37, %v14480_v8 }
 0x30f   :  { %v2137_v34 = vpop.permute.xlu0 %2136  ;;  %v14793_v47 = vadd.f32 %v2548_v60, %v2461_v40  ;;  %v2549_v32 = vrot.slane %v2528_v28, 2  ;;  %v2374_v40 = vrot.slane %v14623_v57, 1  ;;  %v2510_v60 = vsel %vm657_vm2, %v2507_v50, %v2509_v58  ;;  %v19333_v57 = vld [vmem:[#allocation21_spill] sm:$0xff] }
 0x310   :  { %v2158_v7 = vadd.f32 %v2137_v34, %v2054_v17  ;;  %v1925_v39 = vpop.permute.xlu1 %1924  ;;  %v2529_v19 = vmul.f32 %v2510_v60, %v2472_v1 }
 0x311   :  { %v2591_v29 = vrot.slane %v14793_v47, 7  ;;  %v1945_v30 = vadd.f32 %v1925_v39, %v1876_v44  ;;  %v2550_v46 = vsel %vm700_vm3, %v2547_v23, %v2549_v32  ;;  %v2375_v18 = vsel %vm521_vm1, %v2372_v48, %v2374_v40 }
 0x312   :  { %v2207_v59 = vadd.f32 %v2188_v55, %v2158_v7  ;;  %v2191_v44 = vrot.slane %v19333_v57, 1  ;;  %v2551_v35 = vrot.slane %v2529_v19, 2 }
 0x313   :  { %v2592_v11 = vsel %vm657_vm2, %v2589_v15, %v2591_v29  ;;  %v2055_v21 = vadd.f32 %v2035_v53, %v1945_v30  ;;  %v19335_v53 = vld [vmem:[#allocation11_spill] sm:$0xff] }
 0x314   :  { %v2614_v22 = vsel %vm78_vm0, %v2592_v11, 0.0  ;;  %v2139_v2 = vpop.permute.xlu2 %2138  ;;  %v2394_v11 = vmul.f32 %v2375_v18, %v19335_v53  ;;  %v2192_v48 = vsel %vm521_vm1, %v2189_v33, %v2191_v44 }
 0x315   :  { %v2159_v49 = vadd.f32 %v2139_v2, %v2055_v21  ;;  %v2615_v38 = vadd.f32 %v2614_v22, %v2613_v27  ;;  %v19336_v21 = vld [vmem:[#allocation23_spill] sm:$0xff] }
 0x316   :  { %v2376_v50 = vrot.slane %v19336_v21, 1  ;;  %v2473_v22 = vld [vmem:[#allocation2 + $0x188] sm:$0xff]  ;;  %v14891_v21 = vld [vmem:[%s19138_s2 + $0x18] sm:$0xff] }
 0x317   :  { %v2208_v16 = vadd.f32 %v2190_v43, %v2159_v49  ;;  %v2552_v43 = vsel %vm700_vm3, %v2549_v32, %v2551_v35  ;;  %v14864_v32 = vld [vmem:[%s19138_s2] sm:$0xff] }
 0x318   :  { %v2305_v15 = vpop.permute.xlu1 %2304  ;;  %v2377_v28 = vsel %vm521_vm1, %v2374_v40, %v2376_v50  ;;  %3384 = vperm.xlu2 %13073, %v14864_v32  }
 0x319   :  { %v2327_v5 = vadd.f32 %v2305_v15, %v14740_v41 }
 0x31b   :  { %v2402_v27 = vadd.f32 %v2393_v51, %v2327_v5  ;;  %v2513_v5 = vrot.slane %v14696_v9, 7  ;;  %v14872_v9 = vld [vmem:[%s19138_s2 + $0x8] sm:$0xff] }
 0x31c   :  { %v1927_v0 = vpop.permute.xlu2 %1926 }
 0x31d   :  { %v2462_v3 = vadd.f32 %v2440_v45, %v2402_v27  ;;  %v2036_v45 = vrot.slane %v14821_v26, 2  ;;  %v1946_v42 = vadd.f32 %v1927_v0, %v1877_v12  ;;  %v19337_v27 = vld [vmem:[#allocation13_spill] sm:$0xff]  ;;  %v1878_v12 = vmul.f32 %v1859_v36, %v1805_v20 }
 0x31e   :  { %v2395_v0 = vmul.f32 %v2377_v28, %v19337_v27  ;;  %v2340_v28 = vld [vmem:[#allocation2 + $0x1a8] sm:$0x7f] }
 0x31f   :  { %v14823_v24 = vadd.f32 %v2550_v46, %v2462_v3  ;;  %v2037_v8 = vsel %vm700_vm3, %v2034_v14, %v2036_v45  ;;  %v14849_v14 = vld [vmem:[%s19138_s2 + $0x10] sm:$0xff] }
 0x320   :  { %v14825_v41 = vpop.permute.xlu1 %1928  ;;  %v2056_v39 = vadd.f32 %v2037_v8, %v1946_v42  ;;  %3390 = vperm.xlu1 %13074, %v14849_v14   ;;  %v19338_v3 = vld [vmem:[#allocation22_spill] sm:$0xff] }
 0x321   :  { %v2593_v25 = vrot.slane %v14823_v24, 7  ;;  %v2378_v46 = vrot.slane %v19338_v3, 1 }
 0x323   :  { %v2594_v23 = vsel %vm657_vm2, %v2591_v29, %v2593_v25  ;;  %v19334_v29 = vld [vmem:[#allocation24_spill] sm:$0xff]  ;;  %v2379_v18 = vsel %vm521_vm1, %v2376_v50, %v2378_v46 }
 0x324   :  { %v2307_v31 = vpop.permute.xlu2 %2306  ;;  %v2616_v17 = vsel %vm78_vm0, %v2594_v23, 0.0  ;;  %v2511_v30 = vrot.slane %v19334_v29, 7  ;;  %v2143_v37 = vpop.permute.xlu0 %2142  ;;  %v19339_v23 = vmov 5  }
 0x325   :  { %v2617_v34 = vadd.f32 %v2616_v17, %v2615_v38  ;;  %v2328_v7 = vadd.f32 %v2307_v31, %v2207_v59  ;;  %v1956_v38 = vld [vmem:[#allocation2 + $0x170] sm:$0x1]  ;;  %13075 = vset.pattern.permute.xlu2 %v19339_v23 }
 0x326   :  { %v2512_v49 = vsel %vm657_vm2, %v2509_v58, %v2511_v30  ;;  %v2013_v15 = vmul.f32 %v1994_v56, %v1956_v38  ;;  %v2474_v31 = vld [vmem:[#allocation2 + $0x1b0] sm:$0xff]  ;;  %v2514_v36 = vsel %vm657_vm2, %v2511_v30, %v2513_v5  ;;  %3537 = vperm.xlu2 %13075, %v14864_v32  }
 0x327   :  { %v2403_v59 = vadd.f32 %v2394_v11, %v2328_v7  ;;  %v2530_v33 = vmul.f32 %v2512_v49, %v2473_v22  ;;  %v2531_v7 = vmul.f32 %v2514_v36, %v2474_v31  ;;  %v19340_v30 = vld [vmem:[#allocation19_spill] sm:$0xff] }
 0x328   :  { %v2141_v6 = vpop.permute.xlu1 %2140  ;;  %13076 = vset.pattern.permute.xlu1 %v19339_v23  ;;  %v2396_v53 = vmul.f32 %v2379_v18, %v19340_v30  ;;  %v14931_v31 = vld [vmem:[%s19138_s2 + $0x38] sm:$0xff]  ;;  %v19342_v18 = vmov 2  }
 0x329   :  { %v2160_v55 = vadd.f32 %v2141_v6, %v2056_v39  ;;  %v2553_v58 = vrot.slane %v2530_v33, 2  ;;  %3540 = vperm.xlu1 %13076, %v14872_v9   ;;  %v2555_v26 = vrot.slane %v2531_v7, 2 }
 0x32b   :  { %v2209_v2 = vadd.f32 %v2192_v48, %v2160_v55  ;;  %v2554_v8 = vsel %vm700_vm3, %v2551_v35, %v2553_v58  ;;  %v2556_v22 = vsel %vm700_vm3, %v2553_v58, %v2555_v26  ;;  %v14914_v58 = vld [vmem:[%s19138_s2 + $0x30] sm:$0xff] }
 0x32c   :  { %v2442_v62 = vpop.permute.xlu2 %2441  ;;  %v2446_v50 = vpop.permute.xlu0 %2445 }
 0x32d   :  { %v2463_v54 = vadd.f32 %v2442_v62, %v2403_v59 }
 0x32e   :  { %3543 = vperm.xlu2 %13075, %v14849_v14  }
 0x32f   :  { %v14855_v4 = vadd.f32 %v2552_v43, %v2463_v54 }
 0x330   :  { %v2309_v51 = vpop.permute.xlu1 %2308 }
 0x331   :  { %v2595_v13 = vrot.slane %v14855_v4, 7  ;;  %v2329_v10 = vadd.f32 %v2309_v51, %v2208_v16  ;;  %v2038_v16 = vrot.slane %v2013_v15, 2  ;;  %3546 = vperm.xlu1 %13076, %v14891_v21   ;;  %v19341_v51 = vmov 3  }
 0x333   :  { %v2596_v56 = vsel %vm657_vm2, %v2593_v25, %v2595_v13  ;;  %v2404_v40 = vadd.f32 %v2395_v0, %v2329_v10  ;;  %v1947_v25 = vadd.f32 %v14825_v41, %v1878_v12  ;;  %v2039_v39 = vsel %vm700_vm3, %v2036_v45, %v2038_v16 }
 0x334   :  { %v2618_v42 = vsel %vm78_vm0, %v2596_v56, 0.0  ;;  %v2444_v1 = vpop.permute.xlu2 %2443  ;;  %v2397_v10 = vmul.f32 %v2378_v46, %v2340_v28 }
 0x335   :  { %v2619_v17 = vadd.f32 %v2618_v42, %v2617_v34  ;;  %v2464_v60 = vadd.f32 %v2444_v1, %v2404_v40  ;;  %v2057_v29 = vadd.f32 %v2039_v39, %v1947_v25  ;;  %v14923_v40 = vld [vmem:[%s19138_s2 + $0x20] sm:$0xff] }
 0x336   :  { %13077 = vset.pattern.permute.xlu2 %v19341_v51  ;;  %3549 = vperm.xlu0 %13078, %v14923_v40  }
 0x337   :  { %v14880_v19 = vadd.f32 %v2554_v8, %v2464_v60  ;;  %v2161_v59 = vadd.f32 %v2143_v37, %v2057_v29  ;;  %3396 = vperm.xlu2 %13077, %v14923_v40  }
 0x338   :  { %v2311_v6 = vpop.permute.xlu1 %2310 }
 0x339   :  { %v2597_v55 = vrot.slane %v14880_v19, 7  ;;  %v2330_v41 = vadd.f32 %v2311_v6, %v2209_v2  ;;  %v2475_v2 = vld [vmem:[#allocation2 + $0x1d8] sm:$0x1]  ;;  %v2210_v54 = vadd.f32 %v2191_v44, %v2161_v59  ;;  %13080 = vset.pattern.permute.xlu1 %v19341_v51 }
 0x33a   :  { %v2532_v43 = vmul.f32 %v2513_v5, %v2475_v2 }
 0x33b   :  { %v2598_v34 = vsel %vm657_vm2, %v2595_v13, %v2597_v55  ;;  %v2405_v11 = vadd.f32 %v2396_v53, %v2330_v41  ;;  %v14906_v13 = vld [vmem:[%s19138_s2 + $0x28] sm:$0xff] }
 0x33c   :  { %v2620_v45 = vsel %vm78_vm0, %v2598_v34, 0.0  ;;  %3399 = vperm.xlu1 %13080, %v14906_v13   ;;  %v2557_v57 = vrot.slane %v2532_v43, 2 }
 0x33d   :  { %v2621_v35 = vadd.f32 %v2620_v45, %v2619_v17  ;;  %v2465_v48 = vadd.f32 %v2446_v50, %v2405_v11 }
 0x33e   :  { %v2558_v3 = vsel %vm700_vm3, %v2555_v26, %v2557_v57  ;;  %13079 = vset.pattern.permute.xlu0 %v19341_v51 }
 0x33f   :  { %v2575_v62 = vadd.f32 %v2556_v22, %v2465_v48  ;;  %13081 = vset.pattern.permute.xlu2 %v19339_v23  ;;  %3387 = vperm.xlu0 %13079, %v14872_v9  }
 0x340   :  { %v2313_v49 = vpop.permute.xlu1 %2312  ;;  %3552 = vperm.xlu2 %13081, %v14906_v13  }
 0x341   :  { %v2599_v38 = vrot.slane %v2575_v62, 7  ;;  %v2331_v15 = vadd.f32 %v2313_v49, %v2210_v54  ;;  %v19343_v54 = vmov 0  }
 0x343   :  { %v2600_v33 = vsel %vm657_vm2, %v2597_v55, %v2599_v38  ;;  %v2406_v44 = vadd.f32 %v2397_v10, %v2331_v15 }
 0x344   :  { %v2622_v20 = vsel %vm78_vm0, %v2600_v33, 0.0  ;;  %3402 = vperm.xlu1 %13080, %v14914_v58  }
 0x345   :  { %v2623_v27 = vadd.f32 %v2622_v20, %v2621_v35 }
 0x347   :  { %3393 = vperm.xlu0 %13079, %v14891_v21  }
 0x348   :  { %v2448_v5 = vpop.permute.xlu1 %2447  ;;  %3555 = vperm.xlu2 %13081, %v14914_v58  }
 0x349   :  { %v2466_v0 = vadd.f32 %v2448_v5, %v2406_v44 }
 0x34b   :  { %v2576_v37 = vadd.f32 %v2558_v3, %v2466_v0 }
 0x34c   :  { %13082 = vset.pattern.permute.xlu1 %v19339_v23 }
 0x34d   :  { %v2601_v12 = vrot.slane %v2576_v37, 7  ;;  %3558 = vperm.xlu1 %13082, %v14931_v31  }
 0x34f   :  { %v2602_v46 = vsel %vm657_vm2, %v2599_v38, %v2601_v12  ;;  %3405 = vperm.xlu0 %13079, %v14931_v31  }
 0x350   :  { %v2624_v56 = vsel %vm78_vm0, %v2602_v46, 0.0  ;;  %13083 = vset.pattern.permute.xlu2 %v19342_v18 }
 0x351   :  { %v2625_v16 = vadd.f32 %v2624_v56, %v2623_v27  ;;  %3281 = vperm.xlu2 %13083, %v14864_v32  }
 0x353   :  { %v2626_v42 = vrot.slane %v2625_v16, 4 }
 0x355   :  { %v2627_v1 = vadd.f32 %v2626_v42, %v2625_v16  ;;  %13084 = vset.pattern.permute.xlu1 %v19342_v18 }
 0x356   :  { %3284 = vperm.xlu1 %13084, %v14872_v9  }
 0x357   :  { %v2628_v36 = vrot.slane %v2627_v1, 2  ;;  %13085 = vset.pattern.permute.xlu0 %v19343_v54 }
 0x358   :  { %3139 = vperm.xlu0 %13085, %v14864_v32  }
 0x359   :  { %v2629_v25 = vadd.f32 %v2628_v36, %v2627_v1  ;;  %3287 = vperm.xlu2 %13083, %v14849_v14  }
 0x35b   :  { %v2630_v17 = vrot.slane %v2629_v25, 1 }
 0x35d   :  { %v2631_v60 = vadd.f32 %v2630_v17, %v2629_v25 }
 0x35e   :  { %13086 = vset.pattern.permute.xlu1 %v19343_v54 }
 0x35f   :  { %v2632_v8 = vmul.f32 0.015625, %v2631_v60  ;;  %3143 = vperm.xlu1 %13086, %v14872_v9  }
 0x360   :  { %13089 = vset.pattern.permute.xlu0 %v19342_v18 }
 0x361   :  { %v14941_v7 = vsub.f32 %v14742_v61, %v2632_v8  ;;  %v14944_v39 = vsub.f32 %v14751_v52, %v2632_v8  ;;  %v14947_v6 = vsub.f32 %v14758_v63, %v2632_v8  ;;  %v14950_v29 = vsub.f32 %v14793_v47, %v2632_v8  ;;  %3293 = vperm.xlu0 %13089, %v14923_v40  }
 0x362   :  { %v14953_v55 = vsub.f32 %v14823_v24, %v2632_v8  ;;  %v14956_v30 = vsub.f32 %v14855_v4, %v2632_v8  ;;  %v14959_v53 = vsub.f32 %v14880_v19, %v2632_v8  ;;  %v14961_v61 = vsub.f32 %v2575_v62, %v2632_v8  ;;  %13087 = vset.pattern.permute.xlu2 %v19343_v54 }
 0x363   :  { %v14964_v52 = vsub.f32 %v2576_v37, %v2632_v8  ;;  %v2642_v63 = vmul.f32 %v14941_v7, %v14941_v7  ;;  %v2643_v47 = vmul.f32 %v14944_v39, %v14944_v39  ;;  %v2644_v24 = vmul.f32 %v14947_v6, %v14947_v6  ;;  %3147 = vperm.xlu2 %13087, %v14849_v14  }
 0x364   :  { %v2645_v4 = vmul.f32 %v14950_v29, %v14950_v29  ;;  %v2646_v19 = vmul.f32 %v14953_v55, %v14953_v55  ;;  %v2647_v41 = vmul.f32 %v14956_v30, %v14956_v30  ;;  %v2648_v34 = vmul.f32 %v14959_v53, %v14959_v53 }
 0x365   :  { %v2649_v11 = vmul.f32 %v14961_v61, %v14961_v61  ;;  %v2650_v26 = vmul.f32 %v14964_v52, %v14964_v52  ;;  %v2660_v50 = vrot.slane %v2642_v63, 7  ;;  %v2661_v45 = vrot.slane %v2643_v47, 7  ;;  %v11263_v63 = vld [vmem:[#allocation4 + $0x1b8] sm:$0xf]  ;;  %v12682_v47 = vld [vmem:[#allocation4 + $0x1c8] sm:$0xf0] }
 0x366   :  { %v2663_v35 = vrot.slane %v2644_v24, 7  ;;  %v2665_v48 = vrot.slane %v2645_v4, 7  ;;  %v2667_v59 = vrot.slane %v2646_v19, 7  ;;  %v2669_v22 = vrot.slane %v2647_v41, 7  ;;  %v12680_v24 = vld [vmem:[#allocation4 + $0x1bc] sm:$0xf] }
 0x367   :  { %v2662_v2 = vsel %vm657_vm2, %v2660_v50, %v2661_v45  ;;  %v2671_v62 = vrot.slane %v2648_v34, 7  ;;  %v2673_v49 = vrot.slane %v2649_v11, 7  ;;  %v2675_v38 = vrot.slane %v2650_v26, 7  ;;  %13088 = vset.pattern.permute.xlu1 %v19342_v18  ;;  %v11265_v19 = vld [vmem:[#allocation4 + $0x1cc] sm:$0xf0] }
 0x368   :  { %v2664_v28 = vsel %vm657_vm2, %v2661_v45, %v2663_v35  ;;  %v2666_v43 = vsel %vm657_vm2, %v2663_v35, %v2665_v48  ;;  %v2668_v33 = vsel %vm657_vm2, %v2665_v48, %v2667_v59  ;;  %v2670_v15 = vsel %vm657_vm2, %v2667_v59, %v2669_v22  ;;  %3290 = vperm.xlu1 %13088, %v14891_v21   ;;  %v11271_v41 = vld [vmem:[#allocation4 + $0x1c0] sm:$0xf]  ;;  %v12683_v34 = vld [vmem:[#allocation4 + $0x1d0] sm:$0xf0]  ;;  %v12681_v45 = vld [vmem:[#allocation4 + $0x1c4] sm:$0xf] }
 0x369   :  { %v2672_v20 = vsel %vm657_vm2, %v2669_v22, %v2671_v62  ;;  %v2674_v10 = vsel %vm657_vm2, %v2671_v62, %v2673_v49  ;;  %v2676_v27 = vsel %vm657_vm2, %v2673_v49, %v2675_v38  ;;  %v2685_v57 = vsel %vm78_vm0, %v2662_v2, 0.0  ;;  %v11273_v35 = vld [vmem:[#allocation4 + $0x1d4] sm:$0xf0]  ;;  %v11243_v22 = vld [vmem:[#allocation4 + $0x190] sm:$0xf]  ;;  %3296 = vperm.xlu0 %13089, %v14906_v13  }
 0x36a   :  { %v2686_v44 = vsel %vm78_vm0, %v2664_v28, 0.0  ;;  %v2688_v0 = vsel %vm78_vm0, %v2666_v43, 0.0  ;;  %v2690_v37 = vsel %vm78_vm0, %v2668_v33, 0.0  ;;  %v2692_v46 = vsel %vm78_vm0, %v2670_v15, 0.0  ;;  %v12677_v2 = vld [vmem:[#allocation4 + $0x1a0] sm:$0xf0] }
 0x36b   :  { %v2687_v5 = vadd.f32 %v2686_v44, %v2685_v57  ;;  %v2694_v16 = vsel %vm78_vm0, %v2672_v20, 0.0  ;;  %v2696_v1 = vsel %vm78_vm0, %v2674_v10, 0.0  ;;  %v2698_v25 = vsel %vm78_vm0, %v2676_v27, 0.0  ;;  %v12675_v62 = vld [vmem:[#allocation4 + $0x194] sm:$0xf]  ;;  %3151 = vperm.xlu2 %13087, %v14891_v21  }
 0x36c   :  { %v11264_v4 = vor.u32 %v12682_v47, %v11263_v63  ;;  %v11268_v26 = vor.u32 %v12680_v24, %v11265_v19  ;;  %v11272_v50 = vor.u32 %v12683_v34, %v11271_v41  ;;  %v11276_v48 = vor.u32 %v12681_v45, %v11273_v35  ;;  %v11245_v38 = vld [vmem:[#allocation4 + $0x1a4] sm:$0xf0]  ;;  %v11251_v28 = vld [vmem:[#allocation4 + $0x198] sm:$0xf]  ;;  %v12678_v43 = vld [vmem:[#allocation4 + $0x1a8] sm:$0xf0] }
 0x36d   :  { %v2689_v3 = vadd.f32 %v2688_v0, %v2687_v5  ;;  %v11244_v49 = vor.u32 %v12677_v2, %v11243_v22  ;;  %v11248_v15 = vor.u32 %v12675_v62, %v11245_v38  ;;  %v11252_v20 = vor.u32 %v12678_v43, %v11251_v28  ;;  %v12676_v10 = vld [vmem:[#allocation4 + $0x19c] sm:$0xf]  ;;  %v11253_v27 = vld [vmem:[#allocation4 + $0x1ac] sm:$0xf0]  ;;  %v11223_v5 = vld [vmem:[#allocation4 + $0x168] sm:$0xf] }
 0x36e   :  { %2939 = vmatpush.bf16.msra.mxu2 %v11264_v4  ;;  %2968 = vmatpush.bf16.msra.mxu3 %v11268_v26  ;;  %v11256_v57 = vor.u32 %v12676_v10, %v11253_v27  ;;  %v12672_v0 = vld [vmem:[#allocation4 + $0x178] sm:$0xf0]  ;;  %v12665_v63 = vld [vmem:[#allocation4 + $0x144] sm:$0xf]  ;;  %v11205_v4 = vld [vmem:[#allocation4 + $0x154] sm:$0xf0] }
 0x36f   :  { %v2691_v12 = vadd.f32 %v2690_v37, %v2689_v3  ;;  %2997 = vmatpush.bf16.msrb.mxu0 %v11272_v50  ;;  %3026 = vmatpush.bf16.msrb.mxu1 %v11276_v48  ;;  %v12670_v3 = vld [vmem:[#allocation4 + $0x16c] sm:$0xf]  ;;  %v11224_v37 = vor.u32 %v12672_v0, %v11223_v5  ;;  %v11211_v19 = vld [vmem:[#allocation4 + $0x148] sm:$0xf]  ;;  %v11208_v41 = vor.u32 %v12665_v63, %v11205_v4  ;;  %v12668_v34 = vld [vmem:[#allocation4 + $0x158] sm:$0xf0] }
 0x370   :  { %13090 = vset.pattern.permute.xlu1 %v19343_v54  ;;  %v11213_v26 = vld [vmem:[#allocation4 + $0x15c] sm:$0xf0]  ;;  %v11212_v50 = vor.u32 %v12668_v34, %v11211_v19  ;;  %v19344_v35 = vmov 6   ;;  %v3381_v48 = vld [vmem:[#allocation2 + $0x30] sm:$0x80] }
 0x371   :  { %v2693_v56 = vadd.f32 %v2692_v46, %v2691_v12  ;;  %3155 = vperm.xlu1 %13090, %v14923_v40   ;;  %v11225_v12 = vld [vmem:[#allocation4 + $0x17c] sm:$0xf0]  ;;  %v11231_v46 = vld [vmem:[#allocation4 + $0x170] sm:$0xf]  ;;  %3299 = vperm.xlu0 %13089, %v14914_v58   ;;  %v13190_v27 = vld [vmem:[#allocation8 + $0x1] ss:$0 sm:$0xff] }
 0x372   :  { %2940 = vmatpush.bf16.msra.mxu2 %v11244_v49  ;;  %2969 = vmatpush.bf16.msra.mxu3 %v11248_v15 }
 0x373   :  { %v2695_v42 = vadd.f32 %v2694_v16, %v2693_v56  ;;  %2998 = vmatpush.bf16.msrb.mxu0 %v11252_v20  ;;  %3027 = vmatpush.bf16.msrb.mxu1 %v11256_v57  ;;  %v12673_v56 = vld [vmem:[#allocation4 + $0x180] sm:$0xf0] }
 0x374   :  { %13091 = vset.pattern.permute.xlu2 %v19344_v35 }
 0x375   :  { %v2697_v36 = vadd.f32 %v2696_v1, %v2695_v42  ;;  %v11228_v42 = vor.u32 %v12670_v3, %v11225_v12  ;;  %v11232_v1 = vor.u32 %v12673_v56, %v11231_v46 }
 0x376   :  { %2941 = vmatpush.bf16.msra.mxu2 %v11224_v37 }
 0x377   :  { %v2699_v17 = vadd.f32 %v2698_v25, %v2697_v36  ;;  %v12671_v36 = vld [vmem:[#allocation4 + $0x174] sm:$0xf]  ;;  %v11233_v25 = vld [vmem:[#allocation4 + $0x184] sm:$0xf0]  ;;  %2970 = vmatpush.bf16.msra.mxu3 %v11228_v42  ;;  %2999 = vmatpush.bf16.msrb.mxu0 %v11232_v1 }
 0x379   :  { %v2700_v60 = vrot.slane %v2699_v17, 4  ;;  %3159 = vperm.xlu1 %13090, %v14906_v13   ;;  %3302 = vperm.xlu0 %13089, %v14931_v31  }
 0x37b   :  { %v2701_v8 = vadd.f32 %v2700_v60, %v2699_v17  ;;  %v11236_v17 = vor.u32 %v12671_v36, %v11233_v25  ;;  %v11203_v60 = vld [vmem:[#allocation4 + $0x140] sm:$0xf]  ;;  %2971 = vmatpush.bf16.msra.mxu3 %v11208_v41  ;;  %3000 = vmatpush.bf16.msrb.mxu0 %v11212_v50 }
 0x37d   :  { %v2702_v11 = vrot.slane %v2701_v8, 2  ;;  %3028 = vmatpush.bf16.msrb.mxu1 %v11236_v17 }
 0x37f   :  { %v2703_v59 = vadd.f32 %v2702_v11, %v2701_v8  ;;  %v12667_v8 = vld [vmem:[#allocation4 + $0x150] sm:$0xf0]  ;;  %v12666_v11 = vld [vmem:[#allocation4 + $0x14c] sm:$0xf] }
 0x380   :  { %v11204_v24 = vor.u32 %v12667_v8, %v11203_v60  ;;  %v11216_v45 = vor.u32 %v12666_v11, %v11213_v26 }
 0x381   :  { %v2704_v33 = vrot.slane %v2703_v59, 1  ;;  %3163 = vperm.xlu1 %13090, %v14914_v58   ;;  %13092 = vset.pattern.permute.xlu0 %v19344_v35 }
 0x382   :  { %2942 = vmatpush.bf16.msra.mxu2 %v11204_v24  ;;  %3029 = vmatpush.bf16.msrb.mxu1 %v11216_v45 }
 0x383   :  { %v2705_v44 = vadd.f32 %v2704_v33, %v2703_v59  ;;  %v15023_v59 = vpop.permute.xlu2 %3384  ;;  %v2719_v33 = vld [vmem:[#allocation6 + $0x1] sm:$0x1]  ;;  %3668 = vperm.xlu0 %13092, %v14872_v9  }
 0x384   :  { %v3407_v2 = vrot.slane %v15023_v59, 1 }
 0x385   :  { %v2706_v16 = vmul.f32 0.015625, %v2705_v44 }
 0x386   :  { %v3431_v49 = vmul.f32 %v3407_v2, %v3381_v48 }
 0x387   :  { %v2707_v47 = vadd.f32 1e-05, %v2706_v16 }
 0x389   :  { %13197 = vrsqrt.f32 %v2707_v47  ;;  %3449 = vrot.lane.b32.xlu1 %v3431_v49, %s13304_s0  ;;  %vm2714_vm9 = vweird.f32 %v2707_v47 }
 0x38b   :  { %3680 = vperm.xlu0 %13092, %v14906_v13  }
 0x38f   :  { %v13198_v22 = vpop.eup %13197 }
 0x390   :  { %v2709_v62 = vmul.f32 %v13198_v22, %v2707_v47  ;;  %vm2715_vm8 = vweird.f32 %v13198_v22 }
 0x391   :  { %vm2716_vm10 = vmor %vm2714_vm9, %vm2715_vm8  ;;  %3167 = vperm.xlu1 %13090, %v14931_v31  }
 0x392   :  { %v2710_v38 = vmul.f32 %v13198_v22, %v2709_v62 }
 0x393   :  { %3683 = vperm.xlu0 %13092, %v14914_v58  }
 0x394   :  { %v2711_v28 = vmul.f32 0.5, %v2710_v38 }
 0x396   :  { %v2712_v43 = vsub.f32 1.5, %v2711_v28 }
 0x398   :  { %v2713_v15 = vmul.f32 %v13198_v22, %v2712_v43 }
 0x399   :  { %13093 = vset.pattern.permute.xlu1 %v19344_v35 }
 0x39a   :  { %v2717_v20 = vsel %vm2716_vm10, %v13198_v22, %v2713_v15  ;;  %3671 = vperm.xlu1 %13093, %v14849_v14  }
 0x39b   :  { %v2720_v10 = vmul.f32 %v2719_v33, %v2717_v20 }
 0x39d   :  { %v2721_v57 = vperm.slane %v2720_v10, 0 }
 0x39f   :  { %v2730_v44 = vmul.f32 %v2721_v57, %v14964_v52  ;;  %v2722_v5 = vmul.f32 %v2721_v57, %v14941_v7  ;;  %v2723_v0 = vmul.f32 %v2721_v57, %v14944_v39  ;;  %v2724_v3 = vmul.f32 %v2721_v57, %v14947_v6 }
 0x3a0   :  { %v2725_v37 = vmul.f32 %v2721_v57, %v14950_v29  ;;  %v2726_v12 = vmul.f32 %v2721_v57, %v14953_v55  ;;  %v2727_v46 = vmul.f32 %v2721_v57, %v14956_v30  ;;  %v2728_v56 = vmul.f32 %v2721_v57, %v14959_v53 }
 0x3a1   :  { %v2744_v16 = vadd.f32 %v13190_v27, %v2730_v44  ;;  %v2736_v42 = vadd.f32 %v13190_v27, %v2722_v5  ;;  %v2737_v1 = vadd.f32 %v13190_v27, %v2723_v0  ;;  %v2738_v36 = vadd.f32 %v13190_v27, %v2724_v3  ;;  %v15051_v44 = vld [vmem:[#allocation2 + $0x8] sm:$0xff] }
 0x3a2   :  { %v2739_v25 = vadd.f32 %v13190_v27, %v2725_v37  ;;  %v2740_v52 = vadd.f32 %v13190_v27, %v2726_v12  ;;  %v2741_v17 = vadd.f32 %v13190_v27, %v2727_v46  ;;  %v2729_v7 = vmul.f32 %v2721_v57, %v14961_v61  ;;  %v12684_v46 = vld [vmem:[#allocation4 + $0x1d8] sm:$0xf0] }
 0x3a3   :  { %v2749_v39 = vpack.c.bf16 %v2744_v16, %v2744_v16  ;;  %v2745_v60 = vpack.c.bf16 %v2737_v1, %v2736_v42  ;;  %v2742_v6 = vadd.f32 %v13190_v27, %v2728_v56  ;;  %v15054_v5 = vrot.slane %v15051_v44, 1  ;;  %v11259_v16 = vld [vmem:[#allocation4 + $0x1a0] sm:$0xf]  ;;  %v12679_v42 = vld [vmem:[#allocation4 + $0x1b0] sm:$0xf0] }
 0x3a4   :  { %v2746_v29 = vpack.c.bf16 %v2739_v25, %v2738_v36  ;;  %v2747_v55 = vpack.c.bf16 %v2741_v17, %v2740_v52  ;;  %v2743_v30 = vadd.f32 %v13190_v27, %v2729_v7  ;;  %v19345_v0 = vmov 8   ;;  %v11239_v1 = vld [vmem:[#allocation4 + $0x178] sm:$0xf]  ;;  %v12674_v36 = vld [vmem:[#allocation4 + $0x188] sm:$0xf0] }
 0x3a5   :  { %v2811_v53 = vshrl.u32 %v2749_v39, 16  ;;  %v2814_v8 = vshll.u32 %v2749_v39, 16  ;;  %v2776_v63 = vshrl.u32 %v2745_v60, 16  ;;  %v2779_v47 = vshll.u32 %v2745_v60, 16  ;;  %13095 = vset.pattern.permute.xlu1 %v19345_v0  ;;  %3235 = vrot.lane.b32.xlu2 %v15054_v5, %s13304_s0  ;;  %v11219_v52 = vld [vmem:[#allocation4 + $0x150] sm:$0xf] }
 0x3a6   :  { %v2784_v24 = vshrl.u32 %v2746_v29, 16  ;;  %v2787_v4 = vshll.u32 %v2746_v29, 16  ;;  %v2793_v19 = vshrl.u32 %v2747_v55, 16  ;;  %v2796_v61 = vshll.u32 %v2747_v55, 16  ;;  %3806 = vperm.xlu1 %13095, %v14849_v14   ;;  %13099 = vset.pattern.permute.xlu0 %v19345_v0  ;;  %v11279_v14 = vld [vmem:[#allocation4 + $0x1c8] sm:$0xf] }
 0x3a7   :  { %v2778_v41 = vrot.slane %v2776_v63, 3  ;;  %v2781_v34 = vrot.slane %v2779_v47, 4  ;;  %v2748_v11 = vpack.c.bf16 %v2743_v30, %v2742_v6  ;;  %v2813_v26 = vrot.slane %v2811_v53, 3  ;;  %3803 = vperm.xlu0 %13099, %v14872_v9   ;;  %v12669_v17 = vld [vmem:[#allocation4 + $0x160] sm:$0xf0] }
 0x3a8   :  { %v2786_v50 = vrot.slane %v2784_v24, 3  ;;  %v2789_v45 = vrot.slane %v2787_v4, 4  ;;  %v2795_v48 = vrot.slane %v2793_v19, 3  ;;  %v2798_v22 = vrot.slane %v2796_v61, 4  ;;  %v15142_v29 = vpop.permute.xlu0 %3549 }
 0x3a9   :  { %v2782_v62 = vor.u32 %v2781_v34, %v2778_v41  ;;  %v2802_v49 = vshrl.u32 %v2748_v11, 16  ;;  %v2805_v38 = vshll.u32 %v2748_v11, 16  ;;  %v2816_v28 = vrot.slane %v2814_v8, 4 }
 0x3aa   :  { %v2790_v43 = vor.u32 %v2789_v45, %v2786_v50  ;;  %v2799_v33 = vor.u32 %v2798_v22, %v2795_v48  ;;  %v11280_v56 = vor.u32 %v12684_v46, %v11279_v14  ;;  %v11260_v9 = vor.u32 %v12679_v42, %v11259_v16 }
 0x3ab   :  { %v2804_v15 = vrot.slane %v2802_v49, 3  ;;  %v2807_v20 = vrot.slane %v2805_v38, 4  ;;  %v2817_v10 = vor.u32 %v2816_v28, %v2813_v26  ;;  %v11240_v25 = vor.u32 %v12674_v36, %v11239_v1 }
 0x3ac   :  { %v15046_v27 = vsel %vm1451_vm7, %v2782_v62, %v2790_v43  ;;  %v15049_v57 = vsel %vm1451_vm7, %v2790_v43, %v2799_v33  ;;  %3055 = vmatpush.bf16.msrb.mxu2 %v11280_v56 }
 0x3ad   :  { %11281 = vmatmul.msk.bf16.vlgmr.msra.gmra.mxu2 %vm78_vm0, %v15046_v27  ;;  %11285 = vmatmul.msk.bf16.vlgmr.msra.gmra.mxu3 %vm78_vm0, %v15046_v27  ;;  %v2808_v3 = vor.u32 %v2807_v20, %v2804_v15 }
 0x3ae   :  { %11289 = vmatmul.msk.bf16.vlgmr.msrb.gmra.mxu0 %vm78_vm0, %v15046_v27  ;;  %11293 = vmatmul.msk.bf16.vlgmr.msrb.gmra.mxu1 %vm78_vm0, %v15046_v27 }
 0x3af   :  { %v15066_v37 = vsel %vm1451_vm7, %v2799_v33, %v2808_v3  ;;  %v15072_v12 = vsel %vm1451_vm7, %v2808_v3, %v2817_v10  ;;  %3665 = vperm.xlu2 %13091, %v14864_v32   ;;  %13097 = vset.pattern.permute.xlu1 %v19344_v35 }
 0x3b0   :  { %3677 = vperm.xlu1 %13097, %v14923_v40   ;;  %3809 = vperm.xlu0 %13099, %v14891_v21  }
 0x3b1   :  { %3056 = vmatpush.bf16.msrb.mxu2 %v11260_v9  ;;  %v3388_v53 = vpop.permute.xlu0 %3387 }
 0x3b2   :  { %v3408_v4 = vrot.slane %v3388_v53, 1 }
 0x3b4   :  { %v3409_v11 = vsel %vm521_vm1, %v3407_v2, %v3408_v4 }
 0x3b5   :  { %3057 = vmatpush.bf16.msrb.mxu2 %v11240_v25 }
 0x3b7   :  { %13094 = vset.pattern.permute.xlu2 %v19345_v0 }
 0x3b8   :  { %3800 = vperm.xlu2 %13094, %v14864_v32   ;;  %13100 = vset.pattern.permute.xlu1 %v19345_v0  ;;  %v11220_v32 = vor.u32 %v12669_v17, %v11219_v52 }
 0x3b9   :  { %3818 = vperm.xlu1 %13100, %v14914_v58   ;;  %3821 = vperm.xlu0 %13099, %v14931_v31   ;;  %v15158_v41 = vpop.permute.xlu0 %3393 }
 0x3ba   :  { %3058 = vmatpush.bf16.msrb.mxu2 %v11220_v32  ;;  %v3412_v56 = vrot.slane %v15158_v41, 1 }
 0x3bd   :  { %11282 = vmatmul.msk.bf16.gmra.mxu2 %vm78_vm0, %v15049_v57  ;;  %11286 = vmatmul.msk.bf16.gmra.mxu3 %vm78_vm0, %v15049_v57 }
 0x3be   :  { %11290 = vmatmul.msk.bf16.gmra.mxu0 %vm78_vm0, %v15049_v57  ;;  %11294 = vmatmul.msk.bf16.gmra.mxu1 %vm78_vm0, %v15049_v57 }
 0x3c0   :  { %13096 = vset.pattern.permute.xlu2 %v19344_v35 }
 0x3c1   :  { %3674 = vperm.xlu2 %13096, %v14891_v21   ;;  %13103 = vset.pattern.permute.xlu1 %v19341_v51  ;;  %v3538_v21 = vpop.permute.xlu2 %3537  ;;  %v15190_v3 = vpop.permute.xlu0 %3405 }
 0x3c2   :  { %13107 = vset.pattern.permute.xlu0 %v19339_v23  ;;  %v3560_v61 = vrot.slane %v3538_v21, 7 }
 0x3c9   :  { %13098 = vset.pattern.permute.xlu2 %v19345_v0  ;;  %v15124_v58 = vpop.permute.xlu2 %3543 }
 0x3ca   :  { %3812 = vperm.xlu2 %13098, %v14923_v40   ;;  %v3563_v16 = vrot.slane %v15124_v58, 7 }
 0x3cd   :  { %11283 = vmatmul.msk.bf16.gmra.mxu2 %vm78_vm0, %v15066_v37  ;;  %11287 = vmatmul.msk.bf16.gmra.mxu3 %vm78_vm0, %v15066_v37 }
 0x3ce   :  { %11291 = vmatmul.msk.bf16.gmra.mxu0 %vm78_vm0, %v15066_v37  ;;  %11295 = vmatmul.msk.bf16.gmra.mxu1 %vm78_vm0, %v15066_v37 }
 0x3d1   :  { %v15130_v7 = vpop.permute.xlu2 %3396 }
 0x3d2   :  { %3815 = vperm.xlu2 %13098, %v14906_v13   ;;  %v15122_v13 = vpop.permute.xlu1 %3390 }
 0x3da   :  { %13101 = vset.pattern.permute.xlu2 %v19344_v35  ;;  %v15126_v40 = vpop.permute.xlu1 %3540 }
 0x3db   :  { %3686 = vperm.xlu2 %13101, %v14931_v31   ;;  %v15134_v31 = vpop.permute.xlu2 %3552  ;;  %v3561_v19 = vrot.slane %v15126_v40, 7 }
 0x3dd   :  { %11284 = vmatmul.msk.bf16.gmra.mxu2 %vm78_vm0, %v15072_v12  ;;  %11288 = vmatmul.msk.bf16.gmra.mxu3 %vm78_vm0, %v15072_v12  ;;  %v3562_v22 = vsel %vm657_vm2, %v3560_v61, %v3561_v19  ;;  %v3564_v32 = vsel %vm657_vm2, %v3561_v19, %v3563_v16 }
 0x3de   :  { %11292 = vmatmul.msk.bf16.gmra.mxu0 %vm78_vm0, %v15072_v12  ;;  %11296 = vmatmul.msk.bf16.gmra.mxu1 %vm78_vm0, %v15072_v12 }
 0x3e2   :  { %v15132_v39 = vpop.permute.xlu1 %3546 }
 0x3e3   :  { %13102 = vset.pattern.permute.xlu2 %v19341_v51  ;;  %v15140_v6 = vpop.permute.xlu2 %3555  ;;  %v3565_v19 = vrot.slane %v15132_v39, 7 }
 0x3ea   :  { %v15138_v60 = vpop.permute.xlu1 %3399 }
 0x3eb   :  { %v15148_v30 = vpop.permute.xlu2 %3281 }
 0x3ed   :  { %11297 = vmatmul.msk.bf16.vlgmr.msrb.gmra.mxu2 %vm78_vm0, %v15046_v27  ;;  %v3410_v27 = vrot.slane %v15122_v13, 1 }
 0x3ef   :  { %v3411_v42 = vsel %vm521_vm1, %v3408_v4, %v3410_v27  ;;  %v3413_v25 = vsel %vm521_vm1, %v3410_v27, %v3412_v56  ;;  %v15225_v4 = vpop.permute.xlu0 %3139 }
 0x3f2   :  { %v15144_v55 = vpop.permute.xlu1 %3402 }
 0x3f3   :  { %v15152_v63 = vpop.permute.xlu2 %3287 }
 0x3fa   :  { %v15150_v8 = vpop.permute.xlu1 %3558 }
 0x3fb   :  { %v15181_v43 = vpop.permute.xlu2 %3147 }
 0x3fd   :  { %11298 = vmatmul.msk.bf16.gmra.mxu2 %vm78_vm0, %v15049_v57 }
 0x402   :  { %v15160_v34 = vpop.permute.xlu1 %3284 }
 0x403   :  { %v15206_v36 = vpop.permute.xlu2 %3151 }
 0x40d   :  { %11299 = vmatmul.msk.bf16.gmra.mxu2 %vm78_vm0, %v15066_v37  ;;  %v15192_v37 = vpop.permute.xlu1 %3143 }
 0x41d   :  { %11300 = vmatmul.msk.bf16.gmra.mxu2 %vm78_vm0, %v15072_v12 }
 0x42b   :  { %v15154_v47 = vpop.f32.mrf.mxu0  ;;  %v3031_v24 = vpop.f32.mrf.mxu1 }
 0x42c   :  { %3082 = vst [vmem:[#allocation2 + $0x60] sm:$0xff] %v15154_v47 }
 0x42d   :  { %3083 = vst [vmem:[#allocation2 + $0x68] sm:$0xff] %v3031_v24 }
 0x430   :  { %v15165_v26 = vpop.f32.mrf.mxu2  ;;  %v15167_v50 = vpop.f32.mrf.mxu3 }
 0x431   :  { %v3432_v45 = vmul.f32 %v3409_v11, %v15167_v50  ;;  %v3221_v48 = vrot.slane %v15165_v26, 1 }
 0x433   :  { %v15172_v62 = vpop.f32.mrf.mxu0  ;;  %v15174_v49 = vpop.f32.mrf.mxu1  ;;  %v3534_v38 = vld [vmem:[#allocation2 + $0x60] sm:$0xfe]  ;;  %3451 = vrot.lane.b32.xlu2 %v3432_v45, %s13304_s0  ;;  %v3222_v59 = vsel %vm521_vm1, %v15054_v5, %v3221_v48 }
 0x434   :  { %v3584_v2 = vmul.f32 %v3560_v61, %v3534_v38  ;;  %3237 = vrot.lane.b32.xlu1 %v3222_v59, %s13304_s0  ;;  %v3585_v28 = vmul.f32 %v3562_v22, %v15172_v62  ;;  %v3739_v57 = vrot.slane %v15174_v49, 1  ;;  %v15227_v61 = vpop.permute.xlu1 %3290  ;;  %v3566_v38 = vsel %vm657_vm2, %v3563_v16, %v3565_v19  ;;  %v15238_v59 = vpop.permute.xlu2 %3235 }
 0x436   :  { %v3602_v33 = vrot.slane %v3584_v2, 2  ;;  %v3603_v15 = vrot.slane %v3585_v28, 2 }
 0x438   :  { %3619 = vrot.lane.b32.xlu0 %v3602_v33, %s13304_s0  ;;  %v15184_v20 = vpop.f32.mrf.mxu2  ;;  %v15186_v10 = vpop.f32.mrf.mxu3  ;;  %v3604_v46 = vsel %vm700_vm3, %v3602_v33, %v3603_v15 }
 0x439   :  { %v3433_v9 = vmul.f32 %v3411_v42, %v15186_v10  ;;  %v3223_v1 = vrot.slane %v15184_v20, 1  ;;  %v15255_v42 = vpop.permute.xlu0 %3293 }
 0x43b   :  { %v15194_v12 = vpop.f32.mrf.mxu0  ;;  %v15196_v14 = vpop.f32.mrf.mxu1  ;;  %3754 = vrot.lane.b32.xlu2 %v3739_v57, %s13304_s0  ;;  %v3224_v13 = vsel %vm521_vm1, %v3221_v48, %v3223_v1 }
 0x43c   :  { %3621 = vrot.lane.b32.xlu1 %v3604_v46, %s13304_s0  ;;  %v3586_v58 = vmul.f32 %v3564_v32, %v15194_v12  ;;  %v3740_v24 = vrot.slane %v15196_v14, 1  ;;  %v3567_v46 = vrot.slane %v15142_v29, 7  ;;  %v3414_v29 = vrot.slane %v15130_v7, 1 }
 0x43e   :  { %v3605_v41 = vrot.slane %v3586_v58, 2  ;;  %v3741_v11 = vsel %vm521_vm1, %v3739_v57, %v3740_v24  ;;  %v3568_v58 = vsel %vm657_vm2, %v3565_v19, %v3567_v46 }
 0x440   :  { %v15209_v52 = vpop.f32.mrf.mxu2  ;;  %v15211_v17 = vpop.f32.mrf.mxu3  ;;  %3453 = vrot.lane.b32.xlu0 %v3433_v9, %s13304_s0  ;;  %v3606_v2 = vsel %vm700_vm3, %v3603_v15, %v3605_v41 }
 0x441   :  { %v3434_v21 = vmul.f32 %v3413_v25, %v15211_v17  ;;  %v3225_v16 = vrot.slane %v15209_v52, 1  ;;  %v15257_v9 = vpop.permute.xlu1 %3155 }
 0x443   :  { %v15218_v40 = vpop.f32.mrf.mxu0  ;;  %v15220_v53 = vpop.f32.mrf.mxu1  ;;  %3239 = vrot.lane.b32.xlu2 %v3224_v13, %s13304_s0  ;;  %v19191_v13 = vrot.slane %v15138_v60, 1 }
 0x444   :  { %19346 = vst [vmem:[#allocation14_spill] sm:$0xff] %v15220_v53  ;;  %3455 = vrot.lane.b32.xlu1 %v3434_v21, %s13304_s0  ;;  %v3742_v45 = vrot.slane %v15220_v53, 1  ;;  %v3587_v27 = vmul.f32 %v3566_v38, %v15218_v40  ;;  %v15273_v38 = vpop.permute.xlu2 %3665 }
 0x446   :  { %v3743_v33 = vsel %vm521_vm1, %v3740_v24, %v3742_v45  ;;  %v3607_v25 = vrot.slane %v3587_v27, 2  ;;  %v3226_v24 = vsel %vm521_vm1, %v3223_v1, %v3225_v16 }
 0x448   :  { %v15232_v48 = vpop.f32.mrf.mxu2  ;;  %v15234_v22 = vpop.f32.mrf.mxu3  ;;  %3756 = vrot.lane.b32.xlu0 %v3741_v11, %s13304_s0  ;;  %v3608_v11 = vsel %vm700_vm3, %v3605_v41, %v3607_v25 }
 0x44b   :  { %v15241_v28 = vpop.f32.mrf.mxu0  ;;  %v15243_v39 = vpop.f32.mrf.mxu1  ;;  %3623 = vrot.lane.b32.xlu2 %v3606_v2, %s13304_s0  ;;  %v3417_v2 = vsel %vm521_vm1, %v3414_v29, %v19191_v13 }
 0x44c   :  { %3758 = vrot.lane.b32.xlu1 %v3743_v33, %s13304_s0  ;;  %v19192_v57 = vrot.slane %v15243_v39, 1  ;;  %v3415_v33 = vsel %vm521_vm1, %v3412_v56, %v3414_v29  ;;  %v3569_v56 = vrot.slane %v15134_v31, 7  ;;  %v3571_v29 = vrot.slane %v15140_v6, 7 }
 0x44e   :  { %v3745_v15 = vsel %vm521_vm1, %v3742_v45, %v19192_v57  ;;  %v15271_v45 = vmul.f32 %v3568_v58, %v15241_v28  ;;  %v15291_v58 = vpop.permute.xlu1 %3159  ;;  %v3572_v6 = vsel %vm657_vm2, %v3569_v56, %v3571_v29  ;;  %v3570_v18 = vsel %vm657_vm2, %v3567_v46, %v3569_v56 }
 0x44f   :  { %v3420_v46 = vrot.slane %v15190_v3, 1  ;;  %v3418_v3 = vrot.slane %v15144_v55, 1 }
 0x450   :  { %v15259_v32 = vpop.f32.mrf.mxu2  ;;  %v15261_v21 = vpop.f32.mrf.mxu3  ;;  %3760 = vrot.lane.b32.xlu0 %v3745_v15, %s13304_s0  ;;  %v19194_v1 = vrot.slane %v15271_v45, 2 }
 0x451   :  { %19347 = vst [vmem:[#allocation16_spill] sm:$0xff] %v15259_v32  ;;  %v3436_v19 = vmul.f32 %v3417_v2, %v15261_v21  ;;  %v15289_v15 = vpop.permute.xlu0 %3296  ;;  %v15301_v2 = vpop.permute.xlu2 %3800  ;;  %v3229_v31 = vrot.slane %v15259_v32, 1 }
 0x453   :  { %3241 = vrot.lane.b32.xlu2 %v3226_v24, %s13304_s0  ;;  %v15279_v7 = vpop.f32.mrf.mxu0  ;;  %v3435_v24 = vmul.f32 %v3415_v33, %v15234_v22  ;;  %v15304_v13 = vpop.f32.mrf.mxu1 }
 0x454   :  { %3625 = vrot.lane.b32.xlu1 %v3608_v11, %s13304_s0  ;;  %v3610_v11 = vsel %vm700_vm3, %v3607_v25, %v19194_v1  ;;  %19349 = vst [vmem:[#allocation18_spill] sm:$0xff] %v15304_v13  ;;  %v3589_v51 = vmul.f32 %v3570_v18, %v15279_v7 }
 0x456   :  { %v15319_v1 = vpop.permute.xlu1 %3163 }
 0x457   :  { %19353 = vst [vmem:[#allocation21_spill] sm:$0xff] %v15319_v1 }
 0x458   :  { %v15284_v41 = vpop.f32.mrf.mxu2  ;;  %v15286_v27 = vpop.f32.mrf.mxu3  ;;  %3459 = vrot.lane.b32.xlu0 %v3436_v19, %s13304_s0  ;;  %v3227_v19 = vrot.slane %v15232_v48, 1 }
 0x459   :  { %19348 = vst [vmem:[#allocation12_spill] sm:$0xff] %v15284_v41  ;;  %v19202_v33 = vrot.slane %v15284_v41, 1 }
 0x45a   :  { %v3228_v25 = vsel %vm521_vm1, %v3225_v16, %v3227_v19  ;;  %v3230_v53 = vsel %vm521_vm1, %v3227_v19, %v3229_v31  ;;  %v19356_v19 = vrot.slane %v15243_v39, 1 }
 0x45b   :  { %3457 = vrot.lane.b32.xlu2 %v3435_v24, %s13304_s0  ;;  %v15306_v57 = vpop.f32.mrf.mxu0  ;;  %v3232_v35 = vsel %vm521_vm1, %v3229_v31, %v19202_v33  ;;  %v15331_v1 = vpop.f32.mrf.mxu1 }
 0x45c   :  { %3627 = vrot.lane.b32.xlu1 %v3610_v11, %s13304_s0  ;;  %19350 = vst [vmem:[#allocation20_spill] sm:$0xff] %v15306_v57  ;;  %v15317_v11 = vpop.permute.xlu0 %3299  ;;  %v3590_v54 = vmul.f32 %v3572_v6, %v15306_v57 }
 0x45d   :  { %19352 = vst [vmem:[#allocation15_spill] sm:$0xff] %v15317_v11  ;;  %v15329_v11 = vpop.permute.xlu2 %3674 }
 0x45e   :  { %v3613_v23 = vrot.slane %v3590_v54, 2  ;;  %19354 = vst [vmem:[#allocation24_spill] sm:$0xff] %v15331_v1  ;;  %v15339_v18 = vpop.permute.xlu1 %3449  ;;  %v3746_v54 = vrot.slane %v15304_v13, 1 }
 0x460   :  { %v15309_v24 = vpop.f32.mrf.mxu2  ;;  %v15311_v0 = vpop.f32.mrf.mxu3 }
 0x461   :  { %19351 = vst [vmem:[#allocation17_spill] sm:$0xff] %v15311_v0  ;;  %v3233_v31 = vrot.slane %v15309_v24, 1 }
 0x462   :  { %3110 = vst [vmem:[#allocation2 + $0x140] sm:$0xff] %v15309_v24 }
 0x463   :  { %3243 = vrot.lane.b32.xlu2 %v3228_v25, %s13304_s0  ;;  %v3611_v25 = vrot.slane %v3589_v51, 2 }
 0x464   :  { %3247 = vrot.lane.b32.xlu1 %v3232_v35, %s13304_s0  ;;  %v15337_v35 = vpop.permute.xlu0 %3302 }
 0x465   :  { %v3614_v6 = vsel %vm700_vm3, %v3611_v25, %v3613_v23  ;;  %19355 = vst [vmem:[#allocation11_spill] sm:$0xff] %v15337_v35  ;;  %v3421_v35 = vsel %vm521_vm1, %v3418_v3, %v3420_v46 }
 0x466   :  { %v15359_v13 = vpop.permute.xlu1 %3167 }
 0x467   :  { %19358 = vst [vmem:[#allocation13_spill] sm:$0xff] %v15359_v13  ;;  %v3438_v13 = vmul.f32 %v3421_v35, %v15311_v0 }
 0x468   :  { %v2961_v16 = vpop.f32.mrf.mxu2  ;;  %v2990_v32 = vpop.f32.mrf.mxu3 }
 0x469   :  { %3116 = vst [vmem:[#allocation2 + $0x170] sm:$0xff] %v2990_v32  ;;  %v15343_v32 = vpop.permute.xlu2 %3812 }
 0x46b   :  { %3245 = vrot.lane.b32.xlu2 %v3230_v53, %s13304_s0  ;;  %v3747_v53 = vsel %vm521_vm1, %v19356_v19, %v3746_v54  ;;  %v15361_v19 = vpop.f32.mrf.mxu0 }
 0x46c   :  { %3631 = vrot.lane.b32.xlu1 %v3614_v6, %s13304_s0  ;;  %v15349_v6 = vpop.f32.mrf.mxu1  ;;  %v15357_v33 = vpop.permute.xlu0 %3668  ;;  %19359 = vst [vmem:[#allocation22_spill] sm:$0xff] %v15361_v19 }
 0x46d   :  { %19357 = vst [vmem:[#allocation23_spill] sm:$0xff] %v15349_v6 }
 0x470   :  { %v3060_v56 = vpop.f32.mrf.mxu2  ;;  %v3382_v16 = vld [vmem:[#allocation2 + $0x170] sm:$0x7f] }
 0x471   :  { %v3439_v51 = vmul.f32 %v3420_v46, %v3382_v16  ;;  %v3573_v56 = vrot.slane %v15150_v8, 7  ;;  %v19205_v16 = vrot.slane %v15349_v6, 1  ;;  %v19360_v8 = vrot.slane %v15271_v45, 2  ;;  %v15374_v57 = vpop.permute.xlu2 %3815 }
 0x472   :  { %19361 = vst [vmem:[#allocation19_spill] sm:$0xff] %v15374_v57 }
 0x473   :  { %3465 = vrot.lane.b32.xlu0 %v3439_v51, %s13304_s0  ;;  %3762 = vrot.lane.b32.xlu2 %v3747_v53, %s13304_s0  ;;  %v3574_v51 = vsel %vm657_vm2, %v3571_v29, %v3573_v56  ;;  %v3753_v55 = vsel %vm521_vm1, %v19205_v16, %v15054_v5  ;;  %v3612_v53 = vsel %vm700_vm3, %v19360_v8, %v3611_v25  ;;  %v3535_v8 = vld [vmem:[#allocation2 + $0x1a0] sm:$0x1] }
 0x474   :  { %3251 = vrot.lane.b32.xlu1 %v3233_v31, %s13304_s0  ;;  %v3591_v46 = vmul.f32 %v3574_v51, %v15361_v19  ;;  %v15383_v45 = vpop.permute.xlu0 %3680 }
 0x476   :  { %v3615_v29 = vrot.slane %v3591_v46, 2 }
 0x478   :  { %v3062_v24 = vpop.f32.mrf.mxu2  ;;  %v3616_v51 = vsel %vm700_vm3, %v3613_v23, %v3615_v29 }
 0x479   :  { %3089 = vst.msk [vmem:[#allocation2 + $0x98] sm:$0xff] %vm78_vm0, %v3062_v24  ;;  %v19362_v24 = vrot.slane %v15138_v60, 1  ;;  %v15392_v60 = vpop.permute.xlu2 %3686 }
 0x47a   :  { %19363 = vst [vmem:[#allocation25_spill] sm:$0xff] %v15392_v60 }
 0x47b   :  { %3768 = vrot.lane.b32.xlu0 %v3753_v55, %s13304_s0  ;;  %3629 = vrot.lane.b32.xlu2 %v3612_v53, %s13304_s0  ;;  %v3419_v16 = vsel %vm521_vm1, %v19362_v24, %v3418_v3  ;;  %v15387_v55 = vpop.permute.xlu1 %3671 }
 0x47c   :  { %3463 = vrot.lane.b32.xlu1 %v3438_v13, %s13304_s0  ;;  %v3437_v35 = vmul.f32 %v3419_v16, %v15286_v27  ;;  %v3592_v13 = vmul.f32 %v3573_v56, %v3535_v8  ;;  %v15395_v46 = vpop.permute.xlu0 %3683  ;;  %v19364_v16 = vrot.slane %v15284_v41, 1  ;;  %v3307_v8 = vrot.slane %v15152_v63, 7 }
 0x47d   :  { %v3170_v63 = vrot.slane %v15192_v37, 1 }
 0x47e   :  { %v3617_v53 = vrot.slane %v3592_v13, 2  ;;  %v3234_v24 = vsel %vm521_vm1, %v19364_v16, %v3233_v31  ;;  %v3305_v13 = vrot.slane %v15160_v34, 7  ;;  %v3172_v16 = vrot.slane %v15181_v43, 1  ;;  %v3120_v43 = vld [vmem:[#allocation2] sm:$0x80] }
 0x480   :  { %v3065_v25 = vpop.f32.mrf.mxu2 }
 0x481   :  { %3094 = vst.msk [vmem:[#allocation2 + $0xc0] sm:$0xff] %vm78_vm0, %v3065_v25  ;;  %v3618_v25 = vsel %vm700_vm3, %v3615_v29, %v3617_v53  ;;  %v3304_v29 = vrot.slane %v15148_v30, 7  ;;  %v3308_v53 = vsel %vm657_vm2, %v3305_v13, %v3307_v8  ;;  %v3169_v30 = vrot.slane %v15225_v4, 1 }
 0x483   :  { %3461 = vrot.lane.b32.xlu2 %v3437_v35, %s13304_s0  ;;  %v15402_v23 = vpop.permute.xlu1 %3806  ;;  %v3748_v35 = vrot.slane %v15331_v1, 1  ;;  %v3306_v34 = vsel %vm657_vm2, %v3304_v29, %v3305_v13  ;;  %v19365_v13 = vrot.slane %v15349_v6, 1 }
 0x484   :  { %3633 = vrot.lane.b32.xlu1 %v3616_v51, %s13304_s0  ;;  %v3329_v37 = vmul.f32 %v3306_v34, %v15167_v50 }
 0x485   :  { %v3749_v31 = vsel %vm521_vm1, %v3746_v54, %v3748_v35  ;;  %v15425_v54 = vmul.f32 %v3308_v53, %v15186_v10  ;;  %v3751_v19 = vsel %vm521_vm1, %v3748_v35, %v19365_v13 }
 0x486   :  { %v3347_v0 = vrot.slane %v3329_v37, 2 }
 0x487   :  { %v3349_v10 = vrot.slane %v15425_v54, 2 }
 0x488   :  { %v3067_v3 = vpop.f32.mrf.mxu2 }
 0x489   :  { %3099 = vst.msk [vmem:[#allocation2 + $0xe8] sm:$0xff] %vm78_vm0, %v3067_v3  ;;  %v15409_v3 = vpop.permute.xlu0 %3803  ;;  %v3350_v34 = vsel %vm700_vm3, %v3347_v0, %v3349_v10 }
 0x48b   :  { %3249 = vrot.lane.b32.xlu2 %v3234_v24, %s13304_s0 }
 0x48c   :  { %3635 = vrot.lane.b32.xlu1 %v3618_v25, %s13304_s0  ;;  %v15422_v25 = vpop.permute.xlu1 %3677 }
 0x48d   :  { %v3452_v56 = vpop.permute.xlu2 %3451 }
 0x490   :  { %v3070_v51 = vpop.f32.mrf.mxu2 }
 0x491   :  { %3104 = vst.msk [vmem:[#allocation2 + $0x110] sm:$0xff] %vm78_vm0, %v3070_v51  ;;  %v15431_v60 = vpop.permute.xlu0 %3809 }
 0x493   :  { %3764 = vrot.lane.b32.xlu2 %v3749_v31, %s13304_s0  ;;  %v3271_v31 = vld [vmem:[#allocation2 + $0x30] sm:$0xfe] }
 0x494   :  { %3770 = vrot.lane.b32.xlu1 %v15054_v5, %s13304_s0  ;;  %v3173_v5 = vsel %vm521_vm1, %v3170_v63, %v3172_v16  ;;  %v3328_v53 = vmul.f32 %v3304_v29, %v3271_v31  ;;  %v15439_v1 = vpop.permute.xlu1 %3818  ;;  %v3309_v29 = vrot.slane %v15227_v61, 7  ;;  %v3501_v61 = vrot.slane %v15154_v47, 1  ;;  %v3655_v47 = vld [vmem:[#allocation2 + $0x68] sm:$0x80] }
 0x495   :  { %v15419_v24 = vpop.permute.xlu2 %3754  ;;  %v3195_v4 = vmul.f32 %v3173_v5, %v15165_v26  ;;  %v3171_v26 = vsel %vm521_vm1, %v3169_v30, %v3170_v63 }
 0x496   :  { %v3346_v35 = vrot.slane %v3328_v53, 2 }
 0x498   :  { %v3072_v51 = vpop.f32.mrf.mxu2 }
 0x499   :  { %3109 = vst.msk [vmem:[#allocation2 + $0x138] sm:$0xff] %vm78_vm0, %v3072_v51  ;;  %v3193_v51 = vmul.f32 %v3169_v30, %v3120_v43  ;;  %v15446_v13 = vpop.permute.xlu0 %3821 }
 0x49b   :  { %3766 = vrot.lane.b32.xlu2 %v3751_v19, %s13304_s0  ;;  %v3262_v19 = vadd.f32 %v15238_v59, %v3193_v51  ;;  %v3348_v59 = vsel %vm700_vm3, %v3346_v35, %v3347_v0  ;;  %v3310_v51 = vsel %vm657_vm2, %v3307_v8, %v3309_v29 }
 0x49c   :  { %v15465_v0 = vmul.f32 %v3310_v51, %v15211_v17  ;;  %v3504_v17 = vrot.slane %v15194_v12, 1  ;;  %v3790_v12 = vld [vmem:[#allocation2 + $0x98] sm:$0xfe] }
 0x49d   :  { %v3240_v41 = vpop.permute.xlu2 %3239  ;;  %v3372_v5 = vadd.f32 %v3346_v35, %v3262_v19 }
 0x49e   :  { %v3264_v50 = vadd.f32 %v3240_v41, %v3195_v4  ;;  %v3194_v41 = vmul.f32 %v15051_v44, %v3171_v26  ;;  %v3174_v4 = vrot.slane %v15206_v36, 1  ;;  %v3311_v26 = vrot.slane %v15255_v42, 7 }
 0x49f   :  { %v3476_v63 = vadd.f32 %v15339_v18, %v3372_v5  ;;  %v3689_v5 = vrot.slane %v15357_v33, 1 }
 0x4a0   :  { %v3075_v6 = vpop.f32.mrf.mxu2  ;;  %v3374_v57 = vadd.f32 %v3350_v34, %v3264_v50  ;;  %v3175_v34 = vsel %vm521_vm1, %v3172_v16, %v3174_v4  ;;  %v3312_v33 = vsel %vm657_vm2, %v3309_v29, %v3311_v26 }
 0x4a1   :  { %3114 = vst.msk [vmem:[#allocation2 + $0x160] sm:$0xff] %vm78_vm0, %v3075_v6  ;;  %v3502_v6 = vrot.slane %v15172_v62, 1  ;;  %v3688_v62 = vrot.slane %v15273_v38, 1  ;;  %v3525_v8 = vadd.f32 %v3501_v61, %v3476_v63  ;;  %v3196_v38 = vmul.f32 %v3175_v34, %v15184_v20  ;;  %v3791_v63 = vld [vmem:[#allocation2 + $0xc0] sm:$0xff] }
 0x4a3   :  { %v3503_v19 = vsel %vm521_vm1, %v3501_v61, %v3502_v6  ;;  %v3712_v42 = vmul.f32 %v3688_v62, %v3655_v47  ;;  %v3176_v61 = vrot.slane %v15257_v9, 1 }
 0x4a5   :  { %v15450_v37 = vpop.permute.xlu2 %3623 }
 0x4a6   :  { %v3238_v31 = vpop.permute.xlu1 %3237 }
 0x4a7   :  { %v3263_v43 = vadd.f32 %v3238_v31, %v3194_v41  ;;  %v3823_v41 = vrot.slane %v15301_v2, 7  ;;  %v3824_v31 = vrot.slane %v15409_v3, 7  ;;  %v3690_v2 = vsel %vm521_vm1, %v3688_v62, %v3689_v5 }
 0x4a8   :  { %v3077_v53 = vpop.f32.mrf.mxu2 }
 0x4a9   :  { %3119 = vst.msk [vmem:[#allocation2 + $0x188] sm:$0xff] %vm78_vm0, %v3077_v53  ;;  %v3373_v30 = vadd.f32 %v3348_v59, %v3263_v43  ;;  %v3826_v53 = vrot.slane %v15402_v23, 7  ;;  %v3351_v59 = vrot.slane %v15465_v0, 2  ;;  %v3825_v20 = vsel %vm657_vm2, %v3823_v41, %v3824_v31 }
 0x4aa   :  { %v3620_v50 = vpop.permute.xlu0 %3619  ;;  %v3506_v0 = vrot.slane %v15218_v40, 1  ;;  %v3847_v62 = vmul.f32 %v3823_v41, %v3790_v12  ;;  %v3830_v23 = vrot.slane %v15343_v32, 7 }
 0x4ab   :  { %v3477_v44 = vadd.f32 %v3452_v56, %v3373_v30  ;;  %v3691_v56 = vrot.slane %v15387_v55, 1  ;;  %v3646_v43 = vadd.f32 %v3620_v50, %v3525_v8  ;;  %v3827_v29 = vsel %vm657_vm2, %v3824_v31, %v3826_v53 }
 0x4ac   :  { %v3352_v9 = vsel %vm700_vm3, %v3349_v10, %v3351_v59  ;;  %v3332_v31 = vmul.f32 %v3312_v33, %v15234_v22 }
 0x4ad   :  { %v3242_v18 = vpop.permute.xlu2 %3241  ;;  %v3526_v35 = vadd.f32 %v3503_v19, %v3477_v44  ;;  %v3692_v3 = vsel %vm521_vm1, %v3689_v5, %v3691_v56  ;;  %v3721_v50 = vadd.f32 %v3712_v42, %v3646_v43  ;;  %v3505_v44 = vsel %vm521_vm1, %v3502_v6, %v3504_v17  ;;  %v3792_v43 = vld [vmem:[#allocation2 + $0xe8] sm:$0xff] }
 0x4ae   :  { %v3622_v16 = vpop.permute.xlu1 %3621  ;;  %v3265_v51 = vadd.f32 %v3242_v18, %v3196_v38  ;;  %v3848_v19 = vmul.f32 %v3825_v20, %v3791_v63  ;;  %v3313_v6 = vrot.slane %v15289_v15, 7  ;;  %v3714_v10 = vmul.f32 %v3692_v3, %v15196_v14 }
 0x4af   :  { %v3647_v18 = vadd.f32 %v3622_v16, %v3526_v35  ;;  %v3781_v42 = vadd.f32 %v15419_v24, %v3721_v50  ;;  %v3177_v35 = vsel %vm521_vm1, %v3174_v4, %v3176_v61  ;;  %v15501_v16 = vmul.f32 %v3827_v29, %v3792_v43 }
 0x4b0   :  { %v3375_v5 = vadd.f32 %v3352_v9, %v3265_v51  ;;  %v3866_v41 = vrot.slane %v3848_v19, 2  ;;  %v3507_v51 = vsel %vm521_vm1, %v3504_v17, %v3506_v0  ;;  %v3353_v24 = vrot.slane %v3332_v31, 2 }
 0x4b1   :  { %v3197_v4 = vmul.f32 %v3177_v35, %v15209_v52  ;;  %v3868_v3 = vrot.slane %v15501_v16, 2  ;;  %v3178_v17 = vrot.slane %v15291_v58, 1  ;;  %v3508_v29 = vrot.slane %v15241_v28, 1 }
 0x4b2   :  { %v3454_v30 = vpop.permute.xlu0 %3453  ;;  %v3354_v50 = vsel %vm700_vm3, %v3351_v59, %v3353_v24 }
 0x4b3   :  { %v3478_v34 = vadd.f32 %v3454_v30, %v3374_v57  ;;  %v3713_v57 = vmul.f32 %v3690_v2, %v15174_v49  ;;  %v3865_v49 = vrot.slane %v3847_v62, 2  ;;  %v3693_v62 = vrot.slane %v15329_v11, 1 }
 0x4b4   :  { %v3179_v28 = vsel %vm521_vm1, %v3176_v61, %v3178_v17 }
 0x4b5   :  { %v3527_v8 = vadd.f32 %v3505_v44, %v3478_v34  ;;  %v3458_v47 = vpop.permute.xlu2 %3457  ;;  %v3722_v63 = vadd.f32 %v3713_v57, %v3647_v18  ;;  %v15504_v12 = vadd.f32 %v3865_v49, %v3781_v42  ;;  %v3867_v36 = vsel %vm700_vm3, %v3865_v49, %v3866_v41  ;;  %v3793_v57 = vld [vmem:[#allocation2 + $0x110] sm:$0xff]  ;;  %v19366_v49 = vld [vmem:[#allocation14_spill] sm:$0xff] }
 0x4b6   :  { %v3456_v38 = vpop.permute.xlu1 %3455  ;;  %v3869_v18 = vsel %vm700_vm3, %v3866_v41, %v3868_v3 }
 0x4b7   :  { %v3479_v54 = vadd.f32 %v3456_v38, %v3375_v5  ;;  %v3648_v40 = vadd.f32 %v15450_v37, %v3527_v8  ;;  %v3314_v37 = vsel %vm657_vm2, %v3311_v26, %v3313_v6  ;;  %v3909_v19 = vrot.slane %v15504_v12, 7 }
 0x4b8   :  { %v15520_v52 = vmul.f32 %v3314_v37, %v15261_v21  ;;  %v3828_v5 = vrot.slane %v15431_v60, 7  ;;  %v3509_v60 = vsel %vm521_vm1, %v3506_v0, %v3508_v29  ;;  %v19367_v37 = vld [vmem:[#allocation15_spill] sm:$0xff] }
 0x4b9   :  { %v3723_v2 = vadd.f32 %v3714_v10, %v3648_v40  ;;  %v3528_v22 = vadd.f32 %v3507_v51, %v3479_v54  ;;  %v3694_v54 = vsel %vm521_vm1, %v3691_v56, %v3693_v62  ;;  %v3198_v10 = vmul.f32 %v3179_v28, %v15232_v48 }
 0x4ba   :  { %v3757_v33 = vpop.permute.xlu0 %3756  ;;  %v3829_v21 = vsel %vm657_vm2, %v3826_v53, %v3828_v5  ;;  %v3355_v42 = vrot.slane %v15520_v52, 2  ;;  %v3715_v55 = vmul.f32 %v3694_v54, %v19366_v49  ;;  %v3695_v48 = vrot.slane %v15422_v25, 1 }
 0x4bb   :  { %v3782_v14 = vadd.f32 %v3757_v33, %v3722_v63  ;;  %v3850_v61 = vmul.f32 %v3829_v21, %v3793_v57 }
 0x4bc   :  { %v3356_v56 = vsel %vm700_vm3, %v3353_v24, %v3355_v42 }
 0x4bd   :  { %v15513_v30 = vadd.f32 %v3867_v36, %v3782_v14  ;;  %v3244_v20 = vpop.permute.xlu2 %3243  ;;  %v3510_v14 = vrot.slane %v15279_v7, 1  ;;  %v3315_v36 = vrot.slane %v19367_v37, 7 }
 0x4be   :  { %v3266_v44 = vadd.f32 %v3244_v20, %v3197_v4  ;;  %v3759_v34 = vpop.permute.xlu1 %3758  ;;  %v3794_v20 = vld [vmem:[#allocation2 + $0x138] sm:$0xff] }
 0x4bf   :  { %v3910_v26 = vrot.slane %v15513_v30, 7  ;;  %v3783_v9 = vadd.f32 %v3759_v34, %v3723_v2  ;;  %v3870_v2 = vrot.slane %v3850_v61, 2  ;;  %v3511_v7 = vsel %vm521_vm1, %v3508_v29, %v3510_v14 }
 0x4c0   :  { %v3376_v8 = vadd.f32 %v3354_v50, %v3266_v44  ;;  %v3831_v44 = vsel %vm657_vm2, %v3828_v5, %v3830_v23  ;;  %v19368_v5 = vld [vmem:[#allocation21_spill] sm:$0xff] }
 0x4c1   :  { %v3911_v59 = vsel %vm657_vm2, %v3909_v19, %v3910_v26  ;;  %v15526_v43 = vadd.f32 %v3869_v18, %v3783_v9  ;;  %v3871_v24 = vsel %vm700_vm3, %v3868_v3, %v3870_v2  ;;  %v3316_v9 = vsel %vm657_vm2, %v3313_v6, %v3315_v36 }
 0x4c2   :  { %v3761_v38 = vpop.permute.xlu0 %3760  ;;  %v3480_v31 = vadd.f32 %v3458_v47, %v3376_v8  ;;  %v3934_v53 = vsel %vm78_vm0, %v3911_v59, 0.0  ;;  %v3180_v59 = vrot.slane %v19368_v5, 1  ;;  %v3334_v29 = vmul.f32 %v3316_v9, %v15286_v27  ;;  %v19369_v27 = vld [vmem:[#allocation16_spill] sm:$0xff] }
 0x4c3   :  { %v3912_v11 = vrot.slane %v15526_v43, 7 }
 0x4c4   :  { %v3529_v40 = vadd.f32 %v3509_v60, %v3480_v31  ;;  %v3181_v21 = vsel %vm521_vm1, %v3178_v17, %v3180_v59 }
 0x4c5   :  { %v3913_v47 = vsel %vm657_vm2, %v3910_v26, %v3912_v11  ;;  %v3246_v41 = vpop.permute.xlu2 %3245  ;;  %v15557_v26 = vmul.f32 %v3831_v44, %v3794_v20 }
 0x4c6   :  { %v3935_v35 = vsel %vm78_vm0, %v3913_v47, 0.0  ;;  %v3267_v16 = vadd.f32 %v3246_v41, %v3198_v10  ;;  %v3626_v51 = vpop.permute.xlu1 %3625  ;;  %v3357_v10 = vrot.slane %v3334_v29, 2  ;;  %v3199_v47 = vmul.f32 %v3181_v21, %v19369_v27  ;;  %v19376_v29 = vld [vmem:[#allocation12_spill] sm:$0xff]  ;;  %v3279_v27 = vld [vmem:[#allocation2 + $0x170] sm:$0x1] }
 0x4c7   :  { %v3936_v0 = vadd.f32 %v3935_v35, %v3934_v53  ;;  %v3649_v63 = vadd.f32 %v3626_v51, %v3528_v22  ;;  %v3696_v22 = vsel %vm521_vm1, %v3693_v62, %v3695_v48  ;;  %v3699_v51 = vrot.slane %v15395_v46, 1 }
 0x4c8   :  { %v3377_v33 = vadd.f32 %v3356_v56, %v3267_v16  ;;  %v3716_v62 = vmul.f32 %v3696_v22, %v15243_v39  ;;  %v3358_v58 = vsel %vm700_vm3, %v3355_v42, %v3357_v10 }
 0x4c9   :  { %v3724_v4 = vadd.f32 %v3715_v55, %v3649_v63  ;;  %v19371_v63 = vld [vmem:[#allocation11_spill] sm:$0xff] }
 0x4ca   :  { %v3460_v50 = vpop.permute.xlu0 %3459  ;;  %v3317_v56 = vrot.slane %v19371_v63, 7  ;;  %v15617_v63 = vld [vmem:[%s19138_s2 + $0x10] sm:$0xff] }
 0x4cb   :  { %v3784_v34 = vadd.f32 %v3761_v38, %v3724_v4  ;;  %v3481_v19 = vadd.f32 %v3460_v50, %v3377_v33  ;;  %v3872_v38 = vrot.slane %v15557_v26, 2  ;;  %v19372_v50 = vld [vmem:[#allocation13_spill] sm:$0xff]  ;;  %4713 = vperm.xlu1 %13103, %v15617_v63  }
 0x4cc   :  { %v3182_v44 = vrot.slane %v19372_v50, 1  ;;  %v3318_v46 = vsel %vm657_vm2, %v3315_v36, %v3317_v56 }
 0x4cd   :  { %v15563_v52 = vadd.f32 %v3871_v24, %v3784_v34  ;;  %v3763_v8 = vpop.permute.xlu2 %3762  ;;  %v3530_v18 = vadd.f32 %v3511_v7, %v3481_v19  ;;  %v3873_v39 = vsel %vm700_vm3, %v3870_v2, %v3872_v38  ;;  %v3697_v2 = vrot.slane %v15383_v45, 1  ;;  %v19373_v19 = vld [vmem:[#allocation19_spill] sm:$0xff]  ;;  %v19374_v7 = vld [vmem:[#allocation24_spill] sm:$0xff]  ;;  %v19375_v45 = vld [vmem:[#allocation17_spill] sm:$0xff] }
 0x4ce   :  { %v3628_v28 = vpop.permute.xlu1 %3627  ;;  %v3832_v22 = vrot.slane %v19373_v19, 7  ;;  %v3335_v5 = vmul.f32 %v3318_v46, %v19375_v45  ;;  %v3797_v46 = vld [vmem:[#allocation2 + $0x1b0] sm:$0xff] }
 0x4cf   :  { %v3914_v57 = vrot.slane %v15563_v52, 7  ;;  %v3650_v3 = vadd.f32 %v3628_v28, %v3529_v40  ;;  %v3700_v4 = vsel %vm521_vm1, %v3697_v2, %v3699_v51  ;;  %v3795_v28 = vld [vmem:[#allocation2 + $0x160] sm:$0xff]  ;;  %v3698_v36 = vsel %vm521_vm1, %v3695_v48, %v3697_v2 }
 0x4d0   :  { %v3718_v9 = vmul.f32 %v3700_v4, %v19374_v7  ;;  %v3359_v21 = vrot.slane %v3335_v5, 2  ;;  %v19380_v7 = vld [vmem:[#allocation23_spill] sm:$0xff] }
 0x4d1   :  { %v3915_v15 = vsel %vm657_vm2, %v3912_v11, %v3914_v57  ;;  %v3725_v31 = vadd.f32 %v3716_v62, %v3650_v3 }
 0x4d2   :  { %v3937_v6 = vsel %vm78_vm0, %v3915_v15, 0.0 }
 0x4d3   :  { %v3785_v60 = vadd.f32 %v3763_v8, %v3725_v31  ;;  %v3938_v54 = vadd.f32 %v3937_v6, %v3936_v0  ;;  %v19370_v0 = vld [vmem:[#allocation20_spill] sm:$0xff]  ;;  %v3183_v8 = vsel %vm521_vm1, %v3180_v59, %v3182_v44 }
 0x4d4   :  { %v3512_v49 = vrot.slane %v19370_v0, 1  ;;  %v3200_v15 = vmul.f32 %v3183_v8, %v19376_v29  ;;  %v15650_v29 = vld [vmem:[%s19138_s2 + $0x8] sm:$0xff] }
 0x4d5   :  { %v15578_v61 = vadd.f32 %v3873_v39, %v3785_v60  ;;  %v3630_v40 = vpop.permute.xlu2 %3629  ;;  %v3834_v60 = vrot.slane %v15439_v1, 7 }
 0x4d6   :  { %v3248_v11 = vpop.permute.xlu1 %3247  ;;  %v3513_v20 = vsel %vm521_vm1, %v3510_v14, %v3512_v49  ;;  %v3833_v14 = vsel %vm657_vm2, %v3830_v23, %v3832_v22  ;;  %v3651_v6 = vadd.f32 %v3630_v40, %v3530_v18  ;;  %v3360_v23 = vsel %vm700_vm3, %v3357_v10, %v3359_v21 }
 0x4d7   :  { %v3916_v41 = vrot.slane %v15578_v61, 7  ;;  %v3268_v53 = vadd.f32 %v3248_v11, %v3199_v47  ;;  %v3852_v31 = vmul.f32 %v3833_v14, %v3795_v28  ;;  %v3796_v11 = vld [vmem:[#allocation2 + $0x188] sm:$0xff]  ;;  %v3835_v18 = vsel %vm657_vm2, %v3832_v22, %v3834_v60 }
 0x4d8   :  { %v3336_v40 = vmul.f32 %v3317_v56, %v3279_v27  ;;  %v3836_v10 = vrot.slane %v15446_v13, 7 }
 0x4d9   :  { %v3917_v17 = vsel %vm657_vm2, %v3914_v57, %v3916_v41  ;;  %v3378_v35 = vadd.f32 %v3358_v58, %v3268_v53  ;;  %v3874_v47 = vrot.slane %v3852_v31, 2  ;;  %v19378_v53 = vld [vmem:[#allocation22_spill] sm:$0xff] }
 0x4da   :  { %v3939_v16 = vsel %vm78_vm0, %v3917_v17, 0.0  ;;  %v3514_v25 = vrot.slane %v19378_v53, 1  ;;  %v19379_v17 = vld [vmem:[#allocation25_spill] sm:$0xff]  ;;  %v3361_v13 = vrot.slane %v3336_v40, 2 }
 0x4db   :  { %v15589_v55 = vadd.f32 %v3939_v16, %v3938_v54  ;;  %v19377_v54 = vld [vmem:[#allocation18_spill] sm:$0xff]  ;;  %v3875_v2 = vsel %vm700_vm3, %v3872_v38, %v3874_v47  ;;  %v3837_v38 = vsel %vm657_vm2, %v3834_v60, %v3836_v10 }
 0x4dc   :  { %v3717_v39 = vmul.f32 %v3698_v36, %v19377_v54  ;;  %v3128_v16 = vld [vmem:[#allocation2 + $0x140] sm:$0x7f]  ;;  %v3515_v4 = vsel %vm521_vm1, %v3512_v49, %v3514_v25  ;;  %v3854_v8 = vmul.f32 %v3837_v38, %v3797_v46  ;;  %v19381_v36 = vmov 5  }
 0x4dd   :  { %v3462_v33 = vpop.permute.xlu2 %3461  ;;  %13105 = vset.pattern.permute.xlu1 %v19381_v36 }
 0x4de   :  { %v3482_v37 = vadd.f32 %v3462_v33, %v3378_v35  ;;  %v3632_v42 = vpop.permute.xlu1 %3631  ;;  %v3726_v32 = vadd.f32 %v3717_v39, %v3651_v6  ;;  %v3701_v35 = vrot.slane %v19379_v17, 1  ;;  %4863 = vperm.xlu1 %13105, %v15650_v29   ;;  %v3798_v39 = vld [vmem:[#allocation2 + $0x1d8] sm:$0x1] }
 0x4e0   :  { %v3531_v34 = vadd.f32 %v3513_v20, %v3482_v37  ;;  %v3853_v37 = vmul.f32 %v3835_v18, %v3796_v11  ;;  %v3201_v20 = vmul.f32 %v3182_v44, %v3128_v16  ;;  %v3855_v18 = vmul.f32 %v3836_v10, %v3798_v39 }
 0x4e1   :  { %v19382_v10 = vmov 3  }
 0x4e2   :  { %v3652_v24 = vadd.f32 %v3632_v42, %v3531_v34  ;;  %v3702_v34 = vsel %vm521_vm1, %v3699_v51, %v3701_v35  ;;  %v3876_v22 = vrot.slane %v3853_v37, 2  ;;  %v3362_v51 = vsel %vm700_vm3, %v3359_v21, %v3361_v13 }
 0x4e4   :  { %v3727_v57 = vadd.f32 %v3718_v9, %v3652_v24  ;;  %v3719_v9 = vmul.f32 %v3702_v34, %v19380_v7 }
 0x4e5   :  { %v3250_v62 = vpop.permute.xlu2 %3249  ;;  %v3466_v42 = vpop.permute.xlu0 %3465 }
 0x4e6   :  { %v3252_v3 = vpop.permute.xlu1 %3251  ;;  %v3269_v59 = vadd.f32 %v3250_v62, %v3200_v15  ;;  %v15642_v62 = vld [vmem:[%s19138_s2] sm:$0xff]  ;;  %v3878_v15 = vrot.slane %v3854_v8, 2 }
 0x4e7   :  { %v3270_v19 = vadd.f32 %v3252_v3, %v3201_v20  ;;  %4707 = vperm.xlu2 %13102, %v15642_v62   ;;  %v15676_v20 = vld [vmem:[%s19138_s2 + $0x28] sm:$0xff] }
 0x4e8   :  { %v3379_v48 = vadd.f32 %v3360_v23, %v3269_v59  ;;  %v3879_v54 = vsel %vm700_vm3, %v3876_v22, %v3878_v15 }
 0x4e9   :  { %v3380_v14 = vadd.f32 %v3362_v51, %v3270_v19  ;;  %v15692_v19 = vld [vmem:[%s19138_s2 + $0x20] sm:$0xff] }
 0x4ea   :  { %4872 = vperm.xlu0 %13107, %v15692_v19  }
 0x4eb   :  { %v3484_v59 = vadd.f32 %v3466_v42, %v3380_v14 }
 0x4ed   :  { %v3765_v58 = vpop.permute.xlu2 %3764  ;;  %v3769_v31 = vpop.permute.xlu0 %3768  ;;  %v3533_v53 = vadd.f32 %v3514_v25, %v3484_v59 }
 0x4ee   :  { %v3786_v0 = vadd.f32 %v3765_v58, %v3726_v32  ;;  %v3464_v1 = vpop.permute.xlu1 %3463  ;;  %v15662_v58 = vld [vmem:[%s19138_s2 + $0x18] sm:$0xff] }
 0x4ef   :  { %v3483_v33 = vadd.f32 %v3464_v1, %v3379_v48  ;;  %13104 = vset.pattern.permute.xlu2 %v19381_v36  ;;  %v3663_v48 = vld [vmem:[#allocation2 + $0x1a8] sm:$0x7f]  ;;  %4869 = vperm.xlu1 %13105, %v15662_v58  }
 0x4f0   :  { %v15624_v56 = vadd.f32 %v3875_v2, %v3786_v0  ;;  %4860 = vperm.xlu2 %13104, %v15642_v62   ;;  %v3720_v25 = vmul.f32 %v3701_v35, %v3663_v48  ;;  %v3880_v2 = vrot.slane %v3855_v18, 2 }
 0x4f1   :  { %v3532_v50 = vadd.f32 %v3515_v4, %v3483_v33 }
 0x4f2   :  { %v3918_v26 = vrot.slane %v15624_v56, 7  ;;  %v3881_v4 = vsel %vm700_vm3, %v3878_v15, %v3880_v2  ;;  %13108 = vset.pattern.permute.xlu0 %v19382_v10  ;;  %v19383_v15 = vmov 2  }
 0x4f3   :  { %4710 = vperm.xlu0 %13108, %v15650_v29  }
 0x4f4   :  { %v3919_v24 = vsel %vm657_vm2, %v3916_v41, %v3918_v26  ;;  %v3877_v41 = vsel %vm700_vm3, %v3874_v47, %v3876_v22 }
 0x4f5   :  { %v3941_v49 = vsel %vm78_vm0, %v3919_v24, 0.0  ;;  %v3767_v44 = vpop.permute.xlu2 %3766 }
 0x4f6   :  { %v3942_v45 = vadd.f32 %v3941_v49, %v15589_v55  ;;  %v3787_v5 = vadd.f32 %v3767_v44, %v3727_v57  ;;  %v3634_v28 = vpop.permute.xlu1 %3633  ;;  %v15700_v44 = vld [vmem:[%s19138_s2 + $0x38] sm:$0xff] }
 0x4f7   :  { %v3653_v3 = vadd.f32 %v3634_v28, %v3532_v50  ;;  %13109 = vset.pattern.permute.xlu1 %v19382_v10 }
 0x4f8   :  { %v15652_v55 = vadd.f32 %v3877_v41, %v3787_v5  ;;  %4866 = vperm.xlu2 %13104, %v15617_v63   ;;  %4722 = vperm.xlu1 %13109, %v15676_v20  }
 0x4f9   :  { %v3728_v57 = vadd.f32 %v3719_v9, %v3653_v3 }
 0x4fa   :  { %v3920_v6 = vrot.slane %v15652_v55, 7 }
 0x4fb   :  { %v3788_v21 = vadd.f32 %v3769_v31, %v3728_v57  ;;  %4716 = vperm.xlu0 %13108, %v15662_v58  }
 0x4fc   :  { %v3921_v60 = vsel %vm657_vm2, %v3918_v26, %v3920_v6  ;;  %v15685_v26 = vld [vmem:[%s19138_s2 + $0x30] sm:$0xff] }
 0x4fd   :  { %v3943_v27 = vsel %vm78_vm0, %v3921_v60, 0.0  ;;  %v3898_v47 = vadd.f32 %v3879_v54, %v3788_v21 }
 0x4fe   :  { %v3944_v32 = vadd.f32 %v3943_v27, %v3942_v45  ;;  %v3636_v23 = vpop.permute.xlu1 %3635 }
 0x4ff   :  { %v3922_v11 = vrot.slane %v3898_v47, 7  ;;  %v3654_v16 = vadd.f32 %v3636_v23, %v3533_v53 }
 0x500   :  { %13106 = vset.pattern.permute.xlu2 %v19382_v10  ;;  %4725 = vperm.xlu1 %13109, %v15685_v26  }
 0x501   :  { %v3923_v40 = vsel %vm657_vm2, %v3920_v6, %v3922_v11  ;;  %v3729_v33 = vadd.f32 %v3720_v25, %v3654_v16  ;;  %4719 = vperm.xlu2 %13106, %v15692_v19  }
 0x502   :  { %v3945_v0 = vsel %vm78_vm0, %v3923_v40, 0.0 }
 0x503   :  { %v3946_v1 = vadd.f32 %v3945_v0, %v3944_v32  ;;  %4728 = vperm.xlu0 %13108, %v15700_v44  }
 0x506   :  { %v3771_v37 = vpop.permute.xlu1 %3770 }
 0x507   :  { %v3789_v42 = vadd.f32 %v3771_v37, %v3729_v33 }
 0x508   :  { %13111 = vset.pattern.permute.xlu1 %v19381_v36 }
 0x509   :  { %v3899_v50 = vadd.f32 %v3881_v4, %v3789_v42  ;;  %4881 = vperm.xlu1 %13111, %v15700_v44   ;;  %13110 = vset.pattern.permute.xlu2 %v19381_v36  ;;  %v19384_v4 = vmov 0  }
 0x50a   :  { %4875 = vperm.xlu2 %13110, %v15676_v20  }
 0x50b   :  { %v3924_v17 = vrot.slane %v3899_v50, 7  ;;  %13114 = vset.pattern.permute.xlu0 %v19384_v4 }
 0x50c   :  { %4462 = vperm.xlu0 %13114, %v15642_v62  }
 0x50d   :  { %v3925_v35 = vsel %vm657_vm2, %v3922_v11, %v3924_v17 }
 0x50e   :  { %v3947_v34 = vsel %vm78_vm0, %v3925_v35, 0.0 }
 0x50f   :  { %v3948_v13 = vadd.f32 %v3947_v34, %v3946_v1 }
 0x511   :  { %v3949_v46 = vrot.slane %v3948_v13, 4  ;;  %13113 = vset.pattern.permute.xlu1 %v19383_v15 }
 0x512   :  { %4607 = vperm.xlu1 %13113, %v15650_v29   ;;  %4878 = vperm.xlu2 %13110, %v15685_v26  }
 0x513   :  { %v3950_v38 = vadd.f32 %v3949_v46, %v3948_v13 }
 0x514   :  { %13118 = vset.pattern.permute.xlu0 %v19383_v15 }
 0x515   :  { %v3951_v22 = vrot.slane %v3950_v38, 2  ;;  %4616 = vperm.xlu0 %13118, %v15692_v19  }
 0x517   :  { %v3952_v24 = vadd.f32 %v3951_v22, %v3950_v38 }
 0x519   :  { %v3953_v49 = vrot.slane %v3952_v24, 1 }
 0x51a   :  { %13115 = vset.pattern.permute.xlu1 %v19384_v4  ;;  %13112 = vset.pattern.permute.xlu2 %v19383_v15 }
 0x51b   :  { %v3954_v7 = vadd.f32 %v3953_v49, %v3952_v24  ;;  %4466 = vperm.xlu1 %13115, %v15650_v29   ;;  %4604 = vperm.xlu2 %13112, %v15642_v62  }
 0x51d   :  { %v3955_v9 = vmul.f32 0.015625, %v3954_v7  ;;  %4619 = vperm.xlu0 %13118, %v15676_v20  }
 0x51f   :  { %v15708_v8 = vsub.f32 %v15504_v12, %v3955_v9  ;;  %v15711_v51 = vsub.f32 %v15513_v30, %v3955_v9  ;;  %v15714_v45 = vsub.f32 %v15526_v43, %v3955_v9  ;;  %v15717_v5 = vsub.f32 %v15563_v52, %v3955_v9 }
 0x520   :  { %v15720_v28 = vsub.f32 %v15578_v61, %v3955_v9  ;;  %v15723_v14 = vsub.f32 %v15624_v56, %v3955_v9  ;;  %v15726_v41 = vsub.f32 %v15652_v55, %v3955_v9  ;;  %v15728_v12 = vsub.f32 %v3898_v47, %v3955_v9 }
 0x521   :  { %v15730_v3 = vsub.f32 %v3899_v50, %v3955_v9  ;;  %v3965_v30 = vmul.f32 %v15708_v8, %v15708_v8  ;;  %v3966_v43 = vmul.f32 %v15711_v51, %v15711_v51  ;;  %v3967_v52 = vmul.f32 %v15714_v45, %v15714_v45 }
 0x522   :  { %v3968_v61 = vmul.f32 %v15717_v5, %v15717_v5  ;;  %v3969_v56 = vmul.f32 %v15720_v28, %v15720_v28  ;;  %v3970_v55 = vmul.f32 %v15723_v14, %v15723_v14  ;;  %v3971_v57 = vmul.f32 %v15726_v41, %v15726_v41 }
 0x523   :  { %v3972_v31 = vmul.f32 %v15728_v12, %v15728_v12  ;;  %v3973_v6 = vmul.f32 %v15730_v3, %v15730_v3  ;;  %v3983_v21 = vrot.slane %v3965_v30, 7  ;;  %v3984_v59 = vrot.slane %v3966_v43, 7  ;;  %13117 = vset.pattern.permute.xlu1 %v19383_v15  ;;  %4610 = vperm.xlu2 %13112, %v15617_v63   ;;  %v11363_v30 = vld [vmem:[#allocation4 + $0x258] sm:$0xf]  ;;  %v12702_v43 = vld [vmem:[#allocation4 + $0x268] sm:$0xf0] }
 0x524   :  { %v3986_v60 = vrot.slane %v3967_v52, 7  ;;  %v3988_v54 = vrot.slane %v3968_v61, 7  ;;  %v3990_v39 = vrot.slane %v3969_v56, 7  ;;  %v3992_v27 = vrot.slane %v3970_v55, 7  ;;  %4613 = vperm.xlu1 %13117, %v15662_v58   ;;  %v11371_v52 = vld [vmem:[#allocation4 + $0x260] sm:$0xf] }
 0x525   :  { %v3985_v47 = vsel %vm657_vm2, %v3983_v21, %v3984_v59  ;;  %v3994_v32 = vrot.slane %v3971_v57, 7  ;;  %v3996_v23 = vrot.slane %v3972_v31, 7  ;;  %v3998_v11 = vrot.slane %v3973_v6, 7  ;;  %v12703_v56 = vld [vmem:[#allocation4 + $0x270] sm:$0xf0]  ;;  %4622 = vperm.xlu0 %13118, %v15685_v26  }
 0x526   :  { %v3987_v53 = vsel %vm657_vm2, %v3984_v59, %v3986_v60  ;;  %v3989_v48 = vsel %vm657_vm2, %v3986_v60, %v3988_v54  ;;  %v3991_v18 = vsel %vm657_vm2, %v3988_v54, %v3990_v39  ;;  %v3993_v40 = vsel %vm657_vm2, %v3990_v39, %v3992_v27  ;;  %v12700_v55 = vld [vmem:[#allocation4 + $0x25c] sm:$0xf]  ;;  %v11365_v57 = vld [vmem:[#allocation4 + $0x26c] sm:$0xf0]  ;;  %v12701_v59 = vld [vmem:[#allocation4 + $0x264] sm:$0xf] }
 0x527   :  { %v3995_v16 = vsel %vm657_vm2, %v3992_v27, %v3994_v32  ;;  %v3997_v0 = vsel %vm657_vm2, %v3994_v32, %v3996_v23  ;;  %v3999_v25 = vsel %vm657_vm2, %v3996_v23, %v3998_v11  ;;  %v4008_v1 = vsel %vm78_vm0, %v3985_v47, 0.0  ;;  %v11373_v60 = vld [vmem:[#allocation4 + $0x274] sm:$0xf0]  ;;  %v11343_v27 = vld [vmem:[#allocation4 + $0x230] sm:$0xf] }
 0x528   :  { %v4009_v2 = vsel %vm78_vm0, %v3987_v53, 0.0  ;;  %v4011_v37 = vsel %vm78_vm0, %v3989_v48, 0.0  ;;  %v4013_v50 = vsel %vm78_vm0, %v3991_v18, 0.0  ;;  %v4015_v35 = vsel %vm78_vm0, %v3993_v40, 0.0  ;;  %v12697_v47 = vld [vmem:[#allocation4 + $0x240] sm:$0xf0] }
 0x529   :  { %v4010_v33 = vadd.f32 %v4009_v2, %v4008_v1  ;;  %v4017_v13 = vsel %vm78_vm0, %v3995_v16, 0.0  ;;  %v4019_v38 = vsel %vm78_vm0, %v3997_v0, 0.0  ;;  %v4021_v24 = vsel %vm78_vm0, %v3999_v25, 0.0  ;;  %v11351_v32 = vld [vmem:[#allocation4 + $0x238] sm:$0xf] }
 0x52a   :  { %v11364_v61 = vor.u32 %v12702_v43, %v11363_v30  ;;  %v11372_v6 = vor.u32 %v12703_v56, %v11371_v52  ;;  %v11368_v21 = vor.u32 %v12700_v55, %v11365_v57  ;;  %v11376_v54 = vor.u32 %v12701_v59, %v11373_v60  ;;  %v12698_v11 = vld [vmem:[#allocation4 + $0x248] sm:$0xf0]  ;;  %v12695_v53 = vld [vmem:[#allocation4 + $0x234] sm:$0xf]  ;;  %v11345_v48 = vld [vmem:[#allocation4 + $0x244] sm:$0xf0] }
 0x52b   :  { %v4012_v42 = vadd.f32 %v4011_v37, %v4010_v33  ;;  %v11344_v23 = vor.u32 %v12697_v47, %v11343_v27  ;;  %v11352_v40 = vor.u32 %v12698_v11, %v11351_v32  ;;  %v11348_v16 = vor.u32 %v12695_v53, %v11345_v48  ;;  %v12696_v0 = vld [vmem:[#allocation4 + $0x23c] sm:$0xf]  ;;  %v11353_v25 = vld [vmem:[#allocation4 + $0x24c] sm:$0xf0]  ;;  %v11323_v33 = vld [vmem:[#allocation4 + $0x208] sm:$0xf]  ;;  %13116 = vset.pattern.permute.xlu2 %v19384_v4 }
 0x52c   :  { %4262 = vmatpush.bf16.msrb.mxu3 %v11364_v61  ;;  %4320 = vmatpush.bf16.msra.mxu1 %v11372_v6  ;;  %v11356_v1 = vor.u32 %v12696_v0, %v11353_v25  ;;  %v12692_v37 = vld [vmem:[#allocation4 + $0x218] sm:$0xf0]  ;;  %v11311_v30 = vld [vmem:[#allocation4 + $0x1e8] sm:$0xf]  ;;  %v12685_v56 = vld [vmem:[#allocation4 + $0x1e4] sm:$0xf] }
 0x52d   :  { %v4014_v17 = vadd.f32 %v4013_v50, %v4012_v42  ;;  %4291 = vmatpush.bf16.msra.mxu0 %v11368_v21  ;;  %4349 = vmatpush.bf16.msra.mxu2 %v11376_v54  ;;  %v11331_v42 = vld [vmem:[#allocation4 + $0x210] sm:$0xf]  ;;  %v11324_v50 = vor.u32 %v12692_v37, %v11323_v33  ;;  %v12688_v61 = vld [vmem:[#allocation4 + $0x1f8] sm:$0xf0]  ;;  %v11305_v57 = vld [vmem:[#allocation4 + $0x1f4] sm:$0xf0] }
 0x52e   :  { %13119 = vset.pattern.permute.xlu1 %v19384_v4  ;;  %4470 = vperm.xlu2 %13116, %v15617_v63   ;;  %v11312_v55 = vor.u32 %v12688_v61, %v11311_v30  ;;  %v11313_v6 = vld [vmem:[#allocation4 + $0x1fc] sm:$0xf0]  ;;  %v11308_v21 = vor.u32 %v12685_v56, %v11305_v57  ;;  %v4704_v27 = vld [vmem:[#allocation2 + $0x30] sm:$0x80]  ;;  %v19385_v11 = vmov 6  }
 0x52f   :  { %v4016_v34 = vadd.f32 %v4015_v35, %v4014_v17  ;;  %4478 = vperm.xlu1 %13119, %v15692_v19   ;;  %v12693_v17 = vld [vmem:[#allocation4 + $0x220] sm:$0xf0]  ;;  %v12690_v35 = vld [vmem:[#allocation4 + $0x20c] sm:$0xf]  ;;  %4625 = vperm.xlu0 %13118, %v15700_v44   ;;  %v13191_v25 = vld [vmem:[#allocation8 + $0x2] ss:$0 sm:$0xff] }
 0x530   :  { %4263 = vmatpush.bf16.msrb.mxu3 %v11344_v23  ;;  %4321 = vmatpush.bf16.msra.mxu1 %v11352_v40 }
 0x531   :  { %v4018_v46 = vadd.f32 %v4017_v13, %v4016_v34  ;;  %4292 = vmatpush.bf16.msra.mxu0 %v11348_v16  ;;  %4350 = vmatpush.bf16.msra.mxu2 %v11356_v1  ;;  %v11325_v34 = vld [vmem:[#allocation4 + $0x21c] sm:$0xf0] }
 0x533   :  { %v4020_v22 = vadd.f32 %v4019_v38, %v4018_v46  ;;  %v11332_v46 = vor.u32 %v12693_v17, %v11331_v42  ;;  %v11328_v38 = vor.u32 %v12690_v35, %v11325_v34 }
 0x534   :  { %4264 = vmatpush.bf16.msrb.mxu3 %v11324_v50 }
 0x535   :  { %v4022_v49 = vadd.f32 %v4021_v24, %v4020_v22  ;;  %v12691_v22 = vld [vmem:[#allocation4 + $0x214] sm:$0xf]  ;;  %v11333_v24 = vld [vmem:[#allocation4 + $0x224] sm:$0xf0]  ;;  %4322 = vmatpush.bf16.msra.mxu1 %v11332_v46  ;;  %4293 = vmatpush.bf16.msra.mxu0 %v11328_v38 }
 0x536   :  { %4474 = vperm.xlu2 %13116, %v15662_v58  }
 0x537   :  { %v4023_v7 = vrot.slane %v4022_v49, 4  ;;  %4482 = vperm.xlu1 %13119, %v15676_v20   ;;  %13121 = vset.pattern.permute.xlu0 %v19385_v11 }
 0x538   :  { %4991 = vperm.xlu0 %13121, %v15650_v29  }
 0x539   :  { %v4024_v9 = vadd.f32 %v4023_v7, %v4022_v49  ;;  %v11336_v49 = vor.u32 %v12691_v22, %v11333_v24  ;;  %v11303_v7 = vld [vmem:[#allocation4 + $0x1e0] sm:$0xf]  ;;  %4323 = vmatpush.bf16.msra.mxu1 %v11312_v55  ;;  %4294 = vmatpush.bf16.msra.mxu0 %v11308_v21 }
 0x53b   :  { %v4025_v31 = vrot.slane %v4024_v9, 2  ;;  %4351 = vmatpush.bf16.msra.mxu2 %v11336_v49 }
 0x53d   :  { %v4026_v39 = vadd.f32 %v4025_v31, %v4024_v9  ;;  %v12687_v9 = vld [vmem:[#allocation4 + $0x1f0] sm:$0xf0]  ;;  %v12686_v31 = vld [vmem:[#allocation4 + $0x1ec] sm:$0xf] }
 0x53e   :  { %v11304_v52 = vor.u32 %v12687_v9, %v11303_v7  ;;  %v11316_v59 = vor.u32 %v12686_v31, %v11313_v6  ;;  %13120 = vset.pattern.permute.xlu2 %v19385_v11 }
 0x53f   :  { %v4027_v18 = vrot.slane %v4026_v39, 1  ;;  %4486 = vperm.xlu1 %13119, %v15685_v26  }
 0x540   :  { %4265 = vmatpush.bf16.msrb.mxu3 %v11304_v52  ;;  %4352 = vmatpush.bf16.msra.mxu2 %v11316_v59 }
 0x541   :  { %v4028_v2 = vadd.f32 %v4027_v18, %v4026_v39  ;;  %v15791_v47 = vpop.permute.xlu2 %4707  ;;  %v4042_v18 = vld [vmem:[#allocation6 + $0x2] sm:$0x1]  ;;  %5003 = vperm.xlu0 %13121, %v15676_v20  }
 0x542   :  { %v4730_v23 = vrot.slane %v15791_v47, 1 }
 0x543   :  { %v4029_v13 = vmul.f32 0.015625, %v4028_v2 }
 0x544   :  { %v4754_v48 = vmul.f32 %v4730_v23, %v4704_v27 }
 0x545   :  { %v4030_v43 = vadd.f32 1e-05, %v4029_v13 }
 0x547   :  { %13199 = vrsqrt.f32 %v4030_v43  ;;  %vm4037_vm12 = vweird.f32 %v4030_v43  ;;  %4772 = vrot.lane.b32.xlu1 %v4754_v48, %s13304_s0 }
 0x549   :  { %5006 = vperm.xlu0 %13121, %v15685_v26  }
 0x54d   :  { %v13200_v60 = vpop.eup %13199 }
 0x54e   :  { %v4032_v54 = vmul.f32 %v13200_v60, %v4030_v43  ;;  %vm4038_vm11 = vweird.f32 %v13200_v60 }
 0x54f   :  { %vm4039_vm13 = vmor %vm4037_vm12, %vm4038_vm11  ;;  %4490 = vperm.xlu1 %13119, %v15700_v44  }
 0x550   :  { %v4033_v39 = vmul.f32 %v13200_v60, %v4032_v54 }
 0x552   :  { %v4034_v32 = vmul.f32 0.5, %v4033_v39 }
 0x554   :  { %v4035_v53 = vsub.f32 1.5, %v4034_v32 }
 0x556   :  { %v4036_v40 = vmul.f32 %v13200_v60, %v4035_v53 }
 0x557   :  { %13122 = vset.pattern.permute.xlu1 %v19385_v11 }
 0x558   :  { %v4040_v16 = vsel %vm4039_vm13, %v13200_v60, %v4036_v40  ;;  %4994 = vperm.xlu1 %13122, %v15617_v63  }
 0x559   :  { %v4043_v0 = vmul.f32 %v4042_v18, %v4040_v16 }
 0x55b   :  { %v4044_v1 = vperm.slane %v4043_v0, 0 }
 0x55d   :  { %v4053_v2 = vmul.f32 %v4044_v1, %v15730_v3  ;;  %v4045_v33 = vmul.f32 %v4044_v1, %v15708_v8  ;;  %v4046_v37 = vmul.f32 %v4044_v1, %v15711_v51  ;;  %v4047_v42 = vmul.f32 %v4044_v1, %v15714_v45 }
 0x55e   :  { %v4048_v50 = vmul.f32 %v4044_v1, %v15717_v5  ;;  %v4049_v17 = vmul.f32 %v4044_v1, %v15720_v28  ;;  %v4050_v35 = vmul.f32 %v4044_v1, %v15723_v14  ;;  %v4051_v34 = vmul.f32 %v4044_v1, %v15726_v41 }
 0x55f   :  { %v4067_v13 = vadd.f32 %v13191_v25, %v4053_v2  ;;  %v4059_v46 = vadd.f32 %v13191_v25, %v4045_v33  ;;  %v4060_v38 = vadd.f32 %v13191_v25, %v4046_v37  ;;  %v4061_v22 = vadd.f32 %v13191_v25, %v4047_v42  ;;  %v15824_v33 = vld [vmem:[#allocation2 + $0x8] sm:$0xff] }
 0x560   :  { %v4062_v3 = vadd.f32 %v13191_v25, %v4048_v50  ;;  %v4063_v8 = vadd.f32 %v13191_v25, %v4049_v17  ;;  %v4064_v24 = vadd.f32 %v13191_v25, %v4050_v35  ;;  %v4052_v51 = vmul.f32 %v4044_v1, %v15728_v12  ;;  %v12704_v35 = vld [vmem:[#allocation4 + $0x278] sm:$0xf0] }
 0x561   :  { %v4072_v45 = vpack.c.bf16 %v4067_v13, %v4067_v13  ;;  %v4068_v5 = vpack.c.bf16 %v4060_v38, %v4059_v46  ;;  %v4065_v28 = vadd.f32 %v13191_v25, %v4051_v34  ;;  %v15827_v37 = vrot.slane %v15824_v33, 1  ;;  %v11359_v34 = vld [vmem:[#allocation4 + $0x240] sm:$0xf]  ;;  %v12699_v46 = vld [vmem:[#allocation4 + $0x250] sm:$0xf0] }
 0x562   :  { %v4069_v14 = vpack.c.bf16 %v4062_v3, %v4061_v22  ;;  %v4070_v41 = vpack.c.bf16 %v4064_v24, %v4063_v8  ;;  %v4066_v49 = vadd.f32 %v13191_v25, %v4052_v51  ;;  %v19386_v17 = vmov 8   ;;  %v11339_v38 = vld [vmem:[#allocation4 + $0x218] sm:$0xf]  ;;  %v12694_v22 = vld [vmem:[#allocation4 + $0x228] sm:$0xf0] }
 0x563   :  { %v4134_v7 = vshrl.u32 %v4072_v45, 16  ;;  %v4137_v9 = vshll.u32 %v4072_v45, 16  ;;  %v4099_v30 = vshrl.u32 %v4068_v5, 16  ;;  %v4102_v43 = vshll.u32 %v4068_v5, 16  ;;  %4558 = vrot.lane.b32.xlu2 %v15827_v37, %s13304_s0  ;;  %13124 = vset.pattern.permute.xlu1 %v19386_v17  ;;  %v11319_v8 = vld [vmem:[#allocation4 + $0x1f0] sm:$0xf] }
 0x564   :  { %v4107_v52 = vshrl.u32 %v4069_v14, 16  ;;  %v4110_v61 = vshll.u32 %v4069_v14, 16  ;;  %v4116_v56 = vshrl.u32 %v4070_v41, 16  ;;  %v4119_v55 = vshll.u32 %v4070_v41, 16  ;;  %5129 = vperm.xlu1 %13124, %v15617_v63   ;;  %13128 = vset.pattern.permute.xlu0 %v19386_v17  ;;  %v11379_v63 = vld [vmem:[#allocation4 + $0x268] sm:$0xf] }
 0x565   :  { %v4101_v57 = vrot.slane %v4099_v30, 3  ;;  %v4104_v31 = vrot.slane %v4102_v43, 4  ;;  %v4071_v6 = vpack.c.bf16 %v4066_v49, %v4065_v28  ;;  %v4136_v12 = vrot.slane %v4134_v7, 3  ;;  %5126 = vperm.xlu0 %13128, %v15650_v29   ;;  %v12689_v24 = vld [vmem:[#allocation4 + $0x200] sm:$0xf0]  ;;  %v15909_v28 = vpop.permute.xlu0 %4872 }
 0x566   :  { %v4109_v21 = vrot.slane %v4107_v52, 3  ;;  %v4112_v59 = vrot.slane %v4110_v61, 4  ;;  %v4118_v60 = vrot.slane %v4116_v56, 3  ;;  %v4121_v54 = vrot.slane %v4119_v55, 4 }
 0x567   :  { %v4105_v39 = vor.u32 %v4104_v31, %v4101_v57  ;;  %v4125_v27 = vshrl.u32 %v4071_v6, 16  ;;  %v4128_v32 = vshll.u32 %v4071_v6, 16  ;;  %v4139_v53 = vrot.slane %v4137_v9, 4 }
 0x568   :  { %v4113_v48 = vor.u32 %v4112_v59, %v4109_v21  ;;  %v4122_v18 = vor.u32 %v4121_v54, %v4118_v60  ;;  %v11380_v13 = vor.u32 %v12704_v35, %v11379_v63  ;;  %v11360_v29 = vor.u32 %v12699_v46, %v11359_v34 }
 0x569   :  { %v4127_v40 = vrot.slane %v4125_v27, 3  ;;  %v4130_v16 = vrot.slane %v4128_v32, 4  ;;  %v4140_v0 = vor.u32 %v4139_v53, %v4136_v12  ;;  %v11340_v3 = vor.u32 %v12694_v22, %v11339_v38 }
 0x56a   :  { %v15815_v25 = vsel %vm1451_vm7, %v4105_v39, %v4113_v48  ;;  %v15818_v1 = vsel %vm1451_vm7, %v4113_v48, %v4122_v18  ;;  %4378 = vmatpush.bf16.msra.mxu3 %v11380_v13 }
 0x56b   :  { %11381 = vmatmul.msk.bf16.vlgmr.msrb.gmra.mxu3 %vm78_vm0, %v15815_v25  ;;  %11385 = vmatmul.msk.bf16.vlgmr.msra.gmra.mxu0 %vm78_vm0, %v15815_v25  ;;  %v4131_v2 = vor.u32 %v4130_v16, %v4127_v40 }
 0x56c   :  { %11389 = vmatmul.msk.bf16.vlgmr.msra.gmra.mxu1 %vm78_vm0, %v15815_v25  ;;  %11393 = vmatmul.msk.bf16.vlgmr.msra.gmra.mxu2 %vm78_vm0, %v15815_v25 }
 0x56d   :  { %v15834_v42 = vsel %vm1451_vm7, %v4122_v18, %v4131_v2  ;;  %v15839_v50 = vsel %vm1451_vm7, %v4131_v2, %v4140_v0  ;;  %4988 = vperm.xlu2 %13120, %v15642_v62   ;;  %13126 = vset.pattern.permute.xlu1 %v19385_v11  ;;  %v4711_v49 = vpop.permute.xlu0 %4710 }
 0x56e   :  { %5000 = vperm.xlu1 %13126, %v15692_v19   ;;  %5132 = vperm.xlu0 %13128, %v15662_v58   ;;  %v4731_v7 = vrot.slane %v4711_v49, 1 }
 0x56f   :  { %4379 = vmatpush.bf16.msra.mxu3 %v11360_v29 }
 0x570   :  { %v4732_v43 = vsel %vm521_vm1, %v4730_v23, %v4731_v7 }
 0x573   :  { %4380 = vmatpush.bf16.msra.mxu3 %v11340_v3 }
 0x575   :  { %13123 = vset.pattern.permute.xlu2 %v19386_v17  ;;  %v15936_v47 = vpop.permute.xlu0 %4716 }
 0x576   :  { %5123 = vperm.xlu2 %13123, %v15642_v62   ;;  %13129 = vset.pattern.permute.xlu1 %v19386_v17  ;;  %v11320_v62 = vor.u32 %v12689_v24, %v11319_v8  ;;  %v4735_v34 = vrot.slane %v15936_v47, 1 }
 0x577   :  { %5141 = vperm.xlu1 %13129, %v15685_v26   ;;  %5144 = vperm.xlu0 %13128, %v15700_v44  }
 0x578   :  { %4381 = vmatpush.bf16.msra.mxu3 %v11320_v62 }
 0x57b   :  { %11382 = vmatmul.msk.bf16.gmra.mxu3 %vm78_vm0, %v15818_v1  ;;  %11386 = vmatmul.msk.bf16.gmra.mxu0 %vm78_vm0, %v15818_v1 }
 0x57c   :  { %11390 = vmatmul.msk.bf16.gmra.mxu1 %vm78_vm0, %v15818_v1  ;;  %11394 = vmatmul.msk.bf16.gmra.mxu2 %vm78_vm0, %v15818_v1 }
 0x57e   :  { %13125 = vset.pattern.permute.xlu2 %v19385_v11 }
 0x57f   :  { %4997 = vperm.xlu2 %13125, %v15662_v58   ;;  %13132 = vset.pattern.permute.xlu1 %v19382_v10  ;;  %v4861_v58 = vpop.permute.xlu2 %4860 }
 0x580   :  { %13136 = vset.pattern.permute.xlu0 %v19381_v36  ;;  %v4883_v57 = vrot.slane %v4861_v58, 7 }
 0x587   :  { %13127 = vset.pattern.permute.xlu2 %v19386_v17  ;;  %v15895_v26 = vpop.permute.xlu2 %4866 }
 0x588   :  { %5135 = vperm.xlu2 %13127, %v15692_v19   ;;  %v4886_v46 = vrot.slane %v15895_v26, 7 }
 0x58b   :  { %11383 = vmatmul.msk.bf16.gmra.mxu3 %vm78_vm0, %v15834_v42  ;;  %11387 = vmatmul.msk.bf16.gmra.mxu0 %vm78_vm0, %v15834_v42 }
 0x58c   :  { %11391 = vmatmul.msk.bf16.gmra.mxu1 %vm78_vm0, %v15834_v42  ;;  %11395 = vmatmul.msk.bf16.gmra.mxu2 %vm78_vm0, %v15834_v42 }
 0x58f   :  { %v15899_v51 = vpop.permute.xlu2 %4719 }
 0x590   :  { %5138 = vperm.xlu2 %13127, %v15676_v20   ;;  %v15891_v20 = vpop.permute.xlu1 %4713 }
 0x591   :  { %v4733_v16 = vrot.slane %v15891_v20, 1 }
 0x593   :  { %v4734_v35 = vsel %vm521_vm1, %v4731_v7, %v4733_v16  ;;  %v4736_v8 = vsel %vm521_vm1, %v4733_v16, %v4735_v34 }
 0x598   :  { %13130 = vset.pattern.permute.xlu2 %v19385_v11  ;;  %v15897_v19 = vpop.permute.xlu1 %4863 }
 0x599   :  { %5009 = vperm.xlu2 %13130, %v15700_v44   ;;  %v15905_v44 = vpop.permute.xlu2 %4875  ;;  %v4884_v55 = vrot.slane %v15897_v19, 7 }
 0x59b   :  { %11384 = vmatmul.msk.bf16.gmra.mxu3 %vm78_vm0, %v15839_v50  ;;  %11388 = vmatmul.msk.bf16.gmra.mxu0 %vm78_vm0, %v15839_v50  ;;  %v4885_v59 = vsel %vm657_vm2, %v4883_v57, %v4884_v55  ;;  %v4887_v62 = vsel %vm657_vm2, %v4884_v55, %v4886_v46 }
 0x59c   :  { %11392 = vmatmul.msk.bf16.gmra.mxu1 %vm78_vm0, %v15839_v50  ;;  %11396 = vmatmul.msk.bf16.gmra.mxu2 %vm78_vm0, %v15839_v50 }
 0x5a0   :  { %v15901_v45 = vpop.permute.xlu1 %4869 }
 0x5a1   :  { %13131 = vset.pattern.permute.xlu2 %v19382_v10  ;;  %v15911_v14 = vpop.permute.xlu2 %4878  ;;  %v4888_v38 = vrot.slane %v15901_v45, 7  ;;  %v4892_v10 = vrot.slane %v15905_v44, 7  ;;  %v19395_v44 = vrot.slane %v15909_v28, 7 }
 0x5a3   :  { %v4889_v26 = vsel %vm657_vm2, %v4886_v46, %v4888_v38 }
 0x5a8   :  { %v15907_v5 = vpop.permute.xlu1 %4722 }
 0x5a9   :  { %v15917_v9 = vpop.permute.xlu2 %4604 }
 0x5ab   :  { %11397 = vmatmul.msk.bf16.vlgmr.msra.gmra.mxu3 %vm78_vm0, %v15815_v25 }
 0x5b0   :  { %v15915_v41 = vpop.permute.xlu1 %4725 }
 0x5b1   :  { %v15932_v31 = vpop.permute.xlu2 %4610  ;;  %v4741_v11 = vrot.slane %v15915_v41, 1 }
 0x5b8   :  { %v15919_v30 = vpop.permute.xlu1 %4881 }
 0x5b9   :  { %v15956_v25 = vpop.permute.xlu2 %4470 }
 0x5bb   :  { %11398 = vmatmul.msk.bf16.gmra.mxu3 %vm78_vm0, %v15818_v1 }
 0x5c0   :  { %v15942_v60 = vpop.permute.xlu1 %4607 }
 0x5c8   :  { %v15970_v13 = vpop.permute.xlu1 %4466 }
 0x5cb   :  { %11399 = vmatmul.msk.bf16.gmra.mxu3 %vm78_vm0, %v15834_v42  ;;  %v15961_v42 = vpop.permute.xlu0 %4728 }
 0x5cc   :  { %v4743_v4 = vrot.slane %v15961_v42, 1 }
 0x5d3   :  { %v15999_v55 = vpop.permute.xlu0 %4462 }
 0x5db   :  { %11400 = vmatmul.msk.bf16.gmra.mxu3 %vm78_vm0, %v15839_v50 }
 0x5e8   :  { %v15924_v52 = vpop.f32.mrf.mxu0 }
 0x5e9   :  { %v15926_v61 = vpop.f32.mrf.mxu1  ;;  %v4755_v56 = vmul.f32 %v4732_v43, %v15924_v52  ;;  %v15994_v43 = vpop.permute.xlu2 %4474 }
 0x5ea   :  { %4405 = vst [vmem:[#allocation2 + $0x60] sm:$0xff] %v15926_v61 }
 0x5eb   :  { %4774 = vrot.lane.b32.xlu2 %v4755_v56, %s13304_s0 }
 0x5ee   :  { %v15934_v6 = vpop.f32.mrf.mxu3 }
 0x5ef   :  { %v4354_v23 = vpop.f32.mrf.mxu2  ;;  %v4544_v12 = vrot.slane %v15934_v6, 1 }
 0x5f0   :  { %4406 = vst [vmem:[#allocation2 + $0x68] sm:$0xff] %v4354_v23  ;;  %v15939_v21 = vpop.f32.mrf.mxu0 }
 0x5f1   :  { %v15944_v54 = vpop.f32.mrf.mxu1  ;;  %v4857_v39 = vld [vmem:[#allocation2 + $0x60] sm:$0xfe]  ;;  %v4545_v27 = vsel %vm521_vm1, %v15827_v37, %v4544_v12  ;;  %v4756_v29 = vmul.f32 %v4734_v35, %v15939_v21  ;;  %v19213_v35 = vrot.slane %v15909_v28, 7  ;;  %v16021_v46 = vpop.permute.xlu2 %4558 }
 0x5f2   :  { %v4907_v32 = vmul.f32 %v4883_v57, %v4857_v39  ;;  %4560 = vrot.lane.b32.xlu1 %v4545_v27, %s13304_s0  ;;  %v4908_v53 = vmul.f32 %v4885_v59, %v15944_v54  ;;  %v16001_v57 = vpop.permute.xlu1 %4613  ;;  %v19212_v27 = vrot.slane %v15907_v5, 1 }
 0x5f4   :  { %v4925_v48 = vrot.slane %v4907_v32, 2  ;;  %v4926_v18 = vrot.slane %v4908_v53, 2  ;;  %v4737_v32 = vrot.slane %v15899_v51, 1 }
 0x5f6   :  { %4942 = vrot.lane.b32.xlu0 %v4925_v48, %s13304_s0  ;;  %v15951_v40 = vpop.f32.mrf.mxu3  ;;  %v4927_v63 = vsel %vm700_vm3, %v4925_v48, %v4926_v18 }
 0x5f7   :  { %v15954_v0 = vpop.f32.mrf.mxu2  ;;  %v4546_v22 = vrot.slane %v15951_v40, 1 }
 0x5f8   :  { %v15958_v1 = vpop.f32.mrf.mxu0  ;;  %v5062_v2 = vrot.slane %v15954_v0, 1 }
 0x5f9   :  { %v15963_v50 = vpop.f32.mrf.mxu1  ;;  %v4757_v20 = vmul.f32 %v4736_v8, %v15958_v1  ;;  %v4547_v45 = vsel %vm521_vm1, %v4544_v12, %v4546_v22 }
 0x5fa   :  { %5077 = vrot.lane.b32.xlu2 %v5062_v2, %s13304_s0  ;;  %4944 = vrot.lane.b32.xlu1 %v4927_v63, %s13304_s0  ;;  %v4909_v7 = vmul.f32 %v4887_v62, %v15963_v50 }
 0x5fc   :  { %v4928_v59 = vrot.slane %v4909_v7, 2  ;;  %v4891_v7 = vsel %vm657_vm2, %v4888_v38, %v19213_v35 }
 0x5fe   :  { %4776 = vrot.lane.b32.xlu0 %v4756_v29, %s13304_s0  ;;  %v15977_v3 = vpop.f32.mrf.mxu3  ;;  %v4929_v16 = vsel %vm700_vm3, %v4926_v18, %v4928_v59  ;;  %v16024_v29 = vpop.permute.xlu0 %4616 }
 0x5ff   :  { %v15982_v24 = vpop.f32.mrf.mxu2  ;;  %v4548_v18 = vrot.slane %v15977_v3, 1 }
 0x600   :  { %v15985_v58 = vpop.f32.mrf.mxu0  ;;  %v5063_v49 = vrot.slane %v15982_v24, 1 }
 0x601   :  { %v15989_v19 = vpop.f32.mrf.mxu1 }
 0x602   :  { %4562 = vrot.lane.b32.xlu2 %v4547_v45, %s13304_s0  ;;  %4778 = vrot.lane.b32.xlu1 %v4757_v20, %s13304_s0  ;;  %v4910_v56 = vmul.f32 %v4889_v26, %v15989_v19  ;;  %v5064_v23 = vsel %vm521_vm1, %v5062_v2, %v5063_v49  ;;  %v4740_v2 = vsel %vm521_vm1, %v4737_v32, %v19212_v27  ;;  %v16033_v26 = vpop.permute.xlu1 %4478 }
 0x604   :  { %v4930_v12 = vrot.slane %v4910_v56, 2 }
 0x606   :  { %v16004_v39 = vpop.f32.mrf.mxu3  ;;  %5079 = vrot.lane.b32.xlu0 %v5064_v23, %s13304_s0  ;;  %v4931_v63 = vsel %vm700_vm3, %v4928_v59, %v4930_v12  ;;  %v4549_v23 = vsel %vm521_vm1, %v4546_v22, %v4548_v18 }
 0x607   :  { %v16009_v53 = vpop.f32.mrf.mxu2 }
 0x608   :  { %19387 = vst [vmem:[#allocation14_spill] sm:$0xff] %v16009_v53  ;;  %v16011_v48 = vpop.f32.mrf.mxu0  ;;  %v5065_v8 = vrot.slane %v16009_v53, 1 }
 0x609   :  { %v4759_v51 = vmul.f32 %v4740_v2, %v16011_v48  ;;  %v16028_v62 = vpop.f32.mrf.mxu1  ;;  %v16050_v2 = vpop.permute.xlu2 %4988 }
 0x60a   :  { %4946 = vrot.lane.b32.xlu2 %v4929_v16, %s13304_s0  ;;  %4948 = vrot.lane.b32.xlu1 %v4931_v63, %s13304_s0  ;;  %v5066_v59 = vsel %vm521_vm1, %v5063_v49, %v5065_v8  ;;  %v16046_v63 = vmul.f32 %v4891_v7, %v16028_v62  ;;  %v4738_v49 = vsel %vm521_vm1, %v4735_v34, %v4737_v32  ;;  %v16062_v7 = vpop.permute.xlu0 %4619  ;;  %v16069_v35 = vpop.permute.xlu1 %4482  ;;  %v4550_v34 = vrot.slane %v16004_v39, 1 }
 0x60b   :  { %v4758_v27 = vmul.f32 %v4738_v49, %v15985_v58 }
 0x60e   :  { %v16030_v20 = vpop.f32.mrf.mxu3  ;;  %4782 = vrot.lane.b32.xlu0 %v4759_v51, %s13304_s0  ;;  %v19216_v51 = vrot.slane %v16046_v63, 2 }
 0x60f   :  { %19388 = vst [vmem:[#allocation15_spill] sm:$0xff] %v16030_v20  ;;  %v16035_v45 = vpop.f32.mrf.mxu2  ;;  %v4552_v49 = vrot.slane %v16030_v20, 1  ;;  %v4744_v20 = vsel %vm521_vm1, %v4741_v11, %v4743_v4 }
 0x610   :  { %v16040_v56 = vpop.f32.mrf.mxu0  ;;  %v19214_v16 = vrot.slane %v16035_v45, 1 }
 0x611   :  { %v16076_v47 = vpop.f32.mrf.mxu1  ;;  %v4553_v42 = vsel %vm521_vm1, %v4550_v34, %v4552_v49 }
 0x612   :  { %4564 = vrot.lane.b32.xlu2 %v4549_v23, %s13304_s0  ;;  %5081 = vrot.lane.b32.xlu1 %v5066_v59, %s13304_s0  ;;  %v5068_v38 = vsel %vm521_vm1, %v5065_v8, %v19214_v16  ;;  %v4933_v8 = vsel %vm700_vm3, %v4930_v12, %v19216_v51  ;;  %v16086_v12 = vpop.permute.xlu0 %4622  ;;  %v16098_v15 = vpop.permute.xlu1 %4486 }
 0x613   :  { %19392 = vst [vmem:[#allocation11_spill] sm:$0xff] %v16086_v12 }
 0x614   :  { %19394 = vst [vmem:[#allocation19_spill] sm:$0xff] %v16098_v15 }
 0x616   :  { %v16056_v22 = vpop.f32.mrf.mxu3  ;;  %5083 = vrot.lane.b32.xlu0 %v5068_v38, %s13304_s0  ;;  %v16080_v38 = vpop.permute.xlu2 %5123 }
 0x617   :  { %19389 = vst [vmem:[#allocation21_spill] sm:$0xff] %v16056_v22  ;;  %v16064_v23 = vpop.f32.mrf.mxu2  ;;  %v19223_v32 = vrot.slane %v16056_v22, 1 }
 0x618   :  { %19390 = vst [vmem:[#allocation16_spill] sm:$0xff] %v16064_v23  ;;  %v16066_v59 = vpop.f32.mrf.mxu0 }
 0x619   :  { %19391 = vst [vmem:[#allocation20_spill] sm:$0xff] %v16066_v59  ;;  %v4555_v51 = vsel %vm521_vm1, %v4552_v49, %v19223_v32  ;;  %v16102_v36 = vpop.f32.mrf.mxu1  ;;  %v4761_v41 = vmul.f32 %v4744_v20, %v16066_v59 }
 0x61a   :  { %4780 = vrot.lane.b32.xlu2 %v4758_v27, %s13304_s0  ;;  %4950 = vrot.lane.b32.xlu1 %v4933_v8, %s13304_s0  ;;  %v4551_v8 = vsel %vm521_vm1, %v4548_v18, %v4550_v34  ;;  %v16122_v20 = vpop.permute.xlu1 %4772 }
 0x61e   :  { %v16082_v16 = vpop.f32.mrf.mxu3 }
 0x61f   :  { %4433 = vst [vmem:[#allocation2 + $0x140] sm:$0xff] %v16082_v16  ;;  %v16088_v27 = vpop.f32.mrf.mxu2 }
 0x620   :  { %v4313_v17 = vpop.f32.mrf.mxu0  ;;  %19393 = vst [vmem:[#allocation13_spill] sm:$0xff] %v16088_v27 }
 0x621   :  { %4439 = vst [vmem:[#allocation2 + $0x170] sm:$0xff] %v4313_v17  ;;  %v4894_v17 = vrot.slane %v15911_v14, 7  ;;  %v4893_v14 = vsel %vm657_vm2, %v19395_v44, %v4892_v10 }
 0x622   :  { %4566 = vrot.lane.b32.xlu2 %v4551_v8, %s13304_s0  ;;  %4570 = vrot.lane.b32.xlu1 %v4555_v51, %s13304_s0  ;;  %v16106_v8 = vpop.permute.xlu2 %4997 }
 0x623   :  { %v4895_v32 = vsel %vm657_vm2, %v4892_v10, %v4894_v17  ;;  %v19397_v10 = vrot.slane %v15907_v5, 1  ;;  %v16142_v5 = vpop.permute.xlu1 %4490 }
 0x624   :  { %v4913_v15 = vmul.f32 %v4895_v32, %v16102_v36  ;;  %19398 = vst [vmem:[#allocation17_spill] sm:$0xff] %v16142_v5 }
 0x625   :  { %v4742_v49 = vsel %vm521_vm1, %v19397_v10, %v4741_v11  ;;  %v4556_v10 = vrot.slane %v16082_v16, 1  ;;  %v4858_v16 = vld [vmem:[#allocation2 + $0x1a0] sm:$0x1] }
 0x626   :  { %v4284_v18 = vpop.f32.mrf.mxu3  ;;  %v4936_v34 = vrot.slane %v4913_v15, 2  ;;  %v4896_v15 = vrot.slane %v15919_v30, 7 }
 0x627   :  { %v16116_v18 = vpop.permute.xlu0 %4625  ;;  %v16118_v53 = vpop.f32.mrf.mxu2 }
 0x628   :  { %v4705_v51 = vld [vmem:[#allocation2 + $0x170] sm:$0x7f]  ;;  %19396 = vst [vmem:[#allocation24_spill] sm:$0xff] %v16116_v18  ;;  %v19225_v28 = vrot.slane %v16118_v53, 1 }
 0x629   :  { %v4762_v12 = vmul.f32 %v4743_v4, %v4705_v51  ;;  %v4912_v4 = vmul.f32 %v4893_v14, %v16076_v47  ;;  %v16144_v14 = vpop.f32.mrf.mxu1 }
 0x62a   :  { %4568 = vrot.lane.b32.xlu2 %v4553_v42, %s13304_s0  ;;  %4786 = vrot.lane.b32.xlu1 %v4761_v41, %s13304_s0  ;;  %v16128_v41 = vpop.permute.xlu2 %5135  ;;  %v4760_v42 = vmul.f32 %v4742_v49, %v16040_v56  ;;  %19399 = vst [vmem:[#allocation12_spill] sm:$0xff] %v16144_v14  ;;  %v19400_v49 = vrot.slane %v16046_v63, 2 }
 0x62b   :  { %4788 = vrot.lane.b32.xlu0 %v4762_v12, %s13304_s0  ;;  %v4934_v51 = vrot.slane %v4912_v4, 2  ;;  %v5076_v12 = vsel %vm521_vm1, %v19225_v28, %v15827_v37  ;;  %v16161_v63 = vpop.permute.xlu1 %4994 }
 0x62d   :  { %v4937_v44 = vsel %vm700_vm3, %v4934_v51, %v4936_v34 }
 0x62e   :  { %v4383_v32 = vpop.f32.mrf.mxu3 }
 0x62f   :  { %v16140_v11 = vpop.permute.xlu0 %4991  ;;  %v4897_v32 = vsel %vm657_vm2, %v4894_v17, %v4896_v15 }
 0x632   :  { %4784 = vrot.lane.b32.xlu2 %v4760_v42, %s13304_s0  ;;  %4954 = vrot.lane.b32.xlu1 %v4937_v44, %s13304_s0  ;;  %v4935_v42 = vsel %vm700_vm3, %v19400_v49, %v4934_v51  ;;  %v4914_v44 = vmul.f32 %v4897_v32, %v16144_v14  ;;  %v16153_v30 = vpop.permute.xlu2 %5138  ;;  %v19403_v51 = vrot.slane %v16035_v45, 1 }
 0x633   :  { %5091 = vrot.lane.b32.xlu0 %v5076_v12, %s13304_s0  ;;  %19401 = vst [vmem:[#allocation18_spill] sm:$0xff] %v16153_v30  ;;  %v5069_v12 = vrot.slane %v16064_v23, 1  ;;  %v19406_v30 = vrot.slane %v16056_v22, 1 }
 0x634   :  { %v4938_v28 = vrot.slane %v4914_v44, 2 }
 0x635   :  { %v5070_v32 = vsel %vm521_vm1, %v19403_v51, %v5069_v12 }
 0x636   :  { %v4385_v4 = vpop.f32.mrf.mxu3  ;;  %v4939_v49 = vsel %vm700_vm3, %v4936_v34, %v4938_v28  ;;  %v16178_v34 = vpop.permute.xlu1 %5129 }
 0x637   :  { %4412 = vst.msk [vmem:[#allocation2 + $0x98] sm:$0xff] %vm78_vm0, %v4385_v4  ;;  %v16158_v4 = vpop.permute.xlu0 %5003 }
 0x638   :  { %19402 = vst [vmem:[#allocation22_spill] sm:$0xff] %v16158_v4  ;;  %v4557_v4 = vsel %vm521_vm1, %v19406_v30, %v4556_v10 }
 0x63a   :  { %4952 = vrot.lane.b32.xlu2 %v4935_v42, %s13304_s0  ;;  %4574 = vrot.lane.b32.xlu1 %v4556_v10, %s13304_s0  ;;  %v4915_v42 = vmul.f32 %v4896_v15, %v4858_v16  ;;  %v16169_v44 = vpop.permute.xlu2 %5009  ;;  %v5071_v16 = vrot.slane %v16088_v27, 1  ;;  %v4628_v10 = vrot.slane %v15942_v60, 7  ;;  %v19407_v27 = vrot.slane %v16118_v53, 1 }
 0x63b   :  { %19404 = vst [vmem:[#allocation25_spill] sm:$0xff] %v16169_v44 }
 0x63c   :  { %v4940_v14 = vrot.slane %v4915_v42, 2 }
 0x63e   :  { %v4388_v17 = vpop.f32.mrf.mxu3  ;;  %v4941_v51 = vsel %vm700_vm3, %v4938_v28, %v4940_v14  ;;  %v5072_v28 = vsel %vm521_vm1, %v5069_v12, %v5071_v16  ;;  %v4627_v14 = vrot.slane %v15917_v9, 7  ;;  %v16196_v42 = vpop.permute.xlu1 %5000  ;;  %v4594_v9 = vld [vmem:[#allocation2 + $0x30] sm:$0xfe] }
 0x63f   :  { %4417 = vst.msk [vmem:[#allocation2 + $0xc0] sm:$0xff] %vm78_vm0, %v4388_v17  ;;  %v16172_v17 = vpop.permute.xlu0 %5006 }
 0x640   :  { %19405 = vst [vmem:[#allocation23_spill] sm:$0xff] %v16172_v17  ;;  %v4629_v60 = vsel %vm657_vm2, %v4627_v14, %v4628_v10 }
 0x642   :  { %5085 = vrot.lane.b32.xlu2 %v5070_v32, %s13304_s0  ;;  %4956 = vrot.lane.b32.xlu1 %v4939_v49, %s13304_s0 }
 0x645   :  { %v4775_v15 = vpop.permute.xlu2 %4774 }
 0x646   :  { %v4390_v23 = vpop.f32.mrf.mxu3  ;;  %v16216_v22 = vpop.permute.xlu1 %5141 }
 0x647   :  { %4422 = vst.msk [vmem:[#allocation2 + $0xe8] sm:$0xff] %vm78_vm0, %v4390_v23  ;;  %v4630_v23 = vrot.slane %v15932_v31, 7  ;;  %v16185_v49 = vpop.permute.xlu0 %5126  ;;  %v4495_v31 = vrot.slane %v15956_v25, 1 }
 0x649   :  { %v4631_v30 = vsel %vm657_vm2, %v4628_v10, %v4630_v23  ;;  %v5074_v10 = vsel %vm521_vm1, %v5071_v16, %v19407_v27 }
 0x64a   :  { %4572 = vrot.lane.b32.xlu2 %v4557_v4, %s13304_s0  ;;  %4958 = vrot.lane.b32.xlu1 %v4941_v51, %s13304_s0  ;;  %v4493_v4 = vrot.slane %v15970_v13, 1  ;;  %v4652_v13 = vmul.f32 %v4629_v60, %v15924_v52 }
 0x64c   :  { %v4496_v25 = vsel %vm521_vm1, %v4493_v4, %v4495_v31  ;;  %v4670_v17 = vrot.slane %v4652_v13, 2 }
 0x64e   :  { %v4393_v32 = vpop.f32.mrf.mxu3 }
 0x64f   :  { %4427 = vst.msk [vmem:[#allocation2 + $0x110] sm:$0xff] %vm78_vm0, %v4393_v32  ;;  %v16202_v32 = vmul.f32 %v4631_v30, %v15939_v21  ;;  %v16206_v44 = vpop.permute.xlu0 %5132  ;;  %v4651_v30 = vmul.f32 %v4627_v14, %v4594_v9  ;;  %v4632_v9 = vrot.slane %v16001_v57, 7  ;;  %v4824_v57 = vrot.slane %v15926_v61, 1 }
 0x650   :  { %v5012_v61 = vrot.slane %v16140_v11, 1 }
 0x651   :  { %v4672_v21 = vrot.slane %v16202_v32, 2  ;;  %v4669_v60 = vrot.slane %v4651_v30, 2 }
 0x652   :  { %5087 = vrot.lane.b32.xlu2 %v5072_v28, %s13304_s0  ;;  %5093 = vrot.lane.b32.xlu1 %v15827_v37, %s13304_s0  ;;  %v4492_v37 = vrot.slane %v15999_v55, 1  ;;  %v4443_v28 = vld [vmem:[#allocation2] sm:$0x80] }
 0x653   :  { %v4673_v52 = vsel %vm700_vm3, %v4670_v17, %v4672_v21 }
 0x654   :  { %v16198_v51 = vpop.permute.xlu2 %5077  ;;  %v4516_v55 = vmul.f32 %v4492_v37, %v4443_v28 }
 0x656   :  { %v4395_v12 = vpop.f32.mrf.mxu3  ;;  %v4585_v27 = vadd.f32 %v16021_v46, %v4516_v55  ;;  %v4671_v46 = vsel %vm700_vm3, %v4669_v60, %v4670_v17 }
 0x657   :  { %4432 = vst.msk [vmem:[#allocation2 + $0x138] sm:$0xff] %vm78_vm0, %v4395_v12  ;;  %v4518_v12 = vmul.f32 %v4496_v25, %v15934_v6  ;;  %v16223_v14 = vpop.permute.xlu0 %5144  ;;  %v4494_v6 = vsel %vm521_vm1, %v4492_v37, %v4493_v4 }
 0x658   :  { %v4695_v28 = vadd.f32 %v4669_v60, %v4585_v27  ;;  %v4634_v60 = vrot.slane %v16024_v29, 7 }
 0x65a   :  { %5089 = vrot.lane.b32.xlu2 %v5074_v10, %s13304_s0  ;;  %v4799_v55 = vadd.f32 %v16122_v20, %v4695_v28  ;;  %v4635_v11 = vsel %vm657_vm2, %v4632_v9, %v4634_v60 }
 0x65c   :  { %v4563_v59 = vpop.permute.xlu2 %4562 }
 0x65d   :  { %v4587_v5 = vadd.f32 %v4563_v59, %v4518_v12  ;;  %v4517_v59 = vmul.f32 %v15824_v33, %v4494_v6  ;;  %v4497_v12 = vrot.slane %v15994_v43, 1  ;;  %v4978_v6 = vld [vmem:[#allocation2 + $0x68] sm:$0x80]  ;;  %v4501_v43 = vrot.slane %v16069_v35, 1 }
 0x65e   :  { %v4398_v18 = vpop.f32.mrf.mxu3  ;;  %v4835_v35 = vrot.slane %v16102_v36, 1 }
 0x65f   :  { %4437 = vst.msk [vmem:[#allocation2 + $0x160] sm:$0xff] %vm78_vm0, %v4398_v18  ;;  %v4697_v16 = vadd.f32 %v4673_v52, %v4587_v5  ;;  %v4825_v18 = vrot.slane %v15944_v54, 1  ;;  %v4633_v5 = vsel %vm657_vm2, %v4630_v23, %v4632_v9  ;;  %v4498_v52 = vsel %vm521_vm1, %v4495_v31, %v4497_v12 }
 0x660   :  { %v16240_v17 = vmul.f32 %v4633_v5, %v15958_v1  ;;  %v5011_v54 = vrot.slane %v16050_v2, 1  ;;  %v4848_v23 = vadd.f32 %v4824_v57, %v4799_v55  ;;  %v5146_v31 = vrot.slane %v16080_v38, 7  ;;  %v5114_v5 = vld [vmem:[#allocation2 + $0xc0] sm:$0xff] }
 0x661   :  { %v4826_v27 = vsel %vm521_vm1, %v4824_v57, %v4825_v18  ;;  %v4519_v1 = vmul.f32 %v4498_v52, %v15951_v40  ;;  %v4827_v2 = vrot.slane %v15963_v50, 1  ;;  %v5113_v57 = vld [vmem:[#allocation2 + $0x98] sm:$0xfe]  ;;  %v4829_v52 = vrot.slane %v15989_v19, 1 }
 0x662   :  { %v5013_v55 = vsel %vm521_vm1, %v5011_v54, %v5012_v61  ;;  %v5149_v19 = vrot.slane %v16178_v34, 7 }
 0x663   :  { %v4828_v50 = vsel %vm521_vm1, %v4825_v18, %v4827_v2 }
 0x664   :  { %v4947_v25 = vpop.permute.xlu2 %4946  ;;  %v4561_v13 = vpop.permute.xlu1 %4560 }
 0x665   :  { %v4586_v10 = vadd.f32 %v4561_v13, %v4517_v59  ;;  %v5147_v13 = vrot.slane %v16185_v49, 7 }
 0x666   :  { %v4400_v30 = vpop.f32.mrf.mxu3 }
 0x667   :  { %4442 = vst.msk [vmem:[#allocation2 + $0x188] sm:$0xff] %vm78_vm0, %v4400_v30  ;;  %v4696_v4 = vadd.f32 %v4671_v46, %v4586_v10  ;;  %v4674_v30 = vrot.slane %v16240_v17, 2  ;;  %v5035_v46 = vmul.f32 %v5011_v54, %v4978_v6  ;;  %v5148_v49 = vsel %vm657_vm2, %v5146_v31, %v5147_v13 }
 0x668   :  { %v4943_v33 = vpop.permute.xlu0 %4942  ;;  %v4499_v6 = vrot.slane %v16033_v26, 1  ;;  %v4830_v26 = vsel %vm521_vm1, %v4827_v2, %v4829_v52  ;;  %v5150_v2 = vsel %vm657_vm2, %v5147_v13, %v5149_v19 }
 0x669   :  { %v4800_v37 = vadd.f32 %v4775_v15, %v4696_v4  ;;  %v5014_v15 = vrot.slane %v16161_v63, 1  ;;  %v4969_v10 = vadd.f32 %v4943_v33, %v4848_v23  ;;  %v4675_v9 = vsel %vm700_vm3, %v4672_v21, %v4674_v30 }
 0x66b   :  { %v4849_v20 = vadd.f32 %v4826_v27, %v4800_v37  ;;  %v5015_v38 = vsel %vm521_vm1, %v5012_v61, %v5014_v15  ;;  %v5044_v40 = vadd.f32 %v5035_v46, %v4969_v10  ;;  %v16258_v37 = vmul.f32 %v5148_v49, %v5114_v5 }
 0x66c   :  { %v4565_v28 = vpop.permute.xlu2 %4564  ;;  %v4945_v59 = vpop.permute.xlu1 %4944  ;;  %v5170_v27 = vmul.f32 %v5146_v31, %v5113_v57  ;;  %v4636_v61 = vrot.slane %v16062_v7, 7  ;;  %v5037_v32 = vmul.f32 %v5015_v38, %v15982_v24  ;;  %v5016_v49 = vrot.slane %v16106_v8, 1 }
 0x66d   :  { %v4588_v29 = vadd.f32 %v4565_v28, %v4519_v1  ;;  %v4970_v54 = vadd.f32 %v4945_v59, %v4849_v20  ;;  %v5104_v10 = vadd.f32 %v16198_v51, %v5044_v40  ;;  %v5189_v31 = vrot.slane %v16258_v37, 2 }
 0x66e   :  { %v4655_v20 = vmul.f32 %v4635_v11, %v15985_v58  ;;  %v5188_v59 = vrot.slane %v5170_v27, 2  ;;  %v4500_v51 = vsel %vm521_vm1, %v4497_v12, %v4499_v6  ;;  %v4637_v58 = vsel %vm657_vm2, %v4634_v60, %v4636_v61 }
 0x66f   :  { %v4698_v23 = vadd.f32 %v4675_v9, %v4588_v29  ;;  %v4520_v57 = vmul.f32 %v4500_v51, %v15977_v3  ;;  %v16292_v13 = vmul.f32 %v4637_v58, %v16011_v48  ;;  %v4831_v3 = vrot.slane %v16028_v62, 1 }
 0x670   :  { %v4777_v4 = vpop.permute.xlu0 %4776  ;;  %v5190_v34 = vsel %vm700_vm3, %v5188_v59, %v5189_v31  ;;  %v5151_v9 = vrot.slane %v16206_v44, 7 }
 0x671   :  { %v4801_v33 = vadd.f32 %v4777_v4, %v4697_v16  ;;  %v5036_v16 = vmul.f32 %v5013_v55, %v15954_v0  ;;  %v16276_v55 = vadd.f32 %v5188_v59, %v5104_v10  ;;  %v5115_v4 = vld [vmem:[#allocation2 + $0xe8] sm:$0xff] }
 0x672   :  { %v5172_v37 = vmul.f32 %v5150_v2, %v5115_v4  ;;  %v5152_v48 = vsel %vm657_vm2, %v5149_v19, %v5151_v9 }
 0x673   :  { %v4850_v17 = vadd.f32 %v4828_v50, %v4801_v33  ;;  %v5045_v46 = vadd.f32 %v5036_v16, %v4970_v54  ;;  %v5232_v40 = vrot.slane %v16276_v55, 7  ;;  %v5116_v54 = vld [vmem:[#allocation2 + $0x110] sm:$0xff]  ;;  %v4678_v16 = vrot.slane %v16292_v13, 2 }
 0x674   :  { %v4781_v28 = vpop.permute.xlu2 %4780  ;;  %v4779_v18 = vpop.permute.xlu1 %4778  ;;  %v16307_v10 = vmul.f32 %v5152_v48, %v5116_v54 }
 0x675   :  { %v4802_v1 = vadd.f32 %v4779_v18, %v4698_v23  ;;  %v4971_v21 = vadd.f32 %v4947_v25, %v4850_v17  ;;  %v4676_v25 = vrot.slane %v4655_v20, 2  ;;  %v4502_v23 = vsel %vm521_vm1, %v4499_v6, %v4501_v43 }
 0x676   :  { %v5191_v18 = vrot.slane %v5172_v37, 2  ;;  %v5193_v51 = vrot.slane %v16307_v10, 2 }
 0x677   :  { %v4851_v29 = vadd.f32 %v4830_v26, %v4802_v1  ;;  %v5046_v5 = vadd.f32 %v5037_v32, %v4971_v21  ;;  %v4677_v60 = vsel %vm700_vm3, %v4674_v30, %v4676_v25  ;;  %v5017_v30 = vsel %vm521_vm1, %v5014_v15, %v5016_v49 }
 0x678   :  { %v5080_v0 = vpop.permute.xlu0 %5079  ;;  %v4832_v1 = vsel %vm521_vm1, %v4829_v52, %v4831_v3  ;;  %v4521_v21 = vmul.f32 %v4502_v23, %v16004_v39  ;;  %v5018_v15 = vrot.slane %v16196_v42, 1  ;;  %v4833_v52 = vrot.slane %v16076_v47, 1 }
 0x679   :  { %v5105_v24 = vadd.f32 %v5080_v0, %v5045_v46  ;;  %v19408_v46 = vld [vmem:[#allocation14_spill] sm:$0xff]  ;;  %v5192_v0 = vsel %vm700_vm3, %v5189_v31, %v5191_v18  ;;  %v5194_v31 = vsel %vm700_vm3, %v5191_v18, %v5193_v51 }
 0x67a   :  { %v5038_v19 = vmul.f32 %v5017_v30, %v19408_v46 }
 0x67b   :  { %v16283_v11 = vadd.f32 %v5190_v34, %v5105_v24 }
 0x67c   :  { %v4567_v12 = vpop.permute.xlu2 %4566  ;;  %v4949_v38 = vpop.permute.xlu1 %4948 }
 0x67d   :  { %v5233_v33 = vrot.slane %v16283_v11, 7  ;;  %v4589_v50 = vadd.f32 %v4567_v12, %v4520_v57  ;;  %v4972_v32 = vadd.f32 %v4949_v38, %v4851_v29  ;;  %v19409_v29 = vld [vmem:[#allocation11_spill] sm:$0xff]  ;;  %v4834_v12 = vsel %vm521_vm1, %v4831_v3, %v4833_v52 }
 0x67e   :  { %v4638_v24 = vrot.slane %v19409_v29, 7  ;;  %v19413_v29 = vld [vmem:[#allocation17_spill] sm:$0xff] }
 0x67f   :  { %v5234_v27 = vsel %vm657_vm2, %v5232_v40, %v5233_v33  ;;  %v4699_v17 = vadd.f32 %v4677_v60, %v4589_v50  ;;  %v5047_v58 = vadd.f32 %v5038_v19, %v4972_v32  ;;  %v19410_v60 = vld [vmem:[#allocation19_spill] sm:$0xff] }
 0x680   :  { %v4783_v8 = vpop.permute.xlu0 %4782  ;;  %v4639_v47 = vsel %vm657_vm2, %v4636_v61, %v4638_v24  ;;  %v4503_v13 = vrot.slane %v19410_v60, 1  ;;  %v5257_v37 = vsel %vm78_vm0, %v5234_v27, 0.0 }
 0x681   :  { %v4803_v62 = vadd.f32 %v4781_v28, %v4699_v17  ;;  %v4679_v28 = vsel %vm700_vm3, %v4676_v25, %v4678_v16  ;;  %v5019_v25 = vsel %vm521_vm1, %v5016_v49, %v5018_v15 }
 0x682   :  { %v5039_v61 = vmul.f32 %v5019_v25, %v16035_v45  ;;  %v4504_v27 = vsel %vm521_vm1, %v4501_v43, %v4503_v13  ;;  %v19412_v43 = vld [vmem:[#allocation24_spill] sm:$0xff] }
 0x683   :  { %v4852_v6 = vadd.f32 %v4832_v1, %v4803_v62  ;;  %v5153_v62 = vrot.slane %v16128_v41, 7  ;;  %v19411_v1 = vld [vmem:[#allocation15_spill] sm:$0xff]  ;;  %v4640_v41 = vrot.slane %v19412_v43, 7 }
 0x684   :  { %v4569_v20 = vpop.permute.xlu2 %4568  ;;  %v5082_v63 = vpop.permute.xlu1 %5081  ;;  %v4522_v32 = vmul.f32 %v4504_v27, %v19411_v1 }
 0x685   :  { %v4590_v26 = vadd.f32 %v4569_v20, %v4521_v21  ;;  %v5106_v59 = vadd.f32 %v5082_v63, %v5046_v5  ;;  %v5117_v21 = vld [vmem:[#allocation2 + $0x138] sm:$0xff] }
 0x687   :  { %v4700_v39 = vadd.f32 %v4679_v28, %v4590_v26  ;;  %v16318_v34 = vadd.f32 %v5192_v0, %v5106_v59  ;;  %v4836_v28 = vsel %vm521_vm1, %v4833_v52, %v4835_v35  ;;  %v4641_v0 = vsel %vm657_vm2, %v4638_v24, %v4640_v41 }
 0x688   :  { %v5084_v2 = vpop.permute.xlu0 %5083 }
 0x689   :  { %v5235_v57 = vrot.slane %v16318_v34, 7  ;;  %v5107_v5 = vadd.f32 %v5084_v2, %v5047_v58  ;;  %v4804_v4 = vadd.f32 %v4783_v8, %v4700_v39  ;;  %v19414_v2 = vld [vmem:[#allocation23_spill] sm:$0xff] }
 0x68b   :  { %v5236_v38 = vsel %vm657_vm2, %v5233_v33, %v5235_v57  ;;  %v16330_v40 = vadd.f32 %v5194_v31, %v5107_v5  ;;  %v16332_v50 = vadd.f32 %v4834_v12, %v4804_v4  ;;  %v4657_v33 = vmul.f32 %v4639_v47, %v16040_v56  ;;  %v19415_v5 = vld [vmem:[#allocation20_spill] sm:$0xff]  ;;  %v19416_v31 = vld [vmem:[#allocation22_spill] sm:$0xff] }
 0x68c   :  { %v5258_v49 = vsel %vm78_vm0, %v5236_v38, 0.0  ;;  %v4785_v17 = vpop.permute.xlu2 %4784  ;;  %v4951_v54 = vpop.permute.xlu1 %4950  ;;  %v5154_v56 = vsel %vm657_vm2, %v5151_v9, %v5153_v62  ;;  %v4505_v9 = vrot.slane %v19413_v29, 1  ;;  %v4658_v4 = vmul.f32 %v4641_v0, %v19415_v5  ;;  %v19417_v47 = vld [vmem:[#allocation18_spill] sm:$0xff] }
 0x68d   :  { %v5259_v8 = vadd.f32 %v5258_v49, %v5257_v37  ;;  %v5237_v3 = vrot.slane %v16330_v40, 7  ;;  %v4973_v7 = vadd.f32 %v4951_v54, %v4852_v6  ;;  %v4680_v10 = vrot.slane %v4657_v33, 2  ;;  %v5119_v0 = vld [vmem:[#allocation2 + $0x188] sm:$0xff] }
 0x68e   :  { %v16351_v26 = vmul.f32 %v5154_v56, %v5117_v21  ;;  %v5020_v12 = vrot.slane %v19416_v31, 1  ;;  %v5155_v52 = vrot.slane %v19417_v47, 7  ;;  %v4506_v24 = vsel %vm521_vm1, %v4503_v13, %v4505_v9  ;;  %v19419_v13 = vld [vmem:[#allocation13_spill] sm:$0xff]  ;;  %v19420_v21 = vld [vmem:[#allocation12_spill] sm:$0xff] }
 0x68f   :  { %v5238_v23 = vsel %vm657_vm2, %v5235_v57, %v5237_v3  ;;  %v5048_v30 = vadd.f32 %v5039_v61, %v4973_v7  ;;  %v4681_v63 = vsel %vm700_vm3, %v4678_v16, %v4680_v10  ;;  %v5022_v57 = vrot.slane %v19414_v2, 1 }
 0x690   :  { %v5260_v48 = vsel %vm78_vm0, %v5238_v23, 0.0  ;;  %v5195_v19 = vrot.slane %v16351_v26, 2  ;;  %v4682_v37 = vrot.slane %v4658_v4, 2  ;;  %v5021_v1 = vsel %vm521_vm1, %v5018_v15, %v5020_v12  ;;  %v19421_v26 = vld [vmem:[#allocation16_spill] sm:$0xff] }
 0x691   :  { %v5261_v18 = vadd.f32 %v5260_v48, %v5259_v8  ;;  %v5023_v60 = vsel %vm521_vm1, %v5020_v12, %v5022_v57  ;;  %v5156_v8 = vsel %vm657_vm2, %v5153_v62, %v5155_v52  ;;  %v5040_v43 = vmul.f32 %v5021_v1, %v19421_v26 }
 0x692   :  { %v5196_v36 = vsel %vm700_vm3, %v5193_v51, %v5195_v19  ;;  %v5118_v51 = vld [vmem:[#allocation2 + $0x160] sm:$0xff]  ;;  %v5041_v27 = vmul.f32 %v5023_v60, %v19419_v13 }
 0x694   :  { %v4953_v6 = vpop.permute.xlu2 %4952  ;;  %v4571_v45 = vpop.permute.xlu1 %4570 }
 0x695   :  { %v4591_v20 = vadd.f32 %v4571_v45, %v4522_v32  ;;  %v5175_v32 = vmul.f32 %v5156_v8, %v5118_v51  ;;  %v4837_v45 = vrot.slane %v19420_v21, 1  ;;  %v4974_v62 = vadd.f32 %v4953_v6, %v16332_v50  ;;  %v16388_v6 = vld [vmem:[%s19138_s2 + $0x10] sm:$0xff] }
 0x696   :  { %6036 = vperm.xlu1 %13132, %v16388_v6  }
 0x697   :  { %v4701_v59 = vadd.f32 %v4681_v63, %v4591_v20  ;;  %v4602_v63 = vld [vmem:[#allocation2 + $0x170] sm:$0x1]  ;;  %v4838_v42 = vsel %vm521_vm1, %v4835_v35, %v4837_v45  ;;  %v5049_v15 = vadd.f32 %v5040_v43, %v4974_v62 }
 0x699   :  { %v4805_v46 = vadd.f32 %v4785_v17, %v4701_v59  ;;  %v19418_v17 = vld [vmem:[#allocation21_spill] sm:$0xff] }
 0x69a   :  { %v4523_v54 = vmul.f32 %v4506_v24, %v19418_v17  ;;  %v5120_v24 = vld [vmem:[#allocation2 + $0x1b0] sm:$0xff] }
 0x69b   :  { %v4854_v44 = vadd.f32 %v4836_v28, %v4805_v46  ;;  %v5197_v46 = vrot.slane %v5175_v32, 2  ;;  %v4451_v28 = vld [vmem:[#allocation2 + $0x140] sm:$0x7f] }
 0x69c   :  { %v5086_v39 = vpop.permute.xlu2 %5085  ;;  %v4787_v58 = vpop.permute.xlu1 %4786 }
 0x69d   :  { %v5108_v16 = vadd.f32 %v5086_v39, %v5048_v30  ;;  %v4789_v35 = vpop.permute.xlu0 %4788 }
 0x69f   :  { %v16362_v25 = vadd.f32 %v5196_v36, %v5108_v16  ;;  %v5159_v16 = vrot.slane %v16223_v14, 7  ;;  %v4524_v36 = vmul.f32 %v4505_v9, %v4451_v28 }
 0x6a1   :  { %v5239_v38 = vrot.slane %v16362_v25, 7 }
 0x6a3   :  { %v5240_v49 = vsel %vm657_vm2, %v5237_v3, %v5239_v38  ;;  %v4683_v3 = vsel %vm700_vm3, %v4680_v10, %v4682_v37  ;;  %v4659_v10 = vmul.f32 %v4640_v41, %v4602_v63  ;;  %v5198_v41 = vsel %vm700_vm3, %v5195_v19, %v5197_v46 }
 0x6a4   :  { %v5262_v7 = vsel %vm78_vm0, %v5240_v49, 0.0  ;;  %v4573_v61 = vpop.permute.xlu2 %4572  ;;  %v4955_v33 = vpop.permute.xlu1 %4954 }
 0x6a5   :  { %v5263_v23 = vadd.f32 %v5262_v7, %v5261_v18  ;;  %v4592_v30 = vadd.f32 %v4573_v61, %v4523_v54  ;;  %v4975_v48 = vadd.f32 %v4955_v33, %v4854_v44  ;;  %v5157_v18 = vrot.slane %v16216_v22, 7  ;;  %v19422_v22 = vld [vmem:[#allocation25_spill] sm:$0xff] }
 0x6a6   :  { %v5024_v39 = vrot.slane %v19422_v22, 1  ;;  %v4684_v31 = vrot.slane %v4659_v10, 2 }
 0x6a7   :  { %v4702_v56 = vadd.f32 %v4683_v3, %v4592_v30  ;;  %v5050_v20 = vadd.f32 %v5041_v27, %v4975_v48  ;;  %v5160_v60 = vsel %vm657_vm2, %v5157_v18, %v5159_v16  ;;  %v19423_v48 = vmov 5  }
 0x6a8   :  { %v5025_v47 = vsel %vm521_vm1, %v5022_v57, %v5024_v39  ;;  %v4685_v17 = vsel %vm700_vm3, %v4682_v37, %v4684_v31  ;;  %v5177_v54 = vmul.f32 %v5160_v60, %v5120_v24  ;;  %v16407_v57 = vld [vmem:[%s19138_s2] sm:$0xff]  ;;  %13134 = vset.pattern.permute.xlu1 %v19423_v48 }
 0x6a9   :  { %v4806_v59 = vadd.f32 %v4787_v58, %v4702_v56  ;;  %v5158_v58 = vsel %vm657_vm2, %v5155_v52, %v5157_v18  ;;  %v5042_v8 = vmul.f32 %v5025_v47, %v16118_v53  ;;  %6030 = vperm.xlu2 %13131, %v16407_v57   ;;  %v5121_v56 = vld [vmem:[#allocation2 + $0x1d8] sm:$0x1] }
 0x6aa   :  { %v5176_v5 = vmul.f32 %v5158_v58, %v5119_v0  ;;  %v5201_v27 = vrot.slane %v5177_v54, 2  ;;  %v5178_v10 = vmul.f32 %v5159_v16, %v5121_v56  ;;  %v16441_v16 = vld [vmem:[%s19138_s2 + $0x28] sm:$0xff]  ;;  %v16457_v60 = vld [vmem:[%s19138_s2 + $0x20] sm:$0xff] }
 0x6ab   :  { %v4855_v44 = vadd.f32 %v4838_v42, %v4806_v59  ;;  %v16429_v42 = vld [vmem:[%s19138_s2 + $0x18] sm:$0xff]  ;;  %6195 = vperm.xlu0 %13136, %v16457_v60  }
 0x6ac   :  { %v5088_v29 = vpop.permute.xlu2 %5087  ;;  %v4575_v50 = vpop.permute.xlu1 %4574  ;;  %v5199_v14 = vrot.slane %v5176_v5, 2 }
 0x6ad   :  { %v5109_v2 = vadd.f32 %v5088_v29, %v5049_v15  ;;  %v4593_v12 = vadd.f32 %v4575_v50, %v4524_v36  ;;  %v4986_v15 = vld [vmem:[#allocation2 + $0x1a8] sm:$0x7f]  ;;  %v5203_v29 = vrot.slane %v5178_v10, 2 }
 0x6ae   :  { %v5200_v53 = vsel %vm700_vm3, %v5197_v46, %v5199_v14  ;;  %v5202_v62 = vsel %vm700_vm3, %v5199_v14, %v5201_v27  ;;  %v5043_v21 = vmul.f32 %v5024_v39, %v4986_v15 }
 0x6af   :  { %v16395_v4 = vadd.f32 %v5198_v41, %v5109_v2  ;;  %v4703_v9 = vadd.f32 %v4685_v17, %v4593_v12  ;;  %v5204_v2 = vsel %vm700_vm3, %v5201_v27, %v5203_v29  ;;  %v16450_v12 = vld [vmem:[%s19138_s2 + $0x30] sm:$0xff]  ;;  %v16465_v17 = vld [vmem:[%s19138_s2 + $0x38] sm:$0xff]  ;;  %v19425_v27 = vmov 2  }
 0x6b1   :  { %v5241_v52 = vrot.slane %v16395_v4, 7  ;;  %v4807_v32 = vadd.f32 %v4789_v35, %v4703_v9  ;;  %13133 = vset.pattern.permute.xlu2 %v19423_v48  ;;  %v19424_v35 = vmov 3  }
 0x6b2   :  { %6183 = vperm.xlu2 %13133, %v16407_v57  }
 0x6b3   :  { %v5242_v49 = vsel %vm657_vm2, %v5239_v38, %v5241_v52  ;;  %v16414_v38 = vld [vmem:[%s19138_s2 + $0x8] sm:$0xff]  ;;  %v4856_v46 = vadd.f32 %v4837_v45, %v4807_v32  ;;  %13137 = vset.pattern.permute.xlu0 %v19424_v35 }
 0x6b4   :  { %v5264_v19 = vsel %vm78_vm0, %v5242_v49, 0.0  ;;  %v5090_v51 = vpop.permute.xlu2 %5089  ;;  %v4957_v7 = vpop.permute.xlu1 %4956  ;;  %6186 = vperm.xlu1 %13134, %v16414_v38   ;;  %6033 = vperm.xlu0 %13137, %v16414_v38  }
 0x6b5   :  { %v5265_v61 = vadd.f32 %v5264_v19, %v5263_v23  ;;  %v5110_v33 = vadd.f32 %v5090_v51, %v5050_v20  ;;  %v4976_v30 = vadd.f32 %v4957_v7, %v4855_v44  ;;  %v5092_v23 = vpop.permute.xlu0 %5091 }
 0x6b7   :  { %v16418_v37 = vadd.f32 %v5200_v53, %v5110_v33  ;;  %v5051_v13 = vadd.f32 %v5042_v8, %v4976_v30 }
 0x6b9   :  { %v5243_v1 = vrot.slane %v16418_v37, 7  ;;  %v5111_v3 = vadd.f32 %v5092_v23, %v5051_v13 }
 0x6ba   :  { %6189 = vperm.xlu2 %13133, %v16388_v6  }
 0x6bb   :  { %v5244_v20 = vsel %vm657_vm2, %v5241_v52, %v5243_v1  ;;  %v5221_v63 = vadd.f32 %v5202_v62, %v5111_v3 }
 0x6bc   :  { %v5266_v18 = vsel %vm78_vm0, %v5244_v20, 0.0  ;;  %v4959_v26 = vpop.permute.xlu1 %4958  ;;  %6192 = vperm.xlu1 %13134, %v16429_v42   ;;  %6039 = vperm.xlu0 %13137, %v16429_v42  }
 0x6bd   :  { %v5267_v43 = vadd.f32 %v5266_v18, %v5265_v61  ;;  %v5245_v59 = vrot.slane %v5221_v63, 7  ;;  %v4977_v0 = vadd.f32 %v4959_v26, %v4856_v46 }
 0x6bf   :  { %v5246_v28 = vsel %vm657_vm2, %v5243_v1, %v5245_v59  ;;  %v5052_v50 = vadd.f32 %v5043_v21, %v4977_v0 }
 0x6c0   :  { %v5268_v44 = vsel %vm78_vm0, %v5246_v28, 0.0 }
 0x6c1   :  { %v5269_v45 = vadd.f32 %v5268_v44, %v5267_v43 }
 0x6c2   :  { %13135 = vset.pattern.permute.xlu2 %v19424_v35 }
 0x6c3   :  { %6042 = vperm.xlu2 %13135, %v16457_v60  }
 0x6c4   :  { %v5094_v22 = vpop.permute.xlu1 %5093  ;;  %13138 = vset.pattern.permute.xlu1 %v19424_v35  ;;  %6051 = vperm.xlu0 %13137, %v16465_v17  }
 0x6c5   :  { %v5112_v58 = vadd.f32 %v5094_v22, %v5052_v50  ;;  %6045 = vperm.xlu1 %13138, %v16441_v16  }
 0x6c7   :  { %v5222_v41 = vadd.f32 %v5204_v2, %v5112_v58  ;;  %v19426_v2 = vmov 0  }
 0x6c9   :  { %v5247_v39 = vrot.slane %v5222_v41, 7 }
 0x6cb   :  { %v5248_v36 = vsel %vm657_vm2, %v5245_v59, %v5247_v39  ;;  %13139 = vset.pattern.permute.xlu2 %v19423_v48 }
 0x6cc   :  { %v5270_v5 = vsel %vm78_vm0, %v5248_v36, 0.0  ;;  %6198 = vperm.xlu2 %13139, %v16441_v16   ;;  %13143 = vset.pattern.permute.xlu0 %v19426_v2 }
 0x6cd   :  { %v5271_v31 = vadd.f32 %v5270_v5, %v5269_v45  ;;  %6048 = vperm.xlu1 %13138, %v16450_v12   ;;  %5785 = vperm.xlu0 %13143, %v16407_v57  }
 0x6cf   :  { %v5272_v47 = vrot.slane %v5271_v31, 4 }
 0x6d1   :  { %v5273_v24 = vadd.f32 %v5272_v47, %v5271_v31 }
 0x6d3   :  { %v5274_v52 = vrot.slane %v5273_v24, 2 }
 0x6d4   :  { %6201 = vperm.xlu2 %13139, %v16450_v12  }
 0x6d5   :  { %v5275_v14 = vadd.f32 %v5274_v52, %v5273_v24  ;;  %13140 = vset.pattern.permute.xlu1 %v19423_v48  ;;  %13147 = vset.pattern.permute.xlu0 %v19425_v27 }
 0x6d6   :  { %6204 = vperm.xlu1 %13140, %v16465_v17   ;;  %5939 = vperm.xlu0 %13147, %v16457_v60  }
 0x6d7   :  { %v5276_v49 = vrot.slane %v5275_v14, 1 }
 0x6d9   :  { %v5277_v54 = vadd.f32 %v5276_v49, %v5275_v14 }
 0x6db   :  { %v5278_v19 = vmul.f32 0.015625, %v5277_v54 }
 0x6dc   :  { %13141 = vset.pattern.permute.xlu2 %v19425_v27 }
 0x6dd   :  { %v16473_v9 = vsub.f32 %v16276_v55, %v5278_v19  ;;  %v16476_v51 = vsub.f32 %v16283_v11, %v5278_v19  ;;  %v16479_v8 = vsub.f32 %v16318_v34, %v5278_v19  ;;  %v16482_v7 = vsub.f32 %v16330_v40, %v5278_v19  ;;  %5927 = vperm.xlu2 %13141, %v16407_v57  }
 0x6de   :  { %v16485_v61 = vsub.f32 %v16362_v25, %v5278_v19  ;;  %v16488_v33 = vsub.f32 %v16395_v4, %v5278_v19  ;;  %v16491_v30 = vsub.f32 %v16418_v37, %v5278_v19  ;;  %v16493_v55 = vsub.f32 %v5221_v63, %v5278_v19  ;;  %13142 = vset.pattern.permute.xlu1 %v19425_v27 }
 0x6df   :  { %v16495_v53 = vsub.f32 %v5222_v41, %v5278_v19  ;;  %v5288_v11 = vmul.f32 %v16473_v9, %v16473_v9  ;;  %v5289_v34 = vmul.f32 %v16476_v51, %v16476_v51  ;;  %v5290_v40 = vmul.f32 %v16479_v8, %v16479_v8  ;;  %5930 = vperm.xlu1 %13142, %v16414_v38  }
 0x6e0   :  { %v5291_v25 = vmul.f32 %v16482_v7, %v16482_v7  ;;  %v5292_v4 = vmul.f32 %v16485_v61, %v16485_v61  ;;  %v5293_v37 = vmul.f32 %v16488_v33, %v16488_v33  ;;  %v5294_v13 = vmul.f32 %v16491_v30, %v16491_v30  ;;  %5942 = vperm.xlu0 %13147, %v16441_v16  }
 0x6e1   :  { %v5295_v23 = vmul.f32 %v16493_v55, %v16493_v55  ;;  %v5296_v1 = vmul.f32 %v16495_v53, %v16495_v53  ;;  %v5306_v3 = vrot.slane %v5288_v11, 7  ;;  %v5307_v32 = vrot.slane %v5289_v34, 7  ;;  %v12720_v11 = vld [vmem:[#allocation4 + $0x2fc] sm:$0xf]  ;;  %v11465_v34 = vld [vmem:[#allocation4 + $0x30c] sm:$0xf0] }
 0x6e2   :  { %v5309_v62 = vrot.slane %v5290_v40, 7  ;;  %v5311_v56 = vrot.slane %v5291_v25, 7  ;;  %v5313_v20 = vrot.slane %v5292_v4, 7  ;;  %v5315_v63 = vrot.slane %v5293_v37, 7  ;;  %v12721_v40 = vld [vmem:[#allocation4 + $0x304] sm:$0xf] }
 0x6e3   :  { %v5308_v18 = vsel %vm657_vm2, %v5306_v3, %v5307_v32  ;;  %v5317_v26 = vrot.slane %v5294_v13, 7  ;;  %v5319_v43 = vrot.slane %v5295_v23, 7  ;;  %v5321_v59 = vrot.slane %v5296_v1, 7  ;;  %v11473_v4 = vld [vmem:[#allocation4 + $0x314] sm:$0xf0] }
 0x6e4   :  { %v5310_v46 = vsel %vm657_vm2, %v5307_v32, %v5309_v62  ;;  %v5312_v15 = vsel %vm657_vm2, %v5309_v62, %v5311_v56  ;;  %v5314_v10 = vsel %vm657_vm2, %v5311_v56, %v5313_v20  ;;  %v5316_v28 = vsel %vm657_vm2, %v5313_v20, %v5315_v63  ;;  %v11463_v37 = vld [vmem:[#allocation4 + $0x2f8] sm:$0xf]  ;;  %v12722_v13 = vld [vmem:[#allocation4 + $0x308] sm:$0xf0]  ;;  %v11471_v32 = vld [vmem:[#allocation4 + $0x300] sm:$0xf] }
 0x6e5   :  { %v5318_v0 = vsel %vm657_vm2, %v5315_v63, %v5317_v26  ;;  %v5320_v44 = vsel %vm657_vm2, %v5317_v26, %v5319_v43  ;;  %v5322_v21 = vsel %vm657_vm2, %v5319_v43, %v5321_v59  ;;  %v5331_v45 = vsel %vm78_vm0, %v5308_v18, 0.0  ;;  %5933 = vperm.xlu2 %13141, %v16388_v6   ;;  %v12723_v62 = vld [vmem:[#allocation4 + $0x310] sm:$0xf0]  ;;  %v11445_v18 = vld [vmem:[#allocation4 + $0x2e4] sm:$0xf0] }
 0x6e6   :  { %v5332_v29 = vsel %vm78_vm0, %v5310_v46, 0.0  ;;  %v5334_v22 = vsel %vm78_vm0, %v5312_v15, 0.0  ;;  %v5336_v41 = vsel %vm78_vm0, %v5314_v10, 0.0  ;;  %v5338_v36 = vsel %vm78_vm0, %v5316_v28, 0.0  ;;  %v12715_v63 = vld [vmem:[#allocation4 + $0x2d4] sm:$0xf] }
 0x6e7   :  { %v5333_v50 = vadd.f32 %v5332_v29, %v5331_v45  ;;  %13144 = vset.pattern.permute.xlu1 %v19426_v2  ;;  %v5340_v31 = vsel %vm78_vm0, %v5318_v0, 0.0  ;;  %v5342_v24 = vsel %vm78_vm0, %v5320_v44, 0.0  ;;  %v5344_v14 = vsel %vm78_vm0, %v5322_v21, 0.0  ;;  %v12716_v26 = vld [vmem:[#allocation4 + $0x2dc] sm:$0xf] }
 0x6e8   :  { %5789 = vperm.xlu1 %13144, %v16414_v38   ;;  %v11468_v25 = vor.u32 %v12720_v11, %v11465_v34  ;;  %v11476_v1 = vor.u32 %v12721_v40, %v11473_v4  ;;  %v11464_v3 = vor.u32 %v12722_v13, %v11463_v37  ;;  %v11472_v56 = vor.u32 %v12723_v62, %v11471_v32  ;;  %v11453_v59 = vld [vmem:[#allocation4 + $0x2ec] sm:$0xf0]  ;;  %v12717_v15 = vld [vmem:[#allocation4 + $0x2e0] sm:$0xf0]  ;;  %v11451_v44 = vld [vmem:[#allocation4 + $0x2d8] sm:$0xf] }
 0x6e9   :  { %v5335_v58 = vadd.f32 %v5334_v22, %v5333_v50  ;;  %v11448_v43 = vor.u32 %v12715_v63, %v11445_v18  ;;  %v11443_v46 = vld [vmem:[#allocation4 + $0x2d0] sm:$0xf]  ;;  %v11456_v28 = vor.u32 %v12716_v26, %v11453_v59  ;;  %v12718_v21 = vld [vmem:[#allocation4 + $0x2e8] sm:$0xf0]  ;;  %v11425_v22 = vld [vmem:[#allocation4 + $0x2bc] sm:$0xf0]  ;;  %5945 = vperm.xlu0 %13147, %v16450_v12  }
 0x6ea   :  { %5614 = vmatpush.bf16.msrb.mxu1 %v11468_v25  ;;  %5672 = vmatpush.bf16.msrb.mxu3 %v11476_v1  ;;  %v11444_v0 = vor.u32 %v12717_v15, %v11443_v46  ;;  %v11452_v45 = vor.u32 %v12718_v21, %v11451_v44  ;;  %v12710_v50 = vld [vmem:[#allocation4 + $0x2ac] sm:$0xf]  ;;  %v11413_v25 = vld [vmem:[#allocation4 + $0x29c] sm:$0xf0]  ;;  %v12707_v13 = vld [vmem:[#allocation4 + $0x290] sm:$0xf0] }
 0x6eb   :  { %v5337_v39 = vadd.f32 %v5336_v41, %v5335_v58  ;;  %5585 = vmatpush.bf16.msrb.mxu0 %v11464_v3  ;;  %5643 = vmatpush.bf16.msrb.mxu2 %v11472_v56  ;;  %v12711_v58 = vld [vmem:[#allocation4 + $0x2b4] sm:$0xf]  ;;  %v11428_v41 = vor.u32 %v12710_v50, %v11425_v22  ;;  %v12706_v11 = vld [vmem:[#allocation4 + $0x28c] sm:$0xf]  ;;  %v11403_v4 = vld [vmem:[#allocation4 + $0x280] sm:$0xf] }
 0x6ec   :  { %v11416_v37 = vor.u32 %v12706_v11, %v11413_v25  ;;  %v12708_v1 = vld [vmem:[#allocation4 + $0x298] sm:$0xf0]  ;;  %v11404_v3 = vor.u32 %v12707_v13, %v11403_v4  ;;  %v6027_v63 = vld [vmem:[#allocation2 + $0x30] sm:$0x80]  ;;  %v19427_v59 = vmov 6  }
 0x6ed   :  { %v5339_v5 = vadd.f32 %v5338_v36, %v5337_v39  ;;  %v11433_v39 = vld [vmem:[#allocation4 + $0x2c4] sm:$0xf0]  ;;  %13145 = vset.pattern.permute.xlu2 %v19426_v2 }
 0x6ee   :  { %5615 = vmatpush.bf16.msrb.mxu1 %v11448_v43  ;;  %5673 = vmatpush.bf16.msrb.mxu3 %v11456_v28  ;;  %v11423_v36 = vld [vmem:[#allocation4 + $0x2a8] sm:$0xf] }
 0x6ef   :  { %v5341_v47 = vadd.f32 %v5340_v31, %v5339_v5  ;;  %5586 = vmatpush.bf16.msrb.mxu0 %v11444_v0  ;;  %5644 = vmatpush.bf16.msrb.mxu2 %v11452_v45  ;;  %v12712_v5 = vld [vmem:[#allocation4 + $0x2b8] sm:$0xf0]  ;;  %v13192_v21 = vld [vmem:[#allocation8 + $0x3] ss:$0 sm:$0xff] }
 0x6f0   :  { %13146 = vset.pattern.permute.xlu1 %v19425_v27  ;;  %5793 = vperm.xlu2 %13145, %v16388_v6  }
 0x6f1   :  { %v5343_v52 = vadd.f32 %v5342_v24, %v5341_v47  ;;  %5936 = vperm.xlu1 %13146, %v16429_v42   ;;  %v11436_v47 = vor.u32 %v12711_v58, %v11433_v39  ;;  %v11424_v24 = vor.u32 %v12712_v5, %v11423_v36  ;;  %5948 = vperm.xlu0 %13147, %v16465_v17  }
 0x6f2   :  { %5616 = vmatpush.bf16.msrb.mxu1 %v11428_v41 }
 0x6f3   :  { %v5345_v49 = vadd.f32 %v5344_v14, %v5343_v52  ;;  %v11431_v52 = vld [vmem:[#allocation4 + $0x2b0] sm:$0xf]  ;;  %v12713_v14 = vld [vmem:[#allocation4 + $0x2c0] sm:$0xf0]  ;;  %5674 = vmatpush.bf16.msrb.mxu3 %v11436_v47  ;;  %5587 = vmatpush.bf16.msrb.mxu0 %v11424_v24 }
 0x6f5   :  { %v5346_v54 = vrot.slane %v5345_v49, 4 }
 0x6f7   :  { %v5347_v19 = vadd.f32 %v5346_v54, %v5345_v49  ;;  %v11432_v49 = vor.u32 %v12713_v14, %v11431_v52  ;;  %v12705_v54 = vld [vmem:[#allocation4 + $0x284] sm:$0xf]  ;;  %5675 = vmatpush.bf16.msrb.mxu3 %v11416_v37  ;;  %5588 = vmatpush.bf16.msrb.mxu0 %v11404_v3 }
 0x6f8   :  { %5797 = vperm.xlu2 %13145, %v16429_v42  }
 0x6f9   :  { %v5348_v23 = vrot.slane %v5347_v19, 2  ;;  %13148 = vset.pattern.permute.xlu1 %v19426_v2  ;;  %5645 = vmatpush.bf16.msrb.mxu2 %v11432_v49 }
 0x6fa   :  { %5801 = vperm.xlu1 %13148, %v16457_v60   ;;  %13150 = vset.pattern.permute.xlu0 %v19427_v59 }
 0x6fb   :  { %v5349_v20 = vadd.f32 %v5348_v23, %v5347_v19  ;;  %v11405_v19 = vld [vmem:[#allocation4 + $0x294] sm:$0xf0]  ;;  %v11411_v23 = vld [vmem:[#allocation4 + $0x288] sm:$0xf]  ;;  %6314 = vperm.xlu0 %13150, %v16414_v38  }
 0x6fc   :  { %v11408_v40 = vor.u32 %v12705_v54, %v11405_v19  ;;  %v11412_v32 = vor.u32 %v12708_v1, %v11411_v23 }
 0x6fd   :  { %v5350_v10 = vrot.slane %v5349_v20, 1 }
 0x6fe   :  { %5617 = vmatpush.bf16.msrb.mxu1 %v11408_v40  ;;  %5646 = vmatpush.bf16.msrb.mxu2 %v11412_v32 }
 0x6ff   :  { %v5351_v29 = vadd.f32 %v5350_v10, %v5349_v20  ;;  %v5365_v10 = vld [vmem:[#allocation6 + $0x3] sm:$0x1] }
 0x700   :  { %13149 = vset.pattern.permute.xlu2 %v19427_v59 }
 0x701   :  { %v5352_v31 = vmul.f32 0.015625, %v5351_v29 }
 0x702   :  { %5805 = vperm.xlu1 %13148, %v16441_v16  }
 0x703   :  { %v5353_v34 = vadd.f32 1e-05, %v5352_v31  ;;  %v16556_v18 = vpop.permute.xlu2 %6030  ;;  %6326 = vperm.xlu0 %13150, %v16441_v16  }
 0x704   :  { %v6053_v43 = vrot.slane %v16556_v18, 1 }
 0x705   :  { %13201 = vrsqrt.f32 %v5353_v34  ;;  %vm5360_vm15 = vweird.f32 %v5353_v34 }
 0x706   :  { %v6077_v15 = vmul.f32 %v6053_v43, %v6027_v63 }
 0x70a   :  { %5809 = vperm.xlu1 %13148, %v16450_v12  }
 0x70b   :  { %v13202_v62 = vpop.eup %13201  ;;  %6329 = vperm.xlu0 %13150, %v16450_v12  }
 0x70c   :  { %v5355_v56 = vmul.f32 %v13202_v62, %v5353_v34  ;;  %vm5361_vm14 = vweird.f32 %v13202_v62 }
 0x70d   :  { %vm5362_vm4 = vmor %vm5360_vm15, %vm5361_vm14 }
 0x70e   :  { %v5356_v20 = vmul.f32 %v13202_v62, %v5355_v56 }
 0x710   :  { %v5357_v26 = vmul.f32 0.5, %v5356_v20 }
 0x712   :  { %v5358_v46 = vsub.f32 1.5, %v5357_v26  ;;  %6095 = vrot.lane.b32.xlu1 %v6077_v15, %s13304_s0 }
 0x714   :  { %v5359_v28 = vmul.f32 %v13202_v62, %v5358_v46 }
 0x716   :  { %v5363_v0 = vsel %vm5362_vm4, %v13202_v62, %v5359_v28 }
 0x717   :  { %v5366_v44 = vmul.f32 %v5365_v10, %v5363_v0 }
 0x719   :  { %v5367_v45 = vperm.slane %v5366_v44, 0 }
 0x71a   :  { %5813 = vperm.xlu1 %13148, %v16465_v17  }
 0x71b   :  { %v5376_v29 = vmul.f32 %v5367_v45, %v16495_v53  ;;  %v5368_v50 = vmul.f32 %v5367_v45, %v16473_v9  ;;  %v5369_v22 = vmul.f32 %v5367_v45, %v16476_v51  ;;  %v5370_v58 = vmul.f32 %v5367_v45, %v16479_v8 }
 0x71c   :  { %v5371_v41 = vmul.f32 %v5367_v45, %v16482_v7  ;;  %v5372_v39 = vmul.f32 %v5367_v45, %v16485_v61  ;;  %v5373_v36 = vmul.f32 %v5367_v45, %v16488_v33  ;;  %v5374_v5 = vmul.f32 %v5367_v45, %v16491_v30 }
 0x71d   :  { %v5390_v31 = vadd.f32 %v13192_v21, %v5376_v29  ;;  %v5382_v47 = vadd.f32 %v13192_v21, %v5368_v50  ;;  %v5383_v24 = vadd.f32 %v13192_v21, %v5369_v22  ;;  %v5384_v52 = vadd.f32 %v13192_v21, %v5370_v58  ;;  %v16593_v50 = vld [vmem:[#allocation2 + $0x8] sm:$0xff]  ;;  %v16598_v58 = vpop.permute.xlu1 %6036 }
 0x71e   :  { %v5385_v53 = vadd.f32 %v13192_v21, %v5371_v41  ;;  %v5386_v9 = vadd.f32 %v13192_v21, %v5372_v39  ;;  %v5387_v14 = vadd.f32 %v13192_v21, %v5373_v36  ;;  %v5375_v51 = vmul.f32 %v5367_v45, %v16493_v55 }
 0x71f   :  { %v5395_v8 = vpack.c.bf16 %v5390_v31, %v5390_v31  ;;  %v5391_v7 = vpack.c.bf16 %v5383_v24, %v5382_v47  ;;  %v5388_v61 = vadd.f32 %v13192_v21, %v5374_v5  ;;  %v16596_v22 = vrot.slane %v16593_v50, 1  ;;  %v12724_v31 = vld [vmem:[#allocation4 + $0x318] sm:$0xf0]  ;;  %v11459_v47 = vld [vmem:[#allocation4 + $0x2e0] sm:$0xf] }
 0x720   :  { %v5392_v33 = vpack.c.bf16 %v5385_v53, %v5384_v52  ;;  %v5393_v30 = vpack.c.bf16 %v5387_v14, %v5386_v9  ;;  %v5389_v49 = vadd.f32 %v13192_v21, %v5375_v51  ;;  %v19428_v36 = vmov 8   ;;  %v12719_v52 = vld [vmem:[#allocation4 + $0x2f0] sm:$0xf0]  ;;  %v11439_v9 = vld [vmem:[#allocation4 + $0x2b8] sm:$0xf] }
 0x721   :  { %v5457_v54 = vshrl.u32 %v5395_v8, 16  ;;  %v5460_v19 = vshll.u32 %v5395_v8, 16  ;;  %v5422_v11 = vshrl.u32 %v5391_v7, 16  ;;  %v5425_v34 = vshll.u32 %v5391_v7, 16  ;;  %5881 = vrot.lane.b32.xlu2 %v16596_v22, %s13304_s0  ;;  %13157 = vset.pattern.permute.xlu0 %v19428_v36  ;;  %v12714_v14 = vld [vmem:[#allocation4 + $0x2c8] sm:$0xf0] }
 0x722   :  { %v5430_v40 = vshrl.u32 %v5392_v33, 16  ;;  %v5433_v25 = vshll.u32 %v5392_v33, 16  ;;  %v5439_v4 = vshrl.u32 %v5393_v30, 16  ;;  %v5442_v37 = vshll.u32 %v5393_v30, 16  ;;  %13151 = vset.pattern.permute.xlu1 %v19427_v59  ;;  %6449 = vperm.xlu0 %13157, %v16414_v38   ;;  %v11419_v8 = vld [vmem:[#allocation4 + $0x290] sm:$0xf]  ;;  %v16642_v33 = vpop.permute.xlu0 %6195 }
 0x723   :  { %v5424_v13 = vrot.slane %v5422_v11, 3  ;;  %v5427_v23 = vrot.slane %v5425_v34, 4  ;;  %v5394_v1 = vpack.c.bf16 %v5389_v49, %v5388_v61  ;;  %v5459_v55 = vrot.slane %v5457_v54, 3  ;;  %6317 = vperm.xlu1 %13151, %v16388_v6   ;;  %v12709_v7 = vld [vmem:[#allocation4 + $0x2a0] sm:$0xf0]  ;;  %v16671_v49 = vpop.permute.xlu2 %6183 }
 0x724   :  { %v5432_v3 = vrot.slane %v5430_v40, 3  ;;  %v5435_v32 = vrot.slane %v5433_v25, 4  ;;  %v5441_v62 = vrot.slane %v5439_v4, 3  ;;  %v5444_v56 = vrot.slane %v5442_v37, 4 }
 0x725   :  { %v5428_v20 = vor.u32 %v5427_v23, %v5424_v13  ;;  %v5448_v63 = vshrl.u32 %v5394_v1, 16  ;;  %v5451_v26 = vshll.u32 %v5394_v1, 16  ;;  %v5462_v46 = vrot.slane %v5460_v19, 4 }
 0x726   :  { %v5436_v15 = vor.u32 %v5435_v32, %v5432_v3  ;;  %v5445_v10 = vor.u32 %v5444_v56, %v5441_v62  ;;  %v16611_v5 = vpop.permute.xlu1 %6186  ;;  %v11460_v38 = vor.u32 %v12719_v52, %v11459_v47  ;;  %v11440_v51 = vor.u32 %v12714_v14, %v11439_v9 }
 0x727   :  { %v5450_v28 = vrot.slane %v5448_v63, 3  ;;  %v5453_v0 = vrot.slane %v5451_v26, 4  ;;  %v5463_v44 = vor.u32 %v5462_v46, %v5459_v55 }
 0x728   :  { %v16580_v21 = vsel %vm1451_vm7, %v5428_v20, %v5436_v15  ;;  %v16583_v45 = vsel %vm1451_vm7, %v5436_v15, %v5445_v10 }
 0x729   :  { %11481 = vmatmul.msk.bf16.vlgmr.msrb.gmra.mxu0 %vm78_vm0, %v16580_v21  ;;  %11485 = vmatmul.msk.bf16.vlgmr.msrb.gmra.mxu1 %vm78_vm0, %v16580_v21  ;;  %v5454_v29 = vor.u32 %v5453_v0, %v5450_v28 }
 0x72a   :  { %11489 = vmatmul.msk.bf16.vlgmr.msrb.gmra.mxu2 %vm78_vm0, %v16580_v21  ;;  %11493 = vmatmul.msk.bf16.vlgmr.msrb.gmra.mxu3 %vm78_vm0, %v16580_v21 }
 0x72b   :  { %v16601_v41 = vsel %vm1451_vm7, %v5445_v10, %v5454_v29  ;;  %v16604_v39 = vsel %vm1451_vm7, %v5454_v29, %v5463_v44  ;;  %13153 = vset.pattern.permute.xlu1 %v19428_v36  ;;  %6311 = vperm.xlu2 %13149, %v16407_v57   ;;  %v16680_v11 = vpop.permute.xlu2 %6189 }
 0x72c   :  { %6452 = vperm.xlu1 %13153, %v16388_v6   ;;  %v11479_v6 = vld [vmem:[#allocation4 + $0x308] sm:$0xf]  ;;  %6455 = vperm.xlu0 %13157, %v16429_v42  }
 0x72d   :  { %v11480_v24 = vor.u32 %v12724_v31, %v11479_v6  ;;  %v6056_v6 = vrot.slane %v16598_v58, 1 }
 0x72e   :  { %v16626_v53 = vpop.permute.xlu1 %6192 }
 0x72f   :  { %5701 = vmatpush.bf16.msra.mxu0 %v11480_v24 }
 0x733   :  { %13152 = vset.pattern.permute.xlu2 %v19428_v36  ;;  %5702 = vmatpush.bf16.msra.mxu0 %v11460_v38 }
 0x734   :  { %13155 = vset.pattern.permute.xlu1 %v19427_v59  ;;  %6446 = vperm.xlu2 %13152, %v16407_v57   ;;  %v11420_v57 = vor.u32 %v12709_v7, %v11419_v8  ;;  %v6207_v8 = vrot.slane %v16611_v5, 7  ;;  %v6206_v7 = vrot.slane %v16671_v49, 7 }
 0x735   :  { %6323 = vperm.xlu1 %13155, %v16457_v60   ;;  %6467 = vperm.xlu0 %13157, %v16465_v17  }
 0x736   :  { %v6208_v49 = vsel %vm657_vm2, %v6206_v7, %v6207_v8 }
 0x737   :  { %5703 = vmatpush.bf16.msra.mxu0 %v11440_v51  ;;  %v16634_v61 = vpop.permute.xlu1 %6045 }
 0x739   :  { %11482 = vmatmul.msk.bf16.gmra.mxu0 %vm78_vm0, %v16583_v45  ;;  %11486 = vmatmul.msk.bf16.gmra.mxu1 %vm78_vm0, %v16583_v45 }
 0x73a   :  { %11490 = vmatmul.msk.bf16.gmra.mxu2 %vm78_vm0, %v16583_v45  ;;  %11494 = vmatmul.msk.bf16.gmra.mxu3 %vm78_vm0, %v16583_v45 }
 0x73b   :  { %5704 = vmatpush.bf16.msra.mxu0 %v11420_v57 }
 0x73c   :  { %13154 = vset.pattern.permute.xlu2 %v19427_v59 }
 0x73d   :  { %13158 = vset.pattern.permute.xlu1 %v19428_v36  ;;  %6320 = vperm.xlu2 %13154, %v16429_v42  }
 0x73e   :  { %6464 = vperm.xlu1 %13158, %v16450_v12   ;;  %13165 = vset.pattern.permute.xlu0 %v19423_v48  ;;  %v6034_v12 = vpop.permute.xlu0 %6033 }
 0x73f   :  { %v16651_v42 = vpop.permute.xlu1 %6048  ;;  %v6054_v28 = vrot.slane %v6034_v12, 1 }
 0x741   :  { %v6055_v0 = vsel %vm521_vm1, %v6053_v43, %v6054_v28  ;;  %v6057_v24 = vsel %vm521_vm1, %v6054_v28, %v6056_v6 }
 0x745   :  { %13156 = vset.pattern.permute.xlu2 %v19428_v36 }
 0x746   :  { %13161 = vset.pattern.permute.xlu1 %v19424_v35  ;;  %6458 = vperm.xlu2 %13156, %v16457_v60   ;;  %v16659_v30 = vpop.permute.xlu0 %6039 }
 0x747   :  { %v6058_v51 = vrot.slane %v16659_v30, 1 }
 0x748   :  { %v16665_v60 = vpop.permute.xlu1 %6204 }
 0x749   :  { %11483 = vmatmul.msk.bf16.gmra.mxu0 %vm78_vm0, %v16601_v41  ;;  %11487 = vmatmul.msk.bf16.gmra.mxu1 %vm78_vm0, %v16601_v41 }
 0x74a   :  { %11491 = vmatmul.msk.bf16.gmra.mxu2 %vm78_vm0, %v16601_v41  ;;  %11495 = vmatmul.msk.bf16.gmra.mxu3 %vm78_vm0, %v16601_v41 }
 0x74e   :  { %6461 = vperm.xlu2 %13156, %v16441_v16   ;;  %v16669_v16 = vpop.permute.xlu0 %6051 }
 0x751   :  { %v16673_v54 = vpop.permute.xlu1 %5930 }
 0x756   :  { %13159 = vset.pattern.permute.xlu2 %v19427_v59  ;;  %v16678_v19 = vpop.permute.xlu0 %5785 }
 0x757   :  { %6332 = vperm.xlu2 %13159, %v16465_v17   ;;  %v16686_v17 = vpop.permute.xlu2 %6042 }
 0x759   :  { %11484 = vmatmul.msk.bf16.gmra.mxu0 %vm78_vm0, %v16604_v39  ;;  %11488 = vmatmul.msk.bf16.gmra.mxu1 %vm78_vm0, %v16604_v39 }
 0x75a   :  { %11492 = vmatmul.msk.bf16.gmra.mxu2 %vm78_vm0, %v16604_v39  ;;  %11496 = vmatmul.msk.bf16.gmra.mxu3 %vm78_vm0, %v16604_v39  ;;  %v16682_v34 = vpop.permute.xlu1 %5789 }
 0x75e   :  { %v16684_v40 = vpop.permute.xlu0 %5939 }
 0x75f   :  { %13160 = vset.pattern.permute.xlu2 %v19424_v35  ;;  %v16694_v37 = vpop.permute.xlu2 %6198 }
 0x763   :  { %v16688_v25 = vpop.permute.xlu1 %5936 }
 0x766   :  { %v16692_v4 = vpop.permute.xlu0 %5942 }
 0x767   :  { %v19233_v1 = vrot.slane %v16692_v4, 7  ;;  %v16706_v32 = vpop.permute.xlu2 %6201 }
 0x769   :  { %11497 = vmatmul.msk.bf16.vlgmr.msra.gmra.mxu0 %vm78_vm0, %v16580_v21 }
 0x76c   :  { %v16696_v13 = vpop.permute.xlu1 %5801 }
 0x76e   :  { %v5946_v23 = vpop.permute.xlu0 %5945 }
 0x76f   :  { %v5961_v55 = vrot.slane %v5946_v23, 7  ;;  %v16718_v26 = vpop.permute.xlu2 %5927 }
 0x771   :  { %v16702_v3 = vsel %vm657_vm2, %v19233_v1, %v5961_v55 }
 0x774   :  { %v16708_v62 = vpop.permute.xlu1 %5805 }
 0x776   :  { %v16710_v56 = vpop.permute.xlu0 %5948 }
 0x777   :  { %v19232_v20 = vrot.slane %v16710_v56, 7  ;;  %v16724_v15 = vpop.permute.xlu2 %5933 }
 0x779   :  { %11498 = vmatmul.msk.bf16.gmra.mxu0 %vm78_vm0, %v16583_v45  ;;  %v16716_v63 = vsel %vm657_vm2, %v5961_v55, %v19232_v20 }
 0x77c   :  { %v16720_v46 = vpop.permute.xlu1 %5809 }
 0x77d   :  { %19429 = vst [vmem:[#allocation14_spill] sm:$0xff] %v16720_v46 }
 0x77e   :  { %v16746_v43 = vpop.permute.xlu0 %6314 }
 0x77f   :  { %v19239_v20 = vrot.slane %v16746_v43, 1 }
 0x784   :  { %v16726_v10 = vpop.permute.xlu1 %6095 }
 0x786   :  { %v16768_v23 = vpop.permute.xlu0 %6326 }
 0x787   :  { %19432 = vst [vmem:[#allocation15_spill] sm:$0xff] %v16768_v23 }
 0x789   :  { %11499 = vmatmul.msk.bf16.gmra.mxu0 %vm78_vm0, %v16601_v41  ;;  %v16737_v41 = vpop.permute.xlu2 %5793 }
 0x78c   :  { %v16744_v18 = vpop.permute.xlu1 %5813 }
 0x78d   :  { %19430 = vst [vmem:[#allocation11_spill] sm:$0xff] %v16744_v18 }
 0x791   :  { %v16764_v57 = vpop.permute.xlu2 %5797 }
 0x795   :  { %v16766_v12 = vpop.permute.xlu1 %6317 }
 0x796   :  { %19431 = vst [vmem:[#allocation19_spill] sm:$0xff] %v16766_v12 }
 0x799   :  { %11500 = vmatmul.msk.bf16.gmra.mxu0 %vm78_vm0, %v16604_v39 }
 0x7a6   :  { %v16731_v44 = vpop.f32.mrf.mxu0  ;;  %v16733_v21 = vpop.f32.mrf.mxu1 }
 0x7a7   :  { %v6078_v45 = vmul.f32 %v6055_v0, %v16733_v21  ;;  %v5867_v29 = vrot.slane %v16731_v44, 1 }
 0x7a9   :  { %6097 = vrot.lane.b32.xlu2 %v6078_v45, %s13304_s0  ;;  %v5868_v39 = vsel %vm521_vm1, %v16596_v22, %v5867_v29  ;;  %v6059_v45 = vsel %vm521_vm1, %v6056_v6, %v6058_v51 }
 0x7aa   :  { %5883 = vrot.lane.b32.xlu1 %v5868_v39, %s13304_s0  ;;  %v19238_v39 = vrot.slane %v16766_v12, 1 }
 0x7ac   :  { %v6338_v6 = vsel %vm521_vm1, %v19239_v20, %v19238_v39  ;;  %v16816_v20 = vpop.permute.xlu2 %5881 }
 0x7ad   :  { %v16748_v31 = vpop.f32.mrf.mxu2  ;;  %v5677_v47 = vpop.f32.mrf.mxu3 }
 0x7ae   :  { %5728 = vst [vmem:[#allocation2 + $0x60] sm:$0xff] %v16748_v31  ;;  %v16752_v52 = vpop.f32.mrf.mxu0  ;;  %v16754_v38 = vpop.f32.mrf.mxu1 }
 0x7af   :  { %5729 = vst [vmem:[#allocation2 + $0x68] sm:$0xff] %v5677_v47  ;;  %v6079_v58 = vmul.f32 %v6057_v24, %v16754_v38  ;;  %v5869_v9 = vrot.slane %v16752_v52, 1 }
 0x7b1   :  { %6099 = vrot.lane.b32.xlu0 %v6079_v58, %s13304_s0  ;;  %v5870_v14 = vsel %vm521_vm1, %v5867_v29, %v5869_v9 }
 0x7b2   :  { %5885 = vrot.lane.b32.xlu2 %v5870_v14, %s13304_s0 }
 0x7b4   :  { %v16855_v12 = vpop.permute.xlu2 %6311 }
 0x7b5   :  { %v16770_v55 = vpop.f32.mrf.mxu2  ;;  %v16772_v28 = vpop.f32.mrf.mxu3  ;;  %v6180_v0 = vld [vmem:[#allocation2 + $0x60] sm:$0xfe] }
 0x7b6   :  { %v16775_v30 = vpop.f32.mrf.mxu0  ;;  %v16777_v29 = vpop.f32.mrf.mxu1  ;;  %v6230_v5 = vmul.f32 %v6206_v7, %v6180_v0  ;;  %v6385_v58 = vrot.slane %v16772_v28, 1  ;;  %v16784_v14 = vmul.f32 %v6208_v49, %v16770_v55 }
 0x7b7   :  { %v6080_v47 = vmul.f32 %v6059_v45, %v16777_v29  ;;  %v16796_v0 = vpop.permute.xlu0 %6329  ;;  %v5871_v49 = vrot.slane %v16775_v30, 1 }
 0x7b8   :  { %v6248_v24 = vrot.slane %v6230_v5, 2  ;;  %19433 = vst [vmem:[#allocation24_spill] sm:$0xff] %v16796_v0  ;;  %v19244_v1 = vrot.slane %v16796_v0, 1  ;;  %v19436_v35 = vrot.slane %v16784_v14, 2  ;;  %v6060_v0 = vrot.slane %v16686_v17, 1 }
 0x7b9   :  { %6101 = vrot.lane.b32.xlu1 %v6080_v47, %s13304_s0  ;;  %v19245_v47 = vrot.slane %v16768_v23, 1  ;;  %v19246_v23 = vrot.slane %v16684_v40, 7 }
 0x7ba   :  { %6265 = vrot.lane.b32.xlu0 %v6248_v24, %s13304_s0  ;;  %6400 = vrot.lane.b32.xlu2 %v6385_v58, %s13304_s0  ;;  %v6250_v48 = vsel %vm700_vm3, %v6248_v24, %v19436_v35  ;;  %v19437_v35 = vrot.slane %v16692_v4, 7  ;;  %v6061_v4 = vsel %vm521_vm1, %v6058_v51, %v6060_v0 }
 0x7bb   :  { %v16814_v39 = vsel %vm521_vm1, %v19245_v47, %v19244_v1  ;;  %v6209_v1 = vrot.slane %v16680_v11, 7 }
 0x7bd   :  { %v16798_v45 = vpop.f32.mrf.mxu2  ;;  %v5682_v5 = vpop.f32.mrf.mxu3 }
 0x7be   :  { %v16803_v36 = vpop.f32.mrf.mxu0  ;;  %v16805_v59 = vpop.f32.mrf.mxu1  ;;  %v6386_v2 = vrot.slane %v5682_v5, 1  ;;  %v16807_v27 = vmul.f32 %v6338_v6, %v5682_v5  ;;  %v5872_v6 = vsel %vm521_vm1, %v5869_v9, %v5871_v49  ;;  %v19247_v5 = vrot.slane %v16634_v61, 1 }
 0x7bf   :  { %19434 = vst [vmem:[#allocation17_spill] sm:$0xff] %v16803_v36 }
 0x7c0   :  { %19435 = vst [vmem:[#allocation23_spill] sm:$0xff] %v16807_v27  ;;  %v6387_v7 = vsel %vm521_vm1, %v6385_v58, %v6386_v2  ;;  %v6211_v58 = vrot.slane %v16626_v53, 7  ;;  %v6063_v17 = vsel %vm521_vm1, %v6060_v0, %v19247_v5  ;;  %v6210_v5 = vsel %vm657_vm2, %v6207_v8, %v6209_v1 }
 0x7c1   :  { %6267 = vrot.lane.b32.xlu1 %v6250_v48, %s13304_s0  ;;  %v5960_v48 = vsel %vm657_vm2, %v19246_v23, %v19437_v35  ;;  %v6081_v23 = vmul.f32 %v6061_v4, %v16805_v59  ;;  %v6232_v51 = vmul.f32 %v6210_v5, %v16798_v45 }
 0x7c2   :  { %6402 = vrot.lane.b32.xlu0 %v6387_v7, %s13304_s0  ;;  %5887 = vrot.lane.b32.xlu2 %v5872_v6, %s13304_s0  ;;  %v6212_v11 = vsel %vm657_vm2, %v6209_v1, %v6211_v58 }
 0x7c3   :  { %v6251_v8 = vrot.slane %v6232_v51, 2 }
 0x7c5   :  { %v16836_v9 = vpop.f32.mrf.mxu2  ;;  %v16838_v24 = vpop.f32.mrf.mxu3 }
 0x7c6   :  { %19438 = vst [vmem:[#allocation20_spill] sm:$0xff] %v16838_v24  ;;  %v16843_v7 = vpop.f32.mrf.mxu0  ;;  %v5629_v6 = vpop.f32.mrf.mxu1  ;;  %v6388_v53 = vrot.slane %v16838_v24, 1  ;;  %v6233_v46 = vmul.f32 %v6212_v11, %v16836_v9  ;;  %v19442_v24 = vrot.slane %v16784_v14, 2 }
 0x7c7   :  { %19439 = vst [vmem:[#allocation22_spill] sm:$0xff] %v16843_v7  ;;  %v6082_v47 = vmul.f32 %v6063_v17, %v5629_v6  ;;  %v16848_v18 = vmul.f32 %v5960_v48, %v5629_v6 }
 0x7c8   :  { %v6389_v35 = vsel %vm521_vm1, %v6386_v2, %v6388_v53  ;;  %v6253_v0 = vrot.slane %v6233_v46, 2  ;;  %v5873_v2 = vrot.slane %v16803_v36, 1 }
 0x7c9   :  { %19440 = vst [vmem:[#allocation18_spill] sm:$0xff] %v16848_v18  ;;  %6404 = vrot.lane.b32.xlu1 %v6389_v35, %s13304_s0  ;;  %v19249_v5 = vrot.slane %v16848_v18, 2  ;;  %v6213_v35 = vrot.slane %v16642_v33, 7  ;;  %v6252_v18 = vsel %vm700_vm3, %v19442_v24, %v6251_v8 }
 0x7ca   :  { %6105 = vrot.lane.b32.xlu0 %v6082_v47, %s13304_s0  ;;  %6103 = vrot.lane.b32.xlu2 %v6081_v23, %s13304_s0  ;;  %v6254_v23 = vsel %vm700_vm3, %v6251_v8, %v6253_v0  ;;  %v5874_v46 = vsel %vm521_vm1, %v5871_v49, %v5873_v2  ;;  %v6064_v8 = vrot.slane %v16651_v42, 1 }
 0x7cb   :  { %v6214_v33 = vsel %vm657_vm2, %v6211_v58, %v6213_v35 }
 0x7cd   :  { %v16860_v48 = vpop.f32.mrf.mxu3 }
 0x7ce   :  { %v16863_v17 = vpop.f32.mrf.mxu0  ;;  %v5631_v6 = vpop.f32.mrf.mxu1  ;;  %v19250_v1 = vrot.slane %v16860_v48, 1 }
 0x7cf   :  { %v5980_v11 = vmul.f32 %v16702_v3, %v5631_v6  ;;  %v19255_v51 = vrot.slane %v16863_v17, 1 }
 0x7d0   :  { %v6391_v47 = vsel %vm521_vm1, %v6388_v53, %v19250_v1  ;;  %v16882_v53 = vpop.permute.xlu2 %6446 }
 0x7d1   :  { %6271 = vrot.lane.b32.xlu1 %v6254_v23, %s13304_s0  ;;  %v6003_v4 = vrot.slane %v5980_v11, 2  ;;  %v16885_v23 = vpop.f32.mrf.mxu2 }
 0x7d2   :  { %6406 = vrot.lane.b32.xlu0 %v6391_v47, %s13304_s0  ;;  %5889 = vrot.lane.b32.xlu2 %v5874_v46, %s13304_s0  ;;  %v5875_v46 = vrot.slane %v16843_v7, 1 }
 0x7d3   :  { %v16880_v3 = vsel %vm700_vm3, %v19249_v5, %v6003_v4 }
 0x7d4   :  { %19441 = vst [vmem:[#allocation21_spill] sm:$0xff] %v16880_v3  ;;  %v5878_v1 = vsel %vm521_vm1, %v5875_v46, %v19255_v51  ;;  %v16899_v3 = vmul.f32 %v6214_v33, %v16885_v23  ;;  %v5876_v24 = vsel %vm521_vm1, %v5873_v2, %v5875_v46  ;;  %v19446_v2 = vrot.slane %v16710_v56, 7 }
 0x7d5   :  { %v16887_v49 = vpop.f32.mrf.mxu3 }
 0x7d6   :  { %v16889_v11 = vpop.f32.mrf.mxu0  ;;  %v5634_v47 = vpop.f32.mrf.mxu1 }
 0x7d7   :  { %5756 = vst [vmem:[#allocation2 + $0x140] sm:$0xff] %v16889_v11  ;;  %v5981_v5 = vmul.f32 %v16716_v63, %v5634_v47  ;;  %v19256_v63 = vrot.slane %v16899_v3, 2 }
 0x7d9   :  { %5893 = vrot.lane.b32.xlu1 %v5878_v1, %s13304_s0  ;;  %v6005_v7 = vrot.slane %v5981_v5, 2  ;;  %v16916_v1 = vpop.permute.xlu2 %6320  ;;  %v16921_v14 = vpop.f32.mrf.mxu2 }
 0x7da   :  { %6269 = vrot.lane.b32.xlu2 %v6252_v18, %s13304_s0  ;;  %v6256_v18 = vsel %vm700_vm3, %v6253_v0, %v19256_v63 }
 0x7db   :  { %v16907_v58 = vsel %vm700_vm3, %v6003_v4, %v6005_v7 }
 0x7dc   :  { %19443 = vst [vmem:[#allocation13_spill] sm:$0xff] %v16907_v58 }
 0x7dd   :  { %v16910_v36 = vpop.f32.mrf.mxu3 }
 0x7de   :  { %v5607_v51 = vpop.f32.mrf.mxu0  ;;  %v5636_v27 = vpop.f32.mrf.mxu1  ;;  %v16914_v33 = vmul.f32 %v16814_v39, %v16910_v36  ;;  %v6066_v39 = vrot.slane %v16669_v16, 1 }
 0x7df   :  { %5762 = vst [vmem:[#allocation2 + $0x170] sm:$0xff] %v5636_v27  ;;  %v19445_v27 = vrot.slane %v16634_v61, 1  ;;  %v6217_v61 = vrot.slane %v16706_v32, 7 }
 0x7e0   :  { %19444 = vst [vmem:[#allocation12_spill] sm:$0xff] %v16914_v33 }
 0x7e1   :  { %6273 = vrot.lane.b32.xlu1 %v6256_v18, %s13304_s0  ;;  %v6065_v33 = vsel %vm521_vm1, %v19445_v27, %v6064_v8  ;;  %v16931_v0 = vpop.permute.xlu2 %6458  ;;  %v5879_v18 = vrot.slane %v16889_v11, 1  ;;  %v16942_v16 = vpop.f32.mrf.mxu2  ;;  %v6392_v11 = vrot.slane %v16887_v49, 1 }
 0x7e2   :  { %5891 = vrot.lane.b32.xlu2 %v5876_v24, %s13304_s0  ;;  %v6083_v24 = vmul.f32 %v6065_v33, %v5631_v6  ;;  %v6215_v6 = vrot.slane %v16694_v37, 7 }
 0x7e4   :  { %v6216_v27 = vsel %vm657_vm2, %v6213_v35, %v6215_v6 }
 0x7e5   :  { %v16936_v58 = vpop.f32.mrf.mxu3 }
 0x7e6   :  { %v5706_v5 = vpop.f32.mrf.mxu0  ;;  %v6028_v4 = vld [vmem:[#allocation2 + $0x170] sm:$0x7f]  ;;  %v6396_v56 = vrot.slane %v16936_v58, 1 }
 0x7e7   :  { %v5925_v51 = vld [vmem:[#allocation2 + $0x170] sm:$0x1]  ;;  %v6085_v63 = vmul.f32 %v6066_v39, %v6028_v4  ;;  %v6218_v4 = vsel %vm657_vm2, %v6215_v6, %v6217_v61 }
 0x7e8   :  { %v5982_v46 = vmul.f32 %v19446_v2, %v5925_v51  ;;  %v6399_v32 = vsel %vm521_vm1, %v6396_v56, %v16596_v22  ;;  %v6219_v2 = vrot.slane %v16665_v60, 7 }
 0x7e9   :  { %6111 = vrot.lane.b32.xlu0 %v6085_v63, %s13304_s0  ;;  %5897 = vrot.lane.b32.xlu1 %v5879_v18, %s13304_s0  ;;  %v6067_v63 = vsel %vm521_vm1, %v6064_v8, %v6066_v39  ;;  %v16959_v37 = vpop.permute.xlu2 %6461  ;;  %v19447_v8 = vrot.slane %v16860_v48, 1 }
 0x7ea   :  { %v6007_v42 = vrot.slane %v5982_v46, 2  ;;  %6107 = vrot.lane.b32.xlu2 %v6083_v24, %s13304_s0  ;;  %v6084_v51 = vmul.f32 %v6067_v63, %v5634_v47  ;;  %v6235_v47 = vmul.f32 %v6216_v27, %v16921_v14  ;;  %v16969_v24 = vpop.f32.mrf.mxu2  ;;  %v6220_v6 = vsel %vm657_vm2, %v6217_v61, %v6219_v2  ;;  %v6181_v27 = vld [vmem:[#allocation2 + $0x1a0] sm:$0x1] }
 0x7eb   :  { %v6393_v39 = vsel %vm521_vm1, %v19447_v8, %v6392_v11  ;;  %v5953_v61 = vrot.slane %v16724_v15, 7 }
 0x7ec   :  { %v16945_v5 = vsel %vm700_vm3, %v6005_v7, %v6007_v42  ;;  %v6236_v7 = vmul.f32 %v6218_v4, %v16942_v16  ;;  %v6257_v42 = vrot.slane %v6235_v47, 2  ;;  %v19448_v4 = vrot.slane %v16863_v17, 1 }
 0x7ed   :  { %v5950_v47 = vrot.slane %v16718_v26, 7 }
 0x7ee   :  { %v5708_v33 = vpop.f32.mrf.mxu0  ;;  %v6259_v46 = vrot.slane %v6236_v7, 2 }
 0x7ef   :  { %5735 = vst.msk [vmem:[#allocation2 + $0x98] sm:$0xff] %vm78_vm0, %v5708_v33  ;;  %v6237_v33 = vmul.f32 %v6220_v6, %v16969_v24  ;;  %v6238_v6 = vmul.f32 %v6219_v2, %v6181_v27 }
 0x7f0   :  { %v6260_v63 = vsel %vm700_vm3, %v6257_v42, %v6259_v46 }
 0x7f1   :  { %6414 = vrot.lane.b32.xlu0 %v6399_v32, %s13304_s0  ;;  %6109 = vrot.lane.b32.xlu1 %v6084_v51, %s13304_s0  ;;  %v5880_v51 = vsel %vm521_vm1, %v19448_v4, %v5879_v18  ;;  %v16980_v60 = vpop.permute.xlu2 %6332  ;;  %v6261_v32 = vrot.slane %v6237_v33, 2  ;;  %v19449_v18 = vrot.slane %v16899_v3, 2  ;;  %v6394_v4 = vrot.slane %v16910_v36, 1 }
 0x7f2   :  { %6408 = vrot.lane.b32.xlu2 %v6393_v39, %s13304_s0  ;;  %v5951_v39 = vrot.slane %v16673_v54, 7  ;;  %v5818_v54 = vrot.slane %v16737_v41, 1 }
 0x7f3   :  { %v6262_v8 = vsel %vm700_vm3, %v6259_v46, %v6261_v32  ;;  %v5816_v46 = vrot.slane %v16682_v34, 1  ;;  %v17006_v34 = vpop.permute.xlu0 %6449  ;;  %v6395_v41 = vsel %vm521_vm1, %v6392_v11, %v6394_v4  ;;  %v5917_v11 = vld [vmem:[#allocation2 + $0x30] sm:$0xfe] }
 0x7f4   :  { %v5954_v15 = vsel %vm657_vm2, %v5951_v39, %v5953_v61  ;;  %v5952_v26 = vsel %vm657_vm2, %v5950_v47, %v5951_v39 }
 0x7f5   :  { %v5975_v27 = vmul.f32 %v5952_v26, %v16733_v21 }
 0x7f6   :  { %v5711_v35 = vpop.f32.mrf.mxu0 }
 0x7f7   :  { %5740 = vst.msk [vmem:[#allocation2 + $0xc0] sm:$0xff] %vm78_vm0, %v5711_v35  ;;  %v6258_v35 = vsel %vm700_vm3, %v19449_v18, %v6257_v42  ;;  %v17000_v42 = vmul.f32 %v5954_v15, %v16754_v38 }
 0x7f9   :  { %6277 = vrot.lane.b32.xlu1 %v6260_v63, %s13304_s0  ;;  %v16991_v63 = vpop.permute.xlu1 %6452  ;;  %v5995_v36 = vrot.slane %v17000_v42, 2  ;;  %v5815_v42 = vrot.slane %v16678_v19, 1 }
 0x7fa   :  { %5895 = vrot.lane.b32.xlu2 %v5880_v51, %s13304_s0  ;;  %v6263_v51 = vrot.slane %v6238_v6, 2 }
 0x7fb   :  { %v17017_v15 = vpop.permute.xlu0 %6455 }
 0x7fc   :  { %v6264_v2 = vsel %vm700_vm3, %v6261_v32, %v6263_v51  ;;  %v5993_v32 = vrot.slane %v5975_v27, 2 }
 0x7fe   :  { %v5713_v7 = vpop.f32.mrf.mxu0  ;;  %v5996_v21 = vsel %vm700_vm3, %v5993_v32, %v5995_v36 }
 0x7ff   :  { %5745 = vst.msk [vmem:[#allocation2 + $0xe8] sm:$0xff] %vm78_vm0, %v5713_v7  ;;  %v5819_v7 = vsel %vm521_vm1, %v5816_v46, %v5818_v54 }
 0x800   :  { %v5841_v38 = vmul.f32 %v5819_v7, %v16731_v44  ;;  %v6397_v44 = vsel %vm521_vm1, %v6394_v4, %v6396_v56  ;;  %v5766_v7 = vld [vmem:[#allocation2] sm:$0x80]  ;;  %v5955_v56 = vrot.slane %v16688_v25, 7 }
 0x801   :  { %6279 = vrot.lane.b32.xlu1 %v6262_v8, %s13304_s0  ;;  %v17013_v8 = vpop.permute.xlu1 %6323  ;;  %v5839_v4 = vmul.f32 %v5815_v42, %v5766_v7 }
 0x802   :  { %6275 = vrot.lane.b32.xlu2 %v6258_v35, %s13304_s0  ;;  %v5956_v19 = vsel %vm657_vm2, %v5953_v61, %v5955_v56 }
 0x803   :  { %v6098_v33 = vpop.permute.xlu2 %6097  ;;  %v17032_v27 = vpop.permute.xlu0 %6467 }
 0x806   :  { %v5716_v3 = vpop.f32.mrf.mxu0 }
 0x807   :  { %5750 = vst.msk [vmem:[#allocation2 + $0x110] sm:$0xff] %vm78_vm0, %v5716_v3  ;;  %v5974_v3 = vmul.f32 %v5950_v47, %v5917_v11  ;;  %v5820_v47 = vrot.slane %v16764_v57, 1  ;;  %v5908_v11 = vadd.f32 %v16816_v20, %v5839_v4  ;;  %v5977_v57 = vmul.f32 %v5956_v19, %v16777_v29 }
 0x808   :  { %v5822_v4 = vrot.slane %v16696_v13, 1  ;;  %v6152_v13 = vrot.slane %v16836_v9, 1 }
 0x809   :  { %6281 = vrot.lane.b32.xlu1 %v6264_v2, %s13304_s0  ;;  %v17025_v26 = vpop.permute.xlu1 %6464 }
 0x80a   :  { %6410 = vrot.lane.b32.xlu2 %v6395_v41, %s13304_s0  ;;  %v5992_v41 = vrot.slane %v5974_v3, 2  ;;  %v6147_v3 = vrot.slane %v16748_v31, 1 }
 0x80c   :  { %v5886_v39 = vpop.permute.xlu2 %5885  ;;  %v6018_v7 = vadd.f32 %v5992_v41, %v5908_v11 }
 0x80d   :  { %v5910_v18 = vadd.f32 %v5886_v39, %v5841_v38 }
 0x80e   :  { %v5718_v35 = vpop.f32.mrf.mxu0 }
 0x80f   :  { %5755 = vst.msk [vmem:[#allocation2 + $0x138] sm:$0xff] %vm78_vm0, %v5718_v35  ;;  %v6020_v6 = vadd.f32 %v5996_v21, %v5910_v18 }
 0x811   :  { %6416 = vrot.lane.b32.xlu1 %v16596_v22, %s13304_s0  ;;  %v5817_v22 = vsel %vm521_vm1, %v5815_v42, %v5816_v46  ;;  %v6148_v46 = vrot.slane %v16770_v55, 1  ;;  %v6150_v42 = vrot.slane %v16798_v45, 1 }
 0x812   :  { %6412 = vrot.lane.b32.xlu2 %v6397_v44, %s13304_s0  ;;  %v5840_v38 = vmul.f32 %v16593_v50, %v5817_v22  ;;  %v5994_v44 = vsel %vm700_vm3, %v5992_v41, %v5993_v32  ;;  %v5821_v50 = vsel %vm521_vm1, %v5818_v54, %v5820_v47  ;;  %v19450_v32 = vrot.slane %v16684_v40, 7 }
 0x813   :  { %v6149_v61 = vsel %vm521_vm1, %v6147_v3, %v6148_v46  ;;  %v5842_v31 = vmul.f32 %v5821_v50, %v16752_v52  ;;  %v6151_v45 = vsel %vm521_vm1, %v6148_v46, %v6150_v42  ;;  %v6122_v40 = vadd.f32 %v16726_v10, %v6018_v7 }
 0x814   :  { %v17027_v51 = vpop.permute.xlu2 %6400  ;;  %v5958_v55 = vsel %vm657_vm2, %v5955_v56, %v19450_v32  ;;  %v5823_v41 = vsel %vm521_vm1, %v5820_v47, %v5822_v4  ;;  %v6334_v52 = vrot.slane %v16855_v12, 1  ;;  %v6470_v10 = vrot.slane %v17006_v34, 7 }
 0x815   :  { %v5843_v46 = vmul.f32 %v5823_v41, %v16775_v30  ;;  %v6153_v12 = vsel %vm521_vm1, %v6150_v42, %v6152_v13  ;;  %v6154_v30 = vrot.slane %v16885_v23, 1  ;;  %v19451_v7 = vrot.slane %v16746_v43, 1 }
 0x816   :  { %v5721_v2 = vpop.f32.mrf.mxu0  ;;  %v5824_v23 = vrot.slane %v16708_v62, 1 }
 0x817   :  { %5760 = vst.msk [vmem:[#allocation2 + $0x160] sm:$0xff] %vm78_vm0, %v5721_v2 }
 0x81c   :  { %v5884_v39 = vpop.permute.xlu1 %5883  ;;  %v5888_v18 = vpop.permute.xlu2 %5887 }
 0x81d   :  { %v5909_v35 = vadd.f32 %v5884_v39, %v5840_v38  ;;  %v5997_v39 = vrot.slane %v5977_v57, 2  ;;  %v5911_v29 = vadd.f32 %v5888_v18, %v5842_v31 }
 0x81e   :  { %v5723_v21 = vpop.f32.mrf.mxu0 }
 0x81f   :  { %5765 = vst.msk [vmem:[#allocation2 + $0x188] sm:$0xff] %vm78_vm0, %v5723_v21  ;;  %v6019_v25 = vadd.f32 %v5994_v44, %v5909_v35  ;;  %v17054_v35 = vmul.f32 %v5958_v55, %v16805_v59  ;;  %v5998_v56 = vsel %vm700_vm3, %v5995_v36, %v5997_v39  ;;  %v6301_v21 = vld [vmem:[#allocation2 + $0x68] sm:$0x80]  ;;  %v6171_v44 = vadd.f32 %v6147_v3, %v6122_v40  ;;  %v6437_v3 = vld [vmem:[#allocation2 + $0xc0] sm:$0xff] }
 0x820   :  { %v6469_v59 = vrot.slane %v16882_v53, 7  ;;  %v6472_v36 = vrot.slane %v16991_v63, 7  ;;  %v6358_v57 = vmul.f32 %v6334_v52, %v6301_v21  ;;  %v6436_v53 = vld [vmem:[#allocation2 + $0x98] sm:$0xfe]  ;;  %v6336_v63 = vsel %vm521_vm1, %v6334_v52, %v19451_v7 }
 0x821   :  { %v6123_v2 = vadd.f32 %v6098_v33, %v6019_v25  ;;  %v5999_v19 = vrot.slane %v17054_v35, 2  ;;  %v6359_v43 = vmul.f32 %v6336_v63, %v16772_v28 }
 0x822   :  { %v6471_v34 = vsel %vm657_vm2, %v6469_v59, %v6470_v10  ;;  %v6473_v42 = vsel %vm657_vm2, %v6470_v10, %v6472_v36 }
 0x823   :  { %v6100_v20 = vpop.permute.xlu0 %6099  ;;  %v6172_v22 = vadd.f32 %v6149_v61, %v6123_v2  ;;  %v6000_v2 = vsel %vm700_vm3, %v5997_v39, %v5999_v19  ;;  %v6155_v39 = vsel %vm521_vm1, %v6152_v13, %v6154_v30 }
 0x824   :  { %v6124_v38 = vadd.f32 %v6100_v20, %v6020_v6  ;;  %v6104_v54 = vpop.permute.xlu2 %6103  ;;  %v6021_v6 = vadd.f32 %v5998_v56, %v5911_v29  ;;  %v6494_v20 = vmul.f32 %v6471_v34, %v6437_v3 }
 0x826   :  { %v6173_v33 = vadd.f32 %v6151_v45, %v6124_v38  ;;  %v6493_v38 = vmul.f32 %v6469_v59, %v6436_v53  ;;  %v6438_v45 = vld [vmem:[#allocation2 + $0xe8] sm:$0xff] }
 0x827   :  { %v6495_v21 = vmul.f32 %v6473_v42, %v6438_v45  ;;  %v19456_v45 = vld [vmem:[#allocation19_spill] sm:$0xff] }
 0x82b   :  { %v6102_v18 = vpop.permute.xlu1 %6101 }
 0x82c   :  { %v6266_v11 = vpop.permute.xlu0 %6265  ;;  %v6125_v47 = vadd.f32 %v6102_v18, %v6021_v6  ;;  %v5890_v25 = vpop.permute.xlu2 %5889  ;;  %v6512_v6 = vrot.slane %v6494_v20, 2  ;;  %v6439_v20 = vld [vmem:[#allocation2 + $0x110] sm:$0xff] }
 0x82d   :  { %v6292_v9 = vadd.f32 %v6266_v11, %v6171_v44  ;;  %v5912_v50 = vadd.f32 %v5890_v25, %v5843_v46  ;;  %v6511_v44 = vrot.slane %v6493_v38, 2  ;;  %v19452_v46 = vld [vmem:[#allocation23_spill] sm:$0xff]  ;;  %v5825_v11 = vsel %vm521_vm1, %v5822_v4, %v5824_v23  ;;  %v19454_v4 = vld [vmem:[#allocation18_spill] sm:$0xff] }
 0x82e   :  { %v17068_v61 = vadd.f32 %v6153_v12, %v6125_v47  ;;  %v19455_v53 = vrot.slane %v19454_v4, 2  ;;  %v6158_v4 = vrot.slane %v16942_v16, 1 }
 0x82f   :  { %v6022_v32 = vadd.f32 %v6000_v2, %v5912_v50  ;;  %v6367_v55 = vadd.f32 %v6358_v57, %v6292_v9  ;;  %v6513_v62 = vsel %vm700_vm3, %v6511_v44, %v6512_v6  ;;  %v6339_v57 = vrot.slane %v16916_v1, 1 }
 0x831   :  { %v6126_v31 = vadd.f32 %v6104_v54, %v6022_v32  ;;  %v6427_v40 = vadd.f32 %v17027_v51, %v6367_v55  ;;  %v6514_v51 = vrot.slane %v6495_v21, 2  ;;  %v6002_v32 = vsel %vm700_vm3, %v5999_v19, %v19455_v53  ;;  %v19459_v21 = vld [vmem:[#allocation20_spill] sm:$0xff]  ;;  %v19461_v53 = vld [vmem:[#allocation21_spill] sm:$0xff] }
 0x832   :  { %v6474_v55 = vrot.slane %v17017_v15, 7 }
 0x833   :  { %v6268_v29 = vpop.permute.xlu1 %6267  ;;  %v17077_v35 = vadd.f32 %v6155_v39, %v6126_v31  ;;  %v17083_v13 = vadd.f32 %v6511_v44, %v6427_v40  ;;  %v6515_v3 = vsel %vm700_vm3, %v6512_v6, %v6514_v51  ;;  %v6156_v31 = vrot.slane %v16921_v14, 1 }
 0x834   :  { %v6403_v41 = vpop.permute.xlu0 %6402  ;;  %v6293_v56 = vadd.f32 %v6268_v29, %v6172_v22  ;;  %v6270_v52 = vpop.permute.xlu2 %6269  ;;  %v19453_v22 = vld [vmem:[#allocation17_spill] sm:$0xff]  ;;  %v6475_v1 = vsel %vm657_vm2, %v6472_v36, %v6474_v55  ;;  %v19457_v39 = vrot.slane %v19456_v45, 1 }
 0x835   :  { %v6294_v54 = vadd.f32 %v6270_v52, %v6173_v33  ;;  %v5844_v25 = vmul.f32 %v5825_v11, %v19453_v22  ;;  %v6555_v33 = vrot.slane %v17083_v13, 7  ;;  %v6496_v19 = vmul.f32 %v6475_v1, %v6439_v20 }
 0x836   :  { %v6368_v18 = vadd.f32 %v6359_v43, %v6293_v56  ;;  %v6340_v29 = vsel %vm521_vm1, %v19457_v39, %v6339_v57  ;;  %v19458_v43 = vld [vmem:[#allocation14_spill] sm:$0xff]  ;;  %v6159_v45 = vsel %vm521_vm1, %v6156_v31, %v6158_v4 }
 0x837   :  { %v6369_v59 = vadd.f32 %v19452_v46, %v6294_v54  ;;  %v5826_v56 = vrot.slane %v19458_v43, 1  ;;  %v6361_v44 = vmul.f32 %v6340_v29, %v19459_v21 }
 0x838   :  { %v6428_v10 = vadd.f32 %v6403_v41, %v6368_v18  ;;  %v6157_v41 = vsel %vm521_vm1, %v6154_v30, %v6156_v31 }
 0x83a   :  { %v17087_v47 = vadd.f32 %v6513_v62, %v6428_v10  ;;  %v5827_v62 = vsel %vm521_vm1, %v5824_v23, %v5826_v56 }
 0x83b   :  { %v6405_v28 = vpop.permute.xlu1 %6404 }
 0x83c   :  { %v6556_v9 = vrot.slane %v17087_v47, 7  ;;  %v6429_v50 = vadd.f32 %v6405_v28, %v6369_v59  ;;  %v5892_v12 = vpop.permute.xlu2 %5891  ;;  %v6106_v2 = vpop.permute.xlu0 %6105  ;;  %v6516_v59 = vrot.slane %v6496_v19, 2  ;;  %v19462_v19 = vld [vmem:[#allocation11_spill] sm:$0xff] }
 0x83d   :  { %v5913_v34 = vadd.f32 %v5892_v12, %v5844_v25  ;;  %v19460_v25 = vld [vmem:[#allocation22_spill] sm:$0xff] }
 0x83e   :  { %v17098_v7 = vadd.f32 %v6515_v3, %v6429_v50  ;;  %v6557_v63 = vsel %vm657_vm2, %v6555_v33, %v6556_v9  ;;  %v6517_v28 = vsel %vm700_vm3, %v6514_v51, %v6516_v59  ;;  %v5845_v33 = vmul.f32 %v5827_v62, %v19460_v25  ;;  %v6440_v51 = vld [vmem:[#allocation2 + $0x138] sm:$0xff] }
 0x83f   :  { %v6023_v42 = vadd.f32 %v6002_v32, %v5913_v34  ;;  %v6580_v52 = vsel %vm78_vm0, %v6557_v63, 0.0  ;;  %v6476_v50 = vrot.slane %v16931_v0, 7  ;;  %v6341_v3 = vrot.slane %v17013_v8, 1 }
 0x840   :  { %v6558_v38 = vrot.slane %v17098_v7, 7  ;;  %v6160_v25 = vrot.slane %v16969_v24, 1 }
 0x841   :  { %v6127_v40 = vadd.f32 %v6106_v2, %v6023_v42  ;;  %v6477_v63 = vsel %vm657_vm2, %v6474_v55, %v6476_v50  ;;  %v6342_v0 = vsel %vm521_vm1, %v6339_v57, %v6341_v3  ;;  %v6478_v55 = vrot.slane %v16959_v37, 7 }
 0x842   :  { %v6559_v15 = vsel %vm657_vm2, %v6556_v9, %v6558_v38  ;;  %v6497_v1 = vmul.f32 %v6477_v63, %v6440_v51  ;;  %v6362_v16 = vmul.f32 %v6342_v0, %v16860_v48  ;;  %v6482_v0 = vrot.slane %v17032_v27, 7  ;;  %v6443_v27 = vld [vmem:[#allocation2 + $0x1b0] sm:$0xff] }
 0x843   :  { %v6581_v14 = vsel %vm78_vm0, %v6559_v15, 0.0  ;;  %v6272_v6 = vpop.permute.xlu1 %6271  ;;  %v6176_v36 = vadd.f32 %v6157_v41, %v6127_v40  ;;  %v5828_v40 = vrot.slane %v19462_v19, 1 }
 0x844   :  { %v6582_v54 = vadd.f32 %v6581_v14, %v6580_v52  ;;  %v6295_v18 = vadd.f32 %v6272_v6, %v17068_v61  ;;  %v6108_v46 = vpop.permute.xlu2 %6107  ;;  %v6407_v11 = vpop.permute.xlu0 %6406  ;;  %v6518_v15 = vrot.slane %v6497_v1, 2  ;;  %v19463_v14 = vld [vmem:[#allocation15_spill] sm:$0xff] }
 0x845   :  { %v5829_v57 = vsel %vm521_vm1, %v5826_v56, %v5828_v40  ;;  %v19464_v31 = vrot.slane %v19463_v14, 1 }
 0x846   :  { %v6370_v10 = vadd.f32 %v6361_v44, %v6295_v18  ;;  %v6519_v52 = vsel %vm700_vm3, %v6516_v59, %v6518_v15  ;;  %v5846_v44 = vmul.f32 %v5829_v57, %v16863_v17 }
 0x847   :  { %v6344_v6 = vsel %vm521_vm1, %v6341_v3, %v19464_v31  ;;  %v19468_v31 = vld [vmem:[#allocation24_spill] sm:$0xff] }
 0x848   :  { %v6430_v30 = vadd.f32 %v6407_v11, %v6370_v10  ;;  %v6363_v59 = vmul.f32 %v6344_v6, %v16887_v49  ;;  %v6161_v49 = vsel %vm521_vm1, %v6158_v4, %v6160_v25  ;;  %v19469_v6 = vrot.slane %v19468_v31, 1 }
 0x849   :  { %v19471_v31 = vmov 2  }
 0x84a   :  { %v17116_v22 = vadd.f32 %v6517_v28, %v6430_v30 }
 0x84b   :  { %v5894_v9 = vpop.permute.xlu1 %5893 }
 0x84c   :  { %v6560_v12 = vrot.slane %v17116_v22, 7  ;;  %v5914_v2 = vadd.f32 %v5894_v9, %v5845_v33  ;;  %v6409_v61 = vpop.permute.xlu2 %6408  ;;  %v19465_v33 = vld [vmem:[#allocation13_spill] sm:$0xff] }
 0x84e   :  { %v6561_v23 = vsel %vm657_vm2, %v6558_v38, %v6560_v12  ;;  %v6024_v32 = vadd.f32 %v19461_v53, %v5914_v2 }
 0x84f   :  { %v6583_v34 = vsel %vm78_vm0, %v6561_v23, 0.0  ;;  %v6442_v23 = vld [vmem:[#allocation2 + $0x188] sm:$0xff] }
 0x850   :  { %v6584_v20 = vadd.f32 %v6583_v34, %v6582_v54  ;;  %v6128_v42 = vadd.f32 %v6108_v46, %v6024_v32  ;;  %v6479_v46 = vsel %vm657_vm2, %v6476_v50, %v6478_v55  ;;  %v17156_v32 = vld [vmem:[%s19138_s2 + $0x10] sm:$0xff] }
 0x851   :  { %7359 = vperm.xlu1 %13161, %v17156_v32  }
 0x852   :  { %v6177_v39 = vadd.f32 %v6159_v45, %v6128_v42 }
 0x853   :  { %v6274_v8 = vpop.permute.xlu1 %6273 }
 0x854   :  { %v6296_v38 = vadd.f32 %v6274_v8, %v17077_v35  ;;  %v5896_v29 = vpop.permute.xlu2 %5895  ;;  %v6441_v35 = vld [vmem:[#allocation2 + $0x160] sm:$0xff]  ;;  %v6347_v8 = vrot.slane %v16980_v60, 1 }
 0x855   :  { %v5915_v10 = vadd.f32 %v5896_v29, %v5846_v44  ;;  %v6498_v11 = vmul.f32 %v6479_v46, %v6441_v35  ;;  %v17178_v60 = vld [vmem:[%s19138_s2 + $0x8] sm:$0xff] }
 0x856   :  { %v6371_v41 = vadd.f32 %v6362_v16, %v6296_v38  ;;  %v6348_v35 = vsel %vm521_vm1, %v19469_v6, %v6347_v8 }
 0x857   :  { %v6025_v9 = vadd.f32 %v19465_v33, %v5915_v10  ;;  %v6520_v2 = vrot.slane %v6498_v11, 2 }
 0x858   :  { %v6431_v43 = vadd.f32 %v6409_v61, %v6371_v41  ;;  %v6480_v61 = vrot.slane %v17025_v26, 7 }
 0x85a   :  { %v17138_v54 = vadd.f32 %v6519_v52, %v6431_v43  ;;  %v6481_v26 = vsel %vm657_vm2, %v6478_v55, %v6480_v61  ;;  %v17171_v43 = vld [vmem:[%s19138_s2] sm:$0xff]  ;;  %v19467_v52 = vmov 5  }
 0x85b   :  { %v5898_v48 = vpop.permute.xlu1 %5897  ;;  %v6499_v63 = vmul.f32 %v6481_v26, %v6442_v23  ;;  %v6112_v16 = vpop.permute.xlu0 %6111  ;;  %13163 = vset.pattern.permute.xlu1 %v19467_v52  ;;  %7353 = vperm.xlu2 %13160, %v17171_v43  }
 0x85c   :  { %v6562_v21 = vrot.slane %v17138_v54, 7  ;;  %v6276_v18 = vpop.permute.xlu2 %6275  ;;  %7509 = vperm.xlu1 %13163, %v17178_v60  }
 0x85d   :  { %v6297_v37 = vadd.f32 %v6276_v18, %v6176_v36  ;;  %v6522_v29 = vrot.slane %v6499_v63, 2  ;;  %v19470_v63 = vmov 3  }
 0x85e   :  { %v6563_v56 = vsel %vm657_vm2, %v6560_v12, %v6562_v21  ;;  %v6521_v12 = vsel %vm700_vm3, %v6518_v15, %v6520_v2  ;;  %v19466_v15 = vld [vmem:[#allocation12_spill] sm:$0xff] }
 0x85f   :  { %v6372_v62 = vadd.f32 %v6363_v59, %v6297_v37  ;;  %v6585_v30 = vsel %vm78_vm0, %v6563_v56, 0.0  ;;  %v6523_v14 = vsel %vm700_vm3, %v6520_v2, %v6522_v29  ;;  %v6365_v59 = vmul.f32 %v6348_v35, %v16936_v58  ;;  %v6444_v2 = vld [vmem:[#allocation2 + $0x1d8] sm:$0x1] }
 0x860   :  { %v6586_v28 = vadd.f32 %v6585_v30, %v6584_v20  ;;  %v5774_v20 = vld [vmem:[#allocation2 + $0x140] sm:$0x7f] }
 0x861   :  { %v5847_v19 = vmul.f32 %v5828_v40, %v5774_v20  ;;  %v17210_v20 = vld [vmem:[%s19138_s2 + $0x28] sm:$0xff] }
 0x863   :  { %v6110_v17 = vpop.permute.xlu1 %6109  ;;  %v5916_v40 = vadd.f32 %v5898_v48, %v5847_v19  ;;  %13162 = vset.pattern.permute.xlu2 %v19467_v52  ;;  %v17227_v19 = vld [vmem:[%s19138_s2 + $0x20] sm:$0xff] }
 0x864   :  { %v6129_v50 = vadd.f32 %v6110_v17, %v6025_v9  ;;  %v6411_v36 = vpop.permute.xlu2 %6410  ;;  %7506 = vperm.xlu2 %13162, %v17171_v43   ;;  %7518 = vperm.xlu0 %13165, %v17227_v19  }
 0x865   :  { %v6432_v3 = vadd.f32 %v6411_v36, %v6372_v62  ;;  %v6026_v46 = vadd.f32 %v16945_v5, %v5916_v40  ;;  %v6415_v62 = vpop.permute.xlu0 %6414 }
 0x866   :  { %v6178_v53 = vadd.f32 %v6161_v49, %v6129_v50  ;;  %v6501_v49 = vmul.f32 %v6482_v0, %v6444_v2 }
 0x867   :  { %v17158_v51 = vadd.f32 %v6521_v12, %v6432_v3  ;;  %v6130_v9 = vadd.f32 %v6112_v16, %v6026_v46  ;;  %v6309_v3 = vld [vmem:[#allocation2 + $0x1a8] sm:$0x7f] }
 0x868   :  { %v6366_v26 = vmul.f32 %v6347_v8, %v6309_v3  ;;  %v6526_v24 = vrot.slane %v6501_v49, 2  ;;  %v17218_v8 = vld [vmem:[%s19138_s2 + $0x30] sm:$0xff] }
 0x869   :  { %v6564_v34 = vrot.slane %v17158_v51, 7  ;;  %v6179_v36 = vadd.f32 %v6160_v25, %v6130_v9 }
 0x86b   :  { %v6565_v4 = vsel %vm657_vm2, %v6562_v21, %v6564_v34  ;;  %v6278_v42 = vpop.permute.xlu1 %6277 }
 0x86c   :  { %v6587_v1 = vsel %vm78_vm0, %v6565_v4, 0.0  ;;  %v6298_v45 = vadd.f32 %v6278_v42, %v6177_v39  ;;  %v6413_v55 = vpop.permute.xlu2 %6412  ;;  %v6483_v39 = vsel %vm657_vm2, %v6480_v61, %v6482_v0  ;;  %7512 = vperm.xlu2 %13162, %v17156_v32   ;;  %13166 = vset.pattern.permute.xlu0 %v19470_v63 }
 0x86d   :  { %v6588_v38 = vadd.f32 %v6587_v1, %v6586_v28  ;;  %v6500_v44 = vmul.f32 %v6483_v39, %v6443_v27  ;;  %v17196_v28 = vld [vmem:[%s19138_s2 + $0x18] sm:$0xff]  ;;  %7356 = vperm.xlu0 %13166, %v17178_v60  }
 0x86e   :  { %v6373_v41 = vadd.f32 %v19466_v15, %v6298_v45  ;;  %7515 = vperm.xlu1 %13163, %v17196_v28  }
 0x86f   :  { %v6524_v11 = vrot.slane %v6500_v44, 2 }
 0x870   :  { %v6433_v57 = vadd.f32 %v6413_v55, %v6373_v41  ;;  %v17235_v55 = vld [vmem:[%s19138_s2 + $0x38] sm:$0xff] }
 0x871   :  { %v6525_v58 = vsel %vm700_vm3, %v6522_v29, %v6524_v11  ;;  %v6527_v0 = vsel %vm700_vm3, %v6524_v11, %v6526_v24 }
 0x872   :  { %v17186_v21 = vadd.f32 %v6523_v14, %v6433_v57 }
 0x873   :  { %v6280_v18 = vpop.permute.xlu1 %6279 }
 0x874   :  { %v6566_v37 = vrot.slane %v17186_v21, 7  ;;  %v6299_v48 = vadd.f32 %v6280_v18, %v6178_v53  ;;  %13164 = vset.pattern.permute.xlu2 %v19470_v63 }
 0x875   :  { %7365 = vperm.xlu2 %13164, %v17227_v19   ;;  %7362 = vperm.xlu0 %13166, %v17196_v28  }
 0x876   :  { %v6567_v56 = vsel %vm657_vm2, %v6564_v34, %v6566_v37  ;;  %v6374_v10 = vadd.f32 %v6365_v59, %v6299_v48  ;;  %13167 = vset.pattern.permute.xlu1 %v19470_v63 }
 0x877   :  { %v6589_v30 = vsel %vm78_vm0, %v6567_v56, 0.0  ;;  %7368 = vperm.xlu1 %13167, %v17210_v20  }
 0x878   :  { %v6590_v5 = vadd.f32 %v6589_v30, %v6588_v38  ;;  %v6434_v33 = vadd.f32 %v6415_v62, %v6374_v10 }
 0x87a   :  { %v6544_v17 = vadd.f32 %v6525_v58, %v6434_v33 }
 0x87b   :  { %v6282_v61 = vpop.permute.xlu1 %6281 }
 0x87c   :  { %v6568_v50 = vrot.slane %v6544_v17, 7  ;;  %v6300_v23 = vadd.f32 %v6282_v61, %v6179_v36 }
 0x87d   :  { %13168 = vset.pattern.permute.xlu2 %v19467_v52  ;;  %7374 = vperm.xlu0 %13166, %v17235_v55  }
 0x87e   :  { %v6569_v12 = vsel %vm657_vm2, %v6566_v37, %v6568_v50  ;;  %v6375_v25 = vadd.f32 %v6366_v26, %v6300_v23  ;;  %7521 = vperm.xlu2 %13168, %v17210_v20  }
 0x87f   :  { %v6591_v53 = vsel %vm78_vm0, %v6569_v12, 0.0  ;;  %7371 = vperm.xlu1 %13167, %v17218_v8   ;;  %v19472_v12 = vmov 0  }
 0x880   :  { %v6592_v34 = vadd.f32 %v6591_v53, %v6590_v5 }
 0x883   :  { %v6417_v4 = vpop.permute.xlu1 %6416 }
 0x884   :  { %v6435_v42 = vadd.f32 %v6417_v4, %v6375_v25 }
 0x885   :  { %13172 = vset.pattern.permute.xlu0 %v19472_v12 }
 0x886   :  { %v6545_v1 = vadd.f32 %v6527_v0, %v6435_v42  ;;  %7524 = vperm.xlu2 %13168, %v17218_v8   ;;  %7108 = vperm.xlu0 %13172, %v17171_v43  }
 0x887   :  { %13169 = vset.pattern.permute.xlu1 %v19467_v52 }
 0x888   :  { %v6570_v45 = vrot.slane %v6545_v1, 7  ;;  %7527 = vperm.xlu1 %13169, %v17235_v55  }
 0x88a   :  { %v6571_v16 = vsel %vm657_vm2, %v6568_v50, %v6570_v45 }
 0x88b   :  { %v6593_v38 = vsel %vm78_vm0, %v6571_v16, 0.0 }
 0x88c   :  { %v6594_v29 = vadd.f32 %v6593_v38, %v6592_v34 }
 0x88e   :  { %v6595_v15 = vrot.slane %v6594_v29, 4  ;;  %13170 = vset.pattern.permute.xlu2 %v19471_v31  ;;  %13176 = vset.pattern.permute.xlu0 %v19471_v31 }
 0x88f   :  { %7250 = vperm.xlu2 %13170, %v17171_v43   ;;  %7262 = vperm.xlu0 %13176, %v17227_v19  }
 0x890   :  { %v6596_v41 = vadd.f32 %v6595_v15, %v6594_v29  ;;  %13171 = vset.pattern.permute.xlu1 %v19471_v31 }
 0x891   :  { %7253 = vperm.xlu1 %13171, %v17178_v60  }
 0x892   :  { %v6597_v27 = vrot.slane %v6596_v41, 2 }
 0x894   :  { %v6598_v39 = vadd.f32 %v6597_v27, %v6596_v41 }
 0x896   :  { %v6599_v40 = vrot.slane %v6598_v39, 1 }
 0x897   :  { %7256 = vperm.xlu2 %13170, %v17156_v32   ;;  %7265 = vperm.xlu0 %13176, %v17210_v20  }
 0x898   :  { %v6600_v57 = vadd.f32 %v6599_v40, %v6598_v39 }
 0x899   :  { %13173 = vset.pattern.permute.xlu1 %v19472_v12 }
 0x89a   :  { %v6601_v14 = vmul.f32 0.015625, %v6600_v57  ;;  %7112 = vperm.xlu1 %13173, %v17178_v60   ;;  %v11571_v57 = vld [vmem:[#allocation4 + $0x3a0] sm:$0xf] }
 0x89c   :  { %v17245_v6 = vsub.f32 %v17083_v13, %v6601_v14  ;;  %v17248_v35 = vsub.f32 %v17087_v47, %v6601_v14  ;;  %v17251_v44 = vsub.f32 %v17098_v7, %v6601_v14  ;;  %v17254_v52 = vsub.f32 %v17116_v22, %v6601_v14 }
 0x89d   :  { %v17257_v18 = vsub.f32 %v17138_v54, %v6601_v14  ;;  %v17260_v46 = vsub.f32 %v17158_v51, %v6601_v14  ;;  %v17263_v37 = vsub.f32 %v17186_v21, %v6601_v14  ;;  %v17265_v13 = vsub.f32 %v6544_v17, %v6601_v14 }
 0x89e   :  { %v17267_v59 = vsub.f32 %v6545_v1, %v6601_v14  ;;  %v6611_v47 = vmul.f32 %v17245_v6, %v17245_v6  ;;  %v6612_v7 = vmul.f32 %v17248_v35, %v17248_v35  ;;  %v6613_v22 = vmul.f32 %v17251_v44, %v17251_v44  ;;  %v12743_v14 = vld [vmem:[#allocation4 + $0x3b0] sm:$0xf0] }
 0x89f   :  { %v6614_v54 = vmul.f32 %v17254_v52, %v17254_v52  ;;  %v6615_v51 = vmul.f32 %v17257_v18, %v17257_v18  ;;  %v6616_v21 = vmul.f32 %v17260_v46, %v17260_v46  ;;  %v6617_v48 = vmul.f32 %v17263_v37, %v17263_v37  ;;  %13174 = vset.pattern.permute.xlu2 %v19472_v12 }
 0x8a0   :  { %v6618_v56 = vmul.f32 %v17265_v13, %v17265_v13  ;;  %v6619_v10 = vmul.f32 %v17267_v59, %v17267_v59  ;;  %v6629_v11 = vrot.slane %v6611_v47, 7  ;;  %v6630_v62 = vrot.slane %v6612_v7, 7  ;;  %v12740_v47 = vld [vmem:[#allocation4 + $0x39c] sm:$0xf]  ;;  %7116 = vperm.xlu2 %13174, %v17156_v32   ;;  %7268 = vperm.xlu0 %13176, %v17218_v8  }
 0x8a1   :  { %v6632_v30 = vrot.slane %v6613_v22, 7  ;;  %v6634_v5 = vrot.slane %v6614_v54, 7  ;;  %v6636_v33 = vrot.slane %v6615_v51, 7  ;;  %v6638_v9 = vrot.slane %v6616_v21, 7  ;;  %v11565_v54 = vld [vmem:[#allocation4 + $0x3ac] sm:$0xf0] }
 0x8a2   :  { %v6631_v58 = vsel %vm657_vm2, %v6629_v11, %v6630_v62  ;;  %v6640_v2 = vrot.slane %v6617_v48, 7  ;;  %v6642_v17 = vrot.slane %v6618_v56, 7  ;;  %v6644_v61 = vrot.slane %v6619_v10, 7  ;;  %13175 = vset.pattern.permute.xlu1 %v19471_v31  ;;  %v11563_v51 = vld [vmem:[#allocation4 + $0x398] sm:$0xf] }
 0x8a3   :  { %v6633_v50 = vsel %vm657_vm2, %v6630_v62, %v6632_v30  ;;  %v6635_v36 = vsel %vm657_vm2, %v6632_v30, %v6634_v5  ;;  %v6637_v3 = vsel %vm657_vm2, %v6634_v5, %v6636_v33  ;;  %v6639_v49 = vsel %vm657_vm2, %v6636_v33, %v6638_v9  ;;  %7259 = vperm.xlu1 %13175, %v17196_v28   ;;  %v12742_v48 = vld [vmem:[#allocation4 + $0x3a8] sm:$0xf0]  ;;  %v12741_v56 = vld [vmem:[#allocation4 + $0x3a4] sm:$0xf]  ;;  %v11573_v10 = vld [vmem:[#allocation4 + $0x3b4] sm:$0xf0] }
 0x8a4   :  { %v6641_v23 = vsel %vm657_vm2, %v6638_v9, %v6640_v2  ;;  %v6643_v53 = vsel %vm657_vm2, %v6640_v2, %v6642_v17  ;;  %v6645_v26 = vsel %vm657_vm2, %v6642_v17, %v6644_v61  ;;  %v6654_v34 = vsel %vm78_vm0, %v6631_v58, 0.0  ;;  %v11551_v31 = vld [vmem:[#allocation4 + $0x378] sm:$0xf]  ;;  %v12738_v5 = vld [vmem:[#allocation4 + $0x388] sm:$0xf0] }
 0x8a5   :  { %v6655_v63 = vsel %vm78_vm0, %v6633_v50, 0.0  ;;  %v6657_v25 = vsel %vm78_vm0, %v6635_v36, 0.0  ;;  %v6659_v42 = vsel %vm78_vm0, %v6637_v3, 0.0  ;;  %v6661_v1 = vsel %vm78_vm0, %v6639_v49, 0.0  ;;  %v12735_v33 = vld [vmem:[#allocation4 + $0x374] sm:$0xf] }
 0x8a6   :  { %v6656_v24 = vadd.f32 %v6655_v63, %v6654_v34  ;;  %v6663_v16 = vsel %vm78_vm0, %v6641_v23, 0.0  ;;  %v6665_v29 = vsel %vm78_vm0, %v6643_v53, 0.0  ;;  %v6667_v41 = vsel %vm78_vm0, %v6645_v26, 0.0  ;;  %v11545_v2 = vld [vmem:[#allocation4 + $0x384] sm:$0xf0] }
 0x8a7   :  { %v11572_v22 = vor.u32 %v12743_v14, %v11571_v57  ;;  %v11568_v21 = vor.u32 %v12740_v47, %v11565_v54  ;;  %v11564_v62 = vor.u32 %v12742_v48, %v11563_v51  ;;  %v11576_v30 = vor.u32 %v12741_v56, %v11573_v10  ;;  %v11543_v17 = vld [vmem:[#allocation4 + $0x370] sm:$0xf]  ;;  %v12737_v50 = vld [vmem:[#allocation4 + $0x380] sm:$0xf0]  ;;  %v12736_v36 = vld [vmem:[#allocation4 + $0x37c] sm:$0xf] }
 0x8a8   :  { %v6658_v4 = vadd.f32 %v6657_v25, %v6656_v24  ;;  %v11552_v58 = vor.u32 %v12738_v5, %v11551_v31  ;;  %v11548_v61 = vor.u32 %v12735_v33, %v11545_v2  ;;  %v11553_v3 = vld [vmem:[#allocation4 + $0x38c] sm:$0xf0]  ;;  %v12733_v26 = vld [vmem:[#allocation4 + $0x360] sm:$0xf0]  ;;  %v12730_v34 = vld [vmem:[#allocation4 + $0x34c] sm:$0xf]  ;;  %7120 = vperm.xlu2 %13174, %v17196_v28   ;;  %7271 = vperm.xlu0 %13176, %v17235_v55  }
 0x8a9   :  { %6966 = vmatpush.bf16.msra.mxu3 %v11572_v22  ;;  %6937 = vmatpush.bf16.msra.mxu2 %v11568_v21  ;;  %v11556_v23 = vor.u32 %v12736_v36, %v11553_v3  ;;  %v11531_v53 = vld [vmem:[#allocation4 + $0x350] sm:$0xf]  ;;  %v11525_v25 = vld [vmem:[#allocation4 + $0x35c] sm:$0xf0]  ;;  %v12727_v47 = vld [vmem:[#allocation4 + $0x330] sm:$0xf0] }
 0x8aa   :  { %v6660_v0 = vadd.f32 %v6659_v42, %v6658_v4  ;;  %6908 = vmatpush.bf16.msra.mxu1 %v11564_v62  ;;  %6995 = vmatpush.bf16.msrb.mxu0 %v11576_v30  ;;  %v11532_v24 = vor.u32 %v12733_v26, %v11531_v53  ;;  %v11523_v4 = vld [vmem:[#allocation4 + $0x348] sm:$0xf]  ;;  %v11528_v42 = vor.u32 %v12730_v34, %v11525_v25  ;;  %v11503_v57 = vld [vmem:[#allocation4 + $0x320] sm:$0xf]  ;;  %v7350_v21 = vld [vmem:[#allocation2 + $0x30] sm:$0x80] }
 0x8ab   :  { %13177 = vset.pattern.permute.xlu1 %v19472_v12  ;;  %v11544_v12 = vor.u32 %v12737_v50, %v11543_v17  ;;  %v11513_v22 = vld [vmem:[#allocation4 + $0x33c] sm:$0xf0]  ;;  %v11504_v54 = vor.u32 %v12727_v47, %v11503_v57  ;;  %v19473_v56 = vmov 6  }
 0x8ac   :  { %v6662_v45 = vadd.f32 %v6661_v1, %v6660_v0  ;;  %7124 = vperm.xlu1 %13177, %v17227_v19   ;;  %v12732_v0 = vld [vmem:[#allocation4 + $0x358] sm:$0xf0]  ;;  %v12731_v1 = vld [vmem:[#allocation4 + $0x354] sm:$0xf] }
 0x8ad   :  { %6967 = vmatpush.bf16.msra.mxu3 %v11552_v58  ;;  %6938 = vmatpush.bf16.msra.mxu2 %v11548_v61  ;;  %v13193_v61 = vld [vmem:[#allocation8 + $0x4] ss:$0 sm:$0xff] }
 0x8ae   :  { %v6664_v38 = vadd.f32 %v6663_v16, %v6662_v45  ;;  %6909 = vmatpush.bf16.msra.mxu1 %v11544_v12  ;;  %6996 = vmatpush.bf16.msrb.mxu0 %v11556_v23  ;;  %v11533_v45 = vld [vmem:[#allocation4 + $0x364] sm:$0xf0] }
 0x8b0   :  { %v6666_v15 = vadd.f32 %v6665_v29, %v6664_v38  ;;  %v11524_v38 = vor.u32 %v12732_v0, %v11523_v4  ;;  %v11536_v29 = vor.u32 %v12731_v1, %v11533_v45  ;;  %13178 = vset.pattern.permute.xlu2 %v19473_v56  ;;  %13179 = vset.pattern.permute.xlu0 %v19473_v56 }
 0x8b1   :  { %6968 = vmatpush.bf16.msra.mxu3 %v11532_v24  ;;  %6939 = vmatpush.bf16.msra.mxu2 %v11528_v42 }
 0x8b2   :  { %v6668_v27 = vadd.f32 %v6667_v41, %v6666_v15  ;;  %v11511_v15 = vld [vmem:[#allocation4 + $0x328] sm:$0xf]  ;;  %v12728_v41 = vld [vmem:[#allocation4 + $0x338] sm:$0xf0]  ;;  %6910 = vmatpush.bf16.msra.mxu1 %v11524_v38  ;;  %6997 = vmatpush.bf16.msrb.mxu0 %v11536_v29 }
 0x8b3   :  { %7637 = vperm.xlu0 %13179, %v17178_v60  }
 0x8b4   :  { %v6669_v39 = vrot.slane %v6668_v27, 4  ;;  %7128 = vperm.xlu1 %13177, %v17210_v20  }
 0x8b5   :  { %v17326_v48 = vpop.permute.xlu2 %7353 }
 0x8b6   :  { %v6670_v40 = vadd.f32 %v6669_v39, %v6668_v27  ;;  %v11512_v27 = vor.u32 %v12728_v41, %v11511_v15  ;;  %v12725_v39 = vld [vmem:[#allocation4 + $0x324] sm:$0xf]  ;;  %6911 = vmatpush.bf16.msra.mxu1 %v11504_v54 }
 0x8b8   :  { %v6671_v7 = vrot.slane %v6670_v40, 2  ;;  %6969 = vmatpush.bf16.msra.mxu3 %v11512_v27 }
 0x8ba   :  { %v6672_v11 = vadd.f32 %v6671_v7, %v6670_v40  ;;  %v11505_v40 = vld [vmem:[#allocation4 + $0x334] sm:$0xf0]  ;;  %v12726_v7 = vld [vmem:[#allocation4 + $0x32c] sm:$0xf] }
 0x8bb   :  { %v11508_v14 = vor.u32 %v12725_v39, %v11505_v40  ;;  %v11516_v51 = vor.u32 %v12726_v7, %v11513_v22  ;;  %7649 = vperm.xlu0 %13179, %v17210_v20  }
 0x8bc   :  { %v6673_v9 = vrot.slane %v6672_v11, 1  ;;  %7132 = vperm.xlu1 %13177, %v17218_v8  }
 0x8bd   :  { %6940 = vmatpush.bf16.msra.mxu2 %v11508_v14  ;;  %6998 = vmatpush.bf16.msrb.mxu0 %v11516_v51 }
 0x8be   :  { %v6674_v49 = vadd.f32 %v6673_v9, %v6672_v11  ;;  %v7376_v11 = vrot.slane %v17326_v48, 1  ;;  %v6688_v9 = vld [vmem:[#allocation6 + $0x4] sm:$0x1] }
 0x8c0   :  { %v6675_v63 = vmul.f32 0.015625, %v6674_v49  ;;  %v7400_v30 = vmul.f32 %v7376_v11, %v7350_v21 }
 0x8c2   :  { %v6676_v16 = vadd.f32 1e-05, %v6675_v63 }
 0x8c3   :  { %7652 = vperm.xlu0 %13179, %v17218_v8  }
 0x8c4   :  { %13203 = vrsqrt.f32 %v6676_v16  ;;  %7418 = vrot.lane.b32.xlu1 %v7400_v30, %s13304_s0  ;;  %vm6683_vm6 = vweird.f32 %v6676_v16 }
 0x8ca   :  { %v13204_v10 = vpop.eup %13203 }
 0x8cb   :  { %v6678_v62 = vmul.f32 %v13204_v10, %v6676_v16  ;;  %vm6684_vm5 = vweird.f32 %v13204_v10 }
 0x8cc   :  { %vm6685_vm8 = vmor %vm6683_vm6, %vm6684_vm5  ;;  %7136 = vperm.xlu1 %13177, %v17235_v55  }
 0x8cd   :  { %v6679_v31 = vmul.f32 %v13204_v10, %v6678_v62 }
 0x8cf   :  { %v6680_v5 = vmul.f32 0.5, %v6679_v31 }
 0x8d1   :  { %v6681_v33 = vsub.f32 1.5, %v6680_v5 }
 0x8d3   :  { %v6682_v58 = vmul.f32 %v13204_v10, %v6681_v33  ;;  %v17355_v33 = vpop.permute.xlu1 %7359 }
 0x8d4   :  { %13180 = vset.pattern.permute.xlu1 %v19473_v56 }
 0x8d5   :  { %v6686_v2 = vsel %vm6685_vm8, %v13204_v10, %v6682_v58  ;;  %7640 = vperm.xlu1 %13180, %v17156_v32  }
 0x8d6   :  { %v6689_v17 = vmul.f32 %v6688_v9, %v6686_v2  ;;  %v19474_v9 = vmov 8  }
 0x8d7   :  { %13186 = vset.pattern.permute.xlu0 %v19474_v9 }
 0x8d8   :  { %v6690_v50 = vperm.slane %v6689_v17, 0  ;;  %7772 = vperm.xlu0 %13186, %v17178_v60   ;;  %v11559_v60 = vld [vmem:[#allocation4 + $0x380] sm:$0xf] }
 0x8da   :  { %v6699_v36 = vmul.f32 %v6690_v50, %v17267_v59  ;;  %v6691_v3 = vmul.f32 %v6690_v50, %v17245_v6  ;;  %v6692_v49 = vmul.f32 %v6690_v50, %v17248_v35  ;;  %v6693_v12 = vmul.f32 %v6690_v50, %v17251_v44 }
 0x8db   :  { %v6694_v23 = vmul.f32 %v6690_v50, %v17254_v52  ;;  %v6695_v53 = vmul.f32 %v6690_v50, %v17257_v18  ;;  %v6696_v26 = vmul.f32 %v6690_v50, %v17260_v46  ;;  %v6697_v34 = vmul.f32 %v6690_v50, %v17263_v37 }
 0x8dc   :  { %v6713_v63 = vadd.f32 %v13193_v61, %v6699_v36  ;;  %v6705_v24 = vadd.f32 %v13193_v61, %v6691_v3  ;;  %v6706_v25 = vadd.f32 %v13193_v61, %v6692_v49  ;;  %v6707_v59 = vadd.f32 %v13193_v61, %v6693_v12  ;;  %v17381_v12 = vpop.permute.xlu1 %7509 }
 0x8dd   :  { %v6708_v4 = vadd.f32 %v13193_v61, %v6694_v23  ;;  %v6709_v6 = vadd.f32 %v13193_v61, %v6695_v53  ;;  %v6710_v42 = vadd.f32 %v13193_v61, %v6696_v26  ;;  %v6698_v35 = vmul.f32 %v6690_v50, %v17265_v13  ;;  %13182 = vset.pattern.permute.xlu1 %v19474_v9  ;;  %v11579_v23 = vld [vmem:[#allocation4 + $0x3a8] sm:$0xf]  ;;  %v12744_v53 = vld [vmem:[#allocation4 + $0x3b8] sm:$0xf0]  ;;  %v17398_v26 = vpop.permute.xlu2 %7506 }
 0x8de   :  { %v6718_v44 = vpack.c.bf16 %v6713_v63, %v6713_v63  ;;  %v6714_v0 = vpack.c.bf16 %v6706_v25, %v6705_v24  ;;  %v6711_v18 = vadd.f32 %v13193_v61, %v6697_v34  ;;  %7775 = vperm.xlu1 %13182, %v17156_v32   ;;  %v11580_v34 = vor.u32 %v12744_v53, %v11579_v23  ;;  %v12739_v63 = vld [vmem:[#allocation4 + $0x390] sm:$0xf0]  ;;  %v11539_v25 = vld [vmem:[#allocation4 + $0x358] sm:$0xf] }
 0x8df   :  { %v6715_v52 = vpack.c.bf16 %v6708_v4, %v6707_v59  ;;  %v6716_v1 = vpack.c.bf16 %v6710_v42, %v6709_v6  ;;  %v6712_v46 = vadd.f32 %v13193_v61, %v6698_v35  ;;  %v17366_v61 = vld [vmem:[#allocation2 + $0x8] sm:$0xff]  ;;  %v11560_v24 = vor.u32 %v12739_v63, %v11559_v60  ;;  %v11519_v35 = vld [vmem:[#allocation4 + $0x330] sm:$0xf] }
 0x8e0   :  { %v6780_v37 = vshrl.u32 %v6718_v44, 16  ;;  %v6783_v45 = vshll.u32 %v6718_v44, 16  ;;  %v6745_v16 = vshrl.u32 %v6714_v0, 16  ;;  %v6748_v38 = vshll.u32 %v6714_v0, 16  ;;  %7024 = vmatpush.bf16.msrb.mxu1 %v11580_v34  ;;  %v12734_v59 = vld [vmem:[#allocation4 + $0x368] sm:$0xf0]  ;;  %7778 = vperm.xlu0 %13186, %v17196_v28   ;;  %v17412_v0 = vpop.permute.xlu0 %7518 }
 0x8e1   :  { %v6753_v29 = vshrl.u32 %v6715_v52, 16  ;;  %v6756_v15 = vshll.u32 %v6715_v52, 16  ;;  %v6762_v41 = vshrl.u32 %v6716_v1, 16  ;;  %v6765_v27 = vshll.u32 %v6716_v1, 16  ;;  %v12729_v44 = vld [vmem:[#allocation4 + $0x340] sm:$0xf0] }
 0x8e2   :  { %v6747_v39 = vrot.slane %v6745_v16, 3  ;;  %v6750_v13 = vrot.slane %v6748_v38, 4  ;;  %v6782_v7 = vrot.slane %v6780_v37, 3  ;;  %v6785_v22 = vrot.slane %v6783_v45, 4 }
 0x8e3   :  { %v6755_v40 = vrot.slane %v6753_v29, 3  ;;  %v6758_v57 = vrot.slane %v6756_v15, 4  ;;  %v6764_v14 = vrot.slane %v6762_v41, 3  ;;  %v6767_v47 = vrot.slane %v6765_v27, 4 }
 0x8e4   :  { %v6751_v54 = vor.u32 %v6750_v13, %v6747_v39  ;;  %v6717_v51 = vpack.c.bf16 %v6712_v46, %v6711_v18  ;;  %v6786_v17 = vor.u32 %v6785_v22, %v6782_v7  ;;  %v17369_v50 = vrot.slane %v17366_v61, 1  ;;  %v17388_v32 = vpop.permute.xlu1 %7515  ;;  %7025 = vmatpush.bf16.msrb.mxu1 %v11560_v24 }
 0x8e5   :  { %v6759_v21 = vor.u32 %v6758_v57, %v6755_v40  ;;  %v6768_v10 = vor.u32 %v6767_v47, %v6764_v14  ;;  %v11540_v6 = vor.u32 %v12734_v59, %v11539_v25  ;;  %v17407_v42 = vpop.permute.xlu2 %7512 }
 0x8e6   :  { %v6771_v62 = vshrl.u32 %v6717_v51, 16  ;;  %v6774_v30 = vshll.u32 %v6717_v51, 16  ;;  %7204 = vrot.lane.b32.xlu2 %v17369_v50, %s13304_s0  ;;  %13184 = vset.pattern.permute.xlu1 %v19473_v56 }
 0x8e7   :  { %v17350_v31 = vsel %vm1451_vm7, %v6751_v54, %v6759_v21  ;;  %v17353_v5 = vsel %vm1451_vm7, %v6759_v21, %v6768_v10  ;;  %7646 = vperm.xlu1 %13184, %v17227_v19  }
 0x8e8   :  { %11581 = vmatmul.msk.bf16.vlgmr.msra.gmra.mxu1 %vm78_vm0, %v17350_v31  ;;  %11585 = vmatmul.msk.bf16.vlgmr.msra.gmra.mxu2 %vm78_vm0, %v17350_v31  ;;  %v6773_v58 = vrot.slane %v6771_v62, 3  ;;  %v6776_v2 = vrot.slane %v6774_v30, 4  ;;  %v7240_v30 = vld [vmem:[#allocation2 + $0x30] sm:$0xfe] }
 0x8e9   :  { %11589 = vmatmul.msk.bf16.vlgmr.msra.gmra.mxu3 %vm78_vm0, %v17350_v31  ;;  %11593 = vmatmul.msk.bf16.vlgmr.msrb.gmra.mxu0 %vm78_vm0, %v17350_v31 }
 0x8ea   :  { %v6777_v36 = vor.u32 %v6776_v2, %v6773_v58  ;;  %7026 = vmatpush.bf16.msrb.mxu1 %v11540_v6  ;;  %7790 = vperm.xlu0 %13186, %v17235_v55   ;;  %v7089_v2 = vld [vmem:[#allocation2] sm:$0x80] }
 0x8ec   :  { %v17376_v3 = vsel %vm1451_vm7, %v6768_v10, %v6777_v36  ;;  %v17379_v49 = vsel %vm1451_vm7, %v6777_v36, %v6786_v17  ;;  %v17405_v4 = vpop.permute.xlu1 %7368 }
 0x8ee   :  { %7634 = vperm.xlu2 %13178, %v17171_v43  }
 0x8ef   :  { %13187 = vset.pattern.permute.xlu1 %v19474_v9 }
 0x8f0   :  { %7787 = vperm.xlu1 %13187, %v17218_v8   ;;  %v17428_v8 = vpop.permute.xlu0 %7356 }
 0x8f4   :  { %v17414_v52 = vpop.permute.xlu1 %7371 }
 0x8f6   :  { %13181 = vset.pattern.permute.xlu2 %v19474_v9 }
 0x8f7   :  { %7769 = vperm.xlu2 %13181, %v17171_v43   ;;  %v11520_v43 = vor.u32 %v12729_v44, %v11519_v35 }
 0x8f8   :  { %11582 = vmatmul.msk.bf16.gmra.mxu1 %vm78_vm0, %v17353_v5  ;;  %11586 = vmatmul.msk.bf16.gmra.mxu2 %vm78_vm0, %v17353_v5  ;;  %v17435_v46 = vpop.permute.xlu0 %7362 }
 0x8f9   :  { %11590 = vmatmul.msk.bf16.gmra.mxu3 %vm78_vm0, %v17353_v5  ;;  %11594 = vmatmul.msk.bf16.gmra.mxu0 %vm78_vm0, %v17353_v5 }
 0x8fa   :  { %7027 = vmatpush.bf16.msrb.mxu1 %v11520_v43 }
 0x8fc   :  { %v17430_v1 = vpop.permute.xlu1 %7527 }
 0x8ff   :  { %13183 = vset.pattern.permute.xlu2 %v19473_v56 }
 0x900   :  { %7643 = vperm.xlu2 %13183, %v17196_v28   ;;  %v17424_v28 = vpop.permute.xlu2 %7365 }
 0x904   :  { %v7254_v37 = vpop.permute.xlu1 %7253 }
 0x905   :  { %v7274_v16 = vrot.slane %v7254_v37, 7 }
 0x908   :  { %11583 = vmatmul.msk.bf16.gmra.mxu1 %vm78_vm0, %v17376_v3  ;;  %11587 = vmatmul.msk.bf16.gmra.mxu2 %vm78_vm0, %v17376_v3  ;;  %v17432_v18 = vpop.permute.xlu2 %7521 }
 0x909   :  { %11591 = vmatmul.msk.bf16.gmra.mxu3 %vm78_vm0, %v17376_v3  ;;  %11595 = vmatmul.msk.bf16.gmra.mxu0 %vm78_vm0, %v17376_v3 }
 0x90a   :  { %13185 = vset.pattern.permute.xlu2 %v19474_v9 }
 0x90b   :  { %7781 = vperm.xlu2 %13185, %v17227_v19  }
 0x90c   :  { %v17450_v45 = vpop.permute.xlu1 %7112 }
 0x90d   :  { %v7139_v60 = vrot.slane %v17450_v45, 1 }
 0x910   :  { %v17445_v19 = vpop.permute.xlu2 %7524 }
 0x913   :  { %7784 = vperm.xlu2 %13185, %v17210_v20   ;;  %v17448_v20 = vpop.permute.xlu0 %7374 }
 0x915   :  { %v7260_v27 = vpop.permute.xlu1 %7259 }
 0x916   :  { %v7278_v39 = vrot.slane %v7260_v27, 7 }
 0x918   :  { %11584 = vmatmul.msk.bf16.gmra.mxu1 %vm78_vm0, %v17379_v49  ;;  %11588 = vmatmul.msk.bf16.gmra.mxu2 %vm78_vm0, %v17379_v49  ;;  %v7251_v38 = vpop.permute.xlu2 %7250 }
 0x919   :  { %11592 = vmatmul.msk.bf16.gmra.mxu3 %vm78_vm0, %v17379_v49  ;;  %11596 = vmatmul.msk.bf16.gmra.mxu0 %vm78_vm0, %v17379_v49  ;;  %v7273_v29 = vrot.slane %v7251_v38, 7 }
 0x91b   :  { %13188 = vset.pattern.permute.xlu2 %v19473_v56  ;;  %v17454_v15 = vsel %vm657_vm2, %v7273_v29, %v7274_v16  ;;  %v17456_v41 = vpop.permute.xlu0 %7108  ;;  %v17477_v17 = vmul.f32 %v7273_v29, %v7240_v30 }
 0x91c   :  { %7655 = vperm.xlu2 %13188, %v17235_v55  }
 0x91d   :  { %v7315_v53 = vrot.slane %v17477_v17, 2 }
 0x91e   :  { %v7125_v14 = vpop.permute.xlu1 %7124 }
 0x920   :  { %v7257_v56 = vpop.permute.xlu2 %7256 }
 0x921   :  { %v7276_v13 = vrot.slane %v7257_v56, 7 }
 0x923   :  { %v17461_v40 = vsel %vm657_vm2, %v7274_v16, %v7276_v13  ;;  %v17464_v55 = vsel %vm657_vm2, %v7276_v13, %v7278_v39  ;;  %v7263_v57 = vpop.permute.xlu0 %7262  ;;  %v7145_v13 = vrot.slane %v7125_v14, 1 }
 0x924   :  { %v7280_v47 = vrot.slane %v7263_v57, 7 }
 0x926   :  { %v17467_v22 = vsel %vm657_vm2, %v7278_v39, %v7280_v47  ;;  %v7129_v51 = vpop.permute.xlu1 %7128 }
 0x928   :  { %11597 = vmatmul.msk.bf16.vlgmr.msrb.gmra.mxu1 %vm78_vm0, %v17350_v31  ;;  %v7117_v7 = vpop.permute.xlu2 %7116  ;;  %v7138_v31 = vrot.slane %v17456_v41, 1 }
 0x929   :  { %v7141_v63 = vrot.slane %v7117_v7, 1 }
 0x92b   :  { %v7266_v54 = vpop.permute.xlu0 %7265  ;;  %v7142_v37 = vsel %vm521_vm1, %v7139_v60, %v7141_v63 }
 0x92c   :  { %v7282_v21 = vrot.slane %v7266_v54, 7 }
 0x92e   :  { %v17472_v10 = vsel %vm657_vm2, %v7280_v47, %v7282_v21  ;;  %v17475_v58 = vpop.permute.xlu1 %7132 }
 0x930   :  { %v7121_v62 = vpop.permute.xlu2 %7120 }
 0x931   :  { %v7143_v16 = vrot.slane %v7121_v62, 1  ;;  %v7147_v62 = vrot.slane %v7129_v51, 1  ;;  %v19262_v51 = vrot.slane %v17428_v8, 1 }
 0x933   :  { %v7269_v9 = vpop.permute.xlu0 %7268  ;;  %v17508_v56 = vsel %vm521_vm1, %v7141_v63, %v7143_v16  ;;  %v17524_v14 = vsel %vm521_vm1, %v7145_v13, %v7147_v62 }
 0x934   :  { %v7284_v36 = vrot.slane %v7269_v9, 7  ;;  %19476 = vst [vmem:[#allocation25_spill] sm:$0xff] %v17524_v14 }
 0x936   :  { %v17480_v23 = vsel %vm657_vm2, %v7282_v21, %v7284_v36  ;;  %v7419_v59 = vpop.permute.xlu1 %7418  ;;  %v7146_v21 = vsel %vm521_vm1, %v7143_v16, %v7145_v13 }
 0x938   :  { %11598 = vmatmul.msk.bf16.gmra.mxu1 %vm78_vm0, %v17353_v5  ;;  %v7162_v5 = vmul.f32 %v7138_v31, %v7089_v2 }
 0x93b   :  { %v17486_v25 = vpop.permute.xlu0 %7271 }
 0x93c   :  { %v19260_v6 = vrot.slane %v17486_v25, 7 }
 0x93e   :  { %v17496_v44 = vsel %vm657_vm2, %v7284_v36, %v19260_v6 }
 0x940   :  { %v7205_v34 = vpop.permute.xlu2 %7204 }
 0x941   :  { %v7231_v24 = vadd.f32 %v7205_v34, %v7162_v5 }
 0x943   :  { %v7341_v35 = vadd.f32 %v7315_v53, %v7231_v24  ;;  %v7638_v29 = vpop.permute.xlu0 %7637 }
 0x944   :  { %v7658_v27 = vrot.slane %v7638_v29, 1 }
 0x945   :  { %v7445_v43 = vadd.f32 %v7419_v59, %v7341_v35 }
 0x948   :  { %11599 = vmatmul.msk.bf16.gmra.mxu1 %vm78_vm0, %v17376_v3  ;;  %v17499_v45 = vpop.permute.xlu2 %7634  ;;  %v17502_v3 = vpop.permute.xlu1 %7136 }
 0x949   :  { %v19257_v38 = vrot.slane %v17499_v45, 1  ;;  %19475 = vst [vmem:[#allocation16_spill] sm:$0xff] %v17502_v3 }
 0x94b   :  { %v7659_v39 = vsel %vm521_vm1, %v19257_v38, %v7658_v27 }
 0x950   :  { %v7641_v57 = vpop.permute.xlu1 %7640 }
 0x951   :  { %v17510_v47 = vpop.permute.xlu2 %7769  ;;  %v7660_v7 = vrot.slane %v7641_v57, 1 }
 0x953   :  { %v17515_v54 = vsel %vm521_vm1, %v7658_v27, %v7660_v7 }
 0x958   :  { %11600 = vmatmul.msk.bf16.gmra.mxu1 %vm78_vm0, %v17379_v49  ;;  %v17518_v30 = vpop.permute.xlu1 %7775  ;;  %v7149_v49 = vrot.slane %v17475_v58, 1 }
 0x95a   :  { %v7644_v9 = vpop.permute.xlu2 %7643  ;;  %v17543_v29 = vsel %vm521_vm1, %v7147_v62, %v7149_v49  ;;  %v17559_v62 = vsel %vm521_vm1, %v7138_v31, %v7139_v60  ;;  %v19261_v31 = vrot.slane %v17381_v12, 7  ;;  %v7529_v60 = vrot.slane %v17398_v26, 7 }
 0x95b   :  { %v7662_v2 = vrot.slane %v7644_v9, 1 }
 0x95d   :  { %v17521_v36 = vsel %vm521_vm1, %v7660_v7, %v7662_v2 }
 0x960   :  { %v7647_v59 = vpop.permute.xlu1 %7646 }
 0x961   :  { %v7664_v16 = vrot.slane %v7647_v59, 1  ;;  %v7650_v59 = vpop.permute.xlu0 %7649 }
 0x963   :  { %v17540_v58 = vsel %vm521_vm1, %v7662_v2, %v7664_v16 }
 0x965   :  { %v17526_v5 = vpop.f32.mrf.mxu1 }
 0x966   :  { %v7000_v34 = vpop.f32.mrf.mxu0  ;;  %v19263_v63 = vrot.slane %v17526_v5, 1  ;;  %v17531_v24 = vmul.f32 %v7142_v37, %v17526_v5  ;;  %v7378_v37 = vsel %vm521_vm1, %v7376_v11, %v19262_v51  ;;  %v19259_v11 = vrot.slane %v17502_v3, 1 }
 0x967   :  { %7052 = vst [vmem:[#allocation2 + $0x68] sm:$0xff] %v7000_v34 }
 0x968   :  { %v7191_v35 = vsel %vm521_vm1, %v17369_v50, %v19263_v63 }
 0x969   :  { %7206 = vrot.lane.b32.xlu1 %v7191_v35, %s13304_s0  ;;  %v17608_v63 = vpop.permute.xlu0 %7652 }
 0x96a   :  { %19480 = vst [vmem:[#allocation19_spill] sm:$0xff] %v17608_v63 }
 0x96b   :  { %v6942_v27 = vpop.f32.mrf.mxu2 }
 0x96c   :  { %v17550_v13 = vpop.f32.mrf.mxu3  ;;  %v7401_v57 = vmul.f32 %v7378_v37, %v6942_v27  ;;  %v7298_v7 = vmul.f32 %v17454_v15, %v6942_v27  ;;  %v17566_v15 = vpop.permute.xlu2 %7781  ;;  %v7666_v37 = vrot.slane %v7650_v59, 1 }
 0x96d   :  { %7051 = vst [vmem:[#allocation2 + $0x60] sm:$0xff] %v17550_v13  ;;  %v17554_v9 = vpop.f32.mrf.mxu1  ;;  %v19258_v2 = vrot.slane %v17550_v13, 1 }
 0x96e   :  { %v17562_v48 = vpop.f32.mrf.mxu0  ;;  %7420 = vrot.lane.b32.xlu2 %v7401_v57, %s13304_s0  ;;  %v7316_v34 = vrot.slane %v7298_v7, 2  ;;  %v17583_v57 = vsel %vm521_vm1, %v7664_v16, %v7666_v37  ;;  %v7531_v7 = vsel %vm657_vm2, %v7529_v60, %v19261_v31 }
 0x96f   :  { %v17570_v35 = vadd.f32 %v19258_v2, %v7445_v43  ;;  %v17573_v41 = vmul.f32 %v7659_v39, %v17562_v48  ;;  %v17588_v43 = vsel %vm521_vm1, %v7149_v49, %v19259_v11  ;;  %v7708_v17 = vrot.slane %v17562_v48, 1 }
 0x970   :  { %v17580_v27 = vsel %vm700_vm3, %v7315_v53, %v7316_v34  ;;  %19479 = vst [vmem:[#allocation18_spill] sm:$0xff] %v17588_v43  ;;  %v7379_v48 = vrot.slane %v17355_v33, 1 }
 0x971   :  { %19477 = vst [vmem:[#allocation23_spill] sm:$0xff] %v17570_v35 }
 0x972   :  { %19478 = vst [vmem:[#allocation17_spill] sm:$0xff] %v17573_v41 }
 0x973   :  { %v6944_v39 = vpop.f32.mrf.mxu2 }
 0x974   :  { %v17593_v26 = vpop.f32.mrf.mxu3  ;;  %v7503_v59 = vld [vmem:[#allocation2 + $0x60] sm:$0xfe]  ;;  %v7299_v53 = vmul.f32 %v17461_v40, %v6944_v39  ;;  %v19267_v40 = vrot.slane %v17608_v63, 1  ;;  %v19483_v63 = vrot.slane %v17526_v5, 1 }
 0x975   :  { %v17597_v38 = vpop.f32.mrf.mxu1  ;;  %v7553_v16 = vmul.f32 %v7529_v60, %v7503_v59  ;;  %v17600_v2 = vmul.f32 %v7531_v7, %v17593_v26  ;;  %v17611_v60 = vpop.permute.xlu2 %7784 }
 0x976   :  { %v7005_v49 = vpop.f32.mrf.mxu0  ;;  %7723 = vrot.lane.b32.xlu2 %v7708_v17, %s13304_s0  ;;  %v17604_v11 = vmul.f32 %v7146_v21, %v17597_v38  ;;  %v7318_v6 = vrot.slane %v7299_v53, 2  ;;  %v7192_v53 = vrot.slane %v17554_v9, 1 }
 0x977   :  { %v7571_v31 = vrot.slane %v7553_v16, 2  ;;  %v19265_v51 = vrot.slane %v17600_v2, 2  ;;  %v17617_v59 = vmul.f32 %v17515_v54, %v7005_v49  ;;  %v19268_v16 = vrot.slane %v17611_v60, 7 }
 0x978   :  { %v17614_v7 = vsel %vm700_vm3, %v7316_v34, %v7318_v6  ;;  %v17630_v34 = vsel %vm521_vm1, %v7666_v37, %v19267_v40  ;;  %v7193_v37 = vsel %vm521_vm1, %v19483_v63, %v7192_v53  ;;  %v19484_v40 = vrot.slane %v17428_v8, 1 }
 0x979   :  { %19481 = vst [vmem:[#allocation14_spill] sm:$0xff] %v17617_v59  ;;  %7588 = vrot.lane.b32.xlu0 %v7571_v31, %s13304_s0  ;;  %v7573_v21 = vsel %vm700_vm3, %v7571_v31, %v19265_v51  ;;  %v19482_v31 = vrot.slane %v17566_v15, 7  ;;  %v7194_v8 = vrot.slane %v17597_v38, 1 }
 0x97a   :  { %7590 = vrot.lane.b32.xlu1 %v7573_v21, %s13304_s0  ;;  %v7380_v54 = vsel %vm521_vm1, %v19484_v40, %v7379_v48  ;;  %v19270_v40 = vrot.slane %v17388_v32, 7 }
 0x97b   :  { %v6947_v3 = vpop.f32.mrf.mxu2  ;;  %v17638_v51 = vsel %vm657_vm2, %v19482_v31, %v19268_v16  ;;  %v19485_v31 = vrot.slane %v17435_v46, 1  ;;  %v7402_v41 = vmul.f32 %v7380_v54, %v6944_v39  ;;  %v7709_v54 = vrot.slane %v7005_v49, 1 }
 0x97c   :  { %v17640_v43 = vpop.f32.mrf.mxu3  ;;  %v7300_v33 = vmul.f32 %v17464_v55, %v6947_v3 }
 0x97d   :  { %v17643_v21 = vpop.f32.mrf.mxu1  ;;  %v7382_v16 = vsel %vm521_vm1, %v7379_v48, %v19485_v31  ;;  %v7532_v48 = vrot.slane %v17407_v42, 7  ;;  %v19269_v38 = vrot.slane %v17640_v43, 1 }
 0x97e   :  { %v7007_v14 = vpop.f32.mrf.mxu0  ;;  %7208 = vrot.lane.b32.xlu2 %v7193_v37, %s13304_s0  ;;  %v7320_v59 = vrot.slane %v7300_v33, 2  ;;  %v7403_v35 = vmul.f32 %v7382_v16, %v6947_v3  ;;  %v19272_v31 = vrot.slane %v17643_v21, 1 }
 0x97f   :  { %v17656_v55 = vmul.f32 %v17521_v36, %v7007_v14  ;;  %v7535_v49 = vsel %vm657_vm2, %v7532_v48, %v19270_v40 }
 0x980   :  { %v17659_v5 = vsel %vm700_vm3, %v7318_v6, %v7320_v59  ;;  %v7195_v6 = vsel %vm521_vm1, %v7192_v53, %v7194_v8  ;;  %v7710_v53 = vsel %vm521_vm1, %v7708_v17, %v7709_v54 }
 0x981   :  { %19486 = vst [vmem:[#allocation20_spill] sm:$0xff] %v17656_v55  ;;  %7422 = vrot.lane.b32.xlu0 %v7402_v41, %s13304_s0  ;;  %v7711_v41 = vrot.slane %v7007_v14, 1 }
 0x982   :  { %7424 = vrot.lane.b32.xlu1 %v7403_v35, %s13304_s0 }
 0x983   :  { %v17664_v63 = vpop.f32.mrf.mxu2 }
 0x984   :  { %v6978_v39 = vpop.f32.mrf.mxu3  ;;  %v7301_v3 = vmul.f32 %v17467_v22, %v17664_v63 }
 0x985   :  { %v17670_v36 = vpop.f32.mrf.mxu1  ;;  %v7475_v16 = vrot.slane %v6978_v39, 1 }
 0x986   :  { %v17674_v35 = vpop.f32.mrf.mxu0  ;;  %7210 = vrot.lane.b32.xlu2 %v7195_v6, %s13304_s0  ;;  %v7322_v33 = vrot.slane %v7301_v3, 2  ;;  %v17679_v42 = vmul.f32 %v17543_v29, %v17670_v36  ;;  %v7712_v29 = vsel %vm521_vm1, %v7709_v54, %v7711_v41  ;;  %v17700_v3 = vmul.f32 %v7535_v49, %v6978_v39 }
 0x987   :  { %v17684_v22 = vsel %vm521_vm1, %v19269_v38, %v7475_v16  ;;  %v17688_v14 = vmul.f32 %v17540_v58, %v17674_v35  ;;  %v19489_v58 = vrot.slane %v17381_v12, 7  ;;  %v7197_v39 = vsel %vm521_vm1, %v7194_v8, %v19272_v31 }
 0x988   :  { %19487 = vst [vmem:[#allocation22_spill] sm:$0xff] %v17679_v42  ;;  %v17695_v37 = vsel %vm700_vm3, %v7320_v59, %v7322_v33  ;;  %v19271_v59 = vrot.slane %v17674_v35, 1  ;;  %v7576_v12 = vrot.slane %v17700_v3, 2  ;;  %v19492_v31 = vrot.slane %v17412_v0, 7 }
 0x989   :  { %19488 = vst [vmem:[#allocation21_spill] sm:$0xff] %v17688_v14  ;;  %7725 = vrot.lane.b32.xlu0 %v7710_v53, %s13304_s0  ;;  %v7533_v6 = vsel %vm657_vm2, %v19489_v58, %v7532_v48 }
 0x98a   :  { %7727 = vrot.lane.b32.xlu1 %v7712_v29, %s13304_s0  ;;  %v7555_v17 = vmul.f32 %v7533_v6, %v17640_v43 }
 0x98b   :  { %v6952_v38 = vpop.f32.mrf.mxu2 }
 0x98c   :  { %v6981_v40 = vpop.f32.mrf.mxu3  ;;  %v7302_v53 = vmul.f32 %v17472_v10, %v6952_v38  ;;  %v7574_v29 = vrot.slane %v7555_v17, 2  ;;  %v7714_v10 = vsel %vm521_vm1, %v7711_v41, %v19271_v59  ;;  %v19273_v17 = vrot.slane %v17405_v4, 1 }
 0x98d   :  { %v17709_v14 = vpop.f32.mrf.mxu1  ;;  %v7477_v54 = vrot.slane %v6981_v40, 1 }
 0x98e   :  { %v17715_v48 = vpop.f32.mrf.mxu0  ;;  %7212 = vrot.lane.b32.xlu2 %v7197_v39, %s13304_s0  ;;  %v7324_v49 = vrot.slane %v7302_v53, 2  ;;  %v7577_v3 = vsel %vm700_vm3, %v7574_v29, %v7576_v12 }
 0x98f   :  { %v17719_v58 = vsel %vm521_vm1, %v7475_v16, %v7477_v54  ;;  %v17729_v8 = vmul.f32 %v17583_v57, %v17715_v48  ;;  %v7383_v16 = vrot.slane %v17424_v28, 1 }
 0x990   :  { %v17725_v6 = vsel %vm700_vm3, %v7322_v33, %v7324_v49 }
 0x991   :  { %19490 = vst [vmem:[#allocation11_spill] sm:$0xff] %v17729_v8  ;;  %7729 = vrot.lane.b32.xlu0 %v7714_v10, %s13304_s0  ;;  %v19491_v10 = vrot.slane %v17600_v2, 2  ;;  %v7198_v2 = vrot.slane %v17670_v36, 1  ;;  %v19494_v36 = vrot.slane %v17709_v14, 1 }
 0x992   :  { %7594 = vrot.lane.b32.xlu1 %v7577_v3, %s13304_s0  ;;  %v7386_v3 = vsel %vm521_vm1, %v7383_v16, %v19273_v17  ;;  %v19493_v17 = vrot.slane %v17388_v32, 7 }
 0x993   :  { %v17736_v53 = vpop.f32.mrf.mxu2  ;;  %v7575_v59 = vsel %vm700_vm3, %v19491_v10, %v7574_v29  ;;  %v7405_v8 = vmul.f32 %v7386_v3, %v6952_v38  ;;  %v7201_v38 = vsel %vm521_vm1, %v7198_v2, %v19494_v36 }
 0x994   :  { %v17739_v33 = vpop.f32.mrf.mxu3  ;;  %v7303_v57 = vmul.f32 %v17480_v23, %v17736_v53  ;;  %v7537_v42 = vsel %vm657_vm2, %v19493_v17, %v19492_v31 }
 0x995   :  { %v17743_v39 = vpop.f32.mrf.mxu1  ;;  %v7479_v28 = vrot.slane %v17739_v33, 1 }
 0x996   :  { %7079 = vst [vmem:[#allocation2 + $0x140] sm:$0xff] %v17743_v39  ;;  %v17754_v41 = vpop.f32.mrf.mxu0  ;;  %7592 = vrot.lane.b32.xlu2 %v7575_v59, %s13304_s0  ;;  %v7326_v23 = vrot.slane %v7303_v57, 2  ;;  %v17777_v59 = vmul.f32 %v7537_v42, %v6981_v40 }
 0x997   :  { %v17759_v29 = vsel %vm521_vm1, %v7477_v54, %v7479_v28  ;;  %v17763_v10 = vmul.f32 %v17630_v34, %v17754_v41  ;;  %v19495_v34 = vrot.slane %v17435_v46, 1 }
 0x998   :  { %v17771_v55 = vsel %vm700_vm3, %v7324_v49, %v7326_v23  ;;  %v7578_v17 = vrot.slane %v17777_v59, 2 }
 0x999   :  { %7428 = vrot.lane.b32.xlu0 %v7405_v8, %s13304_s0  ;;  %v7384_v54 = vsel %vm521_vm1, %v19495_v34, %v7383_v16 }
 0x99a   :  { %7216 = vrot.lane.b32.xlu1 %v7201_v38, %s13304_s0  ;;  %v7404_v31 = vmul.f32 %v7384_v54, %v17664_v63  ;;  %v17806_v38 = vpop.permute.xlu1 %7787  ;;  %v19496_v54 = vrot.slane %v17643_v21, 1 }
 0x99b   :  { %v6957_v32 = vpop.f32.mrf.mxu2 }
 0x99c   :  { %v17783_v57 = vpop.f32.mrf.mxu3  ;;  %v7304_v49 = vmul.f32 %v17496_v44, %v6957_v32  ;;  %v7579_v44 = vsel %vm700_vm3, %v7576_v12, %v7578_v17  ;;  %v19497_v12 = vrot.slane %v17611_v60, 7 }
 0x99d   :  { %v6930_v8 = vpop.f32.mrf.mxu1  ;;  %v19274_v3 = vrot.slane %v17783_v57, 1 }
 0x99e   :  { %v17789_v40 = vpop.f32.mrf.mxu0  ;;  %7426 = vrot.lane.b32.xlu2 %v7404_v31, %s13304_s0  ;;  %v7328_v42 = vrot.slane %v7304_v49, 2  ;;  %v7202_v49 = vrot.slane %v17743_v39, 1  ;;  %v7715_v8 = vrot.slane %v17715_v48, 1  ;;  %v19499_v39 = vrot.slane %v17674_v35, 1 }
 0x99f   :  { %v17795_v46 = vsel %vm521_vm1, %v7479_v28, %v19274_v3  ;;  %v7199_v28 = vsel %vm521_vm1, %v19496_v54, %v7198_v2  ;;  %v7387_v2 = vrot.slane %v17414_v52, 1  ;;  %v7538_v54 = vrot.slane %v17432_v18, 7 }
 0x9a0   :  { %v17798_v16 = vsel %vm700_vm3, %v7326_v23, %v7328_v42  ;;  %v19275_v23 = vrot.slane %v17806_v38, 7 }
 0x9a2   :  { %7596 = vrot.lane.b32.xlu1 %v7579_v44, %s13304_s0  ;;  %v17818_v31 = vsel %vm657_vm2, %v19497_v12, %v19275_v23  ;;  %v7389_v44 = vrot.slane %v17448_v20, 1  ;;  %v19498_v12 = vrot.slane %v17486_v25, 7  ;;  %v7716_v20 = vsel %vm521_vm1, %v19499_v39, %v7715_v8 }
 0x9a3   :  { %v6959_v63 = vpop.f32.mrf.mxu2 }
 0x9a4   :  { %7085 = vst [vmem:[#allocation2 + $0x170] sm:$0xff] %v6959_v63  ;;  %v17804_v36 = vpop.f32.mrf.mxu3  ;;  %v7390_v18 = vsel %vm521_vm1, %v7387_v2, %v7389_v44 }
 0x9a5   :  { %v7029_v34 = vpop.f32.mrf.mxu1  ;;  %v7407_v25 = vmul.f32 %v7390_v18, %v6957_v32  ;;  %v7542_v32 = vrot.slane %v17430_v1, 7 }
 0x9a6   :  { %7214 = vrot.lane.b32.xlu2 %v7199_v28, %s13304_s0  ;;  %v7540_v28 = vrot.slane %v17445_v19, 7 }
 0x9a8   :  { %v7541_v19 = vsel %vm657_vm2, %v7538_v54, %v7540_v28 }
 0x9a9   :  { %v7559_v35 = vmul.f32 %v7541_v19, %v17783_v57 }
 0x9aa   :  { %7220 = vrot.lane.b32.xlu1 %v7202_v49, %s13304_s0 }
 0x9ab   :  { %v7351_v63 = vld [vmem:[#allocation2 + $0x170] sm:$0x7f] }
 0x9ac   :  { %v7248_v34 = vld [vmem:[#allocation2 + $0x170] sm:$0x1]  ;;  %v7408_v60 = vmul.f32 %v7389_v44, %v7351_v63 }
 0x9ad   :  { %v7305_v3 = vmul.f32 %v19498_v12, %v7248_v34  ;;  %v7031_v23 = vpop.f32.mrf.mxu1  ;;  %v7719_v34 = vrot.slane %v17789_v40, 1  ;;  %v19500_v12 = vrot.slane %v17412_v0, 7 }
 0x9ae   :  { %7058 = vst.msk [vmem:[#allocation2 + $0x98] sm:$0xff] %vm78_vm0, %v7031_v23  ;;  %7434 = vrot.lane.b32.xlu0 %v7408_v60, %s13304_s0  ;;  %7731 = vrot.lane.b32.xlu2 %v7716_v20, %s13304_s0  ;;  %v7582_v20 = vrot.slane %v7559_v35, 2 }
 0x9af   :  { %v7330_v52 = vrot.slane %v7305_v3, 2  ;;  %v7539_v23 = vsel %vm657_vm2, %v19500_v12, %v7538_v54  ;;  %v19501_v3 = vrot.slane %v17405_v4, 1  ;;  %v7722_v0 = vsel %vm521_vm1, %v7719_v34, %v17369_v50  ;;  %v7504_v12 = vld [vmem:[#allocation2 + $0x1a0] sm:$0x1] }
 0x9b0   :  { %v7558_v60 = vmul.f32 %v7539_v23, %v17739_v33  ;;  %v7543_v33 = vsel %vm657_vm2, %v7540_v28, %v7542_v32  ;;  %v7795_v28 = vrot.slane %v17518_v30, 7  ;;  %v17872_v23 = vpop.permute.xlu2 %7655 }
 0x9b1   :  { %v17840_v63 = vsel %vm700_vm3, %v7328_v42, %v7330_v52  ;;  %v7388_v44 = vsel %vm521_vm1, %v19501_v3, %v7387_v2  ;;  %v7773_v2 = vpop.permute.xlu0 %7772  ;;  %v19502_v52 = vrot.slane %v17709_v14, 1 }
 0x9b2   :  { %7432 = vrot.lane.b32.xlu1 %v7407_v25, %s13304_s0  ;;  %v7406_v42 = vmul.f32 %v7388_v44, %v17736_v53  ;;  %v7580_v4 = vrot.slane %v7558_v60, 2  ;;  %v7560_v53 = vmul.f32 %v7543_v33, %v17804_v36  ;;  %v7792_v25 = vrot.slane %v17510_v47, 7 }
 0x9b3   :  { %v7203_v18 = vsel %vm521_vm1, %v19502_v52, %v7202_v49  ;;  %v7793_v35 = vrot.slane %v7773_v2, 7  ;;  %v7561_v60 = vmul.f32 %v7542_v32, %v7504_v12  ;;  %v7717_v52 = vrot.slane %v17754_v41, 1 }
 0x9b4   :  { %v7583_v1 = vsel %vm700_vm3, %v7580_v4, %v7582_v20  ;;  %v7584_v19 = vrot.slane %v7560_v53, 2  ;;  %v7581_v30 = vsel %vm700_vm3, %v7578_v17, %v7580_v4 }
 0x9b5   :  { %v7034_v39 = vpop.f32.mrf.mxu1  ;;  %v7794_v49 = vsel %vm657_vm2, %v7792_v25, %v7793_v35  ;;  %v7586_v32 = vrot.slane %v7561_v60, 2 }
 0x9b6   :  { %7063 = vst.msk [vmem:[#allocation2 + $0xc0] sm:$0xff] %vm78_vm0, %v7034_v39  ;;  %7737 = vrot.lane.b32.xlu0 %v7722_v0, %s13304_s0  ;;  %7430 = vrot.lane.b32.xlu2 %v7406_v42, %s13304_s0  ;;  %v7585_v3 = vsel %vm700_vm3, %v7582_v20, %v7584_v19  ;;  %v7796_v42 = vsel %vm657_vm2, %v7793_v35, %v7795_v28 }
 0x9b9   :  { %v7779_v17 = vpop.permute.xlu0 %7778 }
 0x9ba   :  { %7600 = vrot.lane.b32.xlu1 %v7583_v1, %s13304_s0  ;;  %v7797_v41 = vrot.slane %v7779_v17, 7 }
 0x9bc   :  { %v7798_v12 = vsel %vm657_vm2, %v7795_v28, %v7797_v41 }
 0x9bd   :  { %v7036_v54 = vpop.f32.mrf.mxu1  ;;  %v7760_v44 = vld [vmem:[#allocation2 + $0xc0] sm:$0xff] }
 0x9be   :  { %7068 = vst.msk [vmem:[#allocation2 + $0xe8] sm:$0xff] %vm78_vm0, %v7036_v54  ;;  %7218 = vrot.lane.b32.xlu2 %v7203_v18, %s13304_s0  ;;  %v17880_v39 = vmul.f32 %v7794_v49, %v7760_v44  ;;  %v7587_v54 = vsel %vm700_vm3, %v7584_v19, %v7586_v32  ;;  %v7718_v18 = vsel %vm521_vm1, %v7715_v8, %v7717_v52  ;;  %v19503_v44 = vrot.slane %v17566_v15, 7 }
 0x9bf   :  { %v7720_v8 = vsel %vm521_vm1, %v7717_v52, %v7719_v34 }
 0x9c0   :  { %v7835_v53 = vrot.slane %v17880_v39, 2  ;;  %v7800_v48 = vsel %vm657_vm2, %v7797_v41, %v19503_v44 }
 0x9c1   :  { %v17921_v15 = vpop.permute.xlu0 %7790 }
 0x9c2   :  { %7602 = vrot.lane.b32.xlu1 %v7585_v3, %s13304_s0 }
 0x9c5   :  { %v7039_v0 = vpop.f32.mrf.mxu1  ;;  %v7761_v33 = vld [vmem:[#allocation2 + $0xe8] sm:$0xff] }
 0x9c6   :  { %7073 = vst.msk [vmem:[#allocation2 + $0x110] sm:$0xff] %vm78_vm0, %v7039_v0  ;;  %7598 = vrot.lane.b32.xlu2 %v7581_v30, %s13304_s0  ;;  %v17887_v20 = vmul.f32 %v7796_v42, %v7761_v33  ;;  %v7163_v33 = vmul.f32 %v17366_v61, %v17559_v62  ;;  %v7165_v62 = vmul.f32 %v17508_v56, %v17554_v9 }
 0x9c8   :  { %v7421_v1 = vpop.permute.xlu2 %7420  ;;  %v7837_v2 = vrot.slane %v17887_v20, 2 }
 0x9ca   :  { %7604 = vrot.lane.b32.xlu1 %v7587_v54, %s13304_s0  ;;  %v17899_v59 = vsel %vm700_vm3, %v7835_v53, %v7837_v2 }
 0x9cd   :  { %v7041_v4 = vpop.f32.mrf.mxu1  ;;  %v7762_v35 = vld [vmem:[#allocation2 + $0x110] sm:$0xff] }
 0x9ce   :  { %7078 = vst.msk [vmem:[#allocation2 + $0x138] sm:$0xff] %vm78_vm0, %v7041_v4  ;;  %7733 = vrot.lane.b32.xlu2 %v7718_v18, %s13304_s0  ;;  %v17909_v3 = vmul.f32 %v7798_v12, %v7762_v35  ;;  %v7805_v4 = vrot.slane %v17921_v15, 7  ;;  %v7471_v18 = vrot.slane %v17593_v26, 1 }
 0x9d0   :  { %v7724_v19 = vpop.permute.xlu2 %7723  ;;  %v7839_v42 = vrot.slane %v17909_v3, 2 }
 0x9d2   :  { %7739 = vrot.lane.b32.xlu1 %v17369_v50, %s13304_s0 }
 0x9d5   :  { %v7044_v60 = vpop.f32.mrf.mxu1  ;;  %v7763_v49 = vld [vmem:[#allocation2 + $0x138] sm:$0xff] }
 0x9d6   :  { %7083 = vst.msk [vmem:[#allocation2 + $0x160] sm:$0xff] %vm78_vm0, %v7044_v60  ;;  %7735 = vrot.lane.b32.xlu2 %v7720_v8, %s13304_s0  ;;  %v7820_v28 = vmul.f32 %v7800_v48, %v7763_v49  ;;  %v19504_v48 = vrot.slane %v17806_v38, 7  ;;  %v19505_v8 = vrot.slane %v17550_v13, 1 }
 0x9d8   :  { %v7209_v50 = vpop.permute.xlu2 %7208  ;;  %v7841_v0 = vrot.slane %v7820_v28, 2  ;;  %v7806_v26 = vsel %vm657_vm2, %v19504_v48, %v7805_v4 }
 0x9d9   :  { %v7233_v30 = vadd.f32 %v7209_v50, %v17531_v24 }
 0x9da   :  { %v17928_v34 = vsel %vm700_vm3, %v7839_v42, %v7841_v0 }
 0x9db   :  { %v7207_v32 = vpop.permute.xlu1 %7206  ;;  %v7343_v54 = vadd.f32 %v17614_v7, %v7233_v30  ;;  %v7766_v7 = vld [vmem:[#allocation2 + $0x1b0] sm:$0xff] }
 0x9dc   :  { %v7232_v52 = vadd.f32 %v7207_v32, %v7163_v33  ;;  %v17950_v9 = vmul.f32 %v7806_v26, %v7766_v7  ;;  %v7624_v33 = vld [vmem:[#allocation2 + $0x68] sm:$0x80]  ;;  %v7759_v32 = vld [vmem:[#allocation2 + $0x98] sm:$0xfe] }
 0x9dd   :  { %v7046_v17 = vpop.f32.mrf.mxu1  ;;  %v7764_v24 = vld [vmem:[#allocation2 + $0x160] sm:$0xff] }
 0x9de   :  { %7088 = vst.msk [vmem:[#allocation2 + $0x188] sm:$0xff] %vm78_vm0, %v7046_v17  ;;  %v7342_v41 = vadd.f32 %v17580_v27, %v7232_v52  ;;  %v7821_v61 = vmul.f32 %v17638_v51, %v7764_v24  ;;  %v7472_v27 = vsel %vm521_vm1, %v19505_v8, %v7471_v18  ;;  %v7847_v38 = vrot.slane %v17950_v9, 2 }
 0x9e0   :  { %v7211_v35 = vpop.permute.xlu2 %7210  ;;  %v7446_v12 = vadd.f32 %v7421_v1, %v7342_v41  ;;  %v7843_v44 = vrot.slane %v7821_v61, 2  ;;  %v19507_v41 = vld [vmem:[#allocation23_spill] sm:$0xff] }
 0x9e1   :  { %v7234_v60 = vadd.f32 %v7211_v35, %v7165_v62  ;;  %v7816_v62 = vmul.f32 %v7792_v25, %v7759_v32  ;;  %v19510_v32 = vld [vmem:[#allocation14_spill] sm:$0xff] }
 0x9e2   :  { %v7495_v49 = vadd.f32 %v7472_v27, %v7446_v12  ;;  %v17947_v51 = vsel %vm700_vm3, %v7841_v0, %v7843_v44 }
 0x9e3   :  { %v7344_v56 = vadd.f32 %v17659_v5, %v7234_v60  ;;  %v7834_v26 = vrot.slane %v7816_v62, 2 }
 0x9e5   :  { %v7765_v1 = vld [vmem:[#allocation2 + $0x188] sm:$0xff] }
 0x9e6   :  { %v7822_v28 = vmul.f32 %v17818_v31, %v7765_v1  ;;  %v19506_v31 = vrot.slane %v17499_v45, 1  ;;  %v19509_v45 = vrot.slane %v17640_v43, 1  ;;  %v7836_v43 = vsel %vm700_vm3, %v7834_v26, %v7835_v53 }
 0x9e8   :  { %v7213_v50 = vpop.permute.xlu2 %7212  ;;  %v7845_v30 = vrot.slane %v7822_v28, 2  ;;  %v7681_v24 = vmul.f32 %v19506_v31, %v7624_v33  ;;  %v7474_v28 = vsel %vm521_vm1, %v7471_v18, %v19509_v45 }
 0x9e9   :  { %v7235_v13 = vadd.f32 %v7213_v50, %v17604_v11 }
 0x9ea   :  { %v17956_v52 = vsel %vm700_vm3, %v7843_v44, %v7845_v30  ;;  %v17961_v5 = vsel %vm700_vm3, %v7845_v30, %v7847_v38  ;;  %v19508_v44 = vld [vmem:[#allocation17_spill] sm:$0xff] }
 0x9eb   :  { %v7589_v0 = vpop.permute.xlu0 %7588  ;;  %v7345_v17 = vadd.f32 %v17695_v37, %v7235_v13 }
 0x9ec   :  { %v7615_v61 = vadd.f32 %v7589_v0, %v19507_v41  ;;  %v7591_v11 = vpop.permute.xlu1 %7590 }
 0x9ed   :  { %v7616_v35 = vadd.f32 %v7591_v11, %v7495_v49 }
 0x9ee   :  { %v7690_v12 = vadd.f32 %v7681_v24, %v7615_v61 }
 0x9ef   :  { %v7691_v7 = vadd.f32 %v19508_v44, %v7616_v35 }
 0x9f0   :  { %v7750_v48 = vadd.f32 %v7724_v19, %v7690_v12  ;;  %v7593_v60 = vpop.permute.xlu2 %7592 }
 0x9f2   :  { %v17970_v8 = vadd.f32 %v7834_v26, %v7750_v48  ;;  %v19512_v26 = vld [vmem:[#allocation20_spill] sm:$0xff] }
 0x9f3   :  { %v7423_v27 = vpop.permute.xlu0 %7422 }
 0x9f4   :  { %v7447_v37 = vadd.f32 %v7423_v27, %v7343_v54  ;;  %v7425_v1 = vpop.permute.xlu1 %7424  ;;  %v7878_v41 = vrot.slane %v17970_v8, 7 }
 0x9f5   :  { %v7448_v50 = vadd.f32 %v7425_v1, %v7344_v56  ;;  %v7840_v1 = vsel %vm700_vm3, %v7837_v2, %v7839_v42 }
 0x9f6   :  { %v7496_v47 = vadd.f32 %v7474_v28, %v7447_v37 }
 0x9f7   :  { %v7497_v25 = vadd.f32 %v17684_v22, %v7448_v50  ;;  %v19511_v22 = vld [vmem:[#allocation25_spill] sm:$0xff] }
 0x9f8   :  { %v7617_v49 = vadd.f32 %v7593_v60, %v7496_v47  ;;  %v7427_v30 = vpop.permute.xlu2 %7426 }
 0x9f9   :  { %v7449_v33 = vadd.f32 %v7427_v30, %v7345_v17  ;;  %v7167_v17 = vmul.f32 %v19511_v22, %v17643_v21 }
 0x9fa   :  { %v7692_v19 = vadd.f32 %v19510_v32, %v7617_v49  ;;  %v19513_v49 = vld [vmem:[#allocation22_spill] sm:$0xff] }
 0x9fb   :  { %v7726_v13 = vpop.permute.xlu0 %7725  ;;  %v7498_v0 = vadd.f32 %v17719_v58, %v7449_v33 }
 0x9fc   :  { %v7751_v31 = vadd.f32 %v7726_v13, %v7691_v7  ;;  %v7728_v24 = vpop.permute.xlu1 %7727 }
 0x9fd   :  { %v7752_v54 = vadd.f32 %v7728_v24, %v7692_v19  ;;  %v19514_v24 = vld [vmem:[#allocation21_spill] sm:$0xff] }
 0x9fe   :  { %v17981_v18 = vadd.f32 %v7836_v43, %v7751_v31 }
 0x9ff   :  { %v17984_v56 = vadd.f32 %v17899_v59, %v7752_v54  ;;  %v19515_v54 = vld [vmem:[#allocation18_spill] sm:$0xff] }
 0xa00   :  { %v7879_v61 = vrot.slane %v17981_v18, 7  ;;  %v7215_v58 = vpop.permute.xlu2 %7214  ;;  %v7169_v22 = vmul.f32 %v19515_v54, %v17709_v14 }
 0xa01   :  { %v7881_v62 = vrot.slane %v17984_v56, 7  ;;  %v7236_v11 = vadd.f32 %v7215_v58, %v7167_v17  ;;  %v19516_v58 = vld [vmem:[#allocation16_spill] sm:$0xff] }
 0xa02   :  { %v7880_v39 = vsel %vm657_vm2, %v7878_v41, %v7879_v61 }
 0xa03   :  { %v7903_v53 = vsel %vm78_vm0, %v7880_v39, 0.0  ;;  %v7730_v35 = vpop.permute.xlu0 %7729  ;;  %v7882_v12 = vsel %vm657_vm2, %v7879_v61, %v7881_v62  ;;  %v7346_v59 = vadd.f32 %v17725_v6, %v7236_v11 }
 0xa04   :  { %v7904_v44 = vsel %vm78_vm0, %v7882_v12, 0.0  ;;  %v7595_v21 = vpop.permute.xlu1 %7594 }
 0xa05   :  { %v7905_v7 = vadd.f32 %v7904_v44, %v7903_v53  ;;  %v7618_v48 = vadd.f32 %v7595_v21, %v7497_v25 }
 0xa07   :  { %v7693_v60 = vadd.f32 %v19512_v26, %v7618_v48 }
 0xa08   :  { %v7732_v27 = vpop.permute.xlu2 %7731 }
 0xa09   :  { %v7753_v37 = vadd.f32 %v7730_v35, %v7693_v60 }
 0xa0b   :  { %v7429_v45 = vpop.permute.xlu0 %7428  ;;  %v18002_v28 = vadd.f32 %v7840_v1, %v7753_v37 }
 0xa0c   :  { %v7450_v50 = vadd.f32 %v7429_v45, %v7346_v59  ;;  %v7217_v6 = vpop.permute.xlu1 %7216 }
 0xa0d   :  { %v7883_v47 = vrot.slane %v18002_v28, 7  ;;  %v7237_v30 = vadd.f32 %v7217_v6, %v19513_v49  ;;  %v7670_v49 = vrot.slane %v17872_v23, 1 }
 0xa0e   :  { %v7499_v25 = vadd.f32 %v17759_v29, %v7450_v50  ;;  %v7097_v29 = vld [vmem:[#allocation2 + $0x140] sm:$0x7f] }
 0xa0f   :  { %v7884_v33 = vsel %vm657_vm2, %v7881_v62, %v7883_v47  ;;  %v7347_v32 = vadd.f32 %v17771_v55, %v7237_v30  ;;  %v19517_v62 = vrot.slane %v19516_v58, 1 }
 0xa10   :  { %v7906_v3 = vsel %vm78_vm0, %v7884_v33, 0.0  ;;  %v7431_v20 = vpop.permute.xlu2 %7430 }
 0xa11   :  { %v7451_v19 = vadd.f32 %v7431_v20, %v7347_v32  ;;  %v7907_v2 = vadd.f32 %v7906_v3, %v7905_v7  ;;  %v7170_v11 = vmul.f32 %v19517_v62, %v7097_v29  ;;  %v19518_v7 = vld [vmem:[#allocation11_spill] sm:$0xff] }
 0xa12   :  { %v19520_v20 = vld [vmem:[#allocation19_spill] sm:$0xff] }
 0xa13   :  { %v7500_v42 = vadd.f32 %v17795_v46, %v7451_v19  ;;  %v19521_v19 = vrot.slane %v19520_v20, 1 }
 0xa14   :  { %v7597_v13 = vpop.permute.xlu1 %7596 }
 0xa15   :  { %v7619_v31 = vadd.f32 %v7597_v13, %v7498_v0 }
 0xa17   :  { %v7694_v43 = vadd.f32 %v19514_v24, %v7619_v31 }
 0xa18   :  { %v7219_v17 = vpop.permute.xlu2 %7218 }
 0xa19   :  { %v7754_v41 = vadd.f32 %v7732_v27, %v7694_v43  ;;  %v7238_v61 = vadd.f32 %v7219_v17, %v7169_v22 }
 0xa1b   :  { %v18015_v55 = vadd.f32 %v17928_v34, %v7754_v41  ;;  %v7348_v39 = vadd.f32 %v17798_v16, %v7238_v61  ;;  %v7483_v34 = vrot.slane %v17804_v36, 1  ;;  %v19519_v16 = vrot.slane %v17783_v57, 1  ;;  %v7767_v41 = vld [vmem:[#allocation2 + $0x1d8] sm:$0x1] }
 0xa1c   :  { %v7221_v46 = vpop.permute.xlu1 %7220 }
 0xa1d   :  { %v7885_v0 = vrot.slane %v18015_v55, 7  ;;  %v7239_v53 = vadd.f32 %v7221_v46, %v7170_v11  ;;  %v7484_v27 = vsel %vm521_vm1, %v19519_v16, %v7483_v34  ;;  %v7632_v11 = vld [vmem:[#allocation2 + $0x1a8] sm:$0x7f] }
 0xa1f   :  { %v7886_v35 = vsel %vm657_vm2, %v7883_v47, %v7885_v0  ;;  %v7349_v14 = vadd.f32 %v17840_v63, %v7239_v53  ;;  %v7689_v53 = vmul.f32 %v7670_v49, %v7632_v11 }
 0xa20   :  { %v7599_v12 = vpop.permute.xlu2 %7598  ;;  %v7908_v59 = vsel %vm78_vm0, %v7886_v35, 0.0  ;;  %v7435_v30 = vpop.permute.xlu0 %7434 }
 0xa21   :  { %v7620_v44 = vadd.f32 %v7599_v12, %v7499_v25  ;;  %v7909_v21 = vadd.f32 %v7908_v59, %v7907_v2  ;;  %v7671_v2 = vsel %vm521_vm1, %v19521_v19, %v7670_v49  ;;  %v7453_v29 = vadd.f32 %v7435_v30, %v7349_v14 }
 0xa22   :  { %v7688_v23 = vmul.f32 %v7671_v2, %v17789_v40  ;;  %v7824_v40 = vmul.f32 %v7805_v4, %v7767_v41 }
 0xa23   :  { %v7695_v48 = vadd.f32 %v19518_v7, %v7620_v44 }
 0xa24   :  { %v7433_v26 = vpop.permute.xlu1 %7432  ;;  %v7849_v12 = vrot.slane %v7824_v40, 2 }
 0xa25   :  { %v7452_v60 = vadd.f32 %v7433_v26, %v7348_v39 }
 0xa27   :  { %v7501_v37 = vadd.f32 %v7484_v27, %v7452_v60 }
 0xa28   :  { %v7734_v1 = vpop.permute.xlu2 %7733 }
 0xa29   :  { %v7755_v45 = vadd.f32 %v7734_v1, %v7695_v48 }
 0xa2b   :  { %v7865_v63 = vadd.f32 %v17947_v51, %v7755_v45 }
 0xa2c   :  { %v7601_v50 = vpop.permute.xlu1 %7600 }
 0xa2d   :  { %v7887_v6 = vrot.slane %v7865_v63, 7  ;;  %v7621_v47 = vadd.f32 %v7601_v50, %v7500_v42 }
 0xa2f   :  { %v7888_v36 = vsel %vm657_vm2, %v7885_v0, %v7887_v6  ;;  %v7696_v25 = vadd.f32 %v17763_v10, %v7621_v47  ;;  %v7738_v10 = vpop.permute.xlu0 %7737 }
 0xa30   :  { %v7910_v33 = vsel %vm78_vm0, %v7888_v36, 0.0  ;;  %v7736_v57 = vpop.permute.xlu2 %7735 }
 0xa31   :  { %v7911_v32 = vadd.f32 %v7910_v33, %v7909_v21  ;;  %v7756_v3 = vadd.f32 %v7736_v57, %v7696_v25 }
 0xa33   :  { %v7866_v51 = vadd.f32 %v17956_v52, %v7756_v3  ;;  %v7502_v52 = vadd.f32 %v7483_v34, %v7453_v29 }
 0xa34   :  { %v7603_v13 = vpop.permute.xlu1 %7602 }
 0xa35   :  { %v7889_v42 = vrot.slane %v7866_v51, 7  ;;  %v7622_v31 = vadd.f32 %v7603_v13, %v7501_v37 }
 0xa37   :  { %v7890_v24 = vsel %vm657_vm2, %v7887_v6, %v7889_v42  ;;  %v7697_v43 = vadd.f32 %v7688_v23, %v7622_v31 }
 0xa38   :  { %v7912_v54 = vsel %vm78_vm0, %v7890_v24, 0.0 }
 0xa39   :  { %v7913_v22 = vadd.f32 %v7912_v54, %v7911_v32  ;;  %v7757_v17 = vadd.f32 %v7738_v10, %v7697_v43 }
 0xa3b   :  { %v7867_v61 = vadd.f32 %v17961_v5, %v7757_v17  ;;  %v7850_v5 = vsel %vm700_vm3, %v7847_v38, %v7849_v12 }
 0xa3c   :  { %v7605_v58 = vpop.permute.xlu1 %7604 }
 0xa3d   :  { %v7891_v62 = vrot.slane %v7867_v61, 7  ;;  %v7623_v46 = vadd.f32 %v7605_v58, %v7502_v52 }
 0xa3f   :  { %v7892_v39 = vsel %vm657_vm2, %v7889_v42, %v7891_v62  ;;  %v7698_v59 = vadd.f32 %v7689_v53, %v7623_v46 }
 0xa40   :  { %v7914_v0 = vsel %vm78_vm0, %v7892_v39, 0.0 }
 0xa41   :  { %v7915_v35 = vadd.f32 %v7914_v0, %v7913_v22 }
 0xa44   :  { %v7740_v14 = vpop.permute.xlu1 %7739 }
 0xa45   :  { %v7758_v44 = vadd.f32 %v7740_v14, %v7698_v59 }
 0xa47   :  { %v7868_v21 = vadd.f32 %v7850_v5, %v7758_v44 }
 0xa49   :  { %v7893_v34 = vrot.slane %v7868_v21, 7 }
 0xa4b   :  { %v7894_v15 = vsel %vm657_vm2, %v7891_v62, %v7893_v34 }
 0xa4c   :  { %v7916_v4 = vsel %vm78_vm0, %v7894_v15, 0.0 }
 0xa4d   :  { %v7917_v7 = vadd.f32 %v7916_v4, %v7915_v35 }
 0xa4f   :  { %v7918_v48 = vrot.slane %v7917_v7, 4 }
 0xa51   :  { %v7919_v26 = vadd.f32 %v7918_v48, %v7917_v7 }
 0xa53   :  { %v7920_v60 = vrot.slane %v7919_v26, 2 }
 0xa55   :  { %v7921_v16 = vadd.f32 %v7920_v60, %v7919_v26 }
 0xa57   :  { %v7922_v27 = vrot.slane %v7921_v16, 1 }
 0xa59   :  { %v7923_v37 = vadd.f32 %v7922_v27, %v7921_v16 }
 0xa5b   :  { %v7924_v1 = vmul.f32 0.015625, %v7923_v37 }
 0xa5d   :  { %v18052_v45 = vsub.f32 %v17970_v8, %v7924_v1  ;;  %v18055_v9 = vsub.f32 %v17981_v18, %v7924_v1  ;;  %v18058_v38 = vsub.f32 %v17984_v56, %v7924_v1  ;;  %v18061_v50 = vsub.f32 %v18002_v28, %v7924_v1 }
 0xa5e   :  { %v18064_v6 = vsub.f32 %v18015_v55, %v7924_v1  ;;  %v18066_v47 = vsub.f32 %v7865_v63, %v7924_v1  ;;  %v18068_v49 = vsub.f32 %v7866_v51, %v7924_v1  ;;  %v18070_v30 = vsub.f32 %v7867_v61, %v7924_v1 }
 0xa5f   :  { %v18072_v8 = vsub.f32 %v7868_v21, %v7924_v1  ;;  %v7934_v18 = vmul.f32 %v18052_v45, %v18052_v45  ;;  %v7935_v56 = vmul.f32 %v18055_v9, %v18055_v9  ;;  %v7936_v28 = vmul.f32 %v18058_v38, %v18058_v38  ;;  %v8011_v1 = vld [vmem:[#allocation6 + $0x5] sm:$0x1] }
 0xa60   :  { %v7937_v55 = vmul.f32 %v18061_v50, %v18061_v50  ;;  %v7938_v63 = vmul.f32 %v18064_v6, %v18064_v6  ;;  %v7939_v36 = vmul.f32 %v18066_v47, %v18066_v47  ;;  %v7940_v25 = vmul.f32 %v18068_v49, %v18068_v49 }
 0xa61   :  { %v7941_v33 = vmul.f32 %v18070_v30, %v18070_v30  ;;  %v7942_v57 = vmul.f32 %v18072_v8, %v18072_v8  ;;  %v7952_v32 = vrot.slane %v7934_v18, 7  ;;  %v7953_v3 = vrot.slane %v7935_v56, 7 }
 0xa62   :  { %v7955_v20 = vrot.slane %v7936_v28, 7  ;;  %v7957_v19 = vrot.slane %v7937_v55, 7  ;;  %v7959_v2 = vrot.slane %v7938_v63, 7  ;;  %v7961_v51 = vrot.slane %v7939_v36, 7  ;;  %v13194_v55 = vld [vmem:[#allocation8 + $0x5] ss:$0 sm:$0xff] }
 0xa63   :  { %v7954_v13 = vsel %vm657_vm2, %v7952_v32, %v7953_v3  ;;  %v7963_v42 = vrot.slane %v7940_v25, 7  ;;  %v7965_v23 = vrot.slane %v7941_v33, 7  ;;  %v7967_v31 = vrot.slane %v7942_v57, 7 }
 0xa64   :  { %v7956_v24 = vsel %vm657_vm2, %v7953_v3, %v7955_v20  ;;  %v7958_v43 = vsel %vm657_vm2, %v7955_v20, %v7957_v19  ;;  %v7960_v10 = vsel %vm657_vm2, %v7957_v19, %v7959_v2  ;;  %v7962_v54 = vsel %vm657_vm2, %v7959_v2, %v7961_v51 }
 0xa65   :  { %v7964_v22 = vsel %vm657_vm2, %v7961_v51, %v7963_v42  ;;  %v7966_v17 = vsel %vm657_vm2, %v7963_v42, %v7965_v23  ;;  %v7968_v29 = vsel %vm657_vm2, %v7965_v23, %v7967_v31  ;;  %v7977_v41 = vsel %vm78_vm0, %v7954_v13, 0.0 }
 0xa66   :  { %v7978_v61 = vsel %vm78_vm0, %v7956_v24, 0.0  ;;  %v7980_v62 = vsel %vm78_vm0, %v7958_v43, 0.0  ;;  %v7982_v11 = vsel %vm78_vm0, %v7960_v10, 0.0  ;;  %v7984_v39 = vsel %vm78_vm0, %v7962_v54, 0.0 }
 0xa67   :  { %v7979_v58 = vadd.f32 %v7978_v61, %v7977_v41  ;;  %v7986_v0 = vsel %vm78_vm0, %v7964_v22, 0.0  ;;  %v7988_v35 = vsel %vm78_vm0, %v7966_v17, 0.0  ;;  %v7990_v59 = vsel %vm78_vm0, %v7968_v29, 0.0 }
 0xa69   :  { %v7981_v52 = vadd.f32 %v7980_v62, %v7979_v58 }
 0xa6b   :  { %v7983_v40 = vadd.f32 %v7982_v11, %v7981_v52 }
 0xa6d   :  { %v7985_v46 = vadd.f32 %v7984_v39, %v7983_v40 }
 0xa6f   :  { %v7987_v53 = vadd.f32 %v7986_v0, %v7985_v46 }
 0xa71   :  { %v7989_v12 = vadd.f32 %v7988_v35, %v7987_v53 }
 0xa73   :  { %v7991_v14 = vadd.f32 %v7990_v59, %v7989_v12  ;;  %v12752_v59 = vld [vmem:[%s19141_s5 + $0x38] sm:$0xff] }
 0xa74   :  { %10566 = vmatpush.bf16.msrb.mxu2 %v12752_v59  ;;  %v12785_v59 = vld [vmem:[%s19141_s5 + $0x140] sm:$0xff] }
 0xa75   :  { %v7992_v44 = vrot.slane %v7991_v14, 4 }
 0xa77   :  { %v7993_v5 = vadd.f32 %v7992_v44, %v7991_v14  ;;  %v12760_v14 = vld [vmem:[%s19141_s5 + $0x78] sm:$0xff] }
 0xa78   :  { %10579 = vmatpush.bf16.msrb.mxu3 %v12760_v14  ;;  %v12761_v14 = vld [vmem:[%s19141_s5 + $0x80] sm:$0xff] }
 0xa79   :  { %v7994_v21 = vrot.slane %v7993_v5, 2 }
 0xa7b   :  { %v7995_v34 = vadd.f32 %v7994_v21, %v7993_v5  ;;  %v12751_v21 = vld [vmem:[%s19141_s5 + $0x30] sm:$0xff] }
 0xa7c   :  { %10567 = vmatpush.bf16.msrb.mxu2 %v12751_v21 }
 0xa7d   :  { %v7996_v15 = vrot.slane %v7995_v34, 1 }
 0xa7f   :  { %v7997_v4 = vadd.f32 %v7996_v15, %v7995_v34  ;;  %v12759_v34 = vld [vmem:[%s19141_s5 + $0x70] sm:$0xff]  ;;  %v12750_v15 = vld [vmem:[%s19141_s5 + $0x28] sm:$0xff] }
 0xa80   :  { %10580 = vmatpush.bf16.msrb.mxu3 %v12759_v34  ;;  %10568 = vmatpush.bf16.msrb.mxu2 %v12750_v15 }
 0xa81   :  { %v7998_v7 = vmul.f32 0.015625, %v7997_v4  ;;  %v12758_v4 = vld [vmem:[%s19141_s5 + $0x68] sm:$0xff] }
 0xa83   :  { %v7999_v48 = vadd.f32 1e-05, %v7998_v7 }
 0xa84   :  { %10581 = vmatpush.bf16.msrb.mxu3 %v12758_v4 }
 0xa85   :  { %13205 = vrsqrt.f32 %v7999_v48  ;;  %vm8006_vm3 = vweird.f32 %v7999_v48 }
 0xa8b   :  { %v13206_v26 = vpop.eup %13205 }
 0xa8c   :  { %v8001_v60 = vmul.f32 %v13206_v26, %v7999_v48  ;;  %vm8007_vm1 = vweird.f32 %v13206_v26  ;;  %v12749_v48 = vld [vmem:[%s19141_s5 + $0x20] sm:$0xff] }
 0xa8d   :  { %vm8008_vm0 = vmor %vm8006_vm3, %vm8007_vm1  ;;  %10569 = vmatpush.bf16.msrb.mxu2 %v12749_v48 }
 0xa8e   :  { %v8002_v16 = vmul.f32 %v13206_v26, %v8001_v60  ;;  %v12748_v60 = vld [vmem:[%s19141_s5 + $0x18] sm:$0xff] }
 0xa90   :  { %v8003_v27 = vmul.f32 0.5, %v8002_v16  ;;  %v12756_v16 = vld [vmem:[%s19141_s5 + $0x58] sm:$0xff] }
 0xa91   :  { %10570 = vmatpush.bf16.msrb.mxu2 %v12748_v60 }
 0xa92   :  { %v8004_v37 = vsub.f32 1.5, %v8003_v27 }
 0xa94   :  { %v8005_v18 = vmul.f32 %v13206_v26, %v8004_v37  ;;  %v12747_v37 = vld [vmem:[%s19141_s5 + $0x10] sm:$0xff] }
 0xa95   :  { %10571 = vmatpush.bf16.msrb.mxu2 %v12747_v37 }
 0xa96   :  { %v8009_v56 = vsel %vm8008_vm0, %v13206_v26, %v8005_v18  ;;  %v12757_v26 = vld [vmem:[%s19141_s5 + $0x60] sm:$0xff]  ;;  %v12784_v18 = vld [vmem:[%s19141_s5 + $0x138] sm:$0xff] }
 0xa97   :  { %v8012_v28 = vmul.f32 %v8011_v1, %v8009_v56  ;;  %10582 = vmatpush.bf16.msrb.mxu3 %v12757_v26  ;;  %v12755_v1 = vld [vmem:[%s19141_s5 + $0x50] sm:$0xff]  ;;  %v12746_v56 = vld [vmem:[%s19141_s5 + $0x8] sm:$0xff]  ;;  %10618 = vmatpush.bf16.msra.mxu0 %v12784_v18 }
 0xa99   :  { %v8013_v63 = vperm.slane %v8012_v28, 0  ;;  %v12792_v28 = vld [vmem:[%s19141_s5 + $0x178] sm:$0xff]  ;;  %10572 = vmatpush.bf16.msrb.mxu2 %v12746_v56 }
 0xa9a   :  { %10631 = vmatpush.bf16.msra.mxu1 %v12792_v28  ;;  %v12800_v56 = vld [vmem:[%s19141_s5 + $0x1b8] sm:$0xff] }
 0xa9b   :  { %v8014_v36 = vmul.f32 %v8013_v63, %v18052_v45  ;;  %v8017_v25 = vmul.f32 %v8013_v63, %v18061_v50  ;;  %v8018_v33 = vmul.f32 %v8013_v63, %v18064_v6  ;;  %v8019_v57 = vmul.f32 %v8013_v63, %v18066_v47  ;;  %10583 = vmatpush.bf16.msrb.mxu3 %v12756_v16  ;;  %v12808_v28 = vld [vmem:[%s19141_s5 + $0x1f8] sm:$0xff] }
 0xa9c   :  { %v8020_v32 = vmul.f32 %v8013_v63, %v18068_v49  ;;  %v8021_v3 = vmul.f32 %v8013_v63, %v18070_v30  ;;  %v8022_v20 = vmul.f32 %v8013_v63, %v18072_v8  ;;  %v8016_v19 = vmul.f32 %v8013_v63, %v18058_v38 }
 0xa9d   :  { %v8028_v2 = vadd.f32 %v13194_v55, %v8014_v36  ;;  %v18116_v51 = vadd.f32 %v13194_v55, %v8019_v57  ;;  %v8015_v13 = vmul.f32 %v8013_v63, %v18055_v9  ;;  %v18119_v45 = vadd.f32 %v13194_v55, %v8017_v25  ;;  %v12745_v36 = vld [vmem:[%s19141_s5] sm:$0xff]  ;;  %v12776_v57 = vld [vmem:[%s19141_s5 + $0xf8] sm:$0xff] }
 0xa9e   :  { %v18121_v50 = vadd.f32 %v13194_v55, %v8020_v32  ;;  %v18123_v6 = vadd.f32 %v13194_v55, %v8021_v3  ;;  %v18125_v47 = vadd.f32 %v13194_v55, %v8022_v20  ;;  %v8030_v49 = vadd.f32 %v13194_v55, %v8016_v19  ;;  %v12753_v25 = vld [vmem:[%s19141_s5 + $0x40] sm:$0xff]  ;;  %v12783_v32 = vld [vmem:[%s19141_s5 + $0x130] sm:$0xff]  ;;  %10573 = vmatpush.bf16.msrb.mxu2 %v12745_v36 }
 0xa9f   :  { %8038 = vst [vmem:[#allocation1] sm:$0xff] %v8028_v2  ;;  %v8029_v30 = vadd.f32 %v13194_v55, %v8015_v13  ;;  %v18127_v42 = vadd.f32 %v13194_v55, %v8018_v33  ;;  %v8042_v38 = vlaneseq  ;;  %10584 = vmatpush.bf16.msrb.mxu3 %v12755_v1  ;;  %v12754_v55 = vld [vmem:[%s19141_s5 + $0x48] sm:$0xff]  ;;  %v12768_v33 = vld [vmem:[%s19141_s5 + $0xb8] sm:$0xff]  ;;  %v12791_v3 = vld [vmem:[%s19141_s5 + $0x170] sm:$0xff]  ;;  %10619 = vmatpush.bf16.msra.mxu0 %v12783_v32 }
 0xaa0   :  { %8097 = vrot.lane.b32.xlu0 %v8030_v49, %s13304_s0  ;;  %v12767_v20 = vld [vmem:[%s19141_s5 + $0xb0] sm:$0xff]  ;;  %v12782_v2 = vld [vmem:[%s19141_s5 + $0x128] sm:$0xff]  ;;  %10632 = vmatpush.bf16.msra.mxu1 %v12791_v3  ;;  %v12797_v32 = vld [vmem:[%s19141_s5 + $0x1a0] sm:$0xff] }
 0xaa1   :  { %8048 = vrot.lane.b32.xlu2 %v8029_v30, %s13304_s0  ;;  %vm18131_vm7 = vcmp.lt.s32.totalorder %v8042_v38, 64  ;;  %vm8051_vm9 = vcmp.ge.s32.totalorder %v8042_v38, 64  ;;  %vm8052_vm10 = vcmp.lt.s32.totalorder %v8042_v38, 128  ;;  %v12775_v19 = vld [vmem:[%s19141_s5 + $0xf0] sm:$0xff]  ;;  %v12790_v13 = vld [vmem:[%s19141_s5 + $0x168] sm:$0xff]  ;;  %v12805_v3 = vld [vmem:[%s19141_s5 + $0x1e0] sm:$0xff] }
 0xaa2   :  { %vm18155_vm11 = vmand %vm8051_vm9, %vm8052_vm10  ;;  %10592 = vmatpush.bf16.msra.mxu2 %v12768_v33  ;;  %v12774_v38 = vld [vmem:[%s19141_s5 + $0xe8] sm:$0xff]  ;;  %v12929_v9 = vld [vmem:[%s19141_s5 + $0x5c0] sm:$0xff] }
 0xaa3   :  { %10585 = vmatpush.bf16.msrb.mxu3 %v12754_v55  ;;  %10620 = vmatpush.bf16.msra.mxu0 %v12782_v2  ;;  %v12799_v55 = vld [vmem:[%s19141_s5 + $0x1b0] sm:$0xff]  ;;  %v12806_v33 = vld [vmem:[%s19141_s5 + $0x1e8] sm:$0xff] }
 0xaa4   :  { %10633 = vmatpush.bf16.msra.mxu1 %v12790_v13 }
 0xaa6   :  { %v8040_v8 = vld [vmem:[#allocation1 + $0x7] ss:$9 sm:$0xff]  ;;  %10593 = vmatpush.bf16.msra.mxu2 %v12767_v20 }
 0xaa7   :  { %8055 = vst [vmem:[#allocation1] sm:$0xff] %v8029_v30  ;;  %10586 = vmatpush.bf16.msrb.mxu3 %v12753_v25  ;;  %v12798_v25 = vld [vmem:[%s19141_s5 + $0x1a8] sm:$0xff] }
 0xaa8   :  { %8046 = vst.msk [vmem:[#allocation3] sm:$0x1] %vm18131_vm7, %v8040_v8  ;;  %v12781_v8 = vld [vmem:[%s19141_s5 + $0x120] sm:$0xff] }
 0xaa9   :  { %10621 = vmatpush.bf16.msra.mxu0 %v12781_v8 }
 0xaab   :  { %10605 = vmatpush.bf16.msra.mxu3 %v12776_v57 }
 0xaae   :  { %v8057_v23 = vld [vmem:[#allocation1 + $0x1] ss:$9 sm:$0xff] }
 0xaaf   :  { %8060 = vst [vmem:[#allocation1] sm:$0xff] %v8029_v30  ;;  %10606 = vmatpush.bf16.msra.mxu3 %v12775_v19 }
 0xab0   :  { %8059 = vst.msk [vmem:[#allocation3 + $0x1] sm:$0x1] %vm18131_vm7, %v8057_v23  ;;  %v12789_v23 = vld [vmem:[%s19141_s5 + $0x160] sm:$0xff] }
 0xab1   :  { %10634 = vmatpush.bf16.msra.mxu1 %v12789_v23  ;;  %v12816_v23 = vld [vmem:[%s19141_s5 + $0x238] sm:$0xff] }
 0xab3   :  { %10607 = vmatpush.bf16.msra.mxu3 %v12774_v38  ;;  %v12803_v38 = vld [vmem:[%s19141_s5 + $0x1d0] sm:$0xff] }
 0xab6   :  { %v8062_v31 = vld [vmem:[#allocation1 + $0x2] ss:$9 sm:$0xff] }
 0xab7   :  { %8067 = vst [vmem:[#allocation1] sm:$0xff] %v8029_v30  ;;  %8063 = vrot.lane.b32.xlu0 %v8062_v31, %s13304_s0  ;;  %v12765_v31 = vld [vmem:[%s19141_s5 + $0xa0] sm:$0xff] }
 0xabe   :  { %v8069_v24 = vld [vmem:[#allocation1 + $0x3] ss:$9 sm:$0xff] }
 0xabf   :  { %8072 = vst [vmem:[#allocation1] sm:$0xff] %v8029_v30 }
 0xac0   :  { %8071 = vst.msk [vmem:[#allocation3 + $0x2] sm:$0x1] %vm18131_vm7, %v8069_v24  ;;  %v12773_v24 = vld [vmem:[%s19141_s5 + $0xe0] sm:$0xff] }
 0xac1   :  { %10608 = vmatpush.bf16.msra.mxu3 %v12773_v24  ;;  %v12794_v24 = vld [vmem:[%s19141_s5 + $0x188] sm:$0xff] }
 0xac6   :  { %v8074_v43 = vld [vmem:[#allocation1 + $0x4] ss:$9 sm:$0xff] }
 0xac7   :  { %8079 = vst [vmem:[#allocation1] sm:$0xff] %v8029_v30  ;;  %8075 = vrot.lane.b32.xlu1 %v8074_v43, %s13304_s0  ;;  %v12780_v43 = vld [vmem:[%s19141_s5 + $0x118] sm:$0xff] }
 0xac8   :  { %10622 = vmatpush.bf16.msra.mxu0 %v12780_v43  ;;  %v12802_v43 = vld [vmem:[%s19141_s5 + $0x1c8] sm:$0xff] }
 0xace   :  { %v8081_v10 = vld [vmem:[#allocation1 + $0x5] ss:$9 sm:$0xff] }
 0xacf   :  { %8084 = vst [vmem:[#allocation1] sm:$0xff] %v8029_v30 }
 0xad0   :  { %8083 = vst.msk [vmem:[#allocation3 + $0x3] sm:$0x1] %vm18131_vm7, %v8081_v10  ;;  %v12788_v10 = vld [vmem:[%s19141_s5 + $0x158] sm:$0xff] }
 0xad1   :  { %10635 = vmatpush.bf16.msra.mxu1 %v12788_v10  ;;  %v12815_v10 = vld [vmem:[%s19141_s5 + $0x230] sm:$0xff] }
 0xad6   :  { %v8086_v54 = vld [vmem:[#allocation1 + $0x6] ss:$9 sm:$0xff] }
 0xad7   :  { %8091 = vst [vmem:[#allocation1] sm:$0xff] %v8029_v30  ;;  %8087 = vrot.lane.b32.xlu2 %v8086_v54, %s13304_s0  ;;  %v12766_v30 = vld [vmem:[%s19141_s5 + $0xa8] sm:$0xff] }
 0xad8   :  { %10594 = vmatpush.bf16.msra.mxu2 %v12766_v30  ;;  %v12795_v30 = vld [vmem:[%s19141_s5 + $0x190] sm:$0xff] }
 0xadc   :  { %10595 = vmatpush.bf16.msra.mxu2 %v12765_v31  ;;  %v12824_v31 = vld [vmem:[%s19141_s5 + $0x278] sm:$0xff] }
 0xade   :  { %v8093_v22 = vld [vmem:[#allocation1 + $0x7] ss:$9 sm:$0xff] }
 0xadf   :  { %8101 = vst [vmem:[#allocation1] sm:$0xff] %v8030_v49 }
 0xae0   :  { %8095 = vst.msk [vmem:[#allocation3 + $0x4] sm:$0x1] %vm18131_vm7, %v8093_v22 }
 0xae6   :  { %v8103_v17 = vld [vmem:[#allocation1 + $0x1] ss:$9 sm:$0xff] }
 0xae7   :  { %8106 = vst [vmem:[#allocation1] sm:$0xff] %v8030_v49 }
 0xae8   :  { %8105 = vst.msk [vmem:[#allocation3 + $0x5] sm:$0x1] %vm18131_vm7, %v8103_v17 }
 0xaee   :  { %v8108_v29 = vld [vmem:[#allocation1 + $0x2] ss:$9 sm:$0xff] }
 0xaef   :  { %8113 = vst [vmem:[#allocation1] sm:$0xff] %v8030_v49  ;;  %8109 = vrot.lane.b32.xlu1 %v8108_v29, %s13304_s0  ;;  %v12764_v29 = vld [vmem:[%s19141_s5 + $0x98] sm:$0xff] }
 0xaf0   :  { %10596 = vmatpush.bf16.msra.mxu2 %v12764_v29  ;;  %v12801_v29 = vld [vmem:[%s19141_s5 + $0x1c0] sm:$0xff] }
 0xaf6   :  { %v8115_v41 = vld [vmem:[#allocation1 + $0x3] ss:$9 sm:$0xff] }
 0xaf7   :  { %8118 = vst [vmem:[#allocation1] sm:$0xff] %v8030_v49  ;;  %8143 = vrot.lane.b32.xlu1 %v18119_v45, %s13304_s0 }
 0xaf8   :  { %8117 = vst.msk [vmem:[#allocation3 + $0x6] sm:$0x1] %vm18131_vm7, %v8115_v41  ;;  %v12772_v41 = vld [vmem:[%s19141_s5 + $0xd8] sm:$0xff] }
 0xaf9   :  { %10609 = vmatpush.bf16.msra.mxu3 %v12772_v41 }
 0xafb   :  { %v8049_v58 = vpop.permute.xlu2 %8048 }
 0xafc   :  { %8054 = vst.msk [vmem:[#allocation3] sm:$0x1] %vm18155_vm11, %v8049_v58  ;;  %v12779_v58 = vld [vmem:[%s19141_s5 + $0x110] sm:$0xff] }
 0xafd   :  { %10623 = vmatpush.bf16.msra.mxu0 %v12779_v58 }
 0xafe   :  { %v8120_v62 = vld [vmem:[#allocation1 + $0x4] ss:$9 sm:$0xff] }
 0xaff   :  { %8125 = vst [vmem:[#allocation1] sm:$0xff] %v8030_v49  ;;  %8121 = vrot.lane.b32.xlu2 %v8120_v62, %s13304_s0  ;;  %v12787_v62 = vld [vmem:[%s19141_s5 + $0x150] sm:$0xff] }
 0xb00   :  { %10636 = vmatpush.bf16.msra.mxu1 %v12787_v62 }
 0xb06   :  { %v8127_v52 = vld [vmem:[#allocation1 + $0x5] ss:$9 sm:$0xff] }
 0xb07   :  { %8130 = vst [vmem:[#allocation1] sm:$0xff] %v8030_v49  ;;  %8189 = vrot.lane.b32.xlu2 %v18127_v42, %s13304_s0 }
 0xb08   :  { %8129 = vst.msk [vmem:[#allocation3 + $0x7] sm:$0x1] %vm18131_vm7, %v8127_v52  ;;  %v12763_v52 = vld [vmem:[%s19141_s5 + $0x90] sm:$0xff] }
 0xb09   :  { %10597 = vmatpush.bf16.msra.mxu2 %v12763_v52  ;;  %v12832_v52 = vld [vmem:[%s19141_s5 + $0x2b8] sm:$0xff] }
 0xb0e   :  { %v8132_v11 = vld [vmem:[#allocation1 + $0x6] ss:$9 sm:$0xff] }
 0xb0f   :  { %8137 = vst [vmem:[#allocation1] sm:$0xff] %v8030_v49  ;;  %8133 = vrot.lane.b32.xlu0 %v8132_v11, %s13304_s0  ;;  %v12771_v11 = vld [vmem:[%s19141_s5 + $0xd0] sm:$0xff] }
 0xb10   :  { %10610 = vmatpush.bf16.msra.mxu3 %v12771_v11  ;;  %v12840_v11 = vld [vmem:[%s19141_s5 + $0x2f8] sm:$0xff] }
 0xb12   :  { %v8098_v40 = vpop.permute.xlu0 %8097 }
 0xb13   :  { %8100 = vst.msk [vmem:[#allocation3 + $0x4] sm:$0x1] %vm18155_vm11, %v8098_v40  ;;  %v12778_v40 = vld [vmem:[%s19141_s5 + $0x108] sm:$0xff] }
 0xb14   :  { %10624 = vmatpush.bf16.msra.mxu0 %v12778_v40  ;;  %v12814_v40 = vld [vmem:[%s19141_s5 + $0x228] sm:$0xff] }
 0xb16   :  { %v8139_v39 = vld [vmem:[#allocation1 + $0x7] ss:$9 sm:$0xff] }
 0xb17   :  { %8147 = vst [vmem:[#allocation1] sm:$0xff] %v18119_v45 }
 0xb18   :  { %8141 = vst.msk [vmem:[#allocation3 + $0x8] sm:$0x1] %vm18131_vm7, %v8139_v39  ;;  %v12786_v39 = vld [vmem:[%s19141_s5 + $0x148] sm:$0xff] }
 0xb19   :  { %10637 = vmatpush.bf16.msra.mxu1 %v12786_v39  ;;  %v12822_v39 = vld [vmem:[%s19141_s5 + $0x268] sm:$0xff] }
 0xb1d   :  { %10638 = vmatpush.bf16.msra.mxu1 %v12785_v59  ;;  %v12821_v59 = vld [vmem:[%s19141_s5 + $0x260] sm:$0xff] }
 0xb1e   :  { %v8149_v46 = vld [vmem:[#allocation1 + $0x1] ss:$9 sm:$0xff] }
 0xb1f   :  { %8152 = vst [vmem:[#allocation1] sm:$0xff] %v18119_v45 }
 0xb20   :  { %8151 = vst.msk [vmem:[#allocation3 + $0x9] sm:$0x1] %vm18131_vm7, %v8149_v46 }
 0xb21   :  { %10683 = vmatpush.bf16.msrb.mxu1 %v12824_v31  ;;  %v12870_v31 = vld [vmem:[%s19141_s5 + $0x3e8] sm:$0xff] }
 0xb26   :  { %v8154_v0 = vld [vmem:[#allocation1 + $0x2] ss:$9 sm:$0xff] }
 0xb27   :  { %8159 = vst [vmem:[#allocation1] sm:$0xff] %v18119_v45  ;;  %8155 = vrot.lane.b32.xlu2 %v8154_v0, %s13304_s0 }
 0xb29   :  { %v8064_v53 = vpop.permute.xlu0 %8063 }
 0xb2a   :  { %8066 = vst.msk [vmem:[#allocation3 + $0x1] sm:$0x1] %vm18155_vm11, %v8064_v53  ;;  %v12762_v53 = vld [vmem:[%s19141_s5 + $0x88] sm:$0xff] }
 0xb2b   :  { %10598 = vmatpush.bf16.msra.mxu2 %v12762_v53  ;;  %v12831_v53 = vld [vmem:[%s19141_s5 + $0x2b0] sm:$0xff] }
 0xb2e   :  { %v8161_v35 = vld [vmem:[#allocation1 + $0x3] ss:$9 sm:$0xff] }
 0xb2f   :  { %8164 = vst [vmem:[#allocation1] sm:$0xff] %v18119_v45  ;;  %10599 = vmatpush.bf16.msra.mxu2 %v12761_v14 }
 0xb30   :  { %8163 = vst.msk [vmem:[#allocation3 + $0xa] sm:$0x1] %vm18131_vm7, %v8161_v35  ;;  %v12770_v35 = vld [vmem:[%s19141_s5 + $0xc8] sm:$0xff] }
 0xb31   :  { %v8088_v12 = vpop.permute.xlu2 %8087  ;;  %10611 = vmatpush.bf16.msra.mxu3 %v12770_v35  ;;  %v12839_v35 = vld [vmem:[%s19141_s5 + $0x2f0] sm:$0xff] }
 0xb32   :  { %8090 = vst.msk [vmem:[#allocation3 + $0x3] sm:$0x1] %vm18155_vm11, %v8088_v12  ;;  %v12777_v12 = vld [vmem:[%s19141_s5 + $0x100] sm:$0xff] }
 0xb33   :  { %10625 = vmatpush.bf16.msra.mxu0 %v12777_v12  ;;  %v12813_v12 = vld [vmem:[%s19141_s5 + $0x220] sm:$0xff] }
 0xb36   :  { %v8166_v44 = vld [vmem:[#allocation1 + $0x4] ss:$9 sm:$0xff] }
 0xb37   :  { %8171 = vst [vmem:[#allocation1] sm:$0xff] %v18119_v45  ;;  %8167 = vrot.lane.b32.xlu0 %v8166_v44, %s13304_s0  ;;  %v12769_v44 = vld [vmem:[%s19141_s5 + $0xc0] sm:$0xff]  ;;  %10670 = vmatpush.bf16.msrb.mxu0 %v12816_v23  ;;  %v12862_v23 = vld [vmem:[%s19141_s5 + $0x3a8] sm:$0xff] }
 0xb38   :  { %10612 = vmatpush.bf16.msra.mxu3 %v12769_v44  ;;  %v12830_v44 = vld [vmem:[%s19141_s5 + $0x2a8] sm:$0xff] }
 0xb39   :  { %v8076_v5 = vpop.permute.xlu1 %8075 }
 0xb3a   :  { %8078 = vst.msk [vmem:[#allocation3 + $0x2] sm:$0x1] %vm18155_vm11, %v8076_v5 }
 0xb3b   :  { %10671 = vmatpush.bf16.msrb.mxu0 %v12815_v10  ;;  %v12852_v10 = vld [vmem:[%s19141_s5 + $0x358] sm:$0xff] }
 0xb3e   :  { %v8173_v7 = vld [vmem:[#allocation1 + $0x5] ss:$9 sm:$0xff] }
 0xb3f   :  { %8176 = vst [vmem:[#allocation1] sm:$0xff] %v18119_v45  ;;  %10672 = vmatpush.bf16.msrb.mxu0 %v12814_v40  ;;  %v12850_v40 = vld [vmem:[%s19141_s5 + $0x348] sm:$0xff] }
 0xb40   :  { %8175 = vst.msk [vmem:[#allocation3 + $0xb] sm:$0x1] %vm18131_vm7, %v8173_v7 }
 0xb43   :  { %10673 = vmatpush.bf16.msrb.mxu0 %v12813_v12  ;;  %v12849_v12 = vld [vmem:[%s19141_s5 + $0x340] sm:$0xff] }
 0xb46   :  { %v8178_v27 = vld [vmem:[#allocation1 + $0x6] ss:$9 sm:$0xff] }
 0xb47   :  { %8183 = vst [vmem:[#allocation1] sm:$0xff] %v18119_v45  ;;  %8179 = vrot.lane.b32.xlu1 %v8178_v27, %s13304_s0 }
 0xb4e   :  { %v8185_v63 = vld [vmem:[#allocation1 + $0x7] ss:$9 sm:$0xff] }
 0xb4f   :  { %8187 = vst.msk [vmem:[#allocation3 + $0xc] sm:$0x1] %vm18131_vm7, %v8185_v63  ;;  %v12807_v63 = vld [vmem:[%s19141_s5 + $0x1f0] sm:$0xff] }
 0xb50   :  { %8193 = vst [vmem:[#allocation1] sm:$0xff] %v18127_v42 }
 0xb57   :  { %v8195_v45 = vld [vmem:[#allocation1 + $0x1] ss:$9 sm:$0xff] }
 0xb58   :  { %8197 = vst.msk [vmem:[#allocation3 + $0xd] sm:$0x1] %vm18131_vm7, %v8195_v45  ;;  %v12796_v45 = vld [vmem:[%s19141_s5 + $0x198] sm:$0xff] }
 0xb59   :  { %8198 = vst [vmem:[#allocation1] sm:$0xff] %v18127_v42  ;;  %v8122_v49 = vpop.permute.xlu2 %8121 }
 0xb5a   :  { %8124 = vst.msk [vmem:[#allocation3 + $0x6] sm:$0x1] %vm18155_vm11, %v8122_v49  ;;  %v12804_v49 = vld [vmem:[%s19141_s5 + $0x1d8] sm:$0xff] }
 0xb60   :  { %v8200_v54 = vld [vmem:[#allocation1 + $0x2] ss:$9 sm:$0xff] }
 0xb61   :  { %8201 = vrot.lane.b32.xlu0 %v8200_v54, %s13304_s0  ;;  %8205 = vst [vmem:[#allocation1] sm:$0xff] %v18127_v42  ;;  %v8110_v22 = vpop.permute.xlu1 %8109  ;;  %v8190_v17 = vpop.permute.xlu2 %8189  ;;  %v12823_v54 = vld [vmem:[%s19141_s5 + $0x270] sm:$0xff] }
 0xb62   :  { %8112 = vst.msk [vmem:[#allocation3 + $0x5] sm:$0x1] %vm18155_vm11, %v8110_v22  ;;  %10684 = vmatpush.bf16.msrb.mxu1 %v12823_v54  ;;  %v12861_v54 = vld [vmem:[%s19141_s5 + $0x3a0] sm:$0xff] }
 0xb63   :  { %8192 = vst.msk [vmem:[#allocation3 + $0xc] sm:$0x1] %vm18155_vm11, %v8190_v17  ;;  %v12793_v17 = vld [vmem:[%s19141_s5 + $0x180] sm:$0xff] }
 0xb66   :  { %10685 = vmatpush.bf16.msrb.mxu1 %v12822_v39  ;;  %v12859_v39 = vld [vmem:[%s19141_s5 + $0x390] sm:$0xff] }
 0xb68   :  { %v8207_v46 = vld [vmem:[#allocation1 + $0x3] ss:$9 sm:$0xff] }
 0xb69   :  { %8235 = vrot.lane.b32.xlu0 %v18116_v51, %s13304_s0  ;;  %v8144_v0 = vpop.permute.xlu1 %8143  ;;  %8210 = vst [vmem:[#allocation1] sm:$0xff] %v18127_v42 }
 0xb6a   :  { %8146 = vst.msk [vmem:[#allocation3 + $0x8] sm:$0x1] %vm18155_vm11, %v8144_v0  ;;  %10686 = vmatpush.bf16.msrb.mxu1 %v12821_v59  ;;  %v12858_v59 = vld [vmem:[%s19141_s5 + $0x388] sm:$0xff] }
 0xb6b   :  { %8209 = vst.msk [vmem:[#allocation3 + $0xe] sm:$0x1] %vm18131_vm7, %v8207_v46 }
 0xb70   :  { %v8212_v5 = vld [vmem:[#allocation1 + $0x4] ss:$9 sm:$0xff] }
 0xb71   :  { %8213 = vrot.lane.b32.xlu1 %v8212_v5, %s13304_s0  ;;  %8217 = vst [vmem:[#allocation1] sm:$0xff] %v18127_v42  ;;  %v12838_v5 = vld [vmem:[%s19141_s5 + $0x2e8] sm:$0xff] }
 0xb78   :  { %v8219_v21 = vld [vmem:[#allocation1 + $0x5] ss:$9 sm:$0xff] }
 0xb79   :  { %8281 = vrot.lane.b32.xlu1 %v18121_v50, %s13304_s0  ;;  %8222 = vst [vmem:[#allocation1] sm:$0xff] %v18127_v42 }
 0xb7a   :  { %8221 = vst.msk [vmem:[#allocation3 + $0xf] sm:$0x1] %vm18131_vm7, %v8219_v21  ;;  %v12812_v21 = vld [vmem:[%s19141_s5 + $0x218] sm:$0xff] }
 0xb7b   :  { %10674 = vmatpush.bf16.msrb.mxu0 %v12812_v21 }
 0xb80   :  { %v8224_v34 = vld [vmem:[#allocation1 + $0x6] ss:$9 sm:$0xff] }
 0xb81   :  { %8225 = vrot.lane.b32.xlu2 %v8224_v34, %s13304_s0  ;;  %8229 = vst [vmem:[#allocation1] sm:$0xff] %v18127_v42  ;;  %v8134_v15 = vpop.permute.xlu0 %8133  ;;  %v8156_v4 = vpop.permute.xlu2 %8155  ;;  %v12820_v34 = vld [vmem:[%s19141_s5 + $0x258] sm:$0xff] }
 0xb82   :  { %8136 = vst.msk [vmem:[#allocation3 + $0x7] sm:$0x1] %vm18155_vm11, %v8134_v15  ;;  %v12829_v15 = vld [vmem:[%s19141_s5 + $0x2a0] sm:$0xff]  ;;  %10687 = vmatpush.bf16.msrb.mxu1 %v12820_v34 }
 0xb83   :  { %8158 = vst.msk [vmem:[#allocation3 + $0x9] sm:$0x1] %vm18155_vm11, %v8156_v4  ;;  %v12837_v4 = vld [vmem:[%s19141_s5 + $0x2e0] sm:$0xff] }
 0xb84   :  { %v12865_v34 = vld [vmem:[%s19141_s5 + $0x3c0] sm:$0xff] }
 0xb88   :  { %v8231_v7 = vld [vmem:[#allocation1 + $0x7] ss:$9 sm:$0xff] }
 0xb89   :  { %v18371_v48 = vld [vmem:[#allocation3] sm:$0xff]  ;;  %8239 = vst [vmem:[#allocation1] sm:$0xff] %v18116_v51 }
 0xb8a   :  { %v8421_v26 = vperm.slane %v18371_v48, 0  ;;  %v8422_v60 = vperm.slane %v18371_v48, 1  ;;  %v8425_v16 = vperm.slane %v18371_v48, 4  ;;  %v8426_v42 = vperm.slane %v18371_v48, 5  ;;  %8233 = vst.msk [vmem:[#allocation3 + $0x10] sm:$0x1] %vm18131_vm7, %v8231_v7 }
 0xb8b   :  { %v8423_v20 = vperm.slane %v18371_v48, 2  ;;  %v8424_v19 = vperm.slane %v18371_v48, 3  ;;  %v8427_v58 = vperm.slane %v18371_v48, 6  ;;  %v8428_v62 = vperm.slane %v18371_v48, 7  ;;  %v12811_v7 = vld [vmem:[%s19141_s5 + $0x210] sm:$0xff] }
 0xb8c   :  { %v8485_v27 = vpack.c.bf16 %v8421_v26, %v8421_v26  ;;  %v8486_v37 = vpack.c.bf16 %v8422_v60, %v8422_v60  ;;  %v8489_v1 = vpack.c.bf16 %v8425_v16, %v8425_v16  ;;  %v8490_v18 = vpack.c.bf16 %v8426_v42, %v8426_v42  ;;  %v12819_v48 = vld [vmem:[%s19141_s5 + $0x250] sm:$0xff]  ;;  %v12828_v16 = vld [vmem:[%s19141_s5 + $0x298] sm:$0xff]  ;;  %10675 = vmatpush.bf16.msrb.mxu0 %v12811_v7 }
 0xb8d   :  { %v8487_v2 = vpack.c.bf16 %v8423_v20, %v8423_v20  ;;  %v8488_v13 = vpack.c.bf16 %v8424_v19, %v8424_v19  ;;  %v8491_v46 = vpack.c.bf16 %v8427_v58, %v8427_v58  ;;  %v8492_v0 = vpack.c.bf16 %v8428_v62, %v8428_v62  ;;  %v12836_v42 = vld [vmem:[%s19141_s5 + $0x2d8] sm:$0xff]  ;;  %10688 = vmatpush.bf16.msrb.mxu1 %v12819_v48 }
 0xb8e   :  { %10574 = vmatmul.bf16.vlgmr.msrb.gmra.mxu2 %v8485_v27  ;;  %10587 = vmatmul.bf16.vlgmr.msrb.gmra.mxu3 %v8486_v37  ;;  %v12818_v27 = vld [vmem:[%s19141_s5 + $0x248] sm:$0xff]  ;;  %v12827_v37 = vld [vmem:[%s19141_s5 + $0x290] sm:$0xff]  ;;  %v12864_v20 = vld [vmem:[%s19141_s5 + $0x3b8] sm:$0xff] }
 0xb8f   :  { %10626 = vmatmul.bf16.vlgmr.msra.gmra.mxu0 %v8489_v1  ;;  %10639 = vmatmul.bf16.vlgmr.msra.gmra.mxu1 %v8490_v18  ;;  %v12835_v1 = vld [vmem:[%s19141_s5 + $0x2d0] sm:$0xff]  ;;  %v12809_v18 = vld [vmem:[%s19141_s5 + $0x200] sm:$0xff]  ;;  %v12872_v19 = vld [vmem:[%s19141_s5 + $0x3f8] sm:$0xff] }
 0xb90   :  { %10644 = vmatpush.bf16.msrb.mxu2 %v12800_v56  ;;  %10657 = vmatpush.bf16.msrb.mxu3 %v12808_v28  ;;  %v8241_v36 = vld [vmem:[#allocation1 + $0x1] ss:$9 sm:$0xff] }
 0xb91   :  { %8244 = vst [vmem:[#allocation1] sm:$0xff] %v18116_v51  ;;  %10689 = vmatpush.bf16.msrb.mxu1 %v12818_v27  ;;  %v12817_v56 = vld [vmem:[%s19141_s5 + $0x240] sm:$0xff]  ;;  %v12860_v58 = vld [vmem:[%s19141_s5 + $0x398] sm:$0xff] }
 0xb92   :  { %8243 = vst.msk [vmem:[#allocation3 + $0x11] sm:$0x1] %vm18131_vm7, %v8241_v36  ;;  %v12856_v36 = vld [vmem:[%s19141_s5 + $0x378] sm:$0xff] }
 0xb93   :  { %v12868_v62 = vld [vmem:[%s19141_s5 + $0x3d8] sm:$0xff] }
 0xb94   :  { %10645 = vmatpush.bf16.msrb.mxu2 %v12799_v55  ;;  %10658 = vmatpush.bf16.msrb.mxu3 %v12807_v63  ;;  %v12826_v55 = vld [vmem:[%s19141_s5 + $0x288] sm:$0xff]  ;;  %v12848_v63 = vld [vmem:[%s19141_s5 + $0x338] sm:$0xff] }
 0xb95   :  { %10690 = vmatpush.bf16.msrb.mxu1 %v12817_v56 }
 0xb98   :  { %v8246_v57 = vld [vmem:[#allocation1 + $0x2] ss:$9 sm:$0xff]  ;;  %10646 = vmatpush.bf16.msrb.mxu2 %v12798_v25  ;;  %10659 = vmatpush.bf16.msrb.mxu3 %v12806_v33 }
 0xb99   :  { %8247 = vrot.lane.b32.xlu1 %v8246_v57, %s13304_s0  ;;  %8251 = vst [vmem:[#allocation1] sm:$0xff] %v18116_v51  ;;  %v12834_v25 = vld [vmem:[%s19141_s5 + $0x2c8] sm:$0xff]  ;;  %10735 = vmatpush.bf16.msra.mxu1 %v12856_v36  ;;  %v12847_v33 = vld [vmem:[%s19141_s5 + $0x330] sm:$0xff] }
 0xb9a   :  { %v12855_v57 = vld [vmem:[%s19141_s5 + $0x370] sm:$0xff] }
 0xb9c   :  { %10647 = vmatpush.bf16.msrb.mxu2 %v12797_v32  ;;  %10660 = vmatpush.bf16.msrb.mxu3 %v12805_v3  ;;  %v12825_v32 = vld [vmem:[%s19141_s5 + $0x280] sm:$0xff] }
 0xb9d   :  { %v12833_v3 = vld [vmem:[%s19141_s5 + $0x2c0] sm:$0xff]  ;;  %10736 = vmatpush.bf16.msra.mxu1 %v12855_v57 }
 0xb9e   :  { %10600 = vmatmul.bf16.vlgmr.msra.gmra.mxu2 %v8487_v2  ;;  %10613 = vmatmul.bf16.vlgmr.msra.gmra.mxu3 %v8488_v13  ;;  %v12846_v13 = vld [vmem:[%s19141_s5 + $0x328] sm:$0xff] }
 0xba0   :  { %10648 = vmatpush.bf16.msrb.mxu2 %v12796_v45  ;;  %10661 = vmatpush.bf16.msrb.mxu3 %v12804_v49  ;;  %v8253_v8 = vld [vmem:[#allocation1 + $0x3] ss:$9 sm:$0xff] }
 0xba1   :  { %8256 = vst [vmem:[#allocation1] sm:$0xff] %v18116_v51  ;;  %v12854_v45 = vld [vmem:[%s19141_s5 + $0x368] sm:$0xff]  ;;  %v12863_v49 = vld [vmem:[%s19141_s5 + $0x3b0] sm:$0xff] }
 0xba2   :  { %8255 = vst.msk [vmem:[#allocation3 + $0x12] sm:$0x1] %vm18131_vm7, %v8253_v8  ;;  %10737 = vmatpush.bf16.msra.mxu1 %v12854_v45  ;;  %v12853_v8 = vld [vmem:[%s19141_s5 + $0x360] sm:$0xff] }
 0xba4   :  { %10649 = vmatpush.bf16.msrb.mxu2 %v12795_v30  ;;  %10662 = vmatpush.bf16.msrb.mxu3 %v12803_v38  ;;  %v12871_v30 = vld [vmem:[%s19141_s5 + $0x3f0] sm:$0xff]  ;;  %v12845_v38 = vld [vmem:[%s19141_s5 + $0x320] sm:$0xff] }
 0xba6   :  { %10738 = vmatpush.bf16.msra.mxu1 %v12853_v8 }
 0xba8   :  { %v8258_v22 = vld [vmem:[#allocation1 + $0x4] ss:$9 sm:$0xff]  ;;  %10650 = vmatpush.bf16.msrb.mxu2 %v12794_v24  ;;  %10663 = vmatpush.bf16.msrb.mxu3 %v12802_v43 }
 0xba9   :  { %8259 = vrot.lane.b32.xlu2 %v8258_v22, %s13304_s0  ;;  %8263 = vst [vmem:[#allocation1] sm:$0xff] %v18116_v51  ;;  %v8168_v41 = vpop.permute.xlu0 %8167  ;;  %v12844_v43 = vld [vmem:[%s19141_s5 + $0x318] sm:$0xff] }
 0xbaa   :  { %8170 = vst.msk [vmem:[#allocation3 + $0xa] sm:$0x1] %vm18155_vm11, %v8168_v41  ;;  %10739 = vmatpush.bf16.msra.mxu1 %v12852_v10  ;;  %v12851_v41 = vld [vmem:[%s19141_s5 + $0x350] sm:$0xff] }
 0xbac   :  { %10651 = vmatpush.bf16.msrb.mxu2 %v12793_v17  ;;  %10664 = vmatpush.bf16.msrb.mxu3 %v12801_v29  ;;  %v12869_v17 = vld [vmem:[%s19141_s5 + $0x3e0] sm:$0xff]  ;;  %v12843_v29 = vld [vmem:[%s19141_s5 + $0x310] sm:$0xff] }
 0xbae   :  { %10740 = vmatpush.bf16.msra.mxu1 %v12851_v41  ;;  %v12880_v41 = vld [vmem:[%s19141_s5 + $0x438] sm:$0xff] }
 0xbaf   :  { %10652 = vmatmul.bf16.vlgmr.msrb.gmra.mxu2 %v8491_v46  ;;  %10665 = vmatmul.bf16.vlgmr.msrb.gmra.mxu3 %v8492_v0 }
 0xbb0   :  { %10696 = vmatpush.bf16.msra.mxu2 %v12832_v52  ;;  %10709 = vmatpush.bf16.msra.mxu3 %v12840_v11  ;;  %v8265_v14 = vld [vmem:[#allocation1 + $0x5] ss:$9 sm:$0xff] }
 0xbb1   :  { %8268 = vst [vmem:[#allocation1] sm:$0xff] %v18116_v51  ;;  %v12842_v11 = vld [vmem:[%s19141_s5 + $0x308] sm:$0xff] }
 0xbb2   :  { %8267 = vst.msk [vmem:[#allocation3 + $0x13] sm:$0x1] %vm18131_vm7, %v8265_v14  ;;  %10741 = vmatpush.bf16.msra.mxu1 %v12850_v40  ;;  %v12866_v14 = vld [vmem:[%s19141_s5 + $0x3c8] sm:$0xff]  ;;  %v12879_v40 = vld [vmem:[%s19141_s5 + $0x430] sm:$0xff] }
 0xbb4   :  { %10697 = vmatpush.bf16.msra.mxu2 %v12831_v53  ;;  %10710 = vmatpush.bf16.msra.mxu3 %v12839_v35  ;;  %v12867_v53 = vld [vmem:[%s19141_s5 + $0x3d0] sm:$0xff]  ;;  %v12841_v35 = vld [vmem:[%s19141_s5 + $0x300] sm:$0xff] }
 0xbb6   :  { %10742 = vmatpush.bf16.msra.mxu1 %v12849_v12 }
 0xbb8   :  { %10698 = vmatpush.bf16.msra.mxu2 %v12830_v44  ;;  %10711 = vmatpush.bf16.msra.mxu3 %v12838_v5  ;;  %v8270_v26 = vld [vmem:[#allocation1 + $0x6] ss:$9 sm:$0xff] }
 0xbb9   :  { %8271 = vrot.lane.b32.xlu0 %v8270_v26, %s13304_s0  ;;  %8275 = vst [vmem:[#allocation1] sm:$0xff] %v18116_v51  ;;  %v8180_v60 = vpop.permute.xlu1 %8179  ;;  %v12810_v51 = vld [vmem:[%s19141_s5 + $0x208] sm:$0xff]  ;;  %v12857_v5 = vld [vmem:[%s19141_s5 + $0x380] sm:$0xff] }
 0xbba   :  { %8182 = vst.msk [vmem:[#allocation3 + $0xb] sm:$0x1] %vm18155_vm11, %v8180_v60  ;;  %10676 = vmatpush.bf16.msrb.mxu0 %v12810_v51 }
 0xbbc   :  { %10699 = vmatpush.bf16.msra.mxu2 %v12829_v15  ;;  %10712 = vmatpush.bf16.msra.mxu3 %v12837_v4 }
 0xbbe   :  { %10677 = vmatpush.bf16.msrb.mxu0 %v12809_v18 }
 0xbc0   :  { %10700 = vmatpush.bf16.msra.mxu2 %v12828_v16  ;;  %10713 = vmatpush.bf16.msra.mxu3 %v12836_v42  ;;  %v8277_v28 = vld [vmem:[#allocation1 + $0x7] ss:$9 sm:$0xff] }
 0xbc1   :  { %8285 = vst [vmem:[#allocation1] sm:$0xff] %v18121_v50 }
 0xbc2   :  { %8279 = vst.msk [vmem:[#allocation3 + $0x14] sm:$0x1] %vm18131_vm7, %v8277_v28  ;;  %10722 = vmatpush.bf16.msra.mxu0 %v12848_v63 }
 0xbc4   :  { %10701 = vmatpush.bf16.msra.mxu2 %v12827_v37  ;;  %10714 = vmatpush.bf16.msra.mxu3 %v12835_v1 }
 0xbc6   :  { %10723 = vmatpush.bf16.msra.mxu0 %v12847_v33 }
 0xbc8   :  { %10702 = vmatpush.bf16.msra.mxu2 %v12826_v55  ;;  %10715 = vmatpush.bf16.msra.mxu3 %v12834_v25  ;;  %v8287_v2 = vld [vmem:[#allocation1 + $0x1] ss:$9 sm:$0xff] }
 0xbc9   :  { %8290 = vst [vmem:[#allocation1] sm:$0xff] %v18121_v50 }
 0xbca   :  { %8289 = vst.msk [vmem:[#allocation3 + $0x15] sm:$0x1] %vm18131_vm7, %v8287_v2  ;;  %10724 = vmatpush.bf16.msra.mxu0 %v12846_v13  ;;  %v9029_v13 = vld [vmem:[%s19142_s6] sm:$0x1] }
 0xbcc   :  { %10703 = vmatpush.bf16.msra.mxu2 %v12825_v32  ;;  %10716 = vmatpush.bf16.msra.mxu3 %v12833_v3 }
 0xbce   :  { %10725 = vmatpush.bf16.msra.mxu0 %v12845_v38 }
 0xbd0   :  { %10748 = vmatpush.bf16.msrb.mxu2 %v12864_v20  ;;  %10761 = vmatpush.bf16.msrb.mxu3 %v12872_v19  ;;  %v8292_v24 = vld [vmem:[#allocation1 + $0x2] ss:$9 sm:$0xff] }
 0xbd1   :  { %8293 = vrot.lane.b32.xlu2 %v8292_v24, %s13304_s0  ;;  %8297 = vst [vmem:[#allocation1] sm:$0xff] %v18121_v50 }
 0xbd2   :  { %10726 = vmatpush.bf16.msra.mxu0 %v12844_v43 }
 0xbd3   :  { %v8202_v22 = vpop.permute.xlu0 %8201 }
 0xbd4   :  { %10749 = vmatpush.bf16.msrb.mxu2 %v12863_v49  ;;  %10762 = vmatpush.bf16.msrb.mxu3 %v12871_v30  ;;  %8204 = vst.msk [vmem:[#allocation3 + $0xd] sm:$0x1] %vm18155_vm11, %v8202_v22 }
 0xbd6   :  { %10727 = vmatpush.bf16.msra.mxu0 %v12843_v29 }
 0xbd8   :  { %10750 = vmatpush.bf16.msrb.mxu2 %v12862_v23  ;;  %10763 = vmatpush.bf16.msrb.mxu3 %v12870_v31  ;;  %v8299_v52 = vld [vmem:[#allocation1 + $0x3] ss:$9 sm:$0xff] }
 0xbd9   :  { %8327 = vrot.lane.b32.xlu2 %v18123_v6, %s13304_s0  ;;  %8302 = vst [vmem:[#allocation1] sm:$0xff] %v18121_v50 }
 0xbda   :  { %8301 = vst.msk [vmem:[#allocation3 + $0x16] sm:$0x1] %vm18131_vm7, %v8299_v52  ;;  %10728 = vmatpush.bf16.msra.mxu0 %v12842_v11  ;;  %v12904_v11 = vld [vmem:[%s19141_s5 + $0x4f8] sm:$0xff] }
 0xbdb   :  { %v8236_v46 = vpop.permute.xlu0 %8235  ;;  %v8226_v0 = vpop.permute.xlu2 %8225 }
 0xbdc   :  { %10751 = vmatpush.bf16.msrb.mxu2 %v12861_v54  ;;  %10764 = vmatpush.bf16.msrb.mxu3 %v12869_v17  ;;  %8238 = vst.msk [vmem:[#allocation3 + $0x10] sm:$0x1] %vm18155_vm11, %v8236_v46 }
 0xbdd   :  { %8228 = vst.msk [vmem:[#allocation3 + $0xf] sm:$0x1] %vm18155_vm11, %v8226_v0  ;;  %v12895_v0 = vld [vmem:[%s19141_s5 + $0x4b0] sm:$0xff] }
 0xbde   :  { %10729 = vmatpush.bf16.msra.mxu0 %v12841_v35 }
 0xbe0   :  { %10752 = vmatpush.bf16.msrb.mxu2 %v12860_v58  ;;  %10765 = vmatpush.bf16.msrb.mxu3 %v12868_v62  ;;  %v8304_v44 = vld [vmem:[#allocation1 + $0x4] ss:$9 sm:$0xff] }
 0xbe1   :  { %8305 = vrot.lane.b32.xlu0 %v8304_v44, %s13304_s0  ;;  %8309 = vst [vmem:[#allocation1] sm:$0xff] %v18121_v50  ;;  %v12888_v58 = vld [vmem:[%s19141_s5 + $0x478] sm:$0xff]  ;;  %v12878_v44 = vld [vmem:[%s19141_s5 + $0x428] sm:$0xff] }
 0xbe2   :  { %v12896_v62 = vld [vmem:[%s19141_s5 + $0x4b8] sm:$0xff] }
 0xbe3   :  { %v8214_v21 = vpop.permute.xlu1 %8213 }
 0xbe4   :  { %10753 = vmatpush.bf16.msrb.mxu2 %v12859_v39  ;;  %10766 = vmatpush.bf16.msrb.mxu3 %v12867_v53  ;;  %8216 = vst.msk [vmem:[#allocation3 + $0xe] sm:$0x1] %vm18155_vm11, %v8214_v21  ;;  %v12887_v39 = vld [vmem:[%s19141_s5 + $0x470] sm:$0xff]  ;;  %v12894_v21 = vld [vmem:[%s19141_s5 + $0x4a8] sm:$0xff] }
 0xbe5   :  { %v12903_v53 = vld [vmem:[%s19141_s5 + $0x4f0] sm:$0xff] }
 0xbe8   :  { %10754 = vmatpush.bf16.msrb.mxu2 %v12858_v59  ;;  %10767 = vmatpush.bf16.msrb.mxu3 %v12866_v14  ;;  %v8311_v15 = vld [vmem:[#allocation1 + $0x5] ss:$9 sm:$0xff] }
 0xbe9   :  { %8373 = vrot.lane.b32.xlu0 %v18125_v47, %s13304_s0  ;;  %8314 = vst [vmem:[#allocation1] sm:$0xff] %v18121_v50 }
 0xbea   :  { %8313 = vst.msk [vmem:[#allocation3 + $0x17] sm:$0x1] %vm18131_vm7, %v8311_v15 }
 0xbeb   :  { %v8282_v4 = vpop.permute.xlu1 %8281  ;;  %v8414_v7 = vld [vmem:[#allocation3 + $0x8] sm:$0xff] }
 0xbec   :  { %10755 = vmatpush.bf16.msrb.mxu2 %v12857_v5  ;;  %10768 = vmatpush.bf16.msrb.mxu3 %v12865_v34  ;;  %8284 = vst.msk [vmem:[#allocation3 + $0x14] sm:$0x1] %vm18155_vm11, %v8282_v4  ;;  %v8429_v48 = vperm.slane %v8414_v7, 0  ;;  %v8430_v26 = vperm.slane %v8414_v7, 1  ;;  %v8431_v60 = vperm.slane %v8414_v7, 2  ;;  %v8432_v16 = vperm.slane %v8414_v7, 3 }
 0xbed   :  { %v8433_v56 = vperm.slane %v8414_v7, 4  ;;  %v8434_v28 = vperm.slane %v8414_v7, 5  ;;  %v8435_v55 = vperm.slane %v8414_v7, 6  ;;  %v8436_v63 = vperm.slane %v8414_v7, 7  ;;  %v12886_v5 = vld [vmem:[%s19141_s5 + $0x468] sm:$0xff]  ;;  %v12885_v7 = vld [vmem:[%s19141_s5 + $0x460] sm:$0xff] }
 0xbee   :  { %v8493_v42 = vpack.c.bf16 %v8429_v48, %v8429_v48  ;;  %v8494_v51 = vpack.c.bf16 %v8430_v26, %v8430_v26  ;;  %v8495_v27 = vpack.c.bf16 %v8431_v60, %v8431_v60  ;;  %v8496_v37 = vpack.c.bf16 %v8432_v16, %v8432_v16  ;;  %v12902_v4 = vld [vmem:[%s19141_s5 + $0x4e8] sm:$0xff]  ;;  %v12893_v48 = vld [vmem:[%s19141_s5 + $0x4a0] sm:$0xff] }
 0xbef   :  { %v8497_v36 = vpack.c.bf16 %v8433_v56, %v8433_v56  ;;  %v8498_v25 = vpack.c.bf16 %v8434_v28, %v8434_v28  ;;  %v8499_v33 = vpack.c.bf16 %v8435_v55, %v8435_v55  ;;  %v8500_v57 = vpack.c.bf16 %v8436_v63, %v8436_v63  ;;  %v12901_v26 = vld [vmem:[%s19141_s5 + $0x4e0] sm:$0xff]  ;;  %v12900_v28 = vld [vmem:[%s19141_s5 + $0x4d8] sm:$0xff]  ;;  %v12875_v55 = vld [vmem:[%s19141_s5 + $0x410] sm:$0xff] }
 0xbf0   :  { %10678 = vmatmul.bf16.vlgmr.msrb.gmra.mxu0 %v8493_v42  ;;  %10691 = vmatmul.bf16.vlgmr.msrb.gmra.mxu1 %v8494_v51  ;;  %v8316_v1 = vld [vmem:[#allocation1 + $0x6] ss:$9 sm:$0xff] }
 0xbf1   :  { %10704 = vmatmul.bf16.vlgmr.msra.gmra.mxu2 %v8495_v27  ;;  %10717 = vmatmul.bf16.vlgmr.msra.gmra.mxu3 %v8496_v37  ;;  %8321 = vst [vmem:[#allocation1] sm:$0xff] %v18121_v50  ;;  %v12876_v37 = vld [vmem:[%s19141_s5 + $0x418] sm:$0xff]  ;;  %v12883_v63 = vld [vmem:[%s19141_s5 + $0x450] sm:$0xff] }
 0xbf2   :  { %8317 = vrot.lane.b32.xlu1 %v8316_v1, %s13304_s0  ;;  %10774 = vmatpush.bf16.msrb.mxu0 %v12880_v41  ;;  %v12884_v1 = vld [vmem:[%s19141_s5 + $0x458] sm:$0xff]  ;;  %v12926_v41 = vld [vmem:[%s19141_s5 + $0x5a8] sm:$0xff] }
 0xbf3   :  { %10787 = vmatpush.bf16.msrb.mxu1 %v12888_v58  ;;  %10800 = vmatpush.bf16.msra.mxu2 %v12896_v62  ;;  %v12934_v58 = vld [vmem:[%s19141_s5 + $0x5e8] sm:$0xff]  ;;  %v12909_v62 = vld [vmem:[%s19141_s5 + $0x520] sm:$0xff] }
 0xbf4   :  { %10813 = vmatpush.bf16.msra.mxu3 %v12904_v11  ;;  %v12925_v11 = vld [vmem:[%s19141_s5 + $0x5a0] sm:$0xff] }
 0xbf6   :  { %10775 = vmatpush.bf16.msrb.mxu0 %v12879_v40  ;;  %v12933_v40 = vld [vmem:[%s19141_s5 + $0x5e0] sm:$0xff] }
 0xbf7   :  { %10788 = vmatpush.bf16.msrb.mxu1 %v12887_v39  ;;  %10801 = vmatpush.bf16.msra.mxu2 %v12895_v0  ;;  %v12916_v0 = vld [vmem:[%s19141_s5 + $0x558] sm:$0xff] }
 0xbf8   :  { %v8323_v18 = vld [vmem:[#allocation1 + $0x7] ss:$9 sm:$0xff]  ;;  %10814 = vmatpush.bf16.msra.mxu3 %v12903_v53 }
 0xbf9   :  { %8331 = vst [vmem:[#allocation1] sm:$0xff] %v18123_v6 }
 0xbfa   :  { %8325 = vst.msk [vmem:[#allocation3 + $0x18] sm:$0x1] %vm18131_vm7, %v8323_v18  ;;  %10776 = vmatpush.bf16.msrb.mxu0 %v12878_v44  ;;  %v12892_v18 = vld [vmem:[%s19141_s5 + $0x498] sm:$0xff]  ;;  %v12923_v44 = vld [vmem:[%s19141_s5 + $0x590] sm:$0xff] }
 0xbfb   :  { %10789 = vmatpush.bf16.msrb.mxu1 %v12886_v5  ;;  %10802 = vmatpush.bf16.msra.mxu2 %v12894_v21  ;;  %v12931_v5 = vld [vmem:[%s19141_s5 + $0x5d0] sm:$0xff]  ;;  %v12906_v21 = vld [vmem:[%s19141_s5 + $0x508] sm:$0xff] }
 0xbfc   :  { %10815 = vmatpush.bf16.msra.mxu3 %v12902_v4  ;;  %v12922_v4 = vld [vmem:[%s19141_s5 + $0x588] sm:$0xff] }
 0xbff   :  { %10790 = vmatpush.bf16.msrb.mxu1 %v12885_v7  ;;  %10803 = vmatpush.bf16.msra.mxu2 %v12893_v48  ;;  %v12905_v48 = vld [vmem:[%s19141_s5 + $0x500] sm:$0xff] }
 0xc00   :  { %10730 = vmatmul.bf16.vlgmr.msra.gmra.mxu0 %v8497_v36  ;;  %10743 = vmatmul.bf16.vlgmr.msra.gmra.mxu1 %v8498_v25  ;;  %v8333_v32 = vld [vmem:[#allocation1 + $0x1] ss:$9 sm:$0xff] }
 0xc01   :  { %10756 = vmatmul.bf16.vlgmr.msrb.gmra.mxu2 %v8499_v33  ;;  %10769 = vmatmul.bf16.vlgmr.msrb.gmra.mxu3 %v8500_v57  ;;  %8336 = vst [vmem:[#allocation1] sm:$0xff] %v18123_v6  ;;  %v12891_v36 = vld [vmem:[%s19141_s5 + $0x490] sm:$0xff] }
 0xc02   :  { %8335 = vst.msk [vmem:[#allocation3 + $0x19] sm:$0x1] %vm18131_vm7, %v8333_v32  ;;  %10816 = vmatpush.bf16.msra.mxu3 %v12901_v26  ;;  %v12899_v25 = vld [vmem:[%s19141_s5 + $0x4d0] sm:$0xff]  ;;  %v12913_v26 = vld [vmem:[%s19141_s5 + $0x540] sm:$0xff] }
 0xc03   :  { %v8260_v50 = vpop.permute.xlu2 %8259  ;;  %10791 = vmatpush.bf16.msrb.mxu1 %v12884_v1  ;;  %10804 = vmatpush.bf16.msra.mxu2 %v12892_v18 }
 0xc04   :  { %8262 = vst.msk [vmem:[#allocation3 + $0x12] sm:$0x1] %vm18155_vm11, %v8260_v50  ;;  %v12874_v50 = vld [vmem:[%s19141_s5 + $0x408] sm:$0xff] }
 0xc06   :  { %10817 = vmatpush.bf16.msra.mxu3 %v12900_v28 }
 0xc07   :  { %10792 = vmatpush.bf16.msrb.mxu1 %v12883_v63  ;;  %10805 = vmatpush.bf16.msra.mxu2 %v12891_v36 }
 0xc08   :  { %v8338_v3 = vld [vmem:[#allocation1 + $0x2] ss:$9 sm:$0xff] }
 0xc09   :  { %8339 = vrot.lane.b32.xlu0 %v8338_v3, %s13304_s0  ;;  %8343 = vst [vmem:[#allocation1] sm:$0xff] %v18123_v6  ;;  %v12882_v3 = vld [vmem:[%s19141_s5 + $0x448] sm:$0xff] }
 0xc0a   :  { %10818 = vmatpush.bf16.msra.mxu3 %v12899_v25 }
 0xc0b   :  { %v8248_v20 = vpop.permute.xlu1 %8247  ;;  %10793 = vmatpush.bf16.msrb.mxu1 %v12882_v3 }
 0xc0c   :  { %8250 = vst.msk [vmem:[#allocation3 + $0x11] sm:$0x1] %vm18155_vm11, %v8248_v20  ;;  %v10627_v19 = vpop.f32.mrf.mxu0  ;;  %v10640_v2 = vpop.f32.mrf.mxu1  ;;  %v12890_v20 = vld [vmem:[%s19141_s5 + $0x488] sm:$0xff] }
 0xc0d   :  { %10806 = vmatpush.bf16.msra.mxu2 %v12890_v20 }
 0xc10   :  { %v8345_v45 = vld [vmem:[#allocation1 + $0x3] ss:$9 sm:$0xff] }
 0xc11   :  { %v10575_v49 = vpop.f32.mrf.mxu2  ;;  %v10588_v30 = vpop.f32.mrf.mxu3  ;;  %8348 = vst [vmem:[#allocation1] sm:$0xff] %v18123_v6 }
 0xc12   :  { %v10576_v38 = vadd.f32 %v10575_v49, %v9029_v13  ;;  %8347 = vst.msk [vmem:[#allocation3 + $0x1a] sm:$0x1] %vm18131_vm7, %v8345_v45  ;;  %v12881_v13 = vld [vmem:[%s19141_s5 + $0x440] sm:$0xff] }
 0xc13   :  { %v12889_v45 = vld [vmem:[%s19141_s5 + $0x480] sm:$0xff]  ;;  %10794 = vmatpush.bf16.msrb.mxu1 %v12881_v13 }
 0xc14   :  { %v10589_v8 = vadd.f32 %v10588_v30, %v10576_v38  ;;  %v10629_v23 = vpop.f32.mrf.mxu0  ;;  %v10642_v31 = vpop.f32.mrf.mxu1  ;;  %v12897_v49 = vld [vmem:[%s19141_s5 + $0x4c0] sm:$0xff]  ;;  %10807 = vmatpush.bf16.msra.mxu2 %v12889_v45  ;;  %v12912_v38 = vld [vmem:[%s19141_s5 + $0x538] sm:$0xff] }
 0xc15   :  { %v12928_v23 = vld [vmem:[%s19141_s5 + $0x5b8] sm:$0xff] }
 0xc16   :  { %v12936_v31 = vld [vmem:[%s19141_s5 + $0x5f8] sm:$0xff] }
 0xc18   :  { %v8350_v24 = vld [vmem:[#allocation1 + $0x4] ss:$9 sm:$0xff]  ;;  %10852 = vmatpush.bf16.msrb.mxu2 %v12928_v23 }
 0xc19   :  { %8351 = vrot.lane.b32.xlu1 %v8350_v24, %s13304_s0  ;;  %8355 = vst [vmem:[#allocation1] sm:$0xff] %v18123_v6  ;;  %v10577_v43 = vpop.f32.mrf.mxu2  ;;  %v10590_v10 = vpop.f32.mrf.mxu3  ;;  %v12911_v24 = vld [vmem:[%s19141_s5 + $0x530] sm:$0xff] }
 0xc1a   :  { %v12919_v43 = vld [vmem:[%s19141_s5 + $0x570] sm:$0xff] }
 0xc1b   :  { %v12927_v10 = vld [vmem:[%s19141_s5 + $0x5b0] sm:$0xff] }
 0xc1c   :  { %10853 = vmatpush.bf16.msrb.mxu2 %v12927_v10 }
 0xc20   :  { %v8357_v54 = vld [vmem:[#allocation1 + $0x5] ss:$9 sm:$0xff]  ;;  %10854 = vmatpush.bf16.msrb.mxu2 %v12926_v41 }
 0xc21   :  { %8359 = vst.msk [vmem:[#allocation3 + $0x1b] sm:$0x1] %vm18131_vm7, %v8357_v54  ;;  %v10601_v22 = vpop.f32.mrf.mxu2  ;;  %v10614_v17 = vpop.f32.mrf.mxu3  ;;  %v12935_v54 = vld [vmem:[%s19141_s5 + $0x5f0] sm:$0xff] }
 0xc22   :  { %8360 = vst [vmem:[#allocation1] sm:$0xff] %v18123_v6  ;;  %v10602_v29 = vadd.f32 %v10601_v22, %v10589_v8  ;;  %v12920_v8 = vld [vmem:[%s19141_s5 + $0x578] sm:$0xff]  ;;  %v12910_v22 = vld [vmem:[%s19141_s5 + $0x528] sm:$0xff] }
 0xc23   :  { %10839 = vmatpush.bf16.msra.mxu1 %v12920_v8 }
 0xc24   :  { %v10615_v52 = vadd.f32 %v10614_v17, %v10602_v29  ;;  %v12918_v17 = vld [vmem:[%s19141_s5 + $0x568] sm:$0xff]  ;;  %10855 = vmatpush.bf16.msrb.mxu2 %v12925_v11 }
 0xc26   :  { %v10628_v46 = vadd.f32 %v10627_v19, %v10615_v52  ;;  %v12898_v19 = vld [vmem:[%s19141_s5 + $0x4c8] sm:$0xff]  ;;  %v12917_v52 = vld [vmem:[%s19141_s5 + $0x560] sm:$0xff] }
 0xc27   :  { %10819 = vmatpush.bf16.msra.mxu3 %v12898_v19  ;;  %10840 = vmatpush.bf16.msra.mxu1 %v12919_v43 }
 0xc28   :  { %v10641_v35 = vadd.f32 %v10640_v2, %v10628_v46  ;;  %v12873_v2 = vld [vmem:[%s19141_s5 + $0x400] sm:$0xff]  ;;  %v12908_v46 = vld [vmem:[%s19141_s5 + $0x518] sm:$0xff] }
 0xc29   :  { %v8362_v12 = vld [vmem:[#allocation1 + $0x6] ss:$9 sm:$0xff]  ;;  %v10603_v59 = vpop.f32.mrf.mxu2  ;;  %v10616_v14 = vpop.f32.mrf.mxu3 }
 0xc2a   :  { %8363 = vrot.lane.b32.xlu2 %v8362_v12, %s13304_s0  ;;  %8367 = vst [vmem:[#allocation1] sm:$0xff] %v18123_v6  ;;  %v12877_v6 = vld [vmem:[%s19141_s5 + $0x420] sm:$0xff]  ;;  %v12932_v12 = vld [vmem:[%s19141_s5 + $0x5d8] sm:$0xff]  ;;  %v12907_v59 = vld [vmem:[%s19141_s5 + $0x510] sm:$0xff] }
 0xc2b   :  { %v8272_v34 = vpop.permute.xlu0 %8271  ;;  %v8294_v15 = vpop.permute.xlu2 %8293  ;;  %10777 = vmatpush.bf16.msrb.mxu0 %v12877_v6  ;;  %10820 = vmatpush.bf16.msra.mxu3 %v12897_v49  ;;  %v12915_v14 = vld [vmem:[%s19141_s5 + $0x550] sm:$0xff]  ;;  %v12930_v6 = vld [vmem:[%s19141_s5 + $0x5c8] sm:$0xff] }
 0xc2c   :  { %8274 = vst.msk [vmem:[#allocation3 + $0x13] sm:$0x1] %vm18155_vm11, %v8272_v34  ;;  %10841 = vmatpush.bf16.msra.mxu1 %v12918_v17  ;;  %v12914_v34 = vld [vmem:[%s19141_s5 + $0x548] sm:$0xff] }
 0xc2d   :  { %8296 = vst.msk [vmem:[#allocation3 + $0x15] sm:$0x1] %vm18155_vm11, %v8294_v15 }
 0xc2f   :  { %10778 = vmatpush.bf16.msrb.mxu0 %v12876_v37  ;;  %10865 = vmatpush.bf16.msrb.mxu3 %v12936_v31 }
 0xc30   :  { %10842 = vmatpush.bf16.msra.mxu1 %v12917_v52 }
 0xc31   :  { %v8369_v60 = vld [vmem:[#allocation1 + $0x7] ss:$9 sm:$0xff] }
 0xc32   :  { %8377 = vst [vmem:[#allocation1] sm:$0xff] %v18125_v47  ;;  %v10653_v16 = vpop.f32.mrf.mxu2  ;;  %v10666_v42 = vpop.f32.mrf.mxu3 }
 0xc33   :  { %8371 = vst.msk [vmem:[#allocation3 + $0x1c] sm:$0x1] %vm18131_vm7, %v8369_v60  ;;  %v8328_v51 = vpop.permute.xlu2 %8327  ;;  %v10654_v27 = vadd.f32 %v10653_v16, %v10641_v35  ;;  %10779 = vmatpush.bf16.msrb.mxu0 %v12875_v55  ;;  %10866 = vmatpush.bf16.msrb.mxu3 %v12935_v54  ;;  %v12924_v35 = vld [vmem:[%s19141_s5 + $0x598] sm:$0xff] }
 0xc34   :  { %8330 = vst.msk [vmem:[#allocation3 + $0x18] sm:$0x1] %vm18155_vm11, %v8328_v51  ;;  %10843 = vmatpush.bf16.msra.mxu1 %v12916_v0  ;;  %10856 = vmatpush.bf16.msrb.mxu2 %v12924_v35  ;;  %v12952_v35 = vld [vmem:[%s19141_s5 + $0x678] sm:$0xff] }
 0xc35   :  { %v18766_v56 = vadd.f32 %v10666_v42, %v10654_v27 }
 0xc37   :  { %10780 = vmatpush.bf16.msrb.mxu0 %v12874_v50  ;;  %10867 = vmatpush.bf16.msrb.mxu3 %v12934_v58 }
 0xc38   :  { %10844 = vmatpush.bf16.msra.mxu1 %v12915_v14  ;;  %10857 = vmatpush.bf16.msrb.mxu2 %v12923_v44  ;;  %v12943_v14 = vld [vmem:[%s19141_s5 + $0x630] sm:$0xff] }
 0xc39   :  { %v8379_v33 = vld [vmem:[#allocation1 + $0x1] ss:$9 sm:$0xff] }
 0xc3a   :  { %8381 = vst.msk [vmem:[#allocation3 + $0x1d] sm:$0x1] %vm18131_vm7, %v8379_v33  ;;  %v10655_v57 = vpop.f32.mrf.mxu2  ;;  %v10668_v32 = vpop.f32.mrf.mxu3  ;;  %v12951_v44 = vld [vmem:[%s19141_s5 + $0x670] sm:$0xff] }
 0xc3b   :  { %8382 = vst [vmem:[#allocation1] sm:$0xff] %v18125_v47  ;;  %10781 = vmatpush.bf16.msrb.mxu0 %v12873_v2  ;;  %10868 = vmatpush.bf16.msrb.mxu3 %v12933_v40 }
 0xc3c   :  { %10845 = vmatpush.bf16.msra.mxu1 %v12914_v34  ;;  %10858 = vmatpush.bf16.msrb.mxu2 %v12922_v4  ;;  %v12942_v34 = vld [vmem:[%s19141_s5 + $0x628] sm:$0xff] }
 0xc3d   :  { %v12958_v4 = vld [vmem:[%s19141_s5 + $0x6a8] sm:$0xff] }
 0xc3f   :  { %10826 = vmatpush.bf16.msra.mxu0 %v12912_v38  ;;  %10869 = vmatpush.bf16.msrb.mxu3 %v12932_v12  ;;  %v12960_v12 = vld [vmem:[%s19141_s5 + $0x6b8] sm:$0xff] }
 0xc40   :  { %10846 = vmatpush.bf16.msra.mxu1 %v12913_v26  ;;  %v12957_v26 = vld [vmem:[%s19141_s5 + $0x6a0] sm:$0xff] }
 0xc42   :  { %v8384_v30 = vld [vmem:[#allocation1 + $0x2] ss:$9 sm:$0xff] }
 0xc43   :  { %8385 = vrot.lane.b32.xlu1 %v8384_v30, %s13304_s0  ;;  %8389 = vst [vmem:[#allocation1] sm:$0xff] %v18125_v47  ;;  %10827 = vmatpush.bf16.msra.mxu0 %v12911_v24 }
 0xc44   :  { %10870 = vmatpush.bf16.msrb.mxu3 %v12931_v5  ;;  %v12959_v5 = vld [vmem:[%s19141_s5 + $0x6b0] sm:$0xff] }
 0xc47   :  { %10828 = vmatpush.bf16.msra.mxu0 %v12910_v22 }
 0xc48   :  { %10871 = vmatpush.bf16.msrb.mxu3 %v12930_v6  ;;  %v12966_v6 = vld [vmem:[%s19141_s5 + $0x6e8] sm:$0xff] }
 0xc4a   :  { %v8391_v29 = vld [vmem:[#allocation1 + $0x3] ss:$9 sm:$0xff] }
 0xc4b   :  { %8394 = vst [vmem:[#allocation1] sm:$0xff] %v18125_v47  ;;  %10829 = vmatpush.bf16.msra.mxu0 %v12909_v62 }
 0xc4c   :  { %8393 = vst.msk [vmem:[#allocation3 + $0x1e] sm:$0x1] %vm18131_vm7, %v8391_v29  ;;  %10872 = vmatpush.bf16.msrb.mxu3 %v12929_v9  ;;  %v12940_v9 = vld [vmem:[%s19141_s5 + $0x618] sm:$0xff] }
 0xc4f   :  { %10830 = vmatpush.bf16.msra.mxu0 %v12908_v46 }
 0xc52   :  { %v8396_v39 = vld [vmem:[#allocation1 + $0x4] ss:$9 sm:$0xff] }
 0xc53   :  { %8397 = vrot.lane.b32.xlu2 %v8396_v39, %s13304_s0  ;;  %8401 = vst [vmem:[#allocation1] sm:$0xff] %v18125_v47  ;;  %v8306_v53 = vpop.permute.xlu0 %8305  ;;  %10831 = vmatpush.bf16.msra.mxu0 %v12907_v59  ;;  %v12968_v59 = vld [vmem:[%s19141_s5 + $0x6f8] sm:$0xff] }
 0xc54   :  { %8308 = vst.msk [vmem:[#allocation3 + $0x16] sm:$0x1] %vm18155_vm11, %v8306_v53  ;;  %v12944_v53 = vld [vmem:[%s19141_s5 + $0x638] sm:$0xff] }
 0xc57   :  { %10832 = vmatpush.bf16.msra.mxu0 %v12906_v21  ;;  %v12967_v21 = vld [vmem:[%s19141_s5 + $0x6f0] sm:$0xff] }
 0xc5a   :  { %v8403_v15 = vld [vmem:[#allocation1 + $0x5] ss:$9 sm:$0xff] }
 0xc5b   :  { %v8374_v7 = vpop.permute.xlu0 %8373  ;;  %8406 = vst [vmem:[#allocation1] sm:$0xff] %v18125_v47  ;;  %v12921_v47 = vld [vmem:[%s19141_s5 + $0x580] sm:$0xff]  ;;  %10833 = vmatpush.bf16.msra.mxu0 %v12905_v48 }
 0xc5c   :  { %8376 = vst.msk [vmem:[#allocation3 + $0x1c] sm:$0x1] %vm18155_vm11, %v8374_v7  ;;  %10859 = vmatpush.bf16.msrb.mxu2 %v12921_v47  ;;  %v12941_v7 = vld [vmem:[%s19141_s5 + $0x620] sm:$0xff] }
 0xc5d   :  { %8405 = vst.msk [vmem:[#allocation3 + $0x1f] sm:$0x1] %vm18131_vm7, %v8403_v15  ;;  %v12950_v15 = vld [vmem:[%s19141_s5 + $0x668] sm:$0xff]  ;;  %v12949_v48 = vld [vmem:[%s19141_s5 + $0x660] sm:$0xff] }
 0xc5e   :  { %v12965_v47 = vld [vmem:[%s19141_s5 + $0x6e0] sm:$0xff] }
 0xc62   :  { %v8408_v60 = vld [vmem:[#allocation1 + $0x6] ss:$9 sm:$0xff] }
 0xc63   :  { %8409 = vrot.lane.b32.xlu0 %v8408_v60, %s13304_s0  ;;  %v12948_v60 = vld [vmem:[%s19141_s5 + $0x658] sm:$0xff] }
 0xc64   :  { %v8318_v16 = vpop.permute.xlu1 %8317 }
 0xc65   :  { %8320 = vst.msk [vmem:[#allocation3 + $0x17] sm:$0x1] %vm18155_vm11, %v8318_v16  ;;  %v12956_v16 = vld [vmem:[%s19141_s5 + $0x698] sm:$0xff] }
 0xc6c   :  { %v8415_v42 = vld [vmem:[#allocation3 + $0x10] sm:$0xff] }
 0xc6d   :  { %v10679_v51 = vpop.f32.mrf.mxu0  ;;  %v10692_v27 = vpop.f32.mrf.mxu1  ;;  %v8437_v37 = vperm.slane %v8415_v42, 0  ;;  %v8438_v1 = vperm.slane %v8415_v42, 1  ;;  %v8439_v18 = vperm.slane %v8415_v42, 2  ;;  %v8440_v28 = vperm.slane %v8415_v42, 3 }
 0xc6e   :  { %v10680_v55 = vadd.f32 %v10679_v51, %v18766_v56  ;;  %v8441_v45 = vperm.slane %v8415_v42, 4  ;;  %v8442_v49 = vperm.slane %v8415_v42, 5  ;;  %v8443_v38 = vperm.slane %v8415_v42, 6  ;;  %v12939_v51 = vld [vmem:[%s19141_s5 + $0x610] sm:$0xff] }
 0xc6f   :  { %v8501_v63 = vpack.c.bf16 %v8437_v37, %v8437_v37  ;;  %v8502_v36 = vpack.c.bf16 %v8438_v1, %v8438_v1  ;;  %v8503_v25 = vpack.c.bf16 %v8439_v18, %v8439_v18  ;;  %v8504_v33 = vpack.c.bf16 %v8440_v28, %v8440_v28  ;;  %v12955_v37 = vld [vmem:[%s19141_s5 + $0x690] sm:$0xff]  ;;  %v12938_v18 = vld [vmem:[%s19141_s5 + $0x608] sm:$0xff] }
 0xc70   :  { %v10693_v57 = vadd.f32 %v10692_v27, %v10680_v55  ;;  %v8444_v8 = vperm.slane %v8415_v42, 7  ;;  %v8505_v43 = vpack.c.bf16 %v8441_v45, %v8441_v45  ;;  %v8506_v10 = vpack.c.bf16 %v8442_v49, %v8442_v49  ;;  %v12964_v42 = vld [vmem:[%s19141_s5 + $0x6d8] sm:$0xff]  ;;  %v12947_v27 = vld [vmem:[%s19141_s5 + $0x650] sm:$0xff]  ;;  %v12946_v28 = vld [vmem:[%s19141_s5 + $0x648] sm:$0xff] }
 0xc71   :  { %10782 = vmatmul.bf16.vlgmr.msrb.gmra.mxu0 %v8501_v63  ;;  %10795 = vmatmul.bf16.vlgmr.msrb.gmra.mxu1 %v8502_v36  ;;  %v8507_v22 = vpack.c.bf16 %v8443_v38, %v8443_v38  ;;  %v12963_v1 = vld [vmem:[%s19141_s5 + $0x6d0] sm:$0xff]  ;;  %v12954_v63 = vld [vmem:[%s19141_s5 + $0x688] sm:$0xff] }
 0xc72   :  { %10808 = vmatmul.bf16.vlgmr.msra.gmra.mxu2 %v8503_v25  ;;  %10821 = vmatmul.bf16.vlgmr.msra.gmra.mxu3 %v8504_v33  ;;  %v8508_v17 = vpack.c.bf16 %v8444_v8, %v8444_v8  ;;  %v12962_v36 = vld [vmem:[%s19141_s5 + $0x6c8] sm:$0xff]  ;;  %v12937_v25 = vld [vmem:[%s19141_s5 + $0x600] sm:$0xff]  ;;  %v12983_v45 = vld [vmem:[%s19141_s5 + $0x770] sm:$0xff] }
 0xc73   :  { %10878 = vmatpush.bf16.msrb.mxu0 %v12944_v53  ;;  %10891 = vmatpush.bf16.msrb.mxu1 %v12952_v35  ;;  %v12945_v33 = vld [vmem:[%s19141_s5 + $0x640] sm:$0xff]  ;;  %v12991_v49 = vld [vmem:[%s19141_s5 + $0x7b0] sm:$0xff]  ;;  %v12982_v38 = vld [vmem:[%s19141_s5 + $0x768] sm:$0xff] }
 0xc74   :  { %v10705_v32 = vpop.f32.mrf.mxu2  ;;  %v10718_v50 = vpop.f32.mrf.mxu3  ;;  %10904 = vmatpush.bf16.msra.mxu2 %v12960_v12  ;;  %10917 = vmatpush.bf16.msra.mxu3 %v12968_v59  ;;  %v12990_v8 = vld [vmem:[%s19141_s5 + $0x7a8] sm:$0xff]  ;;  %v12969_v53 = vld [vmem:[%s19141_s5 + $0x700] sm:$0xff] }
 0xc75   :  { %v10706_v3 = vadd.f32 %v10705_v32, %v10693_v57  ;;  %v10681_v20 = vpop.f32.mrf.mxu0  ;;  %v10694_v19 = vpop.f32.mrf.mxu1  ;;  %v12953_v57 = vld [vmem:[%s19141_s5 + $0x680] sm:$0xff] }
 0xc76   :  { %v12961_v32 = vld [vmem:[%s19141_s5 + $0x6c0] sm:$0xff]  ;;  %v12992_v20 = vld [vmem:[%s19141_s5 + $0x7b8] sm:$0xff] }
 0xc77   :  { %v10719_v2 = vadd.f32 %v10718_v50, %v10706_v3  ;;  %10879 = vmatpush.bf16.msrb.mxu0 %v12943_v14  ;;  %10892 = vmatpush.bf16.msrb.mxu1 %v12951_v44  ;;  %v12976_v50 = vld [vmem:[%s19141_s5 + $0x738] sm:$0xff]  ;;  %v12977_v35 = vld [vmem:[%s19141_s5 + $0x740] sm:$0xff] }
 0xc78   :  { %10905 = vmatpush.bf16.msra.mxu2 %v12959_v5  ;;  %10918 = vmatpush.bf16.msra.mxu3 %v12967_v21  ;;  %v12984_v3 = vld [vmem:[%s19141_s5 + $0x778] sm:$0xff]  ;;  %v12985_v12 = vld [vmem:[%s19141_s5 + $0x780] sm:$0xff] }
 0xc79   :  { %v13000_v19 = vld [vmem:[%s19141_s5 + $0x7f8] sm:$0xff]  ;;  %v12993_v59 = vld [vmem:[%s19141_s5 + $0x7c0] sm:$0xff] }
 0xc7b   :  { %v8340_v13 = vpop.permute.xlu0 %8339  ;;  %10880 = vmatpush.bf16.msrb.mxu0 %v12942_v34  ;;  %10893 = vmatpush.bf16.msrb.mxu1 %v12950_v15 }
 0xc7c   :  { %8342 = vst.msk [vmem:[#allocation3 + $0x19] sm:$0x1] %vm18155_vm11, %v8340_v13  ;;  %v10707_v56 = vpop.f32.mrf.mxu2  ;;  %v10720_v30 = vpop.f32.mrf.mxu3  ;;  %10906 = vmatpush.bf16.msra.mxu2 %v12958_v4  ;;  %10919 = vmatpush.bf16.msra.mxu3 %v12966_v6  ;;  %v12975_v13 = vld [vmem:[%s19141_s5 + $0x730] sm:$0xff] }
 0xc7d   :  { %v10731_v23 = vpop.f32.mrf.mxu0  ;;  %v10744_v31 = vpop.f32.mrf.mxu1  ;;  %v12999_v56 = vld [vmem:[%s19141_s5 + $0x7f0] sm:$0xff]  ;;  %v12974_v30 = vld [vmem:[%s19141_s5 + $0x728] sm:$0xff] }
 0xc7e   :  { %v10732_v24 = vadd.f32 %v10731_v23, %v10719_v2  ;;  %v12998_v23 = vld [vmem:[%s19141_s5 + $0x7e8] sm:$0xff] }
 0xc7f   :  { %10881 = vmatpush.bf16.msrb.mxu0 %v12941_v7  ;;  %10894 = vmatpush.bf16.msrb.mxu1 %v12949_v48 }
 0xc80   :  { %v10745_v54 = vadd.f32 %v10744_v31, %v10732_v24  ;;  %10907 = vmatpush.bf16.msra.mxu2 %v12957_v26  ;;  %10920 = vmatpush.bf16.msra.mxu3 %v12965_v47  ;;  %v12973_v31 = vld [vmem:[%s19141_s5 + $0x720] sm:$0xff] }
 0xc81   :  { %10834 = vmatmul.bf16.vlgmr.msra.gmra.mxu0 %v8505_v43  ;;  %10847 = vmatmul.bf16.vlgmr.msra.gmra.mxu1 %v8506_v10  ;;  %v12981_v24 = vld [vmem:[%s19141_s5 + $0x760] sm:$0xff] }
 0xc82   :  { %10860 = vmatmul.bf16.vlgmr.msrb.gmra.mxu2 %v8507_v22  ;;  %10873 = vmatmul.bf16.vlgmr.msrb.gmra.mxu3 %v8508_v17  ;;  %v12989_v43 = vld [vmem:[%s19141_s5 + $0x7a0] sm:$0xff]  ;;  %v12980_v22 = vld [vmem:[%s19141_s5 + $0x758] sm:$0xff] }
 0xc83   :  { %10882 = vmatpush.bf16.msrb.mxu0 %v12940_v9  ;;  %10895 = vmatpush.bf16.msrb.mxu1 %v12948_v60  ;;  %v12997_v10 = vld [vmem:[%s19141_s5 + $0x7e0] sm:$0xff]  ;;  %v12988_v17 = vld [vmem:[%s19141_s5 + $0x798] sm:$0xff] }
 0xc84   :  { %v8364_v29 = vpop.permute.xlu2 %8363  ;;  %v10757_v41 = vpop.f32.mrf.mxu2  ;;  %10908 = vmatpush.bf16.msra.mxu2 %v12956_v16  ;;  %10921 = vmatpush.bf16.msra.mxu3 %v12964_v42 }
 0xc85   :  { %8366 = vst.msk [vmem:[#allocation3 + $0x1b] sm:$0x1] %vm18155_vm11, %v8364_v29  ;;  %v10758_v58 = vadd.f32 %v10757_v41, %v10745_v54  ;;  %v10770_v62 = vpop.f32.mrf.mxu3  ;;  %v10733_v52 = vpop.f32.mrf.mxu0  ;;  %v12972_v54 = vld [vmem:[%s19141_s5 + $0x718] sm:$0xff]  ;;  %v12971_v41 = vld [vmem:[%s19141_s5 + $0x710] sm:$0xff] }
 0xc86   :  { %v10746_v11 = vpop.f32.mrf.mxu1  ;;  %v12996_v29 = vld [vmem:[%s19141_s5 + $0x7d8] sm:$0xff]  ;;  %v12995_v52 = vld [vmem:[%s19141_s5 + $0x7d0] sm:$0xff] }
 0xc87   :  { %v18928_v40 = vadd.f32 %v10770_v62, %v10758_v58  ;;  %10883 = vmatpush.bf16.msrb.mxu0 %v12939_v51  ;;  %10896 = vmatpush.bf16.msrb.mxu1 %v12947_v27  ;;  %v12979_v58 = vld [vmem:[%s19141_s5 + $0x750] sm:$0xff]  ;;  %v12970_v11 = vld [vmem:[%s19141_s5 + $0x708] sm:$0xff] }
 0xc88   :  { %10909 = vmatpush.bf16.msra.mxu2 %v12955_v37  ;;  %10922 = vmatpush.bf16.msra.mxu3 %v12963_v1  ;;  %v12987_v62 = vld [vmem:[%s19141_s5 + $0x790] sm:$0xff] }
 0xc8b   :  { %v8352_v39 = vpop.permute.xlu1 %8351  ;;  %10884 = vmatpush.bf16.msrb.mxu0 %v12938_v18  ;;  %10897 = vmatpush.bf16.msrb.mxu1 %v12946_v28 }
 0xc8c   :  { %8354 = vst.msk [vmem:[#allocation3 + $0x1a] sm:$0x1] %vm18155_vm11, %v8352_v39  ;;  %v10759_v46 = vpop.f32.mrf.mxu2  ;;  %10910 = vmatpush.bf16.msra.mxu2 %v12954_v63  ;;  %10923 = vmatpush.bf16.msra.mxu3 %v12962_v36  ;;  %v12978_v39 = vld [vmem:[%s19141_s5 + $0x748] sm:$0xff] }
 0xc8d   :  { %v10772_v0 = vpop.f32.mrf.mxu3  ;;  %v12986_v46 = vld [vmem:[%s19141_s5 + $0x788] sm:$0xff] }
 0xc8e   :  { %v12994_v0 = vld [vmem:[%s19141_s5 + $0x7c8] sm:$0xff] }
 0xc8f   :  { %10885 = vmatpush.bf16.msrb.mxu0 %v12937_v25  ;;  %10898 = vmatpush.bf16.msrb.mxu1 %v12945_v33 }
 0xc90   :  { %10911 = vmatpush.bf16.msra.mxu2 %v12953_v57  ;;  %10924 = vmatpush.bf16.msra.mxu3 %v12961_v32 }
 0xc93   :  { %10930 = vmatpush.bf16.msra.mxu0 %v12976_v50  ;;  %10943 = vmatpush.bf16.msra.mxu1 %v12984_v3 }
 0xc94   :  { %10956 = vmatpush.bf16.msrb.mxu2 %v12992_v20  ;;  %10969 = vmatpush.bf16.msrb.mxu3 %v13000_v19 }
 0xc97   :  { %10931 = vmatpush.bf16.msra.mxu0 %v12975_v13  ;;  %10944 = vmatpush.bf16.msra.mxu1 %v12983_v45 }
 0xc98   :  { %10957 = vmatpush.bf16.msrb.mxu2 %v12991_v49  ;;  %10970 = vmatpush.bf16.msrb.mxu3 %v12999_v56 }
 0xc9b   :  { %10932 = vmatpush.bf16.msra.mxu0 %v12974_v30  ;;  %10945 = vmatpush.bf16.msra.mxu1 %v12982_v38 }
 0xc9c   :  { %10958 = vmatpush.bf16.msrb.mxu2 %v12990_v8  ;;  %10971 = vmatpush.bf16.msrb.mxu3 %v12998_v23 }
 0xc9f   :  { %10933 = vmatpush.bf16.msra.mxu0 %v12973_v31  ;;  %10946 = vmatpush.bf16.msra.mxu1 %v12981_v24 }
 0xca0   :  { %10959 = vmatpush.bf16.msrb.mxu2 %v12989_v43  ;;  %10972 = vmatpush.bf16.msrb.mxu3 %v12997_v10 }
 0xca3   :  { %10934 = vmatpush.bf16.msra.mxu0 %v12972_v54  ;;  %10947 = vmatpush.bf16.msra.mxu1 %v12980_v22 }
 0xca4   :  { %10960 = vmatpush.bf16.msrb.mxu2 %v12988_v17  ;;  %10973 = vmatpush.bf16.msrb.mxu3 %v12996_v29 }
 0xca7   :  { %10935 = vmatpush.bf16.msra.mxu0 %v12971_v41  ;;  %10948 = vmatpush.bf16.msra.mxu1 %v12979_v58 }
 0xca8   :  { %10961 = vmatpush.bf16.msrb.mxu2 %v12987_v62  ;;  %10974 = vmatpush.bf16.msrb.mxu3 %v12995_v52 }
 0xcab   :  { %10936 = vmatpush.bf16.msra.mxu0 %v12970_v11  ;;  %10949 = vmatpush.bf16.msra.mxu1 %v12978_v39 }
 0xcac   :  { %10962 = vmatpush.bf16.msrb.mxu2 %v12986_v46  ;;  %10975 = vmatpush.bf16.msrb.mxu3 %v12994_v0 }
 0xcad   :  { %v8398_v55 = vpop.permute.xlu2 %8397 }
 0xcae   :  { %8400 = vst.msk [vmem:[#allocation3 + $0x1e] sm:$0x1] %vm18155_vm11, %v8398_v55 }
 0xcaf   :  { %10937 = vmatpush.bf16.msra.mxu0 %v12969_v53  ;;  %10950 = vmatpush.bf16.msra.mxu1 %v12977_v35 }
 0xcb0   :  { %10963 = vmatpush.bf16.msrb.mxu2 %v12985_v12  ;;  %10976 = vmatpush.bf16.msrb.mxu3 %v12993_v59 }
 0xcb5   :  { %v8386_v2 = vpop.permute.xlu1 %8385 }
 0xcb6   :  { %8388 = vst.msk [vmem:[#allocation3 + $0x1d] sm:$0x1] %vm18155_vm11, %v8386_v2 }
 0xcd5   :  { %v8410_v14 = vpop.permute.xlu0 %8409 }
 0xcd6   :  { %8412 = vst.msk [vmem:[#allocation3 + $0x1f] sm:$0x1] %vm18155_vm11, %v8410_v14 }
 0xcdd   :  { %v8416_v44 = vld [vmem:[#allocation3 + $0x18] sm:$0xff] }
 0xcde   :  { %v8445_v5 = vperm.slane %v8416_v44, 0  ;;  %v8446_v21 = vperm.slane %v8416_v44, 1  ;;  %v8447_v34 = vperm.slane %v8416_v44, 2  ;;  %v8448_v15 = vperm.slane %v8416_v44, 3 }
 0xcdf   :  { %v8449_v26 = vperm.slane %v8416_v44, 4  ;;  %v8450_v47 = vperm.slane %v8416_v44, 5  ;;  %v8451_v9 = vperm.slane %v8416_v44, 6  ;;  %v8452_v60 = vperm.slane %v8416_v44, 7 }
 0xce0   :  { %v8509_v4 = vpack.c.bf16 %v8445_v5, %v8445_v5  ;;  %v8510_v6 = vpack.c.bf16 %v8446_v21, %v8446_v21  ;;  %v8511_v7 = vpack.c.bf16 %v8447_v34, %v8447_v34  ;;  %v8512_v48 = vpack.c.bf16 %v8448_v15, %v8448_v15 }
 0xce1   :  { %v8513_v51 = vpack.c.bf16 %v8449_v26, %v8449_v26  ;;  %v8514_v27 = vpack.c.bf16 %v8450_v47, %v8450_v47  ;;  %v8515_v1 = vpack.c.bf16 %v8451_v9, %v8451_v9  ;;  %v8516_v18 = vpack.c.bf16 %v8452_v60, %v8452_v60 }
 0xce2   :  { %10886 = vmatmul.bf16.vlgmr.msrb.gmra.mxu0 %v8509_v4  ;;  %10899 = vmatmul.bf16.vlgmr.msrb.gmra.mxu1 %v8510_v6 }
 0xce3   :  { %10912 = vmatmul.bf16.vlgmr.msra.gmra.mxu2 %v8511_v7  ;;  %10925 = vmatmul.bf16.vlgmr.msra.gmra.mxu3 %v8512_v48 }
 0xcee   :  { %v10783_v16 = vpop.f32.mrf.mxu0  ;;  %v10796_v61 = vpop.f32.mrf.mxu1 }
 0xcef   :  { %v10784_v42 = vadd.f32 %v10783_v16, %v18928_v40 }
 0xcf1   :  { %v10797_v37 = vadd.f32 %v10796_v61, %v10784_v42 }
 0xcf2   :  { %10938 = vmatmul.bf16.vlgmr.msra.gmra.mxu0 %v8513_v51  ;;  %10951 = vmatmul.bf16.vlgmr.msra.gmra.mxu1 %v8514_v27 }
 0xcf3   :  { %10964 = vmatmul.bf16.vlgmr.msrb.gmra.mxu2 %v8515_v1  ;;  %10977 = vmatmul.bf16.vlgmr.msrb.gmra.mxu3 %v8516_v18 }
 0xcf5   :  { %v10809_v28 = vpop.f32.mrf.mxu2  ;;  %v10822_v55 = vpop.f32.mrf.mxu3 }
 0xcf6   :  { %v10810_v63 = vadd.f32 %v10809_v28, %v10797_v37  ;;  %v10785_v36 = vpop.f32.mrf.mxu0  ;;  %v10798_v25 = vpop.f32.mrf.mxu1 }
 0xcf8   :  { %v10823_v33 = vadd.f32 %v10822_v55, %v10810_v63 }
 0xcfd   :  { %v10811_v57 = vpop.f32.mrf.mxu2  ;;  %v10824_v32 = vpop.f32.mrf.mxu3 }
 0xcfe   :  { %v10835_v50 = vpop.f32.mrf.mxu0  ;;  %v10848_v3 = vpop.f32.mrf.mxu1 }
 0xcff   :  { %v10836_v40 = vadd.f32 %v10835_v50, %v10823_v33 }
 0xd01   :  { %v10849_v20 = vadd.f32 %v10848_v3, %v10836_v40 }
 0xd05   :  { %v10861_v19 = vpop.f32.mrf.mxu2  ;;  %v10874_v2 = vpop.f32.mrf.mxu3 }
 0xd06   :  { %v10862_v13 = vadd.f32 %v10861_v19, %v10849_v20  ;;  %v10837_v45 = vpop.f32.mrf.mxu0  ;;  %v10850_v49 = vpop.f32.mrf.mxu1 }
 0xd08   :  { %v10875_v56 = vadd.f32 %v10874_v2, %v10862_v13 }
 0xd0d   :  { %v10863_v30 = vpop.f32.mrf.mxu2  ;;  %v10876_v38 = vpop.f32.mrf.mxu3 }
 0xd5f   :  { %v10887_v8 = vpop.f32.mrf.mxu0  ;;  %v10900_v23 = vpop.f32.mrf.mxu1 }
 0xd60   :  { %v10888_v31 = vadd.f32 %v10887_v8, %v10875_v56 }
 0xd62   :  { %v10901_v22 = vadd.f32 %v10900_v23, %v10888_v31 }
 0xd66   :  { %v10913_v24 = vpop.f32.mrf.mxu2  ;;  %v10926_v43 = vpop.f32.mrf.mxu3 }
 0xd67   :  { %v10889_v10 = vpop.f32.mrf.mxu0  ;;  %v10902_v54 = vpop.f32.mrf.mxu1  ;;  %v10914_v17 = vadd.f32 %v10913_v24, %v10901_v22 }
 0xd69   :  { %v10927_v58 = vadd.f32 %v10926_v43, %v10914_v17 }
 0xd6e   :  { %v10915_v29 = vpop.f32.mrf.mxu2  ;;  %v10928_v41 = vpop.f32.mrf.mxu3 }
 0xd6f   :  { %v10939_v62 = vpop.f32.mrf.mxu0  ;;  %v10952_v52 = vpop.f32.mrf.mxu1 }
 0xd70   :  { %v10940_v11 = vadd.f32 %v10939_v62, %v10927_v58 }
 0xd72   :  { %v10953_v39 = vadd.f32 %v10952_v52, %v10940_v11 }
 0xd76   :  { %v10965_v46 = vpop.f32.mrf.mxu2  ;;  %v10978_v0 = vpop.f32.mrf.mxu3 }
 0xd77   :  { %v10966_v53 = vadd.f32 %v10965_v46, %v10953_v39  ;;  %v10941_v35 = vpop.f32.mrf.mxu0  ;;  %v10954_v12 = vpop.f32.mrf.mxu1 }
 0xd79   :  { %v10979_v59 = vadd.f32 %v10978_v0, %v10966_v53 }
 0xd7b   :  { %v10982_v14 = vsel %vm657_vm2, %v10979_v59, -inf }
 0xd7c   :  { %10983 = vmax.xlane.f32.xlu1 %v10982_v14 }
 0xd7e   :  { %v10967_v44 = vpop.f32.mrf.mxu2  ;;  %v10980_v5 = vpop.f32.mrf.mxu3 }
 0xdef   :  { %v10984_v21 = vpop.xlane.xlu1 %10983 }
 0xdf0   :  { %v10985_v34 = vsub.f32 %v10979_v59, %v10984_v21 }
 0xdf2   :  { %v10986_v15 = vmul.f32 1.442695, %v10985_v34 }
 0xdf4   :  { %13207 = vpow2.f32 %v10986_v15 }
 0xdfa   :  { %v13208_v4 = vpop.eup %13207 }
 0xdfb   :  { %v10988_v6 = vsel %vm657_vm2, %v13208_v4, 0.0 }
 0xdfc   :  { %10989 = vadd.xlane.f32.xlu2 %v10988_v6 }
 0xe6f   :  { %v10990_v7 = vpop.xlane.xlu2 %10989 }
 0xe70   :  { %13209 = vlog2.f32 %v10990_v7 }
 0xe76   :  { %v13210_v48 = vpop.eup %13209 }
 0xe77   :  { %v10992_v26 = vmul.f32 0.6931472, %v13210_v48 }
 0xe79   :  { %v10993_v47 = vsub.f32 %v10985_v34, %v10992_v26 }
 0xe7b   :  { %10994 = vst [vmem:[%s19143_s7] sm:$0x1] %v10993_v47 }
 0xe7c   :  { %10999 = vsyncpa [#allocation5], 1 }
 0xe7d   :  { %11000 = vsyncpa [#allocation7], 1 }

</bundles_post_ra>
